<compile_context>
chip_gen: v7x
topology: tpu7x:2x2x1
jax: 0.10.0
libtpu: 0.0.40
codegen_flags: <defaults>
</compile_context>

<pallas_src>
import jax
import jax.numpy as jnp
from jax.experimental import pallas as pl
from jax.experimental.pallas import tpu as pltpu


# ----------------------------------------------------------------------------
# Kernel 1: conv1 + ReLU + pool1 + conv2 + ReLU + pool2 (one image per grid step)
# ----------------------------------------------------------------------------
def _conv_stack_kernel(x1_ref, w1_ref, b1_ref, w2_ref, b2_ref, o_ref, p1_ref, patch_ref):
    # x1_ref   : (1, 2, 40, 512) conv1 im2col patches (precomputed in the wrapper):
    #            x1[w, 5*g+dj, 256*par + 16*t + hpos] = xpad[4*t+g, 4*hpos + 2*par + w + dj]
    # w1_ref   : (10, 25)   conv1 weight, tap index 5*di+dj
    # b1_ref   : (10, 1)
    # w2_ref   : (20, 250)  conv2 weight, column index 10*(5*di+dj) + ci
    # b2_ref   : (20, 1)
    # o_ref    : (1, 20, 256) pooled conv2 output, lane = 16*v + q' (torch flatten order)
    # p1_ref   : (40, 384) VMEM scratch: pool1 in a flat, column-parity-split, zero-padded
    #            layout: row (a*2+par)*10 + ci, lane 64 + 16*t + hpos holds
    #            pool1[ci, 2*t + a, 2*hpos + par]; lanes [0,64) and [320,384) stay zero.
    # patch_ref: (250, 256) VMEM scratch: conv2 im2col patch matrix for one (p, w) combo.
    f32 = jnp.float32
    w1 = w1_ref[...]
    b1 = b1_ref[...]
    w2 = w2_ref[...]
    b2 = b2_ref[...]

    # Zero only the padding margins of the pool1 buffer; the interior is fully overwritten.
    # Unconditional per grid step (megacore-safe: never gate scratch init on program_id).
    p1_ref[:, 0:64] = jnp.zeros((40, 64), f32)
    p1_ref[:, 320:384] = jnp.zeros((40, 64), f32)

    # ---- stage 1: conv1 + ReLU + 2x2 maxpool, entirely on the MXU ------------------------
    # For pooled-row parity a, window row p (conv1 row 4t+2a+p) and window column w
    # (conv1 column 2q+w), the conv is one (10,25)@(25,512) matmul on precomputed patches;
    # the 2x2 max-pool is the elementwise max of the four (p, w) results.
    for a in range(2):
        m = None
        for p in range(2):
            g0 = 2 * a + p
            for w in range(2):
                patches = x1_ref[0, w, 5 * g0:5 * g0 + 25, :]            # (25, 512)
                v = jnp.dot(w1, patches, preferred_element_type=f32)     # (10, 512)
                m = v if m is None else jnp.maximum(m, v)
        p1a = jnp.maximum(m + b1, 0.0)       # (10, 512): pool1 rows 2t+a, cols 2*hpos+par
        for par in range(2):
            r0 = (a * 2 + par) * 10
            p1_ref[r0:r0 + 10, 64:320] = p1a[:, par * 256:(par + 1) * 256]

    # lane-position masks for the +-1 within-row shifts used by the conv2 im2col staging
    lane16 = jax.lax.broadcasted_iota(jnp.int32, (1, 256), 1) % 16
    mask_lo = (lane16 != 0).astype(f32)      # shift h = -1: column q'=0 reads padding
    mask_hi = (lane16 != 15).astype(f32)     # shift h = +1: column q'=15 reads padding

    # ---- stage 2: conv2 + ReLU + 2x2 maxpool: im2col staging + one MXU matmul per window
    # position (p, w); the 2x2 pool is the max of the four (20,250)@(250,256) results.
    acc = None
    for p in range(2):
        for w in range(2):
            for di in range(5):
                e = p + di - 2               # needed pool1 row = 2v + e
                a = e % 2
                s = (e - a) // 2             # whole-row shift: -1, 0, +1
                for dj in range(5):
                    c = w + dj - 2           # needed pool1 col = 2q' + c
                    par = c % 2
                    h = (c - par) // 2       # within-row shift: -1, 0, +1
                    tap = 5 * di + dj
                    r0 = (a * 2 + par) * 10
                    off = 64 + 16 * s + h    # static lane offset into the padded buffer
                    vals = p1_ref[r0:r0 + 10, off:off + 256]             # (10, 256)
                    if h == -1:
                        vals = vals * mask_lo
                    elif h == 1:
                        vals = vals * mask_hi
                    patch_ref[10 * tap:10 * tap + 10, :] = vals
            v2 = jnp.dot(w2, patch_ref[...], preferred_element_type=f32)  # (20, 256)
            acc = v2 if acc is None else jnp.maximum(acc, v2)
    o_ref[0] = jnp.maximum(acc + b2, 0.0)    # lane-dense (20, 256) output block


def conv_stack(x1, w1, b1, w2, b2):
    N = x1.shape[0]
    return pl.pallas_call(
        _conv_stack_kernel,
        out_shape=jax.ShapeDtypeStruct((N, 20, 256), jnp.float32),
        grid=(N,),
        in_specs=[
            pl.BlockSpec((1, 2, 40, 512), lambda n: (n, 0, 0, 0)),
            pl.BlockSpec((10, 25), lambda n: (0, 0)),
            pl.BlockSpec((10, 1), lambda n: (0, 0)),
            pl.BlockSpec((20, 250), lambda n: (0, 0)),
            pl.BlockSpec((20, 1), lambda n: (0, 0)),
        ],
        out_specs=pl.BlockSpec((1, 20, 256), lambda n: (n, 0, 0)),
        scratch_shapes=[
            pltpu.VMEM((40, 384), jnp.float32),    # pool1, flat padded parity-split layout
            pltpu.VMEM((250, 256), jnp.float32),   # conv2 im2col patch matrix
        ],
        compiler_params=pltpu.CompilerParams(dimension_semantics=("parallel",)),
    )(x1, w1, b1, w2, b2)


# ----------------------------------------------------------------------------
# Kernel 2: fc1 + ReLU + fc2 fused, single grid step (batch is tiny -> no K streaming)
# ----------------------------------------------------------------------------
def _fc_kernel(x_ref, w1_ref, b1_ref, w2_ref, b2_ref, o_ref):
    h = jnp.dot(x_ref[...], w1_ref[...], preferred_element_type=jnp.float32) + b1_ref[...]
    h = jnp.maximum(h, 0.0)
    o_ref[...] = jnp.dot(h, w2_ref[...], preferred_element_type=jnp.float32) + b2_ref[...]


def fc_forward(feats, w1, b1, w2, b2):
    M = feats.shape[0]
    n_out = w2.shape[1]
    return pl.pallas_call(
        _fc_kernel,
        out_shape=jax.ShapeDtypeStruct((M, n_out), jnp.float32),
    )(feats, w1, b1, w2, b2)


# ----------------------------------------------------------------------------
# Parameters: torch-layout init, then a ONE-TIME repack into kernel layouts
# ----------------------------------------------------------------------------
def init_torch_params(key):
    ks = jax.random.split(key, 8)

    def uinit(k, shape, fan_in):
        bound = 1.0 / jnp.sqrt(float(fan_in))
        return jax.random.uniform(k, shape, jnp.float32, -bound, bound)

    return {
        "conv1_w": uinit(ks[0], (10, 1, 5, 5), 25),
        "conv1_b": uinit(ks[1], (10,), 25),
        "conv2_w": uinit(ks[2], (20, 10, 5, 5), 250),
        "conv2_b": uinit(ks[3], (20,), 250),
        "fc1_w": uinit(ks[4], (128, 20 * 16 * 16), 20 * 16 * 16),   # torch (out, in)
        "fc1_b": uinit(ks[5], (128,), 20 * 16 * 16),
        "fc2_w": uinit(ks[6], (15, 128), 128),
        "fc2_b": uinit(ks[7], (15,), 128),
    }


def prepare_params(tp):
    """Repack torch-layout weights once (no transposes/reshapes in the traced forward)."""
    return {
        "w1": tp["conv1_w"].reshape(10, 25),                              # tap = 5*di+dj
        "b1": tp["conv1_b"].reshape(10, 1),
        "w2": tp["conv2_w"].transpose(0, 2, 3, 1).reshape(20, 250),       # 10*(5di+dj)+ci
        "b2": tp["conv2_b"].reshape(20, 1),
        "fc1_w": tp["fc1_w"].T,                                           # (5120, 128) f32
        "fc1_b": tp["fc1_b"].reshape(1, 128),
        "fc2_w": tp["fc2_w"].T,                                           # (128, 15)  f32
        "fc2_b": tp["fc2_b"].reshape(1, 15),
    }


# ----------------------------------------------------------------------------
# Wrapper-side conv1 im2col (tiny XLA glue, ~160 KB/image, makes stage 1 pure MXU work)
# ----------------------------------------------------------------------------
def _build_conv1_patches(xpad):
    # (N, 68, 68) -> (N, 2, 40, 512):
    # x1[b, w, 5*g+dj, 256*par + 16*t + hpos] = xpad[b, 4*t+g, 4*hpos + 2*par + w + dj]
    N = xpad.shape[0]
    g = jnp.arange(8)
    t = jnp.arange(16)
    rows = 4 * t[None, :] + g[:, None]                                   # (8, 16)
    w = jnp.arange(2)
    dj = jnp.arange(5)
    par = jnp.arange(2)
    hpos = jnp.arange(16)
    cols = (w[:, None, None, None] + dj[None, :, None, None]
            + 2 * par[None, None, :, None] + 4 * hpos[None, None, None, :])  # (2, 5, 2, 16)
    a1 = xpad[:, rows, :]                        # (N, 8, 16, 68)
    a2 = a1[:, :, :, cols]                       # (N, 8, 16, 2, 5, 2, 16)
    a3 = jnp.transpose(a2, (0, 3, 1, 4, 5, 2, 6))  # (N, w, g, dj, par, t, hpos)
    return a3.reshape(N, 2, 40, 512)


# ----------------------------------------------------------------------------
# Forward pass (matches SimpleNet.forward)
# ----------------------------------------------------------------------------
@jax.jit
def simple_net_forward(x_nchw, params):
    x = x_nchw.astype(jnp.float32)
    N = x.shape[0]
    xpad = jnp.pad(x[:, 0], ((0, 0), (2, 2), (2, 2)))                    # (N, 68, 68)
    x1 = _build_conv1_patches(xpad)                                      # (N, 2, 40, 512)
    p2 = conv_stack(x1, params["w1"], params["b1"], params["w2"], params["b2"])  # (N,20,256)
    feats = p2.reshape(N, 20 * 256)                  # free reshape == torch Flatten order
    return fc_forward(feats, params["fc1_w"], params["fc1_b"],
                      params["fc2_w"], params["fc2_b"])


# ----------------------------------------------------------------------------
# Pure-JAX reference (numerical sanity check)
# ----------------------------------------------------------------------------
@jax.jit
def reference_forward(x, tp):
    f32 = jnp.float32
    y = jax.lax.conv_general_dilated(
        x.astype(f32), tp["conv1_w"], (1, 1), ((2, 2), (2, 2)),
        dimension_numbers=("NCHW", "OIHW", "NCHW"))
    y = jax.nn.relu(y + tp["conv1_b"][None, :, None, None])
    y = jax.lax.reduce_window(y, -jnp.inf, jax.lax.max, (1, 1, 2, 2), (1, 1, 2, 2), "VALID")
    y = jax.lax.conv_general_dilated(
        y, tp["conv2_w"], (1, 1), ((2, 2), (2, 2)),
        dimension_numbers=("NCHW", "OIHW", "NCHW"))
    y = jax.nn.relu(y + tp["conv2_b"][None, :, None, None])
    y = jax.lax.reduce_window(y, -jnp.inf, jax.lax.max, (1, 1, 2, 2), (1, 1, 2, 2), "VALID")
    y = y.reshape(y.shape[0], -1)
    y = jax.nn.relu(y @ tp["fc1_w"].T + tp["fc1_b"])
    return y @ tp["fc2_w"].T + tp["fc2_b"]


if __name__ == "__main__":
    key = jax.random.PRNGKey(0)
    k_x, k_p = jax.random.split(key)

    # fc1 = Linear(20*16*16, 128) implies a 64x64 single-channel input image.
    x = jax.random.normal(k_x, (2, 1, 64, 64), dtype=jnp.float32)   # NCHW
    torch_params = init_torch_params(k_p)
    params = prepare_params(torch_params)

    out = jax.block_until_ready(simple_net_forward(x, params))
    assert out.shape == (2, 15), out.shape

    # sanity check vs XLA reference
    ref = jax.block_until_ready(reference_forward(x, torch_params))
    err = float(jnp.max(jnp.abs(out - ref)))
    assert jnp.allclose(out, ref, atol=5e-2, rtol=5e-2), err

    print("KERNEL_OK")
</pallas_src>

<mosaic_0001>
module attributes {stable_mosaic.version = 11 : i64} {
  func.func @_conv_stack_kernel(%arg0: i32, %arg1: memref<1x2x40x512xf32, #tpu.memory_space<vmem>>, %arg2: memref<10x25xf32, #tpu.memory_space<vmem>>, %arg3: memref<10x1xf32, #tpu.memory_space<vmem>>, %arg4: memref<20x250xf32, #tpu.memory_space<vmem>>, %arg5: memref<20x1xf32, #tpu.memory_space<vmem>>, %arg6: memref<1x20x256xf32, #tpu.memory_space<vmem>>, %arg7: memref<40x384xf32, #tpu.memory_space<vmem>>, %arg8: memref<250x256xf32, #tpu.memory_space<vmem>>) attributes {dimension_semantics = [#tpu.dimension_semantics<parallel>], iteration_bounds = array<i64: 2>, scalar_prefetch = 0 : i64, scratch_operands = 2 : i64, tpu.core_type = #tpu.core_type<tc>, window_params = [{transform_indices = @transform_0, window_bounds = array<i64: 1, 2, 40, 512>}, {pipeline_mode = #tpu.pipeline_mode<synchronous>, transform_indices = @transform_1, window_bounds = array<i64: 10, 25>}, {pipeline_mode = #tpu.pipeline_mode<synchronous>, transform_indices = @transform_2, window_bounds = array<i64: 10, 1>}, {pipeline_mode = #tpu.pipeline_mode<synchronous>, transform_indices = @transform_3, window_bounds = array<i64: 20, 250>}, {pipeline_mode = #tpu.pipeline_mode<synchronous>, transform_indices = @transform_4, window_bounds = array<i64: 20, 1>}, {transform_indices = @transform_5, window_bounds = array<i64: 1, 20, 256>}]} {
    %c0 = arith.constant 0 : index
    %c0_0 = arith.constant 0 : index
    %0 = vector.load %arg2[%c0, %c0_0] : memref<10x25xf32, #tpu.memory_space<vmem>>, vector<10x25xf32>
    %c0_1 = arith.constant 0 : index
    %c0_2 = arith.constant 0 : index
    %1 = vector.load %arg3[%c0_1, %c0_2] : memref<10x1xf32, #tpu.memory_space<vmem>>, vector<10x1xf32>
    %c0_3 = arith.constant 0 : index
    %c0_4 = arith.constant 0 : index
    %2 = vector.load %arg4[%c0_3, %c0_4] : memref<20x250xf32, #tpu.memory_space<vmem>>, vector<20x250xf32>
    %c0_5 = arith.constant 0 : index
    %c0_6 = arith.constant 0 : index
    %3 = vector.load %arg5[%c0_5, %c0_6] : memref<20x1xf32, #tpu.memory_space<vmem>>, vector<20x1xf32>
    %cst = arith.constant 0.000000e+00 : f32
    %4 = vector.broadcast %cst : f32 to vector<40x64xf32>
    %c0_7 = arith.constant 0 : index
    %c0_8 = arith.constant 0 : index
    %5 = vector.load %arg7[%c0_7, %c0_8] : memref<40x384xf32, #tpu.memory_space<vmem>>, vector<40x64xf32>
    tpu.vector_store %arg7[%c0_7, %c0_8], %4 {strides = array<i32>} : memref<40x384xf32, #tpu.memory_space<vmem>>, vector<40x64xf32>,
    %cst_9 = arith.constant 0.000000e+00 : f32
    %6 = vector.broadcast %cst_9 : f32 to vector<40x64xf32>
    %c0_10 = arith.constant 0 : index
    %c320 = arith.constant 320 : index
    %7 = vector.load %arg7[%c0_10, %c320] : memref<40x384xf32, #tpu.memory_space<vmem>>, vector<40x64xf32>
    tpu.vector_store %arg7[%c0_10, %c320], %6 {strides = array<i32>} : memref<40x384xf32, #tpu.memory_space<vmem>>, vector<40x64xf32>,
    %c0_11 = arith.constant 0 : index
    %c0_12 = arith.constant 0 : index
    %c0_13 = arith.constant 0 : index
    %c0_14 = arith.constant 0 : index
    %8 = vector.load %arg1[%c0_11, %c0_12, %c0_13, %c0_14] : memref<1x2x40x512xf32, #tpu.memory_space<vmem>>, vector<1x1x25x512xf32>
    %9 = vector.shape_cast %8 : vector<1x1x25x512xf32> to vector<25x512xf32>
    %cst_15 = arith.constant dense<0.000000e+00> : vector<10x512xf32>
    %10 = tpu.matmul %0, %9, %cst_15 {dimension_numbers = #tpu.dot_dimension_numbers<[1], [0], [0], [1], [0, 0, 1, 1], [], []>} : vector<10x25xf32>, vector<25x512xf32>, vector<10x512xf32> -> vector<10x512xf32>
    %c0_16 = arith.constant 0 : index
    %c1 = arith.constant 1 : index
    %c0_17 = arith.constant 0 : index
    %c0_18 = arith.constant 0 : index
    %11 = vector.load %arg1[%c0_16, %c1, %c0_17, %c0_18] : memref<1x2x40x512xf32, #tpu.memory_space<vmem>>, vector<1x1x25x512xf32>
    %12 = vector.shape_cast %11 : vector<1x1x25x512xf32> to vector<25x512xf32>
    %cst_19 = arith.constant dense<0.000000e+00> : vector<10x512xf32>
    %13 = tpu.matmul %0, %12, %cst_19 {dimension_numbers = #tpu.dot_dimension_numbers<[1], [0], [0], [1], [0, 0, 1, 1], [], []>} : vector<10x25xf32>, vector<25x512xf32>, vector<10x512xf32> -> vector<10x512xf32>
    %14 = arith.maximumf %10, %13 : vector<10x512xf32>
    %c0_20 = arith.constant 0 : index
    %c0_21 = arith.constant 0 : index
    %c5 = arith.constant 5 : index
    %c0_22 = arith.constant 0 : index
    %15 = vector.load %arg1[%c0_20, %c0_21, %c5, %c0_22] : memref<1x2x40x512xf32, #tpu.memory_space<vmem>>, vector<1x1x25x512xf32>
    %16 = vector.shape_cast %15 : vector<1x1x25x512xf32> to vector<25x512xf32>
    %cst_23 = arith.constant dense<0.000000e+00> : vector<10x512xf32>
    %17 = tpu.matmul %0, %16, %cst_23 {dimension_numbers = #tpu.dot_dimension_numbers<[1], [0], [0], [1], [0, 0, 1, 1], [], []>} : vector<10x25xf32>, vector<25x512xf32>, vector<10x512xf32> -> vector<10x512xf32>
    %18 = arith.maximumf %14, %17 : vector<10x512xf32>
    %c0_24 = arith.constant 0 : index
    %c1_25 = arith.constant 1 : index
    %c5_26 = arith.constant 5 : index
    %c0_27 = arith.constant 0 : index
    %19 = vector.load %arg1[%c0_24, %c1_25, %c5_26, %c0_27] : memref<1x2x40x512xf32, #tpu.memory_space<vmem>>, vector<1x1x25x512xf32>
    %20 = vector.shape_cast %19 : vector<1x1x25x512xf32> to vector<25x512xf32>
    %cst_28 = arith.constant dense<0.000000e+00> : vector<10x512xf32>
    %21 = tpu.matmul %0, %20, %cst_28 {dimension_numbers = #tpu.dot_dimension_numbers<[1], [0], [0], [1], [0, 0, 1, 1], [], []>} : vector<10x25xf32>, vector<25x512xf32>, vector<10x512xf32> -> vector<10x512xf32>
    %22 = arith.maximumf %18, %21 : vector<10x512xf32>
    %23 = vector.broadcast %1 : vector<10x1xf32> to vector<10x512xf32>
    %24 = arith.addf %22, %23 : vector<10x512xf32>
    %cst_29 = arith.constant 0.000000e+00 : f32
    %25 = vector.broadcast %cst_29 : f32 to vector<10x512xf32>
    %26 = arith.maximumf %24, %25 : vector<10x512xf32>
    %27 = vector.extract_strided_slice %26 {offsets = [0, 0], sizes = [10, 256], strides = [1, 1]} : vector<10x512xf32> to vector<10x256xf32>
    %c0_30 = arith.constant 0 : index
    %c64 = arith.constant 64 : index
    %28 = vector.load %arg7[%c0_30, %c64] : memref<40x384xf32, #tpu.memory_space<vmem>>, vector<10x256xf32>
    tpu.vector_store %arg7[%c0_30, %c64], %27 {strides = array<i32>} : memref<40x384xf32, #tpu.memory_space<vmem>>, vector<10x256xf32>,
    %29 = vector.extract_strided_slice %26 {offsets = [0, 256], sizes = [10, 256], strides = [1, 1]} : vector<10x512xf32> to vector<10x256xf32>
    %c10 = arith.constant 10 : index
    %c64_31 = arith.constant 64 : index
    %30 = vector.load %arg7[%c10, %c64_31] : memref<40x384xf32, #tpu.memory_space<vmem>>, vector<10x256xf32>
    tpu.vector_store %arg7[%c10, %c64_31], %29 {strides = array<i32>} : memref<40x384xf32, #tpu.memory_space<vmem>>, vector<10x256xf32>,
    %c0_32 = arith.constant 0 : index
    %c0_33 = arith.constant 0 : index
    %c10_34 = arith.constant 10 : index
    %c0_35 = arith.constant 0 : index
    %31 = vector.load %arg1[%c0_32, %c0_33, %c10_34, %c0_35] : memref<1x2x40x512xf32, #tpu.memory_space<vmem>>, vector<1x1x25x512xf32>
    %32 = vector.shape_cast %31 : vector<1x1x25x512xf32> to vector<25x512xf32>
    %cst_36 = arith.constant dense<0.000000e+00> : vector<10x512xf32>
    %33 = tpu.matmul %0, %32, %cst_36 {dimension_numbers = #tpu.dot_dimension_numbers<[1], [0], [0], [1], [0, 0, 1, 1], [], []>} : vector<10x25xf32>, vector<25x512xf32>, vector<10x512xf32> -> vector<10x512xf32>
    %c0_37 = arith.constant 0 : index
    %c1_38 = arith.constant 1 : index
    %c10_39 = arith.constant 10 : index
    %c0_40 = arith.constant 0 : index
    %34 = vector.load %arg1[%c0_37, %c1_38, %c10_39, %c0_40] : memref<1x2x40x512xf32, #tpu.memory_space<vmem>>, vector<1x1x25x512xf32>
    %35 = vector.shape_cast %34 : vector<1x1x25x512xf32> to vector<25x512xf32>
    %cst_41 = arith.constant dense<0.000000e+00> : vector<10x512xf32>
    %36 = tpu.matmul %0, %35, %cst_41 {dimension_numbers = #tpu.dot_dimension_numbers<[1], [0], [0], [1], [0, 0, 1, 1], [], []>} : vector<10x25xf32>, vector<25x512xf32>, vector<10x512xf32> -> vector<10x512xf32>
    %37 = arith.maximumf %33, %36 : vector<10x512xf32>
    %c0_42 = arith.constant 0 : index
    %c0_43 = arith.constant 0 : index
    %c15 = arith.constant 15 : index
    %c0_44 = arith.constant 0 : index
    %38 = vector.load %arg1[%c0_42, %c0_43, %c15, %c0_44] : memref<1x2x40x512xf32, #tpu.memory_space<vmem>>, vector<1x1x25x512xf32>
    %39 = vector.shape_cast %38 : vector<1x1x25x512xf32> to vector<25x512xf32>
    %cst_45 = arith.constant dense<0.000000e+00> : vector<10x512xf32>
    %40 = tpu.matmul %0, %39, %cst_45 {dimension_numbers = #tpu.dot_dimension_numbers<[1], [0], [0], [1], [0, 0, 1, 1], [], []>} : vector<10x25xf32>, vector<25x512xf32>, vector<10x512xf32> -> vector<10x512xf32>
    %41 = arith.maximumf %37, %40 : vector<10x512xf32>
    %c0_46 = arith.constant 0 : index
    %c1_47 = arith.constant 1 : index
    %c15_48 = arith.constant 15 : index
    %c0_49 = arith.constant 0 : index
    %42 = vector.load %arg1[%c0_46, %c1_47, %c15_48, %c0_49] : memref<1x2x40x512xf32, #tpu.memory_space<vmem>>, vector<1x1x25x512xf32>
    %43 = vector.shape_cast %42 : vector<1x1x25x512xf32> to vector<25x512xf32>
    %cst_50 = arith.constant dense<0.000000e+00> : vector<10x512xf32>
    %44 = tpu.matmul %0, %43, %cst_50 {dimension_numbers = #tpu.dot_dimension_numbers<[1], [0], [0], [1], [0, 0, 1, 1], [], []>} : vector<10x25xf32>, vector<25x512xf32>, vector<10x512xf32> -> vector<10x512xf32>
    %45 = arith.maximumf %41, %44 : vector<10x512xf32>
    %46 = vector.broadcast %1 : vector<10x1xf32> to vector<10x512xf32>
    %47 = arith.addf %45, %46 : vector<10x512xf32>
    %cst_51 = arith.constant 0.000000e+00 : f32
    %48 = vector.broadcast %cst_51 : f32 to vector<10x512xf32>
    %49 = arith.maximumf %47, %48 : vector<10x512xf32>
    %50 = vector.extract_strided_slice %49 {offsets = [0, 0], sizes = [10, 256], strides = [1, 1]} : vector<10x512xf32> to vector<10x256xf32>
    %c20 = arith.constant 20 : index
    %c64_52 = arith.constant 64 : index
    %51 = vector.load %arg7[%c20, %c64_52] : memref<40x384xf32, #tpu.memory_space<vmem>>, vector<10x256xf32>
    tpu.vector_store %arg7[%c20, %c64_52], %50 {strides = array<i32>} : memref<40x384xf32, #tpu.memory_space<vmem>>, vector<10x256xf32>,
    %52 = vector.extract_strided_slice %49 {offsets = [0, 256], sizes = [10, 256], strides = [1, 1]} : vector<10x512xf32> to vector<10x256xf32>
    %c30 = arith.constant 30 : index
    %c64_53 = arith.constant 64 : index
    %53 = vector.load %arg7[%c30, %c64_53] : memref<40x384xf32, #tpu.memory_space<vmem>>, vector<10x256xf32>
    tpu.vector_store %arg7[%c30, %c64_53], %52 {strides = array<i32>} : memref<40x384xf32, #tpu.memory_space<vmem>>, vector<10x256xf32>,
    %54 = tpu.iota {dimensions = array<i32: 1>} : vector<1x256xi32>
    %c16_i32 = arith.constant 16 : i32
    %c0_i32 = arith.constant 0 : i32
    %55 = arith.cmpi eq, %c16_i32, %c0_i32 : i32
    %c1_i32 = arith.constant 1 : i32
    %56 = arith.select %55, %c1_i32, %c16_i32 : i32
    %57 = vector.broadcast %56 : i32 to vector<1x256xi32>
    %58 = arith.remsi %54, %57 : vector<1x256xi32>
    %c0_i32_54 = arith.constant 0 : i32
    %59 = vector.broadcast %c0_i32_54 : i32 to vector<1x256xi32>
    %60 = arith.cmpi ne, %58, %59 : vector<1x256xi32>
    %c0_i32_55 = arith.constant 0 : i32
    %61 = vector.broadcast %c0_i32_55 : i32 to vector<1x256xi32>
    %62 = arith.cmpi slt, %58, %61 : vector<1x256xi32>
    %c0_i32_56 = arith.constant 0 : i32
    %63 = arith.cmpi slt, %56, %c0_i32_56 : i32
    %64 = vector.broadcast %63 : i1 to vector<1x256xi1>
    %65 = vector.broadcast %64 : vector<1x256xi1> to vector<1x256xi1>
    %66 = arith.xori %62, %65 : vector<1x256xi1>
    %67 = arith.andi %66, %60 : vector<1x256xi1>
    %68 = vector.broadcast %56 : i32 to vector<1x256xi32>
    %69 = arith.addi %58, %68 : vector<1x256xi32>
    %70 = arith.select %67, %69, %58 : vector<1x256xi1>, vector<1x256xi32>
    %c0_i32_57 = arith.constant 0 : i32
    %71 = vector.broadcast %c0_i32_57 : i32 to vector<1x256xi32>
    %72 = arith.cmpi ne, %70, %71 : vector<1x256xi32>
    %73 = arith.extui %72 : vector<1x256xi1> to vector<1x256xi32>
    %74 = arith.sitofp %73 : vector<1x256xi32> to vector<1x256xf32>
    %c15_i32 = arith.constant 15 : i32
    %75 = vector.broadcast %c15_i32 : i32 to vector<1x256xi32>
    %76 = arith.cmpi ne, %70, %75 : vector<1x256xi32>
    %77 = arith.extui %76 : vector<1x256xi1> to vector<1x256xi32>
    %78 = arith.sitofp %77 : vector<1x256xi32> to vector<1x256xf32>
    %c0_58 = arith.constant 0 : index
    %c47 = arith.constant 47 : index
    %79 = vector.load %arg7[%c0_58, %c47] : memref<40x384xf32, #tpu.memory_space<vmem>>, vector<10x256xf32>
    %80 = vector.broadcast %74 : vector<1x256xf32> to vector<10x256xf32>
    %81 = arith.mulf %79, %80 : vector<10x256xf32>
    %c0_59 = arith.constant 0 : index
    %c0_60 = arith.constant 0 : index
    %82 = vector.load %arg8[%c0_59, %c0_60] : memref<250x256xf32, #tpu.memory_space<vmem>>, vector<10x256xf32>
    tpu.vector_store %arg8[%c0_59, %c0_60], %81 {strides = array<i32>} : memref<250x256xf32, #tpu.memory_space<vmem>>, vector<10x256xf32>,
    %c10_61 = arith.constant 10 : index
    %c47_62 = arith.constant 47 : index
    %83 = vector.load %arg7[%c10_61, %c47_62] : memref<40x384xf32, #tpu.memory_space<vmem>>, vector<10x256xf32>
    %84 = vector.broadcast %74 : vector<1x256xf32> to vector<10x256xf32>
    %85 = arith.mulf %83, %84 : vector<10x256xf32>
    %c10_63 = arith.constant 10 : index
    %c0_64 = arith.constant 0 : index
    %86 = vector.load %arg8[%c10_63, %c0_64] : memref<250x256xf32, #tpu.memory_space<vmem>>, vector<10x256xf32>
    tpu.vector_store %arg8[%c10_63, %c0_64], %85 {strides = array<i32>} : memref<250x256xf32, #tpu.memory_space<vmem>>, vector<10x256xf32>,
    %c0_65 = arith.constant 0 : index
    %c48 = arith.constant 48 : index
    %87 = vector.load %arg7[%c0_65, %c48] : memref<40x384xf32, #tpu.memory_space<vmem>>, vector<10x256xf32>
    %c20_66 = arith.constant 20 : index
    %c0_67 = arith.constant 0 : index
    %88 = vector.load %arg8[%c20_66, %c0_67] : memref<250x256xf32, #tpu.memory_space<vmem>>, vector<10x256xf32>
    tpu.vector_store %arg8[%c20_66, %c0_67], %87 {strides = array<i32>} : memref<250x256xf32, #tpu.memory_space<vmem>>, vector<10x256xf32>,
    %c10_68 = arith.constant 10 : index
    %c48_69 = arith.constant 48 : index
    %89 = vector.load %arg7[%c10_68, %c48_69] : memref<40x384xf32, #tpu.memory_space<vmem>>, vector<10x256xf32>
    %c30_70 = arith.constant 30 : index
    %c0_71 = arith.constant 0 : index
    %90 = vector.load %arg8[%c30_70, %c0_71] : memref<250x256xf32, #tpu.memory_space<vmem>>, vector<10x256xf32>
    tpu.vector_store %arg8[%c30_70, %c0_71], %89 {strides = array<i32>} : memref<250x256xf32, #tpu.memory_space<vmem>>, vector<10x256xf32>,
    %c0_72 = arith.constant 0 : index
    %c49 = arith.constant 49 : index
    %91 = vector.load %arg7[%c0_72, %c49] : memref<40x384xf32, #tpu.memory_space<vmem>>, vector<10x256xf32>
    %92 = vector.broadcast %78 : vector<1x256xf32> to vector<10x256xf32>
    %93 = arith.mulf %91, %92 : vector<10x256xf32>
    %c40 = arith.constant 40 : index
    %c0_73 = arith.constant 0 : index
    %94 = vector.load %arg8[%c40, %c0_73] : memref<250x256xf32, #tpu.memory_space<vmem>>, vector<10x256xf32>
    tpu.vector_store %arg8[%c40, %c0_73], %93 {strides = array<i32>} : memref<250x256xf32, #tpu.memory_space<vmem>>, vector<10x256xf32>,
    %c20_74 = arith.constant 20 : index
    %c47_75 = arith.constant 47 : index
    %95 = vector.load %arg7[%c20_74, %c47_75] : memref<40x384xf32, #tpu.memory_space<vmem>>, vector<10x256xf32>
    %96 = vector.broadcast %74 : vector<1x256xf32> to vector<10x256xf32>
    %97 = arith.mulf %95, %96 : vector<10x256xf32>
    %c50 = arith.constant 50 : index
    %c0_76 = arith.constant 0 : index
    %98 = vector.load %arg8[%c50, %c0_76] : memref<250x256xf32, #tpu.memory_space<vmem>>, vector<10x256xf32>
    tpu.vector_store %arg8[%c50, %c0_76], %97 {strides = array<i32>} : memref<250x256xf32, #tpu.memory_space<vmem>>, vector<10x256xf32>,
    %c30_77 = arith.constant 30 : index
    %c47_78 = arith.constant 47 : index
    %99 = vector.load %arg7[%c30_77, %c47_78] : memref<40x384xf32, #tpu.memory_space<vmem>>, vector<10x256xf32>
    %100 = vector.broadcast %74 : vector<1x256xf32> to vector<10x256xf32>
    %101 = arith.mulf %99, %100 : vector<10x256xf32>
    %c60 = arith.constant 60 : index
    %c0_79 = arith.constant 0 : index
    %102 = vector.load %arg8[%c60, %c0_79] : memref<250x256xf32, #tpu.memory_space<vmem>>, vector<10x256xf32>
    tpu.vector_store %arg8[%c60, %c0_79], %101 {strides = array<i32>} : memref<250x256xf32, #tpu.memory_space<vmem>>, vector<10x256xf32>,
    %c20_80 = arith.constant 20 : index
    %c48_81 = arith.constant 48 : index
    %103 = vector.load %arg7[%c20_80, %c48_81] : memref<40x384xf32, #tpu.memory_space<vmem>>, vector<10x256xf32>
    %c70 = arith.constant 70 : index
    %c0_82 = arith.constant 0 : index
    %104 = vector.load %arg8[%c70, %c0_82] : memref<250x256xf32, #tpu.memory_space<vmem>>, vector<10x256xf32>
    tpu.vector_store %arg8[%c70, %c0_82], %103 {strides = array<i32>} : memref<250x256xf32, #tpu.memory_space<vmem>>, vector<10x256xf32>,
    %c30_83 = arith.constant 30 : index
    %c48_84 = arith.constant 48 : index
    %105 = vector.load %arg7[%c30_83, %c48_84] : memref<40x384xf32, #tpu.memory_space<vmem>>, vector<10x256xf32>
    %c80 = arith.constant 80 : index
    %c0_85 = arith.constant 0 : index
    %106 = vector.load %arg8[%c80, %c0_85] : memref<250x256xf32, #tpu.memory_space<vmem>>, vector<10x256xf32>
    tpu.vector_store %arg8[%c80, %c0_85], %105 {strides = array<i32>} : memref<250x256xf32, #tpu.memory_space<vmem>>, vector<10x256xf32>,
    %c20_86 = arith.constant 20 : index
    %c49_87 = arith.constant 49 : index
    %107 = vector.load %arg7[%c20_86, %c49_87] : memref<40x384xf32, #tpu.memory_space<vmem>>, vector<10x256xf32>
    %108 = vector.broadcast %78 : vector<1x256xf32> to vector<10x256xf32>
    %109 = arith.mulf %107, %108 : vector<10x256xf32>
    %c90 = arith.constant 90 : index
    %c0_88 = arith.constant 0 : index
    %110 = vector.load %arg8[%c90, %c0_88] : memref<250x256xf32, #tpu.memory_space<vmem>>, vector<10x256xf32>
    tpu.vector_store %arg8[%c90, %c0_88], %109 {strides = array<i32>} : memref<250x256xf32, #tpu.memory_space<vmem>>, vector<10x256xf32>,
    %c0_89 = arith.constant 0 : index
    %c63 = arith.constant 63 : index
    %111 = vector.load %arg7[%c0_89, %c63] : memref<40x384xf32, #tpu.memory_space<vmem>>, vector<10x256xf32>
    %112 = vector.broadcast %74 : vector<1x256xf32> to vector<10x256xf32>
    %113 = arith.mulf %111, %112 : vector<10x256xf32>
    %c100 = arith.constant 100 : index
    %c0_90 = arith.constant 0 : index
    %114 = vector.load %arg8[%c100, %c0_90] : memref<250x256xf32, #tpu.memory_space<vmem>>, vector<10x256xf32>
    tpu.vector_store %arg8[%c100, %c0_90], %113 {strides = array<i32>} : memref<250x256xf32, #tpu.memory_space<vmem>>, vector<10x256xf32>,
    %c10_91 = arith.constant 10 : index
    %c63_92 = arith.constant 63 : index
    %115 = vector.load %arg7[%c10_91, %c63_92] : memref<40x384xf32, #tpu.memory_space<vmem>>, vector<10x256xf32>
    %116 = vector.broadcast %74 : vector<1x256xf32> to vector<10x256xf32>
    %117 = arith.mulf %115, %116 : vector<10x256xf32>
    %c110 = arith.constant 110 : index
    %c0_93 = arith.constant 0 : index
    %118 = vector.load %arg8[%c110, %c0_93] : memref<250x256xf32, #tpu.memory_space<vmem>>, vector<10x256xf32>
    tpu.vector_store %arg8[%c110, %c0_93], %117 {strides = array<i32>} : memref<250x256xf32, #tpu.memory_space<vmem>>, vector<10x256xf32>,
    %c0_94 = arith.constant 0 : index
    %c64_95 = arith.constant 64 : index
    %119 = vector.load %arg7[%c0_94, %c64_95] : memref<40x384xf32, #tpu.memory_space<vmem>>, vector<10x256xf32>
    %c120 = arith.constant 120 : index
    %c0_96 = arith.constant 0 : index
    %120 = vector.load %arg8[%c120, %c0_96] : memref<250x256xf32, #tpu.memory_space<vmem>>, vector<10x256xf32>
    tpu.vector_store %arg8[%c120, %c0_96], %119 {strides = array<i32>} : memref<250x256xf32, #tpu.memory_space<vmem>>, vector<10x256xf32>,
    %c10_97 = arith.constant 10 : index
    %c64_98 = arith.constant 64 : index
    %121 = vector.load %arg7[%c10_97, %c64_98] : memref<40x384xf32, #tpu.memory_space<vmem>>, vector<10x256xf32>
    %c130 = arith.constant 130 : index
    %c0_99 = arith.constant 0 : index
    %122 = vector.load %arg8[%c130, %c0_99] : memref<250x256xf32, #tpu.memory_space<vmem>>, vector<10x256xf32>
    tpu.vector_store %arg8[%c130, %c0_99], %121 {strides = array<i32>} : memref<250x256xf32, #tpu.memory_space<vmem>>, vector<10x256xf32>,
    %c0_100 = arith.constant 0 : index
    %c65 = arith.constant 65 : index
    %123 = vector.load %arg7[%c0_100, %c65] : memref<40x384xf32, #tpu.memory_space<vmem>>, vector<10x256xf32>
    %124 = vector.broadcast %78 : vector<1x256xf32> to vector<10x256xf32>
    %125 = arith.mulf %123, %124 : vector<10x256xf32>
    %c140 = arith.constant 140 : index
    %c0_101 = arith.constant 0 : index
    %126 = vector.load %arg8[%c140, %c0_101] : memref<250x256xf32, #tpu.memory_space<vmem>>, vector<10x256xf32>
    tpu.vector_store %arg8[%c140, %c0_101], %125 {strides = array<i32>} : memref<250x256xf32, #tpu.memory_space<vmem>>, vector<10x256xf32>,
    %c20_102 = arith.constant 20 : index
    %c63_103 = arith.constant 63 : index
    %127 = vector.load %arg7[%c20_102, %c63_103] : memref<40x384xf32, #tpu.memory_space<vmem>>, vector<10x256xf32>
    %128 = vector.broadcast %74 : vector<1x256xf32> to vector<10x256xf32>
    %129 = arith.mulf %127, %128 : vector<10x256xf32>
    %c150 = arith.constant 150 : index
    %c0_104 = arith.constant 0 : index
    %130 = vector.load %arg8[%c150, %c0_104] : memref<250x256xf32, #tpu.memory_space<vmem>>, vector<10x256xf32>
    tpu.vector_store %arg8[%c150, %c0_104], %129 {strides = array<i32>} : memref<250x256xf32, #tpu.memory_space<vmem>>, vector<10x256xf32>,
    %c30_105 = arith.constant 30 : index
    %c63_106 = arith.constant 63 : index
    %131 = vector.load %arg7[%c30_105, %c63_106] : memref<40x384xf32, #tpu.memory_space<vmem>>, vector<10x256xf32>
    %132 = vector.broadcast %74 : vector<1x256xf32> to vector<10x256xf32>
    %133 = arith.mulf %131, %132 : vector<10x256xf32>
    %c160 = arith.constant 160 : index
    %c0_107 = arith.constant 0 : index
    %134 = vector.load %arg8[%c160, %c0_107] : memref<250x256xf32, #tpu.memory_space<vmem>>, vector<10x256xf32>
    tpu.vector_store %arg8[%c160, %c0_107], %133 {strides = array<i32>} : memref<250x256xf32, #tpu.memory_space<vmem>>, vector<10x256xf32>,
    %c20_108 = arith.constant 20 : index
    %c64_109 = arith.constant 64 : index
    %135 = vector.load %arg7[%c20_108, %c64_109] : memref<40x384xf32, #tpu.memory_space<vmem>>, vector<10x256xf32>
    %c170 = arith.constant 170 : index
    %c0_110 = arith.constant 0 : index
    %136 = vector.load %arg8[%c170, %c0_110] : memref<250x256xf32, #tpu.memory_space<vmem>>, vector<10x256xf32>
    tpu.vector_store %arg8[%c170, %c0_110], %135 {strides = array<i32>} : memref<250x256xf32, #tpu.memory_space<vmem>>, vector<10x256xf32>,
    %c30_111 = arith.constant 30 : index
    %c64_112 = arith.constant 64 : index
    %137 = vector.load %arg7[%c30_111, %c64_112] : memref<40x384xf32, #tpu.memory_space<vmem>>, vector<10x256xf32>
    %c180 = arith.constant 180 : index
    %c0_113 = arith.constant 0 : index
    %138 = vector.load %arg8[%c180, %c0_113] : memref<250x256xf32, #tpu.memory_space<vmem>>, vector<10x256xf32>
    tpu.vector_store %arg8[%c180, %c0_113], %137 {strides = array<i32>} : memref<250x256xf32, #tpu.memory_space<vmem>>, vector<10x256xf32>,
    %c20_114 = arith.constant 20 : index
    %c65_115 = arith.constant 65 : index
    %139 = vector.load %arg7[%c20_114, %c65_115] : memref<40x384xf32, #tpu.memory_space<vmem>>, vector<10x256xf32>
    %140 = vector.broadcast %78 : vector<1x256xf32> to vector<10x256xf32>
    %141 = arith.mulf %139, %140 : vector<10x256xf32>
    %c190 = arith.constant 190 : index
    %c0_116 = arith.constant 0 : index
    %142 = vector.load %arg8[%c190, %c0_116] : memref<250x256xf32, #tpu.memory_space<vmem>>, vector<10x256xf32>
    tpu.vector_store %arg8[%c190, %c0_116], %141 {strides = array<i32>} : memref<250x256xf32, #tpu.memory_space<vmem>>, vector<10x256xf32>,
    %c0_117 = arith.constant 0 : index
    %c79 = arith.constant 79 : index
    %143 = vector.load %arg7[%c0_117, %c79] : memref<40x384xf32, #tpu.memory_space<vmem>>, vector<10x256xf32>
    %144 = vector.broadcast %74 : vector<1x256xf32> to vector<10x256xf32>
    %145 = arith.mulf %143, %144 : vector<10x256xf32>
    %c200 = arith.constant 200 : index
    %c0_118 = arith.constant 0 : index
    %146 = vector.load %arg8[%c200, %c0_118] : memref<250x256xf32, #tpu.memory_space<vmem>>, vector<10x256xf32>
    tpu.vector_store %arg8[%c200, %c0_118], %145 {strides = array<i32>} : memref<250x256xf32, #tpu.memory_space<vmem>>, vector<10x256xf32>,
    %c10_119 = arith.constant 10 : index
    %c79_120 = arith.constant 79 : index
    %147 = vector.load %arg7[%c10_119, %c79_120] : memref<40x384xf32, #tpu.memory_space<vmem>>, vector<10x256xf32>
    %148 = vector.broadcast %74 : vector<1x256xf32> to vector<10x256xf32>
    %149 = arith.mulf %147, %148 : vector<10x256xf32>
    %c210 = arith.constant 210 : index
    %c0_121 = arith.constant 0 : index
    %150 = vector.load %arg8[%c210, %c0_121] : memref<250x256xf32, #tpu.memory_space<vmem>>, vector<10x256xf32>
    tpu.vector_store %arg8[%c210, %c0_121], %149 {strides = array<i32>} : memref<250x256xf32, #tpu.memory_space<vmem>>, vector<10x256xf32>,
    %c0_122 = arith.constant 0 : index
    %c80_123 = arith.constant 80 : index
    %151 = vector.load %arg7[%c0_122, %c80_123] : memref<40x384xf32, #tpu.memory_space<vmem>>, vector<10x256xf32>
    %c220 = arith.constant 220 : index
    %c0_124 = arith.constant 0 : index
    %152 = vector.load %arg8[%c220, %c0_124] : memref<250x256xf32, #tpu.memory_space<vmem>>, vector<10x256xf32>
    tpu.vector_store %arg8[%c220, %c0_124], %151 {strides = array<i32>} : memref<250x256xf32, #tpu.memory_space<vmem>>, vector<10x256xf32>,
    %c10_125 = arith.constant 10 : index
    %c80_126 = arith.constant 80 : index
    %153 = vector.load %arg7[%c10_125, %c80_126] : memref<40x384xf32, #tpu.memory_space<vmem>>, vector<10x256xf32>
    %c230 = arith.constant 230 : index
    %c0_127 = arith.constant 0 : index
    %154 = vector.load %arg8[%c230, %c0_127] : memref<250x256xf32, #tpu.memory_space<vmem>>, vector<10x256xf32>
    tpu.vector_store %arg8[%c230, %c0_127], %153 {strides = array<i32>} : memref<250x256xf32, #tpu.memory_space<vmem>>, vector<10x256xf32>,
    %c0_128 = arith.constant 0 : index
    %c81 = arith.constant 81 : index
    %155 = vector.load %arg7[%c0_128, %c81] : memref<40x384xf32, #tpu.memory_space<vmem>>, vector<10x256xf32>
    %156 = vector.broadcast %78 : vector<1x256xf32> to vector<10x256xf32>
    %157 = arith.mulf %155, %156 : vector<10x256xf32>
    %c240 = arith.constant 240 : index
    %c0_129 = arith.constant 0 : index
    %158 = vector.load %arg8[%c240, %c0_129] : memref<250x256xf32, #tpu.memory_space<vmem>>, vector<10x256xf32>
    tpu.vector_store %arg8[%c240, %c0_129], %157 {strides = array<i32>} : memref<250x256xf32, #tpu.memory_space<vmem>>, vector<10x256xf32>,
    %c0_130 = arith.constant 0 : index
    %c0_131 = arith.constant 0 : index
    %159 = vector.load %arg8[%c0_130, %c0_131] : memref<250x256xf32, #tpu.memory_space<vmem>>, vector<250x256xf32>
    %cst_132 = arith.constant dense<0.000000e+00> : vector<20x256xf32>
    %160 = tpu.matmul %2, %159, %cst_132 {dimension_numbers = #tpu.dot_dimension_numbers<[1], [0], [0], [1], [0, 0, 1, 1], [], []>} : vector<20x250xf32>, vector<250x256xf32>, vector<20x256xf32> -> vector<20x256xf32>
    %c10_133 = arith.constant 10 : index
    %c47_134 = arith.constant 47 : index
    %161 = vector.load %arg7[%c10_133, %c47_134] : memref<40x384xf32, #tpu.memory_space<vmem>>, vector<10x256xf32>
    %162 = vector.broadcast %74 : vector<1x256xf32> to vector<10x256xf32>
    %163 = arith.mulf %161, %162 : vector<10x256xf32>
    %c0_135 = arith.constant 0 : index
    %c0_136 = arith.constant 0 : index
    %164 = vector.load %arg8[%c0_135, %c0_136] : memref<250x256xf32, #tpu.memory_space<vmem>>, vector<10x256xf32>
    tpu.vector_store %arg8[%c0_135, %c0_136], %163 {strides = array<i32>} : memref<250x256xf32, #tpu.memory_space<vmem>>, vector<10x256xf32>,
    %c0_137 = arith.constant 0 : index
    %c48_138 = arith.constant 48 : index
    %165 = vector.load %arg7[%c0_137, %c48_138] : memref<40x384xf32, #tpu.memory_space<vmem>>, vector<10x256xf32>
    %c10_139 = arith.constant 10 : index
    %c0_140 = arith.constant 0 : index
    %166 = vector.load %arg8[%c10_139, %c0_140] : memref<250x256xf32, #tpu.memory_space<vmem>>, vector<10x256xf32>
    tpu.vector_store %arg8[%c10_139, %c0_140], %165 {strides = array<i32>} : memref<250x256xf32, #tpu.memory_space<vmem>>, vector<10x256xf32>,
    %c10_141 = arith.constant 10 : index
    %c48_142 = arith.constant 48 : index
    %167 = vector.load %arg7[%c10_141, %c48_142] : memref<40x384xf32, #tpu.memory_space<vmem>>, vector<10x256xf32>
    %c20_143 = arith.constant 20 : index
    %c0_144 = arith.constant 0 : index
    %168 = vector.load %arg8[%c20_143, %c0_144] : memref<250x256xf32, #tpu.memory_space<vmem>>, vector<10x256xf32>
    tpu.vector_store %arg8[%c20_143, %c0_144], %167 {strides = array<i32>} : memref<250x256xf32, #tpu.memory_space<vmem>>, vector<10x256xf32>,
    %c0_145 = arith.constant 0 : index
    %c49_146 = arith.constant 49 : index
    %169 = vector.load %arg7[%c0_145, %c49_146] : memref<40x384xf32, #tpu.memory_space<vmem>>, vector<10x256xf32>
    %170 = vector.broadcast %78 : vector<1x256xf32> to vector<10x256xf32>
    %171 = arith.mulf %169, %170 : vector<10x256xf32>
    %c30_147 = arith.constant 30 : index
    %c0_148 = arith.constant 0 : index
    %172 = vector.load %arg8[%c30_147, %c0_148] : memref<250x256xf32, #tpu.memory_space<vmem>>, vector<10x256xf32>
    tpu.vector_store %arg8[%c30_147, %c0_148], %171 {strides = array<i32>} : memref<250x256xf32, #tpu.memory_space<vmem>>, vector<10x256xf32>,
    %c10_149 = arith.constant 10 : index
    %c49_150 = arith.constant 49 : index
    %173 = vector.load %arg7[%c10_149, %c49_150] : memref<40x384xf32, #tpu.memory_space<vmem>>, vector<10x256xf32>
    %174 = vector.broadcast %78 : vector<1x256xf32> to vector<10x256xf32>
    %175 = arith.mulf %173, %174 : vector<10x256xf32>
    %c40_151 = arith.constant 40 : index
    %c0_152 = arith.constant 0 : index
    %176 = vector.load %arg8[%c40_151, %c0_152] : memref<250x256xf32, #tpu.memory_space<vmem>>, vector<10x256xf32>
    tpu.vector_store %arg8[%c40_151, %c0_152], %175 {strides = array<i32>} : memref<250x256xf32, #tpu.memory_space<vmem>>, vector<10x256xf32>,
    %c30_153 = arith.constant 30 : index
    %c47_154 = arith.constant 47 : index
    %177 = vector.load %arg7[%c30_153, %c47_154] : memref<40x384xf32, #tpu.memory_space<vmem>>, vector<10x256xf32>
    %178 = vector.broadcast %74 : vector<1x256xf32> to vector<10x256xf32>
    %179 = arith.mulf %177, %178 : vector<10x256xf32>
    %c50_155 = arith.constant 50 : index
    %c0_156 = arith.constant 0 : index
    %180 = vector.load %arg8[%c50_155, %c0_156] : memref<250x256xf32, #tpu.memory_space<vmem>>, vector<10x256xf32>
    tpu.vector_store %arg8[%c50_155, %c0_156], %179 {strides = array<i32>} : memref<250x256xf32, #tpu.memory_space<vmem>>, vector<10x256xf32>,
    %c20_157 = arith.constant 20 : index
    %c48_158 = arith.constant 48 : index
    %181 = vector.load %arg7[%c20_157, %c48_158] : memref<40x384xf32, #tpu.memory_space<vmem>>, vector<10x256xf32>
    %c60_159 = arith.constant 60 : index
    %c0_160 = arith.constant 0 : index
    %182 = vector.load %arg8[%c60_159, %c0_160] : memref<250x256xf32, #tpu.memory_space<vmem>>, vector<10x256xf32>
    tpu.vector_store %arg8[%c60_159, %c0_160], %181 {strides = array<i32>} : memref<250x256xf32, #tpu.memory_space<vmem>>, vector<10x256xf32>,
    %c30_161 = arith.constant 30 : index
    %c48_162 = arith.constant 48 : index
    %183 = vector.load %arg7[%c30_161, %c48_162] : memref<40x384xf32, #tpu.memory_space<vmem>>, vector<10x256xf32>
    %c70_163 = arith.constant 70 : index
    %c0_164 = arith.constant 0 : index
    %184 = vector.load %arg8[%c70_163, %c0_164] : memref<250x256xf32, #tpu.memory_space<vmem>>, vector<10x256xf32>
    tpu.vector_store %arg8[%c70_163, %c0_164], %183 {strides = array<i32>} : memref<250x256xf32, #tpu.memory_space<vmem>>, vector<10x256xf32>,
    %c20_165 = arith.constant 20 : index
    %c49_166 = arith.constant 49 : index
    %185 = vector.load %arg7[%c20_165, %c49_166] : memref<40x384xf32, #tpu.memory_space<vmem>>, vector<10x256xf32>
    %186 = vector.broadcast %78 : vector<1x256xf32> to vector<10x256xf32>
    %187 = arith.mulf %185, %186 : vector<10x256xf32>
    %c80_167 = arith.constant 80 : index
    %c0_168 = arith.constant 0 : index
    %188 = vector.load %arg8[%c80_167, %c0_168] : memref<250x256xf32, #tpu.memory_space<vmem>>, vector<10x256xf32>
    tpu.vector_store %arg8[%c80_167, %c0_168], %187 {strides = array<i32>} : memref<250x256xf32, #tpu.memory_space<vmem>>, vector<10x256xf32>,
    %c30_169 = arith.constant 30 : index
    %c49_170 = arith.constant 49 : index
    %189 = vector.load %arg7[%c30_169, %c49_170] : memref<40x384xf32, #tpu.memory_space<vmem>>, vector<10x256xf32>
    %190 = vector.broadcast %78 : vector<1x256xf32> to vector<10x256xf32>
    %191 = arith.mulf %189, %190 : vector<10x256xf32>
    %c90_171 = arith.constant 90 : index
    %c0_172 = arith.constant 0 : index
    %192 = vector.load %arg8[%c90_171, %c0_172] : memref<250x256xf32, #tpu.memory_space<vmem>>, vector<10x256xf32>
    tpu.vector_store %arg8[%c90_171, %c0_172], %191 {strides = array<i32>} : memref<250x256xf32, #tpu.memory_space<vmem>>, vector<10x256xf32>,
    %c10_173 = arith.constant 10 : index
    %c63_174 = arith.constant 63 : index
    %193 = vector.load %arg7[%c10_173, %c63_174] : memref<40x384xf32, #tpu.memory_space<vmem>>, vector<10x256xf32>
    %194 = vector.broadcast %74 : vector<1x256xf32> to vector<10x256xf32>
    %195 = arith.mulf %193, %194 : vector<10x256xf32>
    %c100_175 = arith.constant 100 : index
    %c0_176 = arith.constant 0 : index
    %196 = vector.load %arg8[%c100_175, %c0_176] : memref<250x256xf32, #tpu.memory_space<vmem>>, vector<10x256xf32>
    tpu.vector_store %arg8[%c100_175, %c0_176], %195 {strides = array<i32>} : memref<250x256xf32, #tpu.memory_space<vmem>>, vector<10x256xf32>,
    %c0_177 = arith.constant 0 : index
    %c64_178 = arith.constant 64 : index
    %197 = vector.load %arg7[%c0_177, %c64_178] : memref<40x384xf32, #tpu.memory_space<vmem>>, vector<10x256xf32>
    %c110_179 = arith.constant 110 : index
    %c0_180 = arith.constant 0 : index
    %198 = vector.load %arg8[%c110_179, %c0_180] : memref<250x256xf32, #tpu.memory_space<vmem>>, vector<10x256xf32>
    tpu.vector_store %arg8[%c110_179, %c0_180], %197 {strides = array<i32>} : memref<250x256xf32, #tpu.memory_space<vmem>>, vector<10x256xf32>,
    %c10_181 = arith.constant 10 : index
    %c64_182 = arith.constant 64 : index
    %199 = vector.load %arg7[%c10_181, %c64_182] : memref<40x384xf32, #tpu.memory_space<vmem>>, vector<10x256xf32>
    %c120_183 = arith.constant 120 : index
    %c0_184 = arith.constant 0 : index
    %200 = vector.load %arg8[%c120_183, %c0_184] : memref<250x256xf32, #tpu.memory_space<vmem>>, vector<10x256xf32>
    tpu.vector_store %arg8[%c120_183, %c0_184], %199 {strides = array<i32>} : memref<250x256xf32, #tpu.memory_space<vmem>>, vector<10x256xf32>,
    %c0_185 = arith.constant 0 : index
    %c65_186 = arith.constant 65 : index
    %201 = vector.load %arg7[%c0_185, %c65_186] : memref<40x384xf32, #tpu.memory_space<vmem>>, vector<10x256xf32>
    %202 = vector.broadcast %78 : vector<1x256xf32> to vector<10x256xf32>
    %203 = arith.mulf %201, %202 : vector<10x256xf32>
    %c130_187 = arith.constant 130 : index
    %c0_188 = arith.constant 0 : index
    %204 = vector.load %arg8[%c130_187, %c0_188] : memref<250x256xf32, #tpu.memory_space<vmem>>, vector<10x256xf32>
    tpu.vector_store %arg8[%c130_187, %c0_188], %203 {strides = array<i32>} : memref<250x256xf32, #tpu.memory_space<vmem>>, vector<10x256xf32>,
    %c10_189 = arith.constant 10 : index
    %c65_190 = arith.constant 65 : index
    %205 = vector.load %arg7[%c10_189, %c65_190] : memref<40x384xf32, #tpu.memory_space<vmem>>, vector<10x256xf32>
    %206 = vector.broadcast %78 : vector<1x256xf32> to vector<10x256xf32>
    %207 = arith.mulf %205, %206 : vector<10x256xf32>
    %c140_191 = arith.constant 140 : index
    %c0_192 = arith.constant 0 : index
    %208 = vector.load %arg8[%c140_191, %c0_192] : memref<250x256xf32, #tpu.memory_space<vmem>>, vector<10x256xf32>
    tpu.vector_store %arg8[%c140_191, %c0_192], %207 {strides = array<i32>} : memref<250x256xf32, #tpu.memory_space<vmem>>, vector<10x256xf32>,
    %c30_193 = arith.constant 30 : index
    %c63_194 = arith.constant 63 : index
    %209 = vector.load %arg7[%c30_193, %c63_194] : memref<40x384xf32, #tpu.memory_space<vmem>>, vector<10x256xf32>
    %210 = vector.broadcast %74 : vector<1x256xf32> to vector<10x256xf32>
    %211 = arith.mulf %209, %210 : vector<10x256xf32>
    %c150_195 = arith.constant 150 : index
    %c0_196 = arith.constant 0 : index
    %212 = vector.load %arg8[%c150_195, %c0_196] : memref<250x256xf32, #tpu.memory_space<vmem>>, vector<10x256xf32>
    tpu.vector_store %arg8[%c150_195, %c0_196], %211 {strides = array<i32>} : memref<250x256xf32, #tpu.memory_space<vmem>>, vector<10x256xf32>,
    %c20_197 = arith.constant 20 : index
    %c64_198 = arith.constant 64 : index
    %213 = vector.load %arg7[%c20_197, %c64_198] : memref<40x384xf32, #tpu.memory_space<vmem>>, vector<10x256xf32>
    %c160_199 = arith.constant 160 : index
    %c0_200 = arith.constant 0 : index
    %214 = vector.load %arg8[%c160_199, %c0_200] : memref<250x256xf32, #tpu.memory_space<vmem>>, vector<10x256xf32>
    tpu.vector_store %arg8[%c160_199, %c0_200], %213 {strides = array<i32>} : memref<250x256xf32, #tpu.memory_space<vmem>>, vector<10x256xf32>,
    %c30_201 = arith.constant 30 : index
    %c64_202 = arith.constant 64 : index
    %215 = vector.load %arg7[%c30_201, %c64_202] : memref<40x384xf32, #tpu.memory_space<vmem>>, vector<10x256xf32>
    %c170_203 = arith.constant 170 : index
    %c0_204 = arith.constant 0 : index
    %216 = vector.load %arg8[%c170_203, %c0_204] : memref<250x256xf32, #tpu.memory_space<vmem>>, vector<10x256xf32>
    tpu.vector_store %arg8[%c170_203, %c0_204], %215 {strides = array<i32>} : memref<250x256xf32, #tpu.memory_space<vmem>>, vector<10x256xf32>,
    %c20_205 = arith.constant 20 : index
    %c65_206 = arith.constant 65 : index
    %217 = vector.load %arg7[%c20_205, %c65_206] : memref<40x384xf32, #tpu.memory_space<vmem>>, vector<10x256xf32>
    %218 = vector.broadcast %78 : vector<1x256xf32> to vector<10x256xf32>
    %219 = arith.mulf %217, %218 : vector<10x256xf32>
    %c180_207 = arith.constant 180 : index
    %c0_208 = arith.constant 0 : index
    %220 = vector.load %arg8[%c180_207, %c0_208] : memref<250x256xf32, #tpu.memory_space<vmem>>, vector<10x256xf32>
    tpu.vector_store %arg8[%c180_207, %c0_208], %219 {strides = array<i32>} : memref<250x256xf32, #tpu.memory_space<vmem>>, vector<10x256xf32>,
    %c30_209 = arith.constant 30 : index
    %c65_210 = arith.constant 65 : index
    %221 = vector.load %arg7[%c30_209, %c65_210] : memref<40x384xf32, #tpu.memory_space<vmem>>, vector<10x256xf32>
    %222 = vector.broadcast %78 : vector<1x256xf32> to vector<10x256xf32>
    %223 = arith.mulf %221, %222 : vector<10x256xf32>
    %c190_211 = arith.constant 190 : index
    %c0_212 = arith.constant 0 : index
    %224 = vector.load %arg8[%c190_211, %c0_212] : memref<250x256xf32, #tpu.memory_space<vmem>>, vector<10x256xf32>
    tpu.vector_store %arg8[%c190_211, %c0_212], %223 {strides = array<i32>} : memref<250x256xf32, #tpu.memory_space<vmem>>, vector<10x256xf32>,
    %c10_213 = arith.constant 10 : index
    %c79_214 = arith.constant 79 : index
    %225 = vector.load %arg7[%c10_213, %c79_214] : memref<40x384xf32, #tpu.memory_space<vmem>>, vector<10x256xf32>
    %226 = vector.broadcast %74 : vector<1x256xf32> to vector<10x256xf32>
    %227 = arith.mulf %225, %226 : vector<10x256xf32>
    %c200_215 = arith.constant 200 : index
    %c0_216 = arith.constant 0 : index
    %228 = vector.load %arg8[%c200_215, %c0_216] : memref<250x256xf32, #tpu.memory_space<vmem>>, vector<10x256xf32>
    tpu.vector_store %arg8[%c200_215, %c0_216], %227 {strides = array<i32>} : memref<250x256xf32, #tpu.memory_space<vmem>>, vector<10x256xf32>,
    %c0_217 = arith.constant 0 : index
    %c80_218 = arith.constant 80 : index
    %229 = vector.load %arg7[%c0_217, %c80_218] : memref<40x384xf32, #tpu.memory_space<vmem>>, vector<10x256xf32>
    %c210_219 = arith.constant 210 : index
    %c0_220 = arith.constant 0 : index
    %230 = vector.load %arg8[%c210_219, %c0_220] : memref<250x256xf32, #tpu.memory_space<vmem>>, vector<10x256xf32>
    tpu.vector_store %arg8[%c210_219, %c0_220], %229 {strides = array<i32>} : memref<250x256xf32, #tpu.memory_space<vmem>>, vector<10x256xf32>,
    %c10_221 = arith.constant 10 : index
    %c80_222 = arith.constant 80 : index
    %231 = vector.load %arg7[%c10_221, %c80_222] : memref<40x384xf32, #tpu.memory_space<vmem>>, vector<10x256xf32>
    %c220_223 = arith.constant 220 : index
    %c0_224 = arith.constant 0 : index
    %232 = vector.load %arg8[%c220_223, %c0_224] : memref<250x256xf32, #tpu.memory_space<vmem>>, vector<10x256xf32>
    tpu.vector_store %arg8[%c220_223, %c0_224], %231 {strides = array<i32>} : memref<250x256xf32, #tpu.memory_space<vmem>>, vector<10x256xf32>,
    %c0_225 = arith.constant 0 : index
    %c81_226 = arith.constant 81 : index
    %233 = vector.load %arg7[%c0_225, %c81_226] : memref<40x384xf32, #tpu.memory_space<vmem>>, vector<10x256xf32>
    %234 = vector.broadcast %78 : vector<1x256xf32> to vector<10x256xf32>
    %235 = arith.mulf %233, %234 : vector<10x256xf32>
    %c230_227 = arith.constant 230 : index
    %c0_228 = arith.constant 0 : index
    %236 = vector.load %arg8[%c230_227, %c0_228] : memref<250x256xf32, #tpu.memory_space<vmem>>, vector<10x256xf32>
    tpu.vector_store %arg8[%c230_227, %c0_228], %235 {strides = array<i32>} : memref<250x256xf32, #tpu.memory_space<vmem>>, vector<10x256xf32>,
    %c10_229 = arith.constant 10 : index
    %c81_230 = arith.constant 81 : index
    %237 = vector.load %arg7[%c10_229, %c81_230] : memref<40x384xf32, #tpu.memory_space<vmem>>, vector<10x256xf32>
    %238 = vector.broadcast %78 : vector<1x256xf32> to vector<10x256xf32>
    %239 = arith.mulf %237, %238 : vector<10x256xf32>
    %c240_231 = arith.constant 240 : index
    %c0_232 = arith.constant 0 : index
    %240 = vector.load %arg8[%c240_231, %c0_232] : memref<250x256xf32, #tpu.memory_space<vmem>>, vector<10x256xf32>
    tpu.vector_store %arg8[%c240_231, %c0_232], %239 {strides = array<i32>} : memref<250x256xf32, #tpu.memory_space<vmem>>, vector<10x256xf32>,
    %c0_233 = arith.constant 0 : index
    %c0_234 = arith.constant 0 : index
    %241 = vector.load %arg8[%c0_233, %c0_234] : memref<250x256xf32, #tpu.memory_space<vmem>>, vector<250x256xf32>
    %cst_235 = arith.constant dense<0.000000e+00> : vector<20x256xf32>
    %242 = tpu.matmul %2, %241, %cst_235 {dimension_numbers = #tpu.dot_dimension_numbers<[1], [0], [0], [1], [0, 0, 1, 1], [], []>} : vector<20x250xf32>, vector<250x256xf32>, vector<20x256xf32> -> vector<20x256xf32>
    %243 = arith.maximumf %160, %242 : vector<20x256xf32>
    %c20_236 = arith.constant 20 : index
    %c47_237 = arith.constant 47 : index
    %244 = vector.load %arg7[%c20_236, %c47_237] : memref<40x384xf32, #tpu.memory_space<vmem>>, vector<10x256xf32>
    %245 = vector.broadcast %74 : vector<1x256xf32> to vector<10x256xf32>
    %246 = arith.mulf %244, %245 : vector<10x256xf32>
    %c0_238 = arith.constant 0 : index
    %c0_239 = arith.constant 0 : index
    %247 = vector.load %arg8[%c0_238, %c0_239] : memref<250x256xf32, #tpu.memory_space<vmem>>, vector<10x256xf32>
    tpu.vector_store %arg8[%c0_238, %c0_239], %246 {strides = array<i32>} : memref<250x256xf32, #tpu.memory_space<vmem>>, vector<10x256xf32>,
    %c30_240 = arith.constant 30 : index
    %c47_241 = arith.constant 47 : index
    %248 = vector.load %arg7[%c30_240, %c47_241] : memref<40x384xf32, #tpu.memory_space<vmem>>, vector<10x256xf32>
    %249 = vector.broadcast %74 : vector<1x256xf32> to vector<10x256xf32>
    %250 = arith.mulf %248, %249 : vector<10x256xf32>
    %c10_242 = arith.constant 10 : index
    %c0_243 = arith.constant 0 : index
    %251 = vector.load %arg8[%c10_242, %c0_243] : memref<250x256xf32, #tpu.memory_space<vmem>>, vector<10x256xf32>
    tpu.vector_store %arg8[%c10_242, %c0_243], %250 {strides = array<i32>} : memref<250x256xf32, #tpu.memory_space<vmem>>, vector<10x256xf32>,
    %c20_244 = arith.constant 20 : index
    %c48_245 = arith.constant 48 : index
    %252 = vector.load %arg7[%c20_244, %c48_245] : memref<40x384xf32, #tpu.memory_space<vmem>>, vector<10x256xf32>
    %c20_246 = arith.constant 20 : index
    %c0_247 = arith.constant 0 : index
    %253 = vector.load %arg8[%c20_246, %c0_247] : memref<250x256xf32, #tpu.memory_space<vmem>>, vector<10x256xf32>
    tpu.vector_store %arg8[%c20_246, %c0_247], %252 {strides = array<i32>} : memref<250x256xf32, #tpu.memory_space<vmem>>, vector<10x256xf32>,
    %c30_248 = arith.constant 30 : index
    %c48_249 = arith.constant 48 : index
    %254 = vector.load %arg7[%c30_248, %c48_249] : memref<40x384xf32, #tpu.memory_space<vmem>>, vector<10x256xf32>
    %c30_250 = arith.constant 30 : index
    %c0_251 = arith.constant 0 : index
    %255 = vector.load %arg8[%c30_250, %c0_251] : memref<250x256xf32, #tpu.memory_space<vmem>>, vector<10x256xf32>
    tpu.vector_store %arg8[%c30_250, %c0_251], %254 {strides = array<i32>} : memref<250x256xf32, #tpu.memory_space<vmem>>, vector<10x256xf32>,
    %c20_252 = arith.constant 20 : index
    %c49_253 = arith.constant 49 : index
    %256 = vector.load %arg7[%c20_252, %c49_253] : memref<40x384xf32, #tpu.memory_space<vmem>>, vector<10x256xf32>
    %257 = vector.broadcast %78 : vector<1x256xf32> to vector<10x256xf32>
    %258 = arith.mulf %256, %257 : vector<10x256xf32>
    %c40_254 = arith.constant 40 : index
    %c0_255 = arith.constant 0 : index
    %259 = vector.load %arg8[%c40_254, %c0_255] : memref<250x256xf32, #tpu.memory_space<vmem>>, vector<10x256xf32>
    tpu.vector_store %arg8[%c40_254, %c0_255], %258 {strides = array<i32>} : memref<250x256xf32, #tpu.memory_space<vmem>>, vector<10x256xf32>,
    %c0_256 = arith.constant 0 : index
    %c63_257 = arith.constant 63 : index
    %260 = vector.load %arg7[%c0_256, %c63_257] : memref<40x384xf32, #tpu.memory_space<vmem>>, vector<10x256xf32>
    %261 = vector.broadcast %74 : vector<1x256xf32> to vector<10x256xf32>
    %262 = arith.mulf %260, %261 : vector<10x256xf32>
    %c50_258 = arith.constant 50 : index
    %c0_259 = arith.constant 0 : index
    %263 = vector.load %arg8[%c50_258, %c0_259] : memref<250x256xf32, #tpu.memory_space<vmem>>, vector<10x256xf32>
    tpu.vector_store %arg8[%c50_258, %c0_259], %262 {strides = array<i32>} : memref<250x256xf32, #tpu.memory_space<vmem>>, vector<10x256xf32>,
    %c10_260 = arith.constant 10 : index
    %c63_261 = arith.constant 63 : index
    %264 = vector.load %arg7[%c10_260, %c63_261] : memref<40x384xf32, #tpu.memory_space<vmem>>, vector<10x256xf32>
    %265 = vector.broadcast %74 : vector<1x256xf32> to vector<10x256xf32>
    %266 = arith.mulf %264, %265 : vector<10x256xf32>
    %c60_262 = arith.constant 60 : index
    %c0_263 = arith.constant 0 : index
    %267 = vector.load %arg8[%c60_262, %c0_263] : memref<250x256xf32, #tpu.memory_space<vmem>>, vector<10x256xf32>
    tpu.vector_store %arg8[%c60_262, %c0_263], %266 {strides = array<i32>} : memref<250x256xf32, #tpu.memory_space<vmem>>, vector<10x256xf32>,
    %c0_264 = arith.constant 0 : index
    %c64_265 = arith.constant 64 : index
    %268 = vector.load %arg7[%c0_264, %c64_265] : memref<40x384xf32, #tpu.memory_space<vmem>>, vector<10x256xf32>
    %c70_266 = arith.constant 70 : index
    %c0_267 = arith.constant 0 : index
    %269 = vector.load %arg8[%c70_266, %c0_267] : memref<250x256xf32, #tpu.memory_space<vmem>>, vector<10x256xf32>
    tpu.vector_store %arg8[%c70_266, %c0_267], %268 {strides = array<i32>} : memref<250x256xf32, #tpu.memory_space<vmem>>, vector<10x256xf32>,
    %c10_268 = arith.constant 10 : index
    %c64_269 = arith.constant 64 : index
    %270 = vector.load %arg7[%c10_268, %c64_269] : memref<40x384xf32, #tpu.memory_space<vmem>>, vector<10x256xf32>
    %c80_270 = arith.constant 80 : index
    %c0_271 = arith.constant 0 : index
    %271 = vector.load %arg8[%c80_270, %c0_271] : memref<250x256xf32, #tpu.memory_space<vmem>>, vector<10x256xf32>
    tpu.vector_store %arg8[%c80_270, %c0_271], %270 {strides = array<i32>} : memref<250x256xf32, #tpu.memory_space<vmem>>, vector<10x256xf32>,
    %c0_272 = arith.constant 0 : index
    %c65_273 = arith.constant 65 : index
    %272 = vector.load %arg7[%c0_272, %c65_273] : memref<40x384xf32, #tpu.memory_space<vmem>>, vector<10x256xf32>
    %273 = vector.broadcast %78 : vector<1x256xf32> to vector<10x256xf32>
    %274 = arith.mulf %272, %273 : vector<10x256xf32>
    %c90_274 = arith.constant 90 : index
    %c0_275 = arith.constant 0 : index
    %275 = vector.load %arg8[%c90_274, %c0_275] : memref<250x256xf32, #tpu.memory_space<vmem>>, vector<10x256xf32>
    tpu.vector_store %arg8[%c90_274, %c0_275], %274 {strides = array<i32>} : memref<250x256xf32, #tpu.memory_space<vmem>>, vector<10x256xf32>,
    %c20_276 = arith.constant 20 : index
    %c63_277 = arith.constant 63 : index
    %276 = vector.load %arg7[%c20_276, %c63_277] : memref<40x384xf32, #tpu.memory_space<vmem>>, vector<10x256xf32>
    %277 = vector.broadcast %74 : vector<1x256xf32> to vector<10x256xf32>
    %278 = arith.mulf %276, %277 : vector<10x256xf32>
    %c100_278 = arith.constant 100 : index
    %c0_279 = arith.constant 0 : index
    %279 = vector.load %arg8[%c100_278, %c0_279] : memref<250x256xf32, #tpu.memory_space<vmem>>, vector<10x256xf32>
    tpu.vector_store %arg8[%c100_278, %c0_279], %278 {strides = array<i32>} : memref<250x256xf32, #tpu.memory_space<vmem>>, vector<10x256xf32>,
    %c30_280 = arith.constant 30 : index
    %c63_281 = arith.constant 63 : index
    %280 = vector.load %arg7[%c30_280, %c63_281] : memref<40x384xf32, #tpu.memory_space<vmem>>, vector<10x256xf32>
    %281 = vector.broadcast %74 : vector<1x256xf32> to vector<10x256xf32>
    %282 = arith.mulf %280, %281 : vector<10x256xf32>
    %c110_282 = arith.constant 110 : index
    %c0_283 = arith.constant 0 : index
    %283 = vector.load %arg8[%c110_282, %c0_283] : memref<250x256xf32, #tpu.memory_space<vmem>>, vector<10x256xf32>
    tpu.vector_store %arg8[%c110_282, %c0_283], %282 {strides = array<i32>} : memref<250x256xf32, #tpu.memory_space<vmem>>, vector<10x256xf32>,
    %c20_284 = arith.constant 20 : index
    %c64_285 = arith.constant 64 : index
    %284 = vector.load %arg7[%c20_284, %c64_285] : memref<40x384xf32, #tpu.memory_space<vmem>>, vector<10x256xf32>
    %c120_286 = arith.constant 120 : index
    %c0_287 = arith.constant 0 : index
    %285 = vector.load %arg8[%c120_286, %c0_287] : memref<250x256xf32, #tpu.memory_space<vmem>>, vector<10x256xf32>
    tpu.vector_store %arg8[%c120_286, %c0_287], %284 {strides = array<i32>} : memref<250x256xf32, #tpu.memory_space<vmem>>, vector<10x256xf32>,
    %c30_288 = arith.constant 30 : index
    %c64_289 = arith.constant 64 : index
    %286 = vector.load %arg7[%c30_288, %c64_289] : memref<40x384xf32, #tpu.memory_space<vmem>>, vector<10x256xf32>
    %c130_290 = arith.constant 130 : index
    %c0_291 = arith.constant 0 : index
    %287 = vector.load %arg8[%c130_290, %c0_291] : memref<250x256xf32, #tpu.memory_space<vmem>>, vector<10x256xf32>
    tpu.vector_store %arg8[%c130_290, %c0_291], %286 {strides = array<i32>} : memref<250x256xf32, #tpu.memory_space<vmem>>, vector<10x256xf32>,
    %c20_292 = arith.constant 20 : index
    %c65_293 = arith.constant 65 : index
    %288 = vector.load %arg7[%c20_292, %c65_293] : memref<40x384xf32, #tpu.memory_space<vmem>>, vector<10x256xf32>
    %289 = vector.broadcast %78 : vector<1x256xf32> to vector<10x256xf32>
    %290 = arith.mulf %288, %289 : vector<10x256xf32>
    %c140_294 = arith.constant 140 : index
    %c0_295 = arith.constant 0 : index
    %291 = vector.load %arg8[%c140_294, %c0_295] : memref<250x256xf32, #tpu.memory_space<vmem>>, vector<10x256xf32>
    tpu.vector_store %arg8[%c140_294, %c0_295], %290 {strides = array<i32>} : memref<250x256xf32, #tpu.memory_space<vmem>>, vector<10x256xf32>,
    %c0_296 = arith.constant 0 : index
    %c79_297 = arith.constant 79 : index
    %292 = vector.load %arg7[%c0_296, %c79_297] : memref<40x384xf32, #tpu.memory_space<vmem>>, vector<10x256xf32>
    %293 = vector.broadcast %74 : vector<1x256xf32> to vector<10x256xf32>
    %294 = arith.mulf %292, %293 : vector<10x256xf32>
    %c150_298 = arith.constant 150 : index
    %c0_299 = arith.constant 0 : index
    %295 = vector.load %arg8[%c150_298, %c0_299] : memref<250x256xf32, #tpu.memory_space<vmem>>, vector<10x256xf32>
    tpu.vector_store %arg8[%c150_298, %c0_299], %294 {strides = array<i32>} : memref<250x256xf32, #tpu.memory_space<vmem>>, vector<10x256xf32>,
    %c10_300 = arith.constant 10 : index
    %c79_301 = arith.constant 79 : index
    %296 = vector.load %arg7[%c10_300, %c79_301] : memref<40x384xf32, #tpu.memory_space<vmem>>, vector<10x256xf32>
    %297 = vector.broadcast %74 : vector<1x256xf32> to vector<10x256xf32>
    %298 = arith.mulf %296, %297 : vector<10x256xf32>
    %c160_302 = arith.constant 160 : index
    %c0_303 = arith.constant 0 : index
    %299 = vector.load %arg8[%c160_302, %c0_303] : memref<250x256xf32, #tpu.memory_space<vmem>>, vector<10x256xf32>
    tpu.vector_store %arg8[%c160_302, %c0_303], %298 {strides = array<i32>} : memref<250x256xf32, #tpu.memory_space<vmem>>, vector<10x256xf32>,
    %c0_304 = arith.constant 0 : index
    %c80_305 = arith.constant 80 : index
    %300 = vector.load %arg7[%c0_304, %c80_305] : memref<40x384xf32, #tpu.memory_space<vmem>>, vector<10x256xf32>
    %c170_306 = arith.constant 170 : index
    %c0_307 = arith.constant 0 : index
    %301 = vector.load %arg8[%c170_306, %c0_307] : memref<250x256xf32, #tpu.memory_space<vmem>>, vector<10x256xf32>
    tpu.vector_store %arg8[%c170_306, %c0_307], %300 {strides = array<i32>} : memref<250x256xf32, #tpu.memory_space<vmem>>, vector<10x256xf32>,
    %c10_308 = arith.constant 10 : index
    %c80_309 = arith.constant 80 : index
    %302 = vector.load %arg7[%c10_308, %c80_309] : memref<40x384xf32, #tpu.memory_space<vmem>>, vector<10x256xf32>
    %c180_310 = arith.constant 180 : index
    %c0_311 = arith.constant 0 : index
    %303 = vector.load %arg8[%c180_310, %c0_311] : memref<250x256xf32, #tpu.memory_space<vmem>>, vector<10x256xf32>
    tpu.vector_store %arg8[%c180_310, %c0_311], %302 {strides = array<i32>} : memref<250x256xf32, #tpu.memory_space<vmem>>, vector<10x256xf32>,
    %c0_312 = arith.constant 0 : index
    %c81_313 = arith.constant 81 : index
    %304 = vector.load %arg7[%c0_312, %c81_313] : memref<40x384xf32, #tpu.memory_space<vmem>>, vector<10x256xf32>
    %305 = vector.broadcast %78 : vector<1x256xf32> to vector<10x256xf32>
    %306 = arith.mulf %304, %305 : vector<10x256xf32>
    %c190_314 = arith.constant 190 : index
    %c0_315 = arith.constant 0 : index
    %307 = vector.load %arg8[%c190_314, %c0_315] : memref<250x256xf32, #tpu.memory_space<vmem>>, vector<10x256xf32>
    tpu.vector_store %arg8[%c190_314, %c0_315], %306 {strides = array<i32>} : memref<250x256xf32, #tpu.memory_space<vmem>>, vector<10x256xf32>,
    %c20_316 = arith.constant 20 : index
    %c79_317 = arith.constant 79 : index
    %308 = vector.load %arg7[%c20_316, %c79_317] : memref<40x384xf32, #tpu.memory_space<vmem>>, vector<10x256xf32>
    %309 = vector.broadcast %74 : vector<1x256xf32> to vector<10x256xf32>
    %310 = arith.mulf %308, %309 : vector<10x256xf32>
    %c200_318 = arith.constant 200 : index
    %c0_319 = arith.constant 0 : index
    %311 = vector.load %arg8[%c200_318, %c0_319] : memref<250x256xf32, #tpu.memory_space<vmem>>, vector<10x256xf32>
    tpu.vector_store %arg8[%c200_318, %c0_319], %310 {strides = array<i32>} : memref<250x256xf32, #tpu.memory_space<vmem>>, vector<10x256xf32>,
    %c30_320 = arith.constant 30 : index
    %c79_321 = arith.constant 79 : index
    %312 = vector.load %arg7[%c30_320, %c79_321] : memref<40x384xf32, #tpu.memory_space<vmem>>, vector<10x256xf32>
    %313 = vector.broadcast %74 : vector<1x256xf32> to vector<10x256xf32>
    %314 = arith.mulf %312, %313 : vector<10x256xf32>
    %c210_322 = arith.constant 210 : index
    %c0_323 = arith.constant 0 : index
    %315 = vector.load %arg8[%c210_322, %c0_323] : memref<250x256xf32, #tpu.memory_space<vmem>>, vector<10x256xf32>
    tpu.vector_store %arg8[%c210_322, %c0_323], %314 {strides = array<i32>} : memref<250x256xf32, #tpu.memory_space<vmem>>, vector<10x256xf32>,
    %c20_324 = arith.constant 20 : index
    %c80_325 = arith.constant 80 : index
    %316 = vector.load %arg7[%c20_324, %c80_325] : memref<40x384xf32, #tpu.memory_space<vmem>>, vector<10x256xf32>
    %c220_326 = arith.constant 220 : index
    %c0_327 = arith.constant 0 : index
    %317 = vector.load %arg8[%c220_326, %c0_327] : memref<250x256xf32, #tpu.memory_space<vmem>>, vector<10x256xf32>
    tpu.vector_store %arg8[%c220_326, %c0_327], %316 {strides = array<i32>} : memref<250x256xf32, #tpu.memory_space<vmem>>, vector<10x256xf32>,
    %c30_328 = arith.constant 30 : index
    %c80_329 = arith.constant 80 : index
    %318 = vector.load %arg7[%c30_328, %c80_329] : memref<40x384xf32, #tpu.memory_space<vmem>>, vector<10x256xf32>
    %c230_330 = arith.constant 230 : index
    %c0_331 = arith.constant 0 : index
    %319 = vector.load %arg8[%c230_330, %c0_331] : memref<250x256xf32, #tpu.memory_space<vmem>>, vector<10x256xf32>
    tpu.vector_store %arg8[%c230_330, %c0_331], %318 {strides = array<i32>} : memref<250x256xf32, #tpu.memory_space<vmem>>, vector<10x256xf32>,
    %c20_332 = arith.constant 20 : index
    %c81_333 = arith.constant 81 : index
    %320 = vector.load %arg7[%c20_332, %c81_333] : memref<40x384xf32, #tpu.memory_space<vmem>>, vector<10x256xf32>
    %321 = vector.broadcast %78 : vector<1x256xf32> to vector<10x256xf32>
    %322 = arith.mulf %320, %321 : vector<10x256xf32>
    %c240_334 = arith.constant 240 : index
    %c0_335 = arith.constant 0 : index
    %323 = vector.load %arg8[%c240_334, %c0_335] : memref<250x256xf32, #tpu.memory_space<vmem>>, vector<10x256xf32>
    tpu.vector_store %arg8[%c240_334, %c0_335], %322 {strides = array<i32>} : memref<250x256xf32, #tpu.memory_space<vmem>>, vector<10x256xf32>,
    %c0_336 = arith.constant 0 : index
    %c0_337 = arith.constant 0 : index
    %324 = vector.load %arg8[%c0_336, %c0_337] : memref<250x256xf32, #tpu.memory_space<vmem>>, vector<250x256xf32>
    %cst_338 = arith.constant dense<0.000000e+00> : vector<20x256xf32>
    %325 = tpu.matmul %2, %324, %cst_338 {dimension_numbers = #tpu.dot_dimension_numbers<[1], [0], [0], [1], [0, 0, 1, 1], [], []>} : vector<20x250xf32>, vector<250x256xf32>, vector<20x256xf32> -> vector<20x256xf32>
    %326 = arith.maximumf %243, %325 : vector<20x256xf32>
    %c30_339 = arith.constant 30 : index
    %c47_340 = arith.constant 47 : index
    %327 = vector.load %arg7[%c30_339, %c47_340] : memref<40x384xf32, #tpu.memory_space<vmem>>, vector<10x256xf32>
    %328 = vector.broadcast %74 : vector<1x256xf32> to vector<10x256xf32>
    %329 = arith.mulf %327, %328 : vector<10x256xf32>
    %c0_341 = arith.constant 0 : index
    %c0_342 = arith.constant 0 : index
    %330 = vector.load %arg8[%c0_341, %c0_342] : memref<250x256xf32, #tpu.memory_space<vmem>>, vector<10x256xf32>
    tpu.vector_store %arg8[%c0_341, %c0_342], %329 {strides = array<i32>} : memref<250x256xf32, #tpu.memory_space<vmem>>, vector<10x256xf32>,
    %c20_343 = arith.constant 20 : index
    %c48_344 = arith.constant 48 : index
    %331 = vector.load %arg7[%c20_343, %c48_344] : memref<40x384xf32, #tpu.memory_space<vmem>>, vector<10x256xf32>
    %c10_345 = arith.constant 10 : index
    %c0_346 = arith.constant 0 : index
    %332 = vector.load %arg8[%c10_345, %c0_346] : memref<250x256xf32, #tpu.memory_space<vmem>>, vector<10x256xf32>
    tpu.vector_store %arg8[%c10_345, %c0_346], %331 {strides = array<i32>} : memref<250x256xf32, #tpu.memory_space<vmem>>, vector<10x256xf32>,
    %c30_347 = arith.constant 30 : index
    %c48_348 = arith.constant 48 : index
    %333 = vector.load %arg7[%c30_347, %c48_348] : memref<40x384xf32, #tpu.memory_space<vmem>>, vector<10x256xf32>
    %c20_349 = arith.constant 20 : index
    %c0_350 = arith.constant 0 : index
    %334 = vector.load %arg8[%c20_349, %c0_350] : memref<250x256xf32, #tpu.memory_space<vmem>>, vector<10x256xf32>
    tpu.vector_store %arg8[%c20_349, %c0_350], %333 {strides = array<i32>} : memref<250x256xf32, #tpu.memory_space<vmem>>, vector<10x256xf32>,
    %c20_351 = arith.constant 20 : index
    %c49_352 = arith.constant 49 : index
    %335 = vector.load %arg7[%c20_351, %c49_352] : memref<40x384xf32, #tpu.memory_space<vmem>>, vector<10x256xf32>
    %336 = vector.broadcast %78 : vector<1x256xf32> to vector<10x256xf32>
    %337 = arith.mulf %335, %336 : vector<10x256xf32>
    %c30_353 = arith.constant 30 : index
    %c0_354 = arith.constant 0 : index
    %338 = vector.load %arg8[%c30_353, %c0_354] : memref<250x256xf32, #tpu.memory_space<vmem>>, vector<10x256xf32>
    tpu.vector_store %arg8[%c30_353, %c0_354], %337 {strides = array<i32>} : memref<250x256xf32, #tpu.memory_space<vmem>>, vector<10x256xf32>,
    %c30_355 = arith.constant 30 : index
    %c49_356 = arith.constant 49 : index
    %339 = vector.load %arg7[%c30_355, %c49_356] : memref<40x384xf32, #tpu.memory_space<vmem>>, vector<10x256xf32>
    %340 = vector.broadcast %78 : vector<1x256xf32> to vector<10x256xf32>
    %341 = arith.mulf %339, %340 : vector<10x256xf32>
    %c40_357 = arith.constant 40 : index
    %c0_358 = arith.constant 0 : index
    %342 = vector.load %arg8[%c40_357, %c0_358] : memref<250x256xf32, #tpu.memory_space<vmem>>, vector<10x256xf32>
    tpu.vector_store %arg8[%c40_357, %c0_358], %341 {strides = array<i32>} : memref<250x256xf32, #tpu.memory_space<vmem>>, vector<10x256xf32>,
    %c10_359 = arith.constant 10 : index
    %c63_360 = arith.constant 63 : index
    %343 = vector.load %arg7[%c10_359, %c63_360] : memref<40x384xf32, #tpu.memory_space<vmem>>, vector<10x256xf32>
    %344 = vector.broadcast %74 : vector<1x256xf32> to vector<10x256xf32>
    %345 = arith.mulf %343, %344 : vector<10x256xf32>
    %c50_361 = arith.constant 50 : index
    %c0_362 = arith.constant 0 : index
    %346 = vector.load %arg8[%c50_361, %c0_362] : memref<250x256xf32, #tpu.memory_space<vmem>>, vector<10x256xf32>
    tpu.vector_store %arg8[%c50_361, %c0_362], %345 {strides = array<i32>} : memref<250x256xf32, #tpu.memory_space<vmem>>, vector<10x256xf32>,
    %c0_363 = arith.constant 0 : index
    %c64_364 = arith.constant 64 : index
    %347 = vector.load %arg7[%c0_363, %c64_364] : memref<40x384xf32, #tpu.memory_space<vmem>>, vector<10x256xf32>
    %c60_365 = arith.constant 60 : index
    %c0_366 = arith.constant 0 : index
    %348 = vector.load %arg8[%c60_365, %c0_366] : memref<250x256xf32, #tpu.memory_space<vmem>>, vector<10x256xf32>
    tpu.vector_store %arg8[%c60_365, %c0_366], %347 {strides = array<i32>} : memref<250x256xf32, #tpu.memory_space<vmem>>, vector<10x256xf32>,
    %c10_367 = arith.constant 10 : index
    %c64_368 = arith.constant 64 : index
    %349 = vector.load %arg7[%c10_367, %c64_368] : memref<40x384xf32, #tpu.memory_space<vmem>>, vector<10x256xf32>
    %c70_369 = arith.constant 70 : index
    %c0_370 = arith.constant 0 : index
    %350 = vector.load %arg8[%c70_369, %c0_370] : memref<250x256xf32, #tpu.memory_space<vmem>>, vector<10x256xf32>
    tpu.vector_store %arg8[%c70_369, %c0_370], %349 {strides = array<i32>} : memref<250x256xf32, #tpu.memory_space<vmem>>, vector<10x256xf32>,
    %c0_371 = arith.constant 0 : index
    %c65_372 = arith.constant 65 : index
    %351 = vector.load %arg7[%c0_371, %c65_372] : memref<40x384xf32, #tpu.memory_space<vmem>>, vector<10x256xf32>
    %352 = vector.broadcast %78 : vector<1x256xf32> to vector<10x256xf32>
    %353 = arith.mulf %351, %352 : vector<10x256xf32>
    %c80_373 = arith.constant 80 : index
    %c0_374 = arith.constant 0 : index
    %354 = vector.load %arg8[%c80_373, %c0_374] : memref<250x256xf32, #tpu.memory_space<vmem>>, vector<10x256xf32>
    tpu.vector_store %arg8[%c80_373, %c0_374], %353 {strides = array<i32>} : memref<250x256xf32, #tpu.memory_space<vmem>>, vector<10x256xf32>,
    %c10_375 = arith.constant 10 : index
    %c65_376 = arith.constant 65 : index
    %355 = vector.load %arg7[%c10_375, %c65_376] : memref<40x384xf32, #tpu.memory_space<vmem>>, vector<10x256xf32>
    %356 = vector.broadcast %78 : vector<1x256xf32> to vector<10x256xf32>
    %357 = arith.mulf %355, %356 : vector<10x256xf32>
    %c90_377 = arith.constant 90 : index
    %c0_378 = arith.constant 0 : index
    %358 = vector.load %arg8[%c90_377, %c0_378] : memref<250x256xf32, #tpu.memory_space<vmem>>, vector<10x256xf32>
    tpu.vector_store %arg8[%c90_377, %c0_378], %357 {strides = array<i32>} : memref<250x256xf32, #tpu.memory_space<vmem>>, vector<10x256xf32>,
    %c30_379 = arith.constant 30 : index
    %c63_380 = arith.constant 63 : index
    %359 = vector.load %arg7[%c30_379, %c63_380] : memref<40x384xf32, #tpu.memory_space<vmem>>, vector<10x256xf32>
    %360 = vector.broadcast %74 : vector<1x256xf32> to vector<10x256xf32>
    %361 = arith.mulf %359, %360 : vector<10x256xf32>
    %c100_381 = arith.constant 100 : index
    %c0_382 = arith.constant 0 : index
    %362 = vector.load %arg8[%c100_381, %c0_382] : memref<250x256xf32, #tpu.memory_space<vmem>>, vector<10x256xf32>
    tpu.vector_store %arg8[%c100_381, %c0_382], %361 {strides = array<i32>} : memref<250x256xf32, #tpu.memory_space<vmem>>, vector<10x256xf32>,
    %c20_383 = arith.constant 20 : index
    %c64_384 = arith.constant 64 : index
    %363 = vector.load %arg7[%c20_383, %c64_384] : memref<40x384xf32, #tpu.memory_space<vmem>>, vector<10x256xf32>
    %c110_385 = arith.constant 110 : index
    %c0_386 = arith.constant 0 : index
    %364 = vector.load %arg8[%c110_385, %c0_386] : memref<250x256xf32, #tpu.memory_space<vmem>>, vector<10x256xf32>
    tpu.vector_store %arg8[%c110_385, %c0_386], %363 {strides = array<i32>} : memref<250x256xf32, #tpu.memory_space<vmem>>, vector<10x256xf32>,
    %c30_387 = arith.constant 30 : index
    %c64_388 = arith.constant 64 : index
    %365 = vector.load %arg7[%c30_387, %c64_388] : memref<40x384xf32, #tpu.memory_space<vmem>>, vector<10x256xf32>
    %c120_389 = arith.constant 120 : index
    %c0_390 = arith.constant 0 : index
    %366 = vector.load %arg8[%c120_389, %c0_390] : memref<250x256xf32, #tpu.memory_space<vmem>>, vector<10x256xf32>
    tpu.vector_store %arg8[%c120_389, %c0_390], %365 {strides = array<i32>} : memref<250x256xf32, #tpu.memory_space<vmem>>, vector<10x256xf32>,
    %c20_391 = arith.constant 20 : index
    %c65_392 = arith.constant 65 : index
    %367 = vector.load %arg7[%c20_391, %c65_392] : memref<40x384xf32, #tpu.memory_space<vmem>>, vector<10x256xf32>
    %368 = vector.broadcast %78 : vector<1x256xf32> to vector<10x256xf32>
    %369 = arith.mulf %367, %368 : vector<10x256xf32>
    %c130_393 = arith.constant 130 : index
    %c0_394 = arith.constant 0 : index
    %370 = vector.load %arg8[%c130_393, %c0_394] : memref<250x256xf32, #tpu.memory_space<vmem>>, vector<10x256xf32>
    tpu.vector_store %arg8[%c130_393, %c0_394], %369 {strides = array<i32>} : memref<250x256xf32, #tpu.memory_space<vmem>>, vector<10x256xf32>,
    %c30_395 = arith.constant 30 : index
    %c65_396 = arith.constant 65 : index
    %371 = vector.load %arg7[%c30_395, %c65_396] : memref<40x384xf32, #tpu.memory_space<vmem>>, vector<10x256xf32>
    %372 = vector.broadcast %78 : vector<1x256xf32> to vector<10x256xf32>
    %373 = arith.mulf %371, %372 : vector<10x256xf32>
    %c140_397 = arith.constant 140 : index
    %c0_398 = arith.constant 0 : index
    %374 = vector.load %arg8[%c140_397, %c0_398] : memref<250x256xf32, #tpu.memory_space<vmem>>, vector<10x256xf32>
    tpu.vector_store %arg8[%c140_397, %c0_398], %373 {strides = array<i32>} : memref<250x256xf32, #tpu.memory_space<vmem>>, vector<10x256xf32>,
    %c10_399 = arith.constant 10 : index
    %c79_400 = arith.constant 79 : index
    %375 = vector.load %arg7[%c10_399, %c79_400] : memref<40x384xf32, #tpu.memory_space<vmem>>, vector<10x256xf32>
    %376 = vector.broadcast %74 : vector<1x256xf32> to vector<10x256xf32>
    %377 = arith.mulf %375, %376 : vector<10x256xf32>
    %c150_401 = arith.constant 150 : index
    %c0_402 = arith.constant 0 : index
    %378 = vector.load %arg8[%c150_401, %c0_402] : memref<250x256xf32, #tpu.memory_space<vmem>>, vector<10x256xf32>
    tpu.vector_store %arg8[%c150_401, %c0_402], %377 {strides = array<i32>} : memref<250x256xf32, #tpu.memory_space<vmem>>, vector<10x256xf32>,
    %c0_403 = arith.constant 0 : index
    %c80_404 = arith.constant 80 : index
    %379 = vector.load %arg7[%c0_403, %c80_404] : memref<40x384xf32, #tpu.memory_space<vmem>>, vector<10x256xf32>
    %c160_405 = arith.constant 160 : index
    %c0_406 = arith.constant 0 : index
    %380 = vector.load %arg8[%c160_405, %c0_406] : memref<250x256xf32, #tpu.memory_space<vmem>>, vector<10x256xf32>
    tpu.vector_store %arg8[%c160_405, %c0_406], %379 {strides = array<i32>} : memref<250x256xf32, #tpu.memory_space<vmem>>, vector<10x256xf32>,
    %c10_407 = arith.constant 10 : index
    %c80_408 = arith.constant 80 : index
    %381 = vector.load %arg7[%c10_407, %c80_408] : memref<40x384xf32, #tpu.memory_space<vmem>>, vector<10x256xf32>
    %c170_409 = arith.constant 170 : index
    %c0_410 = arith.constant 0 : index
    %382 = vector.load %arg8[%c170_409, %c0_410] : memref<250x256xf32, #tpu.memory_space<vmem>>, vector<10x256xf32>
    tpu.vector_store %arg8[%c170_409, %c0_410], %381 {strides = array<i32>} : memref<250x256xf32, #tpu.memory_space<vmem>>, vector<10x256xf32>,
    %c0_411 = arith.constant 0 : index
    %c81_412 = arith.constant 81 : index
    %383 = vector.load %arg7[%c0_411, %c81_412] : memref<40x384xf32, #tpu.memory_space<vmem>>, vector<10x256xf32>
    %384 = vector.broadcast %78 : vector<1x256xf32> to vector<10x256xf32>
    %385 = arith.mulf %383, %384 : vector<10x256xf32>
    %c180_413 = arith.constant 180 : index
    %c0_414 = arith.constant 0 : index
    %386 = vector.load %arg8[%c180_413, %c0_414] : memref<250x256xf32, #tpu.memory_space<vmem>>, vector<10x256xf32>
    tpu.vector_store %arg8[%c180_413, %c0_414], %385 {strides = array<i32>} : memref<250x256xf32, #tpu.memory_space<vmem>>, vector<10x256xf32>,
    %c10_415 = arith.constant 10 : index
    %c81_416 = arith.constant 81 : index
    %387 = vector.load %arg7[%c10_415, %c81_416] : memref<40x384xf32, #tpu.memory_space<vmem>>, vector<10x256xf32>
    %388 = vector.broadcast %78 : vector<1x256xf32> to vector<10x256xf32>
    %389 = arith.mulf %387, %388 : vector<10x256xf32>
    %c190_417 = arith.constant 190 : index
    %c0_418 = arith.constant 0 : index
    %390 = vector.load %arg8[%c190_417, %c0_418] : memref<250x256xf32, #tpu.memory_space<vmem>>, vector<10x256xf32>
    tpu.vector_store %arg8[%c190_417, %c0_418], %389 {strides = array<i32>} : memref<250x256xf32, #tpu.memory_space<vmem>>, vector<10x256xf32>,
    %c30_419 = arith.constant 30 : index
    %c79_420 = arith.constant 79 : index
    %391 = vector.load %arg7[%c30_419, %c79_420] : memref<40x384xf32, #tpu.memory_space<vmem>>, vector<10x256xf32>
    %392 = vector.broadcast %74 : vector<1x256xf32> to vector<10x256xf32>
    %393 = arith.mulf %391, %392 : vector<10x256xf32>
    %c200_421 = arith.constant 200 : index
    %c0_422 = arith.constant 0 : index
    %394 = vector.load %arg8[%c200_421, %c0_422] : memref<250x256xf32, #tpu.memory_space<vmem>>, vector<10x256xf32>
    tpu.vector_store %arg8[%c200_421, %c0_422], %393 {strides = array<i32>} : memref<250x256xf32, #tpu.memory_space<vmem>>, vector<10x256xf32>,
    %c20_423 = arith.constant 20 : index
    %c80_424 = arith.constant 80 : index
    %395 = vector.load %arg7[%c20_423, %c80_424] : memref<40x384xf32, #tpu.memory_space<vmem>>, vector<10x256xf32>
    %c210_425 = arith.constant 210 : index
    %c0_426 = arith.constant 0 : index
    %396 = vector.load %arg8[%c210_425, %c0_426] : memref<250x256xf32, #tpu.memory_space<vmem>>, vector<10x256xf32>
    tpu.vector_store %arg8[%c210_425, %c0_426], %395 {strides = array<i32>} : memref<250x256xf32, #tpu.memory_space<vmem>>, vector<10x256xf32>,
    %c30_427 = arith.constant 30 : index
    %c80_428 = arith.constant 80 : index
    %397 = vector.load %arg7[%c30_427, %c80_428] : memref<40x384xf32, #tpu.memory_space<vmem>>, vector<10x256xf32>
    %c220_429 = arith.constant 220 : index
    %c0_430 = arith.constant 0 : index
    %398 = vector.load %arg8[%c220_429, %c0_430] : memref<250x256xf32, #tpu.memory_space<vmem>>, vector<10x256xf32>
    tpu.vector_store %arg8[%c220_429, %c0_430], %397 {strides = array<i32>} : memref<250x256xf32, #tpu.memory_space<vmem>>, vector<10x256xf32>,
    %c20_431 = arith.constant 20 : index
    %c81_432 = arith.constant 81 : index
    %399 = vector.load %arg7[%c20_431, %c81_432] : memref<40x384xf32, #tpu.memory_space<vmem>>, vector<10x256xf32>
    %400 = vector.broadcast %78 : vector<1x256xf32> to vector<10x256xf32>
    %401 = arith.mulf %399, %400 : vector<10x256xf32>
    %c230_433 = arith.constant 230 : index
    %c0_434 = arith.constant 0 : index
    %402 = vector.load %arg8[%c230_433, %c0_434] : memref<250x256xf32, #tpu.memory_space<vmem>>, vector<10x256xf32>
    tpu.vector_store %arg8[%c230_433, %c0_434], %401 {strides = array<i32>} : memref<250x256xf32, #tpu.memory_space<vmem>>, vector<10x256xf32>,
    %c30_435 = arith.constant 30 : index
    %c81_436 = arith.constant 81 : index
    %403 = vector.load %arg7[%c30_435, %c81_436] : memref<40x384xf32, #tpu.memory_space<vmem>>, vector<10x256xf32>
    %404 = vector.broadcast %78 : vector<1x256xf32> to vector<10x256xf32>
    %405 = arith.mulf %403, %404 : vector<10x256xf32>
    %c240_437 = arith.constant 240 : index
    %c0_438 = arith.constant 0 : index
    %406 = vector.load %arg8[%c240_437, %c0_438] : memref<250x256xf32, #tpu.memory_space<vmem>>, vector<10x256xf32>
    tpu.vector_store %arg8[%c240_437, %c0_438], %405 {strides = array<i32>} : memref<250x256xf32, #tpu.memory_space<vmem>>, vector<10x256xf32>,
    %c0_439 = arith.constant 0 : index
    %c0_440 = arith.constant 0 : index
    %407 = vector.load %arg8[%c0_439, %c0_440] : memref<250x256xf32, #tpu.memory_space<vmem>>, vector<250x256xf32>
    %cst_441 = arith.constant dense<0.000000e+00> : vector<20x256xf32>
    %408 = tpu.matmul %2, %407, %cst_441 {dimension_numbers = #tpu.dot_dimension_numbers<[1], [0], [0], [1], [0, 0, 1, 1], [], []>} : vector<20x250xf32>, vector<250x256xf32>, vector<20x256xf32> -> vector<20x256xf32>
    %409 = arith.maximumf %326, %408 : vector<20x256xf32>
    %410 = vector.broadcast %3 : vector<20x1xf32> to vector<20x256xf32>
    %411 = arith.addf %409, %410 : vector<20x256xf32>
    %cst_442 = arith.constant 0.000000e+00 : f32
    %412 = vector.broadcast %cst_442 : f32 to vector<20x256xf32>
    %413 = arith.maximumf %411, %412 : vector<20x256xf32>
    %c0_443 = arith.constant 0 : index
    %c0_444 = arith.constant 0 : index
    %c0_445 = arith.constant 0 : index
    %414 = vector.load %arg6[%c0_443, %c0_444, %c0_445] : memref<1x20x256xf32, #tpu.memory_space<vmem>>, vector<1x20x256xf32>
    %415 = vector.shape_cast %414 : vector<1x20x256xf32> to vector<20x256xf32>
    %416 = vector.shape_cast %413 : vector<20x256xf32> to vector<1x20x256xf32>
    tpu.vector_store %arg6[%c0_443, %c0_444, %c0_445], %416 {strides = array<i32>} : memref<1x20x256xf32, #tpu.memory_space<vmem>>, vector<1x20x256xf32>,
    return
  }
  func.func @transform_0(%arg0: i32) -> (i32, i32, i32, i32) {
    %c0_i32 = arith.constant 0 : i32
    %c0_i32_0 = arith.constant 0 : i32
    %c0_i32_1 = arith.constant 0 : i32
    %c0_i32_2 = arith.constant 0 : i32
    return %arg0, %c0_i32, %c0_i32_0, %c0_i32_1 : i32, i32, i32, i32
  }
  func.func @transform_1(%arg0: i32) -> (i32, i32) {
    %c0_i32 = arith.constant 0 : i32
    %c0_i32_0 = arith.constant 0 : i32
    %c0_i32_1 = arith.constant 0 : i32
    return %c0_i32, %c0_i32_0 : i32, i32
  }
  func.func @transform_2(%arg0: i32) -> (i32, i32) {
    %c0_i32 = arith.constant 0 : i32
    %c0_i32_0 = arith.constant 0 : i32
    %c0_i32_1 = arith.constant 0 : i32
    return %c0_i32, %c0_i32_0 : i32, i32
  }
  func.func @transform_3(%arg0: i32) -> (i32, i32) {
    %c0_i32 = arith.constant 0 : i32
    %c0_i32_0 = arith.constant 0 : i32
    %c0_i32_1 = arith.constant 0 : i32
    return %c0_i32, %c0_i32_0 : i32, i32
  }
  func.func @transform_4(%arg0: i32) -> (i32, i32) {
    %c0_i32 = arith.constant 0 : i32
    %c0_i32_0 = arith.constant 0 : i32
    %c0_i32_1 = arith.constant 0 : i32
    return %c0_i32, %c0_i32_0 : i32, i32
  }
  func.func @transform_5(%arg0: i32) -> (i32, i32, i32) {
    %c0_i32 = arith.constant 0 : i32
    %c0_i32_0 = arith.constant 0 : i32
    %c0_i32_1 = arith.constant 0 : i32
    return %arg0, %c0_i32, %c0_i32_0 : i32, i32, i32
  }
}

module attributes {stable_mosaic.version = 11 : i64} {
  func.func @_fc_kernel(%arg0: memref<2x5120xf32, #tpu.memory_space<vmem>>, %arg1: memref<5120x128xf32, #tpu.memory_space<vmem>>, %arg2: memref<1x128xf32, #tpu.memory_space<vmem>>, %arg3: memref<128x15xf32, #tpu.memory_space<vmem>>, %arg4: memref<1x15xf32, #tpu.memory_space<vmem>>, %arg5: memref<2x15xf32, #tpu.memory_space<vmem>>) attributes {dimension_semantics = [], scalar_prefetch = 0 : i64, scratch_operands = 0 : i64, tpu.core_type = #tpu.core_type<tc>} {
    %c0 = arith.constant 0 : index
    %c0_0 = arith.constant 0 : index
    %0 = vector.load %arg0[%c0, %c0_0] : memref<2x5120xf32, #tpu.memory_space<vmem>>, vector<2x5120xf32>
    %c0_1 = arith.constant 0 : index
    %c0_2 = arith.constant 0 : index
    %1 = vector.load %arg1[%c0_1, %c0_2] : memref<5120x128xf32, #tpu.memory_space<vmem>>, vector<5120x128xf32>
    %cst = arith.constant dense<0.000000e+00> : vector<2x128xf32>
    %2 = tpu.matmul %0, %1, %cst {dimension_numbers = #tpu.dot_dimension_numbers<[1], [0], [0], [1], [0, 0, 1, 1], [], []>} : vector<2x5120xf32>, vector<5120x128xf32>, vector<2x128xf32> -> vector<2x128xf32>
    %c0_3 = arith.constant 0 : index
    %c0_4 = arith.constant 0 : index
    %3 = vector.load %arg2[%c0_3, %c0_4] : memref<1x128xf32, #tpu.memory_space<vmem>>, vector<1x128xf32>
    %4 = vector.broadcast %3 : vector<1x128xf32> to vector<2x128xf32>
    %5 = arith.addf %2, %4 : vector<2x128xf32>
    %cst_5 = arith.constant 0.000000e+00 : f32
    %6 = vector.broadcast %cst_5 : f32 to vector<2x128xf32>
    %7 = arith.maximumf %5, %6 : vector<2x128xf32>
    %c0_6 = arith.constant 0 : index
    %c0_7 = arith.constant 0 : index
    %8 = vector.load %arg3[%c0_6, %c0_7] : memref<128x15xf32, #tpu.memory_space<vmem>>, vector<128x15xf32>
    %cst_8 = arith.constant dense<0.000000e+00> : vector<2x15xf32>
    %9 = tpu.matmul %7, %8, %cst_8 {dimension_numbers = #tpu.dot_dimension_numbers<[1], [0], [0], [1], [0, 0, 1, 1], [], []>} : vector<2x128xf32>, vector<128x15xf32>, vector<2x15xf32> -> vector<2x15xf32>
    %c0_9 = arith.constant 0 : index
    %c0_10 = arith.constant 0 : index
    %10 = vector.load %arg4[%c0_9, %c0_10] : memref<1x15xf32, #tpu.memory_space<vmem>>, vector<1x15xf32>
    %11 = vector.broadcast %10 : vector<1x15xf32> to vector<2x15xf32>
    %12 = arith.addf %9, %11 : vector<2x15xf32>
    %c0_11 = arith.constant 0 : index
    %c0_12 = arith.constant 0 : index
    %13 = vector.load %arg5[%c0_11, %c0_12] : memref<2x15xf32, #tpu.memory_space<vmem>>, vector<2x15xf32>
    tpu.vector_store %arg5[%c0_11, %c0_12], %12 {strides = array<i32>} : memref<2x15xf32, #tpu.memory_space<vmem>>, vector<2x15xf32>,
    return
  }
}

</mosaic_0001>

<bundles_post_ra>
// kernel: simple_net_forward.3
= control target key start
LH: loop header
LB: loop body
LE: loop exit
PB: predicated region body
PF: predicated region fallthrough
CT: control target
= control target key end

     0   :  { %v3865_v47 = vmov 1983009808   ;;  %v692_v49 = vlaneseq  ;;  %s6034_s0 = inlined_call_operand.vmem [shape: f32[2,5120], index: 0, kind: input, shape index: {}]   ;;  %s6035_s1 = inlined_call_operand.vmem [shape: f32[5120,128], index: 1, kind: input, shape index: {}]   ;;  %s6036_s2 = inlined_call_operand.vmem [shape: f32[1,128], index: 2, kind: input, shape index: {}]   ;;  %s6037_s3 = inlined_call_operand.vmem [shape: f32[128,15], index: 3, kind: input, shape index: {}]   ;;  %s6038_s4 = inlined_call_operand.vmem [shape: f32[1,15], index: 4, kind: input, shape index: {}]   ;;  %s6039_s5 = inlined_call_operand.hbm [shape: f32[2,15], index: 5, kind: output, shape index: {}]  }
   0x1   :  { %v47_v0 = vld [vmem:[%s6035_s1 + $0x80] sm:$0xff]  ;;  %v48_v1 = vld [vmem:[%s6035_s1 + $0x88] sm:$0xff]  ;;  %v49_v11 = vld [vmem:[%s6035_s1 + $0x90] sm:$0xff]  ;;  %v690_v48 = vunpack.c.l.s4 %v3865_v47 }
   0x2   :  { %v31_v2 = vld [vmem:[%s6035_s1] sm:$0xff]  ;;  %v3162_v3 = vpack.c.bf16 %v48_v1, %v47_v0  ;;  %v32_v4 = vld [vmem:[%s6035_s1 + $0x8] sm:$0xff]  ;;  %v50_v13 = vld [vmem:[%s6035_s1 + $0x98] sm:$0xff]  ;;  %v693_v0 = vshrl.u32 %v692_v49, 7 }
   0x3   :  { %v79_v5 = vld [vmem:[%s6035_s1 + $0x180] sm:$0xff]  ;;  %v80_v6 = vld [vmem:[%s6035_s1 + $0x188] sm:$0xff]  ;;  %v3164_v7 = vpack.c.bf16 %v32_v4, %v31_v2  ;;  %v33_v14 = vld [vmem:[%s6035_s1 + $0x10] sm:$0xff]  ;;  %v3166_v16 = vpack.c.bf16 %v50_v13, %v49_v11  ;;  %v691_v63 = vunpack.c.0.s8 %v690_v48 }
   0x4   :  { %v3194_v8 = vpack.c.bf16 %v80_v6, %v79_v5  ;;  %v63_v9 = vld [vmem:[%s6035_s1 + $0x100] sm:$0xff]  ;;  %v64_v10 = vld [vmem:[%s6035_s1 + $0x108] sm:$0xff]  ;;  %3163 = vmatprep.subr.bf16.mxu0 %v3162_v3  ;;  %v34_v15 = vld [vmem:[%s6035_s1 + $0x18] sm:$0xff] }
   0x5   :  { %v3196_v12 = vpack.c.bf16 %v64_v10, %v63_v9  ;;  %3165 = vmatpush3.bf16.msra.mxu0 %v3164_v7  ;;  %v3168_v17 = vpack.c.bf16 %v34_v15, %v33_v14  ;;  %v81_v18 = vld [vmem:[%s6035_s1 + $0x190] sm:$0xff]  ;;  %v82_v19 = vld [vmem:[%s6035_s1 + $0x198] sm:$0xff]  ;;  %v51_v23 = vld [vmem:[%s6035_s1 + $0xa0] sm:$0xff]  ;;  %v4050_v13 = vsub.s32 %v691_v63, %v693_v0 }
   0x6   :  { %3195 = vmatprep.subr.bf16.mxu1 %v3194_v8  ;;  %v65_v20 = vld [vmem:[%s6035_s1 + $0x110] sm:$0xff]  ;;  %v3198_v21 = vpack.c.bf16 %v82_v19, %v81_v18  ;;  %v66_v22 = vld [vmem:[%s6035_s1 + $0x118] sm:$0xff]  ;;  %v52_v24 = vld [vmem:[%s6035_s1 + $0xa8] sm:$0xff]  ;;  %3167 = vmatprep.subr.bf16.mxu0 %v3166_v16 }
   0x7   :  { %3197 = vmatpush3.bf16.msra.mxu1 %v3196_v12  ;;  %v3200_v25 = vpack.c.bf16 %v66_v22, %v65_v20  ;;  %v3170_v26 = vpack.c.bf16 %v52_v24, %v51_v23  ;;  %v35_v27 = vld [vmem:[%s6035_s1 + $0x20] sm:$0xff]  ;;  %v36_v28 = vld [vmem:[%s6035_s1 + $0x28] sm:$0xff]  ;;  %v53_v35 = vld [vmem:[%s6035_s1 + $0xb0] sm:$0xff] }
   0x8   :  { %v83_v29 = vld [vmem:[%s6035_s1 + $0x1a0] sm:$0xff]  ;;  %3199 = vmatprep.subr.bf16.mxu1 %v3198_v21  ;;  %v84_v30 = vld [vmem:[%s6035_s1 + $0x1a8] sm:$0xff]  ;;  %v3172_v33 = vpack.c.bf16 %v36_v28, %v35_v27  ;;  %v54_v36 = vld [vmem:[%s6035_s1 + $0xb8] sm:$0xff] }
   0x9   :  { %v67_v31 = vld [vmem:[%s6035_s1 + $0x120] sm:$0xff]  ;;  %v68_v32 = vld [vmem:[%s6035_s1 + $0x128] sm:$0xff]  ;;  %3169 = vmatpush3.bf16.msra.mxu0 %v3168_v17  ;;  %v3202_v34 = vpack.c.bf16 %v84_v30, %v83_v29  ;;  %v37_v37 = vld [vmem:[%s6035_s1 + $0x30] sm:$0xff]  ;;  %v3174_v39 = vpack.c.bf16 %v54_v36, %v53_v35 }
   0xa   :  { %3171 = vmatprep.subr.bf16.mxu0 %v3170_v26  ;;  %v3204_v38 = vpack.c.bf16 %v68_v32, %v67_v31  ;;  %v38_v40 = vld [vmem:[%s6035_s1 + $0x38] sm:$0xff]  ;;  %v85_v41 = vld [vmem:[%s6035_s1 + $0x1b0] sm:$0xff]  ;;  %v55_v46 = vld [vmem:[%s6035_s1 + $0xc0] sm:$0xff] }
   0xb   :  { %3201 = vmatpush3.bf16.msra.mxu1 %v3200_v25  ;;  %v86_v42 = vld [vmem:[%s6035_s1 + $0x1b8] sm:$0xff]  ;;  %v69_v44 = vld [vmem:[%s6035_s1 + $0x130] sm:$0xff]  ;;  %v56_v50 = vld [vmem:[%s6035_s1 + $0xc8] sm:$0xff]  ;;  %v3176_v51 = vpack.c.bf16 %v38_v40, %v37_v37 }
   0xc   :  { %3203 = vmatprep.subr.bf16.mxu1 %v3202_v34  ;;  %v3206_v43 = vpack.c.bf16 %v86_v42, %v85_v41  ;;  %v70_v45 = vld [vmem:[%s6035_s1 + $0x138] sm:$0xff]  ;;  %v87_v52 = vld [vmem:[%s6035_s1 + $0x1c0] sm:$0xff]  ;;  %v88_v53 = vld [vmem:[%s6035_s1 + $0x1c8] sm:$0xff]  ;;  %v3178_v55 = vpack.c.bf16 %v56_v50, %v55_v46 }
   0xd   :  { %3173 = vmatpush3.bf16.msra.mxu0 %v3172_v33  ;;  %v3208_v54 = vpack.c.bf16 %v70_v45, %v69_v44  ;;  %v39_v56 = vld [vmem:[%s6035_s1 + $0x40] sm:$0xff]  ;;  %v40_v57 = vld [vmem:[%s6035_s1 + $0x48] sm:$0xff]  ;;  %v3210_v59 = vpack.c.bf16 %v88_v53, %v87_v52  ;;  %v57_v61 = vld [vmem:[%s6035_s1 + $0xd0] sm:$0xff] }
   0xe   :  { %3175 = vmatprep.subr.bf16.mxu0 %v3174_v39  ;;  %v71_v58 = vld [vmem:[%s6035_s1 + $0x140] sm:$0xff]  ;;  %v72_v60 = vld [vmem:[%s6035_s1 + $0x148] sm:$0xff]  ;;  %v58_v62 = vld [vmem:[%s6035_s1 + $0xd8] sm:$0xff]  ;;  %v3180_v3 = vpack.c.bf16 %v40_v57, %v39_v56 }
   0xf   :  { %3205 = vmatpush3.bf16.msra.mxu1 %v3204_v38  ;;  %v89_v1 = vld [vmem:[%s6035_s1 + $0x1d0] sm:$0xff]  ;;  %v90_v2 = vld [vmem:[%s6035_s1 + $0x1d8] sm:$0xff]  ;;  %v3212_v4 = vpack.c.bf16 %v72_v60, %v71_v58  ;;  %v3182_v5 = vpack.c.bf16 %v58_v62, %v57_v61  ;;  %v59_v11 = vld [vmem:[%s6035_s1 + $0xe0] sm:$0xff] }
  0x10   :  { %3207 = vmatprep.subr.bf16.mxu1 %v3206_v43  ;;  %v41_v6 = vld [vmem:[%s6035_s1 + $0x50] sm:$0xff]  ;;  %v42_v7 = vld [vmem:[%s6035_s1 + $0x58] sm:$0xff]  ;;  %v3214_v9 = vpack.c.bf16 %v90_v2, %v89_v1  ;;  %v60_v12 = vld [vmem:[%s6035_s1 + $0xe8] sm:$0xff] }
  0x11   :  { %3177 = vmatpush3.bf16.msra.mxu0 %v3176_v51  ;;  %v73_v8 = vld [vmem:[%s6035_s1 + $0x150] sm:$0xff]  ;;  %v74_v10 = vld [vmem:[%s6035_s1 + $0x158] sm:$0xff]  ;;  %v91_v14 = vld [vmem:[%s6035_s1 + $0x1e0] sm:$0xff]  ;;  %v3184_v16 = vpack.c.bf16 %v42_v7, %v41_v6  ;;  %v3186_v19 = vpack.c.bf16 %v60_v12, %v59_v11 }
  0x12   :  { %3179 = vmatprep.subr.bf16.mxu0 %v3178_v55  ;;  %v92_v15 = vld [vmem:[%s6035_s1 + $0x1e8] sm:$0xff]  ;;  %v43_v17 = vld [vmem:[%s6035_s1 + $0x60] sm:$0xff]  ;;  %v3216_v18 = vpack.c.bf16 %v74_v10, %v73_v8  ;;  %v61_v25 = vld [vmem:[%s6035_s1 + $0xf0] sm:$0xff] }
  0x13   :  { %3209 = vmatpush3.bf16.msra.mxu1 %v3208_v54  ;;  %v44_v20 = vld [vmem:[%s6035_s1 + $0x68] sm:$0xff]  ;;  %v75_v21 = vld [vmem:[%s6035_s1 + $0x160] sm:$0xff]  ;;  %v3218_v23 = vpack.c.bf16 %v92_v15, %v91_v14  ;;  %v62_v26 = vld [vmem:[%s6035_s1 + $0xf8] sm:$0xff] }
  0x14   :  { %3211 = vmatprep.subr.bf16.mxu1 %v3210_v59  ;;  %v21_v22 = vld [vmem:[%s6034_s0] sm:$0xff]  ;;  %v76_v24 = vld [vmem:[%s6035_s1 + $0x168] sm:$0xff]  ;;  %v93_v29 = vld [vmem:[%s6035_s1 + $0x1f0] sm:$0xff]  ;;  %v3188_v31 = vpack.c.bf16 %v44_v20, %v43_v17  ;;  %v3190_v35 = vpack.c.bf16 %v62_v26, %v61_v25 }
  0x15   :  { %3181 = vmatpush3.bf16.msra.mxu0 %v3180_v3  ;;  %v695_v27 = vrot.slane %v21_v22, %v4050_v13  ;;  %v688_v28 = vcombine.high %v21_v22, %v21_v22  ;;  %v94_v30 = vld [vmem:[%s6035_s1 + $0x1f8] sm:$0xff]  ;;  %v3220_v34 = vpack.c.bf16 %v76_v24, %v75_v21  ;;  %v45_v36 = vld [vmem:[%s6035_s1 + $0x70] sm:$0xff]  ;;  %v111_v41 = vld [vmem:[%s6035_s1 + $0x280] sm:$0xff] }
  0x16   :  { %3183 = vmatprep.subr.bf16.mxu0 %v3182_v5  ;;  %v46_v37 = vld [vmem:[%s6035_s1 + $0x78] sm:$0xff]  ;;  %v77_v38 = vld [vmem:[%s6035_s1 + $0x170] sm:$0xff]  ;;  %v3222_v39 = vpack.c.bf16 %v94_v30, %v93_v29  ;;  %v112_v42 = vld [vmem:[%s6035_s1 + $0x288] sm:$0xff] }
  0x17   :  { %3213 = vmatpush3.bf16.msra.mxu1 %v3212_v4  ;;  %v703_v32 = vcombine.high %v695_v27, %v695_v27  ;;  %v702_v33 = vrot.slane %v688_v28, %v4050_v13  ;;  %v78_v40 = vld [vmem:[%s6035_s1 + $0x178] sm:$0xff]  ;;  %v143_v44 = vld [vmem:[%s6035_s1 + $0x380] sm:$0xff]  ;;  %v144_v45 = vld [vmem:[%s6035_s1 + $0x388] sm:$0xff]  ;;  %v3192_v46 = vpack.c.bf16 %v46_v37, %v45_v36  ;;  %v3226_v48 = vpack.c.bf16 %v112_v42, %v111_v41 }
  0x18   :  { %3215 = vmatprep.subr.bf16.mxu1 %v3214_v9  ;;  %v3224_v47 = vpack.c.bf16 %v78_v40, %v77_v38  ;;  %v95_v49 = vld [vmem:[%s6035_s1 + $0x200] sm:$0xff]  ;;  %v96_v50 = vld [vmem:[%s6035_s1 + $0x208] sm:$0xff]  ;;  %v3258_v52 = vpack.c.bf16 %v144_v45, %v143_v44  ;;  %v113_v54 = vld [vmem:[%s6035_s1 + $0x290] sm:$0xff] }
  0x19   :  { %3185 = vmatpush3.bf16.msra.mxu0 %v3184_v16  ;;  %962 = vmatprep.mubr.f32.mxu0 %v703_v32  ;;  %v704_v43 = vcombine.high %v702_v33, %v702_v33  ;;  %v127_v51 = vld [vmem:[%s6035_s1 + $0x300] sm:$0xff]  ;;  %v128_v53 = vld [vmem:[%s6035_s1 + $0x308] sm:$0xff]  ;;  %v114_v55 = vld [vmem:[%s6035_s1 + $0x298] sm:$0xff]  ;;  %v3228_v58 = vpack.c.bf16 %v96_v50, %v95_v49 }
  0x1a   :  { %3187 = vmatprep.subr.bf16.mxu0 %v3186_v19  ;;  %v145_v56 = vld [vmem:[%s6035_s1 + $0x390] sm:$0xff]  ;;  %v146_v57 = vld [vmem:[%s6035_s1 + $0x398] sm:$0xff]  ;;  %v3260_v59 = vpack.c.bf16 %v128_v53, %v127_v51  ;;  %v3230_v60 = vpack.c.bf16 %v114_v55, %v113_v54  ;;  %v115_v2 = vld [vmem:[%s6035_s1 + $0x2a0] sm:$0xff] }
  0x1b   :  { %3217 = vmatpush3.bf16.msra.mxu1 %v3216_v18  ;;  %1032 = vmatprep.mubr.f32.mxu1 %v704_v43  ;;  %v97_v61 = vld [vmem:[%s6035_s1 + $0x210] sm:$0xff]  ;;  %v98_v62 = vld [vmem:[%s6035_s1 + $0x218] sm:$0xff]  ;;  %v3262_v0 = vpack.c.bf16 %v146_v57, %v145_v56  ;;  %v116_v3 = vld [vmem:[%s6035_s1 + $0x2a8] sm:$0xff] }
  0x1c   :  { %3219 = vmatprep.subr.bf16.mxu1 %v3218_v23  ;;  %v129_v63 = vld [vmem:[%s6035_s1 + $0x310] sm:$0xff]  ;;  %v130_v1 = vld [vmem:[%s6035_s1 + $0x318] sm:$0xff]  ;;  %v147_v4 = vld [vmem:[%s6035_s1 + $0x3a0] sm:$0xff]  ;;  %v3232_v6 = vpack.c.bf16 %v98_v62, %v97_v61  ;;  %v3234_v8 = vpack.c.bf16 %v116_v3, %v115_v2 }
  0x1d   :  { %3189 = vmatpush3.bf16.msra.mxu0 %v3188_v31  ;;  %v148_v5 = vld [vmem:[%s6035_s1 + $0x3a8] sm:$0xff]  ;;  %v3264_v7 = vpack.c.bf16 %v130_v1, %v129_v63  ;;  %v99_v9 = vld [vmem:[%s6035_s1 + $0x220] sm:$0xff]  ;;  %v117_v15 = vld [vmem:[%s6035_s1 + $0x2b0] sm:$0xff] }
  0x1e   :  { %3191 = vmatprep.subr.bf16.mxu0 %v3190_v35  ;;  %v100_v10 = vld [vmem:[%s6035_s1 + $0x228] sm:$0xff]  ;;  %v131_v11 = vld [vmem:[%s6035_s1 + $0x320] sm:$0xff]  ;;  %v3266_v12 = vpack.c.bf16 %v148_v5, %v147_v4  ;;  %v118_v16 = vld [vmem:[%s6035_s1 + $0x2b8] sm:$0xff] }
  0x1f   :  { %3221 = vmatpush3.bf16.msra.mxu1 %v3220_v34  ;;  %v132_v14 = vld [vmem:[%s6035_s1 + $0x328] sm:$0xff]  ;;  %v149_v17 = vld [vmem:[%s6035_s1 + $0x3b0] sm:$0xff]  ;;  %v150_v18 = vld [vmem:[%s6035_s1 + $0x3b8] sm:$0xff]  ;;  %v3236_v19 = vpack.c.bf16 %v100_v10, %v99_v9  ;;  %v3238_v21 = vpack.c.bf16 %v118_v16, %v117_v15 }
  0x20   :  { %3223 = vmatprep.subr.bf16.mxu1 %v3222_v39  ;;  %v3268_v20 = vpack.c.bf16 %v132_v14, %v131_v11  ;;  %v101_v22 = vld [vmem:[%s6035_s1 + $0x230] sm:$0xff]  ;;  %v102_v23 = vld [vmem:[%s6035_s1 + $0x238] sm:$0xff]  ;;  %v3270_v25 = vpack.c.bf16 %v150_v18, %v149_v17  ;;  %v120_v28 = vld [vmem:[%s6035_s1 + $0x2c8] sm:$0xff] }
  0x21   :  { %3193 = vmatpush3.bf16.msra.mxu0 %v3192_v46  ;;  %v133_v24 = vld [vmem:[%s6035_s1 + $0x330] sm:$0xff]  ;;  %v134_v26 = vld [vmem:[%s6035_s1 + $0x338] sm:$0xff]  ;;  %v151_v29 = vld [vmem:[%s6035_s1 + $0x3c0] sm:$0xff]  ;;  %v3240_v32 = vpack.c.bf16 %v102_v23, %v101_v22 }
  0x22   :  { %3227 = vmatprep.subr.bf16.mxu0 %v3226_v48  ;;  %v152_v30 = vld [vmem:[%s6035_s1 + $0x3c8] sm:$0xff]  ;;  %v3272_v35 = vpack.c.bf16 %v134_v26, %v133_v24  ;;  %v103_v37 = vld [vmem:[%s6035_s1 + $0x240] sm:$0xff]  ;;  %v121_v42 = vld [vmem:[%s6035_s1 + $0x2d0] sm:$0xff] }
  0x23   :  { %3225 = vmatpush3.bf16.msra.mxu1 %v3224_v47  ;;  %v22_v31 = vld [vmem:[%s6034_s0 + $0x8] sm:$0xff]  ;;  %v135_v39 = vld [vmem:[%s6035_s1 + $0x340] sm:$0xff]  ;;  %v3274_v40 = vpack.c.bf16 %v152_v30, %v151_v29  ;;  %v122_v43 = vld [vmem:[%s6035_s1 + $0x2d8] sm:$0xff] }
  0x24   :  { %3259 = vmatprep.subr.bf16.mxu1 %v3258_v52  ;;  %963 = vmatmul.mubr.f32.vlgmr.msra.gmra.mrb[0].mxu0 %v695_v27  ;;  %v119_v27 = vld [vmem:[%s6035_s1 + $0x2c0] sm:$0xff]  ;;  %v705_v34 = vcombine.high %v22_v31, %v22_v31  ;;  %v104_v38 = vld [vmem:[%s6035_s1 + $0x248] sm:$0xff]  ;;  %v153_v46 = vld [vmem:[%s6035_s1 + $0x3d0] sm:$0xff]  ;;  %v3246_v51 = vpack.c.bf16 %v122_v43, %v121_v42 }
  0x25   :  { %3229 = vmatpush3.bf16.msra.mxu0 %v3228_v58  ;;  %v3242_v36 = vpack.c.bf16 %v120_v28, %v119_v27  ;;  %v136_v41 = vld [vmem:[%s6035_s1 + $0x348] sm:$0xff]  ;;  %v154_v47 = vld [vmem:[%s6035_s1 + $0x3d8] sm:$0xff]  ;;  %v3244_v48 = vpack.c.bf16 %v104_v38, %v103_v37  ;;  %v105_v52 = vld [vmem:[%s6035_s1 + $0x250] sm:$0xff] }
  0x26   :  { %1033 = vmatmul.mubr.f32.vlgmr.msra.gmra.mrb[0].mxu1 %v702_v33  ;;  %3231 = vmatprep.subr.bf16.mxu0 %v3230_v60  ;;  %v4211_v33 = vrot.slane %v22_v31, %v4050_v13  ;;  %v4234_v45 = vrot.slane %v705_v34, %v4050_v13  ;;  %v3276_v50 = vpack.c.bf16 %v136_v41, %v135_v39  ;;  %v106_v53 = vld [vmem:[%s6035_s1 + $0x258] sm:$0xff]  ;;  %v137_v54 = vld [vmem:[%s6035_s1 + $0x350] sm:$0xff]  ;;  %v123_v57 = vld [vmem:[%s6035_s1 + $0x2e0] sm:$0xff] }
  0x27   :  { %3261 = vmatpush3.bf16.msra.mxu1 %v3260_v59  ;;  %v3278_v55 = vpack.c.bf16 %v154_v47, %v153_v46  ;;  %v138_v56 = vld [vmem:[%s6035_s1 + $0x358] sm:$0xff]  ;;  %v124_v58 = vld [vmem:[%s6035_s1 + $0x2e8] sm:$0xff]  ;;  %v155_v59 = vld [vmem:[%s6035_s1 + $0x3e0] sm:$0xff]  ;;  %v3248_v61 = vpack.c.bf16 %v106_v53, %v105_v52 }
  0x28   :  { %3263 = vmatprep.subr.bf16.mxu1 %v3262_v0  ;;  %v720_v44 = vcombine.high %v4211_v33, %v4211_v33  ;;  %v721_v49 = vcombine.high %v4234_v45, %v4234_v45  ;;  %v156_v60 = vld [vmem:[%s6035_s1 + $0x3e8] sm:$0xff]  ;;  %v3280_v62 = vpack.c.bf16 %v138_v56, %v137_v54  ;;  %v3250_v63 = vpack.c.bf16 %v124_v58, %v123_v57  ;;  %v107_v0 = vld [vmem:[%s6035_s1 + $0x260] sm:$0xff]  ;;  %v125_v5 = vld [vmem:[%s6035_s1 + $0x2f0] sm:$0xff] }
  0x29   :  { %3233 = vmatpush3.bf16.msra.mxu0 %v3232_v6  ;;  %v108_v1 = vld [vmem:[%s6035_s1 + $0x268] sm:$0xff]  ;;  %v139_v2 = vld [vmem:[%s6035_s1 + $0x360] sm:$0xff]  ;;  %v3282_v3 = vpack.c.bf16 %v156_v60, %v155_v59  ;;  %v126_v6 = vld [vmem:[%s6035_s1 + $0x2f8] sm:$0xff] }
  0x2a   :  { %3235 = vmatprep.subr.bf16.mxu0 %v3234_v8  ;;  %1102 = vmatprep.mubr.f32.mxu0 %v720_v44  ;;  %v140_v4 = vld [vmem:[%s6035_s1 + $0x368] sm:$0xff]  ;;  %v158_v8 = vld [vmem:[%s6035_s1 + $0x3f8] sm:$0xff]  ;;  %v3252_v9 = vpack.c.bf16 %v108_v1, %v107_v0  ;;  %v3254_v11 = vpack.c.bf16 %v126_v6, %v125_v5  ;;  %v141_v15 = vld [vmem:[%s6035_s1 + $0x370] sm:$0xff] }
  0x2b   :  { %3265 = vmatpush3.bf16.msra.mxu1 %v3264_v7  ;;  %1172 = vmatprep.mubr.f32.mxu1 %v721_v49  ;;  %v157_v7 = vld [vmem:[%s6035_s1 + $0x3f0] sm:$0xff]  ;;  %v3284_v10 = vpack.c.bf16 %v140_v4, %v139_v2  ;;  %v110_v14 = vld [vmem:[%s6035_s1 + $0x278] sm:$0xff]  ;;  %v175_v18 = vld [vmem:[%s6035_s1 + $0x480] sm:$0xff] }
  0x2c   :  { %3267 = vmatprep.subr.bf16.mxu1 %v3266_v12  ;;  %v109_v12 = vld [vmem:[%s6035_s1 + $0x270] sm:$0xff]  ;;  %v3286_v16 = vpack.c.bf16 %v158_v8, %v157_v7  ;;  %v142_v17 = vld [vmem:[%s6035_s1 + $0x378] sm:$0xff]  ;;  %v159_v23 = vld [vmem:[%s6035_s1 + $0x400] sm:$0xff] }
  0x2d   :  { %3237 = vmatpush3.bf16.msra.mxu0 %v3236_v19  ;;  %v176_v19 = vld [vmem:[%s6035_s1 + $0x488] sm:$0xff]  ;;  %v3256_v22 = vpack.c.bf16 %v110_v14, %v109_v12  ;;  %v3288_v24 = vpack.c.bf16 %v142_v17, %v141_v15  ;;  %v191_v27 = vld [vmem:[%s6035_s1 + $0x500] sm:$0xff]  ;;  %v177_v30 = vld [vmem:[%s6035_s1 + $0x490] sm:$0xff] }
  0x2e   :  { %3239 = vmatprep.subr.bf16.mxu0 %v3238_v21  ;;  %v208_v21 = vld [vmem:[%s6035_s1 + $0x588] sm:$0xff]  ;;  %v178_v31 = vld [vmem:[%s6035_s1 + $0x498] sm:$0xff]  ;;  %v23_v37 = vld [vmem:[%s6034_s0 + $0x10] sm:$0xff] }
  0x2f   :  { %3269 = vmatpush3.bf16.msra.mxu1 %v3268_v20  ;;  %v207_v20 = vld [vmem:[%s6035_s1 + $0x580] sm:$0xff]  ;;  %v160_v26 = vld [vmem:[%s6035_s1 + $0x408] sm:$0xff]  ;;  %v210_v34 = vld [vmem:[%s6035_s1 + $0x598] sm:$0xff]  ;;  %v3294_v38 = vpack.c.bf16 %v178_v31, %v177_v30  ;;  %v4353_v42 = vrot.slane %v23_v37, %v4050_v13  ;;  %v722_v43 = vcombine.high %v23_v37, %v23_v37 }
  0x30   :  { %3271 = vmatprep.subr.bf16.mxu1 %v3270_v25  ;;  %v3290_v25 = vpack.c.bf16 %v176_v19, %v175_v18  ;;  %v192_v28 = vld [vmem:[%s6035_s1 + $0x508] sm:$0xff]  ;;  %v3322_v29 = vpack.c.bf16 %v208_v21, %v207_v20  ;;  %v161_v39 = vld [vmem:[%s6035_s1 + $0x410] sm:$0xff]  ;;  %v194_v46 = vld [vmem:[%s6035_s1 + $0x518] sm:$0xff] }
  0x31   :  { %3241 = vmatpush3.bf16.msra.mxu0 %v3240_v32  ;;  %v209_v32 = vld [vmem:[%s6035_s1 + $0x590] sm:$0xff]  ;;  %v179_v47 = vld [vmem:[%s6035_s1 + $0x4a0] sm:$0xff]  ;;  %v4374_v52 = vrot.slane %v722_v43, %v4050_v13  ;;  %v164_v56 = vld [vmem:[%s6035_s1 + $0x428] sm:$0xff] }
  0x32   :  { %3243 = vmatprep.subr.bf16.mxu0 %v3242_v36  ;;  %v3324_v36 = vpack.c.bf16 %v192_v28, %v191_v27  ;;  %v193_v41 = vld [vmem:[%s6035_s1 + $0x510] sm:$0xff]  ;;  %v3326_v44 = vpack.c.bf16 %v210_v34, %v209_v32  ;;  %v211_v49 = vld [vmem:[%s6035_s1 + $0x5a0] sm:$0xff]  ;;  %v196_v59 = vld [vmem:[%s6035_s1 + $0x528] sm:$0xff] }
  0x33   :  { %3273 = vmatpush3.bf16.msra.mxu1 %v3272_v35  ;;  %v3292_v35 = vpack.c.bf16 %v160_v26, %v159_v23  ;;  %v195_v57 = vld [vmem:[%s6035_s1 + $0x520] sm:$0xff]  ;;  %v181_v60 = vld [vmem:[%s6035_s1 + $0x4b0] sm:$0xff]  ;;  %v166_v4 = vld [vmem:[%s6035_s1 + $0x438] sm:$0xff] }
  0x34   :  { %3275 = vmatprep.subr.bf16.mxu1 %v3274_v40  ;;  %v162_v40 = vld [vmem:[%s6035_s1 + $0x418] sm:$0xff]  ;;  %v3332_v1 = vpack.c.bf16 %v196_v59, %v195_v57  ;;  %v197_v5 = vld [vmem:[%s6035_s1 + $0x530] sm:$0xff]  ;;  %v183_v8 = vld [vmem:[%s6035_s1 + $0x4c0] sm:$0xff] }
  0x35   :  { %3245 = vmatpush3.bf16.msra.mxu0 %v3244_v48  ;;  %v180_v48 = vld [vmem:[%s6035_s1 + $0x4a8] sm:$0xff]  ;;  %v3296_v53 = vpack.c.bf16 %v162_v40, %v161_v39  ;;  %v198_v7 = vld [vmem:[%s6035_s1 + $0x538] sm:$0xff]  ;;  %v199_v18 = vld [vmem:[%s6035_s1 + $0x540] sm:$0xff] }
  0x36   :  { %3247 = vmatprep.subr.bf16.mxu0 %v3246_v51  ;;  %v737_v51 = vcombine.high %v4353_v42, %v4353_v42  ;;  %v3298_v54 = vpack.c.bf16 %v180_v48, %v179_v47  ;;  %v3336_v14 = vpack.c.bf16 %v198_v7, %v197_v5  ;;  %v168_v17 = vld [vmem:[%s6035_s1 + $0x448] sm:$0xff]  ;;  %v185_v21 = vld [vmem:[%s6035_s1 + $0x4d0] sm:$0xff]  ;;  %v202_v32 = vld [vmem:[%s6035_s1 + $0x558] sm:$0xff] }
  0x37   :  { %3277 = vmatpush3.bf16.msra.mxu1 %v3276_v50  ;;  %v212_v50 = vld [vmem:[%s6035_s1 + $0x5a8] sm:$0xff]  ;;  %v217_v23 = vld [vmem:[%s6035_s1 + $0x5d0] sm:$0xff]  ;;  %v187_v34 = vld [vmem:[%s6035_s1 + $0x4e0] sm:$0xff] }
  0x38   :  { %3279 = vmatprep.subr.bf16.mxu1 %v3278_v55  ;;  %v163_v55 = vld [vmem:[%s6035_s1 + $0x420] sm:$0xff]  ;;  %v3330_v58 = vpack.c.bf16 %v212_v50, %v211_v49  ;;  %v200_v20 = vld [vmem:[%s6035_s1 + $0x548] sm:$0xff]  ;;  %v169_v28 = vld [vmem:[%s6035_s1 + $0x450] sm:$0xff] }
  0x39   :  { %3249 = vmatpush3.bf16.msra.mxu0 %v3248_v61  ;;  %v182_v61 = vld [vmem:[%s6035_s1 + $0x4b8] sm:$0xff]  ;;  %v3300_v0 = vpack.c.bf16 %v164_v56, %v163_v55  ;;  %v3340_v26 = vpack.c.bf16 %v200_v20, %v199_v18  ;;  %v201_v30 = vld [vmem:[%s6035_s1 + $0x550] sm:$0xff]  ;;  %v220_v37 = vld [vmem:[%s6035_s1 + $0x5e8] sm:$0xff] }
  0x3a   :  { %3251 = vmatprep.subr.bf16.mxu0 %v3250_v63  ;;  %v214_v63 = vld [vmem:[%s6035_s1 + $0x5b8] sm:$0xff]  ;;  %v3302_v2 = vpack.c.bf16 %v182_v61, %v181_v60  ;;  %v3344_v39 = vpack.c.bf16 %v202_v32, %v201_v30  ;;  %v172_v43 = vld [vmem:[%s6035_s1 + $0x468] sm:$0xff]  ;;  %v189_v48 = vld [vmem:[%s6035_s1 + $0x4f0] sm:$0xff] }
  0x3b   :  { %3281 = vmatpush3.bf16.msra.mxu1 %v3280_v62  ;;  %v213_v62 = vld [vmem:[%s6035_s1 + $0x5b0] sm:$0xff]  ;;  %v204_v47 = vld [vmem:[%s6035_s1 + $0x568] sm:$0xff]  ;;  %v190_v49 = vld [vmem:[%s6035_s1 + $0x4f8] sm:$0xff] }
  0x3c   :  { %3283 = vmatprep.subr.bf16.mxu1 %v3282_v3  ;;  %v165_v3 = vld [vmem:[%s6035_s1 + $0x430] sm:$0xff]  ;;  %v3334_v6 = vpack.c.bf16 %v214_v63, %v213_v62  ;;  %v3318_v55 = vpack.c.bf16 %v190_v49, %v189_v48  ;;  %v174_v57 = vld [vmem:[%s6035_s1 + $0x478] sm:$0xff]  ;;  %v239_v60 = vld [vmem:[%s6035_s1 + $0x680] sm:$0xff] }
  0x3d   :  { %3253 = vmatpush3.bf16.msra.mxu0 %v3252_v9  ;;  %v184_v9 = vld [vmem:[%s6035_s1 + $0x4c8] sm:$0xff]  ;;  %v3304_v12 = vpack.c.bf16 %v166_v4, %v165_v3  ;;  %v221_v50 = vld [vmem:[%s6035_s1 + $0x5f0] sm:$0xff]  ;;  %v206_v59 = vld [vmem:[%s6035_s1 + $0x578] sm:$0xff] }
  0x3e   :  { %3255 = vmatprep.subr.bf16.mxu0 %v3254_v11  ;;  %v216_v11 = vld [vmem:[%s6035_s1 + $0x5c8] sm:$0xff]  ;;  %v3306_v15 = vpack.c.bf16 %v184_v9, %v183_v8  ;;  %v173_v56 = vld [vmem:[%s6035_s1 + $0x470] sm:$0xff]  ;;  %v271_v62 = vld [vmem:[%s6035_s1 + $0x780] sm:$0xff] }
  0x3f   :  { %3285 = vmatpush3.bf16.msra.mxu1 %v3284_v10  ;;  %v215_v10 = vld [vmem:[%s6035_s1 + $0x5c0] sm:$0xff]  ;;  %v240_v61 = vld [vmem:[%s6035_s1 + $0x688] sm:$0xff]  ;;  %v241_v9 = vld [vmem:[%s6035_s1 + $0x690] sm:$0xff] }
  0x40   :  { %3287 = vmatprep.subr.bf16.mxu1 %v3286_v16  ;;  %v167_v16 = vld [vmem:[%s6035_s1 + $0x440] sm:$0xff]  ;;  %v3338_v19 = vpack.c.bf16 %v216_v11, %v215_v10  ;;  %v272_v63 = vld [vmem:[%s6035_s1 + $0x788] sm:$0xff]  ;;  %v3354_v3 = vpack.c.bf16 %v240_v61, %v239_v60  ;;  %v242_v10 = vld [vmem:[%s6035_s1 + $0x698] sm:$0xff] }
  0x41   :  { %3257 = vmatpush3.bf16.msra.mxu0 %v3256_v22  ;;  %v186_v22 = vld [vmem:[%s6035_s1 + $0x4d8] sm:$0xff]  ;;  %v223_v4 = vld [vmem:[%s6035_s1 + $0x600] sm:$0xff]  ;;  %v224_v5 = vld [vmem:[%s6035_s1 + $0x608] sm:$0xff]  ;;  %v3386_v7 = vpack.c.bf16 %v272_v63, %v271_v62  ;;  %v3358_v18 = vpack.c.bf16 %v242_v10, %v241_v9 }
  0x42   :  { %3291 = vmatprep.subr.bf16.mxu0 %v3290_v25  ;;  %v3308_v25 = vpack.c.bf16 %v168_v17, %v167_v16  ;;  %v3310_v27 = vpack.c.bf16 %v186_v22, %v185_v21  ;;  %v256_v8 = vld [vmem:[%s6035_s1 + $0x708] sm:$0xff]  ;;  %v3356_v16 = vpack.c.bf16 %v224_v5, %v223_v4  ;;  %v226_v20 = vld [vmem:[%s6035_s1 + $0x618] sm:$0xff]  ;;  %v257_v21 = vld [vmem:[%s6035_s1 + $0x710] sm:$0xff] }
  0x43   :  { %3289 = vmatpush3.bf16.msra.mxu1 %v3288_v24  ;;  %v218_v24 = vld [vmem:[%s6035_s1 + $0x5d8] sm:$0xff]  ;;  %v261_v48 = vld [vmem:[%s6035_s1 + $0x730] sm:$0xff]  ;;  %v264_v61 = vld [vmem:[%s6035_s1 + $0x748] sm:$0xff] }
  0x44   :  { %3323 = vmatprep.subr.bf16.mxu1 %v3322_v29  ;;  %1103 = vmatmul.mubr.f32.vlgmr.msra.gmra.mrb[2].mxu0 %v4211_v33  ;;  %v3328_v33 = vpack.c.bf16 %v194_v46, %v193_v41  ;;  %v170_v29 = vld [vmem:[%s6035_s1 + $0x458] sm:$0xff]  ;;  %v3342_v31 = vpack.c.bf16 %v218_v24, %v217_v23  ;;  %v171_v41 = vld [vmem:[%s6035_s1 + $0x460] sm:$0xff]  ;;  %v249_v62 = vld [vmem:[%s6035_s1 + $0x6d0] sm:$0xff] }
  0x45   :  { %3293 = vmatpush3.bf16.msra.mxu0 %v3292_v35  ;;  %1242 = vmatprep.mubr.f32.mxu0 %v737_v51  ;;  %v188_v35 = vld [vmem:[%s6035_s1 + $0x4e8] sm:$0xff]  ;;  %v222_v51 = vld [vmem:[%s6035_s1 + $0x5f8] sm:$0xff]  ;;  %v243_v24 = vld [vmem:[%s6035_s1 + $0x6a0] sm:$0xff] }
  0x46   :  { %1173 = vmatmul.mubr.f32.vlgmr.msra.gmra.mrb[2].mxu1 %v4234_v45  ;;  %3295 = vmatprep.subr.bf16.mxu0 %v3294_v38  ;;  %v738_v45 = vcombine.high %v4374_v52, %v4374_v52  ;;  %v3312_v38 = vpack.c.bf16 %v170_v29, %v169_v28  ;;  %v3314_v40 = vpack.c.bf16 %v188_v35, %v187_v34  ;;  %v258_v23 = vld [vmem:[%s6035_s1 + $0x718] sm:$0xff]  ;;  %v276_v28 = vld [vmem:[%s6035_s1 + $0x7a8] sm:$0xff]  ;;  %v259_v35 = vld [vmem:[%s6035_s1 + $0x720] sm:$0xff] }
  0x47   :  { %3325 = vmatpush3.bf16.msra.mxu1 %v3324_v36  ;;  %v219_v36 = vld [vmem:[%s6035_s1 + $0x5e0] sm:$0xff]  ;;  %v228_v34 = vld [vmem:[%s6035_s1 + $0x628] sm:$0xff]  ;;  %v250_v63 = vld [vmem:[%s6035_s1 + $0x6d8] sm:$0xff] }
  0x48   :  { %3327 = vmatprep.subr.bf16.mxu1 %v3326_v44  ;;  %1312 = vmatprep.mubr.f32.mxu1 %v738_v45  ;;  %v203_v44 = vld [vmem:[%s6035_s1 + $0x560] sm:$0xff]  ;;  %v3346_v46 = vpack.c.bf16 %v220_v37, %v219_v36  ;;  %v205_v45 = vld [vmem:[%s6035_s1 + $0x570] sm:$0xff]  ;;  %v3374_v4 = vpack.c.bf16 %v250_v63, %v249_v62  ;;  %v266_v9 = vld [vmem:[%s6035_s1 + $0x758] sm:$0xff] }
  0x49   :  { %3297 = vmatpush3.bf16.msra.mxu0 %v3296_v53  ;;  %v3316_v53 = vpack.c.bf16 %v172_v43, %v171_v41  ;;  %v245_v37 = vld [vmem:[%s6035_s1 + $0x6b0] sm:$0xff]  ;;  %v251_v10 = vld [vmem:[%s6035_s1 + $0x6e0] sm:$0xff] }
  0x4a   :  { %3299 = vmatprep.subr.bf16.mxu0 %v3298_v54  ;;  %v3348_v54 = vpack.c.bf16 %v204_v47, %v203_v44  ;;  %v230_v47 = vld [vmem:[%s6035_s1 + $0x638] sm:$0xff]  ;;  %v233_v5 = vld [vmem:[%s6035_s1 + $0x650] sm:$0xff] }
  0x4b   :  { %3329 = vmatpush3.bf16.msra.mxu1 %v3328_v33  ;;  %v24_v33 = vld [vmem:[%s6034_s0 + $0x18] sm:$0xff]  ;;  %v321_v62 = vld [vmem:[%s6035_s1 + $0x910] sm:$0xff] }
  0x4c   :  { %3331 = vmatprep.subr.bf16.mxu1 %v3330_v58  ;;  %v3350_v58 = vpack.c.bf16 %v222_v51, %v221_v50  ;;  %v4545_v11 = vrot.slane %v24_v33, %v4050_v13  ;;  %v262_v50 = vld [vmem:[%s6035_s1 + $0x738] sm:$0xff]  ;;  %v247_v51 = vld [vmem:[%s6035_s1 + $0x6c0] sm:$0xff] }
  0x4d   :  { %3301 = vmatpush3.bf16.msra.mxu0 %v3300_v0  ;;  %v739_v0 = vcombine.high %v24_v33, %v24_v33  ;;  %v279_v33 = vld [vmem:[%s6035_s1 + $0x7c0] sm:$0xff] }
  0x4e   :  { %3303 = vmatprep.subr.bf16.mxu0 %v3302_v2  ;;  %v3352_v2 = vpack.c.bf16 %v206_v59, %v205_v45  ;;  %v231_v45 = vld [vmem:[%s6035_s1 + $0x640] sm:$0xff] }
  0x4f   :  { %3333 = vmatpush3.bf16.msra.mxu1 %v3332_v1  ;;  %v3320_v1 = vpack.c.bf16 %v174_v57, %v173_v56  ;;  %v3400_v56 = vpack.c.bf16 %v262_v50, %v261_v48  ;;  %v263_v59 = vld [vmem:[%s6035_s1 + $0x740] sm:$0xff]  ;;  %v288_v48 = vld [vmem:[%s6035_s1 + $0x808] sm:$0xff] }
  0x50   :  { %3335 = vmatprep.subr.bf16.mxu1 %v3334_v6  ;;  %v255_v6 = vld [vmem:[%s6035_s1 + $0x700] sm:$0xff] }
  0x51   :  { %3305 = vmatpush3.bf16.msra.mxu0 %v3304_v12  ;;  %v273_v12 = vld [vmem:[%s6035_s1 + $0x790] sm:$0xff]  ;;  %v3388_v17 = vpack.c.bf16 %v256_v8, %v255_v6  ;;  %v234_v6 = vld [vmem:[%s6035_s1 + $0x658] sm:$0xff] }
  0x52   :  { %3307 = vmatprep.subr.bf16.mxu0 %v3306_v15  ;;  %v4554_v15 = vrot.slane %v739_v0, %v4050_v13  ;;  %v281_v0 = vld [vmem:[%s6035_s1 + $0x7d0] sm:$0xff] }
  0x53   :  { %3337 = vmatpush3.bf16.msra.mxu1 %v3336_v14  ;;  %v274_v14 = vld [vmem:[%s6035_s1 + $0x798] sm:$0xff] }
  0x54   :  { %3339 = vmatprep.subr.bf16.mxu1 %v3338_v19  ;;  %v225_v19 = vld [vmem:[%s6035_s1 + $0x610] sm:$0xff]  ;;  %v3390_v22 = vpack.c.bf16 %v274_v14, %v273_v12  ;;  %v755_v29 = vcombine.high %v4554_v15, %v4554_v15  ;;  %v252_v12 = vld [vmem:[%s6035_s1 + $0x6e8] sm:$0xff]  ;;  %v283_v14 = vld [vmem:[%s6035_s1 + $0x7e0] sm:$0xff] }
  0x55   :  { %3309 = vmatpush3.bf16.msra.mxu0 %v3308_v25  ;;  %v244_v25 = vld [vmem:[%s6035_s1 + $0x6a8] sm:$0xff]  ;;  %v3360_v30 = vpack.c.bf16 %v226_v20, %v225_v19  ;;  %v3378_v19 = vpack.c.bf16 %v252_v12, %v251_v10  ;;  %v235_v20 = vld [vmem:[%s6035_s1 + $0x660] sm:$0xff] }
  0x56   :  { %3311 = vmatprep.subr.bf16.mxu0 %v3310_v27  ;;  %v275_v27 = vld [vmem:[%s6035_s1 + $0x7a0] sm:$0xff]  ;;  %v3362_v32 = vpack.c.bf16 %v244_v25, %v243_v24  ;;  %v268_v24 = vld [vmem:[%s6035_s1 + $0x768] sm:$0xff]  ;;  %v253_v25 = vld [vmem:[%s6035_s1 + $0x6f0] sm:$0xff] }
  0x57   :  { %3341 = vmatpush3.bf16.msra.mxu1 %v3340_v26  ;;  %v754_v26 = vcombine.high %v4545_v11, %v4545_v11  ;;  %v3394_v36 = vpack.c.bf16 %v276_v28, %v275_v27  ;;  %v285_v27 = vld [vmem:[%s6035_s1 + $0x7f0] sm:$0xff]  ;;  %v286_v28 = vld [vmem:[%s6035_s1 + $0x7f8] sm:$0xff]  ;;  %v292_v10 = vld [vmem:[%s6035_s1 + $0x828] sm:$0xff] }
  0x58   :  { %3343 = vmatprep.subr.bf16.mxu1 %v3342_v31  ;;  %v3392_v31 = vpack.c.bf16 %v258_v23, %v257_v21  ;;  %v236_v21 = vld [vmem:[%s6035_s1 + $0x668] sm:$0xff]  ;;  %v323_v12 = vld [vmem:[%s6035_s1 + $0x920] sm:$0xff] }
  0x59   :  { %3313 = vmatpush3.bf16.msra.mxu0 %v3312_v38  ;;  %v246_v38 = vld [vmem:[%s6035_s1 + $0x6b8] sm:$0xff] }
  0x5a   :  { %3315 = vmatprep.subr.bf16.mxu0 %v3314_v40  ;;  %v278_v40 = vld [vmem:[%s6035_s1 + $0x7b8] sm:$0xff]  ;;  %v3366_v44 = vpack.c.bf16 %v246_v38, %v245_v37  ;;  %v303_v37 = vld [vmem:[%s6035_s1 + $0x880] sm:$0xff]  ;;  %v304_v38 = vld [vmem:[%s6035_s1 + $0x888] sm:$0xff] }
  0x5b   :  { %3345 = vmatpush3.bf16.msra.mxu1 %v3344_v39  ;;  %v277_v39 = vld [vmem:[%s6035_s1 + $0x7b0] sm:$0xff] }
  0x5c   :  { %3347 = vmatprep.subr.bf16.mxu1 %v3346_v46  ;;  %v229_v46 = vld [vmem:[%s6035_s1 + $0x630] sm:$0xff]  ;;  %v3398_v49 = vpack.c.bf16 %v278_v40, %v277_v39  ;;  %v335_v39 = vld [vmem:[%s6035_s1 + $0x980] sm:$0xff]  ;;  %v336_v40 = vld [vmem:[%s6035_s1 + $0x988] sm:$0xff] }
  0x5d   :  { %3317 = vmatpush3.bf16.msra.mxu0 %v3316_v53  ;;  %v248_v53 = vld [vmem:[%s6035_s1 + $0x6c8] sm:$0xff]  ;;  %v3450_v50 = vpack.c.bf16 %v336_v40, %v335_v39  ;;  %v313_v39 = vld [vmem:[%s6035_s1 + $0x8d0] sm:$0xff]  ;;  %v314_v40 = vld [vmem:[%s6035_s1 + $0x8d8] sm:$0xff] }
  0x5e   :  { %3319 = vmatprep.subr.bf16.mxu0 %v3318_v55  ;;  %v3368_v55 = vpack.c.bf16 %v230_v47, %v229_v46  ;;  %v3370_v57 = vpack.c.bf16 %v248_v53, %v247_v51  ;;  %v3418_v46 = vpack.c.bf16 %v304_v38, %v303_v37  ;;  %v287_v47 = vld [vmem:[%s6035_s1 + $0x800] sm:$0xff]  ;;  %v320_v51 = vld [vmem:[%s6035_s1 + $0x908] sm:$0xff]  ;;  %v305_v53 = vld [vmem:[%s6035_s1 + $0x890] sm:$0xff] }
  0x5f   :  { %3349 = vmatpush3.bf16.msra.mxu1 %v3348_v54  ;;  %v280_v54 = vld [vmem:[%s6035_s1 + $0x7c8] sm:$0xff] }
  0x60   :  { %3351 = vmatprep.subr.bf16.mxu1 %v3350_v58  ;;  %v232_v58 = vld [vmem:[%s6035_s1 + $0x648] sm:$0xff]  ;;  %v3402_v60 = vpack.c.bf16 %v280_v54, %v279_v33  ;;  %v306_v33 = vld [vmem:[%s6035_s1 + $0x898] sm:$0xff] }
  0x61   :  { %3321 = vmatpush3.bf16.msra.mxu0 %v3320_v1  ;;  %v282_v1 = vld [vmem:[%s6035_s1 + $0x7d8] sm:$0xff]  ;;  %v328_v38 = vld [vmem:[%s6035_s1 + $0x948] sm:$0xff] }
  0x62   :  { %3355 = vmatprep.subr.bf16.mxu0 %v3354_v3  ;;  %v3404_v3 = vpack.c.bf16 %v264_v61, %v263_v59  ;;  %v3406_v8 = vpack.c.bf16 %v282_v1, %v281_v0  ;;  %v3422_v59 = vpack.c.bf16 %v306_v33, %v305_v53  ;;  %v290_v61 = vld [vmem:[%s6035_s1 + $0x818] sm:$0xff]  ;;  %v307_v1 = vld [vmem:[%s6035_s1 + $0x8a0] sm:$0xff] }
  0x63   :  { %3353 = vmatpush3.bf16.msra.mxu1 %v3352_v2  ;;  %v3372_v2 = vpack.c.bf16 %v232_v58, %v231_v45  ;;  %v3420_v45 = vpack.c.bf16 %v288_v48, %v287_v47  ;;  %v322_v0 = vld [vmem:[%s6035_s1 + $0x918] sm:$0xff]  ;;  %v3438_v47 = vpack.c.bf16 %v314_v40, %v313_v39  ;;  %v297_v48 = vld [vmem:[%s6035_s1 + $0x850] sm:$0xff]  ;;  %v315_v33 = vld [vmem:[%s6035_s1 + $0x8e0] sm:$0xff] }
  0x64   :  { %3387 = vmatprep.subr.bf16.mxu1 %v3386_v7  ;;  %1243 = vmatmul.mubr.f32.vlgmr.msra.gmra.mrb[4].mxu0 %v4353_v42  ;;  %v227_v42 = vld [vmem:[%s6035_s1 + $0x620] sm:$0xff]  ;;  %v265_v7 = vld [vmem:[%s6035_s1 + $0x750] sm:$0xff]  ;;  %v330_v53 = vld [vmem:[%s6035_s1 + $0x958] sm:$0xff] }
  0x65   :  { %3357 = vmatpush3.bf16.msra.mxu0 %v3356_v16  ;;  %1382 = vmatprep.mubr.f32.mxu0 %v754_v26  ;;  %v3364_v41 = vpack.c.bf16 %v228_v34, %v227_v42  ;;  %v284_v16 = vld [vmem:[%s6035_s1 + $0x7e8] sm:$0xff]  ;;  %v254_v26 = vld [vmem:[%s6035_s1 + $0x6f8] sm:$0xff]  ;;  %v237_v42 = vld [vmem:[%s6035_s1 + $0x670] sm:$0xff] }
  0x66   :  { %1313 = vmatmul.mubr.f32.vlgmr.msra.gmra.mrb[4].mxu1 %v4374_v52  ;;  %3359 = vmatprep.subr.bf16.mxu0 %v3358_v18  ;;  %v260_v52 = vld [vmem:[%s6035_s1 + $0x728] sm:$0xff]  ;;  %v3408_v18 = vpack.c.bf16 %v266_v9, %v265_v7  ;;  %v3410_v23 = vpack.c.bf16 %v284_v16, %v283_v14  ;;  %v238_v34 = vld [vmem:[%s6035_s1 + $0x678] sm:$0xff]  ;;  %v309_v16 = vld [vmem:[%s6035_s1 + $0x8b0] sm:$0xff] }
  0x67   :  { %3389 = vmatpush3.bf16.msra.mxu1 %v3388_v17  ;;  %1452 = vmatprep.mubr.f32.mxu1 %v755_v29  ;;  %v3396_v43 = vpack.c.bf16 %v260_v52, %v259_v35  ;;  %v3376_v17 = vpack.c.bf16 %v234_v6, %v233_v5  ;;  %v3380_v29 = vpack.c.bf16 %v236_v21, %v235_v20  ;;  %v269_v35 = vld [vmem:[%s6035_s1 + $0x770] sm:$0xff]  ;;  %v270_v52 = vld [vmem:[%s6035_s1 + $0x778] sm:$0xff]  ;;  %v340_v5 = vld [vmem:[%s6035_s1 + $0x9a8] sm:$0xff] }
  0x68   :  { %3391 = vmatprep.subr.bf16.mxu1 %v3390_v22  ;;  %v267_v22 = vld [vmem:[%s6035_s1 + $0x760] sm:$0xff]  ;;  %v385_v39 = vld [vmem:[%s6035_s1 + $0xb10] sm:$0xff] }
  0x69   :  { %3361 = vmatpush3.bf16.msra.mxu0 %v3360_v30  ;;  %v25_v30 = vld [vmem:[%s6034_s0 + $0x20] sm:$0xff] }
  0x6a   :  { %3363 = vmatprep.subr.bf16.mxu0 %v3362_v32  ;;  %v3382_v32 = vpack.c.bf16 %v254_v26, %v253_v25  ;;  %v4752_v54 = vrot.slane %v25_v30, %v4050_v13  ;;  %v325_v25 = vld [vmem:[%s6035_s1 + $0x930] sm:$0xff] }
  0x6b   :  { %3393 = vmatpush3.bf16.msra.mxu1 %v3392_v31  ;;  %v3412_v31 = vpack.c.bf16 %v268_v24, %v267_v22  ;;  %v294_v24 = vld [vmem:[%s6035_s1 + $0x838] sm:$0xff] }
  0x6c   :  { %3395 = vmatprep.subr.bf16.mxu1 %v3394_v36  ;;  %v3414_v36 = vpack.c.bf16 %v286_v28, %v285_v27  ;;  %v326_v27 = vld [vmem:[%s6035_s1 + $0x938] sm:$0xff]  ;;  %v311_v28 = vld [vmem:[%s6035_s1 + $0x8c0] sm:$0xff] }
  0x6d   :  { %3365 = vmatpush3.bf16.msra.mxu0 %v3364_v41  ;;  %v756_v41 = vcombine.high %v25_v30, %v25_v30  ;;  %v343_v30 = vld [vmem:[%s6035_s1 + $0x9c0] sm:$0xff] }
  0x6e   :  { %3367 = vmatprep.subr.bf16.mxu0 %v3366_v44  ;;  %v3416_v44 = vpack.c.bf16 %v270_v52, %v269_v35  ;;  %v295_v35 = vld [vmem:[%s6035_s1 + $0x840] sm:$0xff] }
  0x6f   :  { %3397 = vmatpush3.bf16.msra.mxu1 %v3396_v43  ;;  %v3384_v43 = vpack.c.bf16 %v238_v34, %v237_v42  ;;  %v3464_v42 = vpack.c.bf16 %v326_v27, %v325_v25  ;;  %v327_v52 = vld [vmem:[%s6035_s1 + $0x940] sm:$0xff]  ;;  %v352_v25 = vld [vmem:[%s6035_s1 + $0xa08] sm:$0xff] }
  0x70   :  { %3399 = vmatprep.subr.bf16.mxu1 %v3398_v49  ;;  %v319_v49 = vld [vmem:[%s6035_s1 + $0x900] sm:$0xff] }
  0x71   :  { %3369 = vmatpush3.bf16.msra.mxu0 %v3368_v55  ;;  %v337_v55 = vld [vmem:[%s6035_s1 + $0x990] sm:$0xff]  ;;  %v3452_v58 = vpack.c.bf16 %v320_v51, %v319_v49  ;;  %v298_v49 = vld [vmem:[%s6035_s1 + $0x858] sm:$0xff] }
  0x72   :  { %3371 = vmatprep.subr.bf16.mxu0 %v3370_v57  ;;  %v4761_v57 = vrot.slane %v756_v41, %v4050_v13  ;;  %v345_v41 = vld [vmem:[%s6035_s1 + $0x9d0] sm:$0xff] }
  0x73   :  { %3401 = vmatpush3.bf16.msra.mxu1 %v3400_v56  ;;  %v338_v56 = vld [vmem:[%s6035_s1 + $0x998] sm:$0xff] }
  0x74   :  { %3403 = vmatprep.subr.bf16.mxu1 %v3402_v60  ;;  %v289_v60 = vld [vmem:[%s6035_s1 + $0x810] sm:$0xff]  ;;  %v3454_v63 = vpack.c.bf16 %v338_v56, %v337_v55  ;;  %v772_v6 = vcombine.high %v4761_v57, %v4761_v57  ;;  %v316_v55 = vld [vmem:[%s6035_s1 + $0x8e8] sm:$0xff]  ;;  %v347_v56 = vld [vmem:[%s6035_s1 + $0x9e0] sm:$0xff] }
  0x75   :  { %3373 = vmatpush3.bf16.msra.mxu0 %v3372_v2  ;;  %v308_v2 = vld [vmem:[%s6035_s1 + $0x8a8] sm:$0xff]  ;;  %v3424_v7 = vpack.c.bf16 %v290_v61, %v289_v60  ;;  %v3442_v60 = vpack.c.bf16 %v316_v55, %v315_v33  ;;  %v299_v61 = vld [vmem:[%s6035_s1 + $0x860] sm:$0xff] }
  0x76   :  { %3375 = vmatprep.subr.bf16.mxu0 %v3374_v4  ;;  %v339_v4 = vld [vmem:[%s6035_s1 + $0x9a0] sm:$0xff]  ;;  %v3426_v9 = vpack.c.bf16 %v308_v2, %v307_v1  ;;  %v332_v1 = vld [vmem:[%s6035_s1 + $0x968] sm:$0xff]  ;;  %v317_v2 = vld [vmem:[%s6035_s1 + $0x8f0] sm:$0xff] }
  0x77   :  { %3405 = vmatpush3.bf16.msra.mxu1 %v3404_v3  ;;  %v771_v3 = vcombine.high %v4752_v54, %v4752_v54  ;;  %v3458_v14 = vpack.c.bf16 %v340_v5, %v339_v4  ;;  %v349_v4 = vld [vmem:[%s6035_s1 + $0x9f0] sm:$0xff]  ;;  %v350_v5 = vld [vmem:[%s6035_s1 + $0x9f8] sm:$0xff]  ;;  %v356_v33 = vld [vmem:[%s6035_s1 + $0xa28] sm:$0xff] }
  0x78   :  { %3407 = vmatprep.subr.bf16.mxu1 %v3406_v8  ;;  %v3456_v8 = vpack.c.bf16 %v322_v0, %v321_v62  ;;  %v300_v62 = vld [vmem:[%s6035_s1 + $0x868] sm:$0xff]  ;;  %v387_v55 = vld [vmem:[%s6035_s1 + $0xb20] sm:$0xff] }
  0x79   :  { %3377 = vmatpush3.bf16.msra.mxu0 %v3376_v17  ;;  %v310_v17 = vld [vmem:[%s6035_s1 + $0x8b8] sm:$0xff] }
  0x7a   :  { %3379 = vmatprep.subr.bf16.mxu0 %v3378_v19  ;;  %v342_v19 = vld [vmem:[%s6035_s1 + $0x9b8] sm:$0xff]  ;;  %v3430_v22 = vpack.c.bf16 %v310_v17, %v309_v16  ;;  %v367_v16 = vld [vmem:[%s6035_s1 + $0xa80] sm:$0xff]  ;;  %v368_v17 = vld [vmem:[%s6035_s1 + $0xa88] sm:$0xff] }
  0x7b   :  { %3409 = vmatpush3.bf16.msra.mxu1 %v3408_v18  ;;  %v341_v18 = vld [vmem:[%s6035_s1 + $0x9b0] sm:$0xff] }
  0x7c   :  { %3411 = vmatprep.subr.bf16.mxu1 %v3410_v23  ;;  %v293_v23 = vld [vmem:[%s6035_s1 + $0x830] sm:$0xff]  ;;  %v3462_v26 = vpack.c.bf16 %v342_v19, %v341_v18  ;;  %v399_v18 = vld [vmem:[%s6035_s1 + $0xb80] sm:$0xff]  ;;  %v400_v19 = vld [vmem:[%s6035_s1 + $0xb88] sm:$0xff] }
  0x7d   :  { %3381 = vmatpush3.bf16.msra.mxu0 %v3380_v29  ;;  %v312_v29 = vld [vmem:[%s6035_s1 + $0x8c8] sm:$0xff]  ;;  %v3514_v27 = vpack.c.bf16 %v400_v19, %v399_v18  ;;  %v377_v18 = vld [vmem:[%s6035_s1 + $0xad0] sm:$0xff]  ;;  %v378_v19 = vld [vmem:[%s6035_s1 + $0xad8] sm:$0xff] }
  0x7e   :  { %3383 = vmatprep.subr.bf16.mxu0 %v3382_v32  ;;  %v3432_v32 = vpack.c.bf16 %v294_v24, %v293_v23  ;;  %v3434_v34 = vpack.c.bf16 %v312_v29, %v311_v28  ;;  %v3482_v23 = vpack.c.bf16 %v368_v17, %v367_v16  ;;  %v351_v24 = vld [vmem:[%s6035_s1 + $0xa00] sm:$0xff]  ;;  %v384_v28 = vld [vmem:[%s6035_s1 + $0xb08] sm:$0xff]  ;;  %v369_v29 = vld [vmem:[%s6035_s1 + $0xa90] sm:$0xff] }
  0x7f   :  { %3413 = vmatpush3.bf16.msra.mxu1 %v3412_v31  ;;  %v344_v31 = vld [vmem:[%s6035_s1 + $0x9c8] sm:$0xff] }
  0x80   :  { %3415 = vmatprep.subr.bf16.mxu1 %v3414_v36  ;;  %v296_v36 = vld [vmem:[%s6035_s1 + $0x848] sm:$0xff]  ;;  %v3466_v37 = vpack.c.bf16 %v344_v31, %v343_v30  ;;  %v370_v30 = vld [vmem:[%s6035_s1 + $0xa98] sm:$0xff] }
  0x81   :  { %3385 = vmatpush3.bf16.msra.mxu0 %v3384_v43  ;;  %v346_v43 = vld [vmem:[%s6035_s1 + $0x9d8] sm:$0xff]  ;;  %v392_v17 = vld [vmem:[%s6035_s1 + $0xb48] sm:$0xff] }
  0x82   :  { %3419 = vmatprep.subr.bf16.mxu0 %v3418_v46  ;;  %v3468_v46 = vpack.c.bf16 %v328_v38, %v327_v52  ;;  %v3470_v51 = vpack.c.bf16 %v346_v43, %v345_v41  ;;  %v3486_v52 = vpack.c.bf16 %v370_v30, %v369_v29  ;;  %v354_v38 = vld [vmem:[%s6035_s1 + $0xa18] sm:$0xff]  ;;  %v371_v43 = vld [vmem:[%s6035_s1 + $0xaa0] sm:$0xff] }
  0x83   :  { %3417 = vmatpush3.bf16.msra.mxu1 %v3416_v44  ;;  %v3436_v44 = vpack.c.bf16 %v296_v36, %v295_v35  ;;  %v3484_v35 = vpack.c.bf16 %v352_v25, %v351_v24  ;;  %v386_v41 = vld [vmem:[%s6035_s1 + $0xb18] sm:$0xff]  ;;  %v3502_v24 = vpack.c.bf16 %v378_v19, %v377_v18  ;;  %v361_v25 = vld [vmem:[%s6035_s1 + $0xa50] sm:$0xff]  ;;  %v379_v30 = vld [vmem:[%s6035_s1 + $0xae0] sm:$0xff] }
  0x84   :  { %3451 = vmatprep.subr.bf16.mxu1 %v3450_v50  ;;  %1383 = vmatmul.mubr.f32.vlgmr.msra.gmra.mrb[6].mxu0 %v4545_v11  ;;  %v291_v11 = vld [vmem:[%s6035_s1 + $0x820] sm:$0xff]  ;;  %v329_v50 = vld [vmem:[%s6035_s1 + $0x950] sm:$0xff]  ;;  %v394_v29 = vld [vmem:[%s6035_s1 + $0xb58] sm:$0xff] }
  0x85   :  { %3421 = vmatpush3.bf16.msra.mxu0 %v3420_v45  ;;  %1522 = vmatprep.mubr.f32.mxu0 %v771_v3  ;;  %v3428_v20 = vpack.c.bf16 %v292_v10, %v291_v11  ;;  %v348_v45 = vld [vmem:[%s6035_s1 + $0x9e8] sm:$0xff]  ;;  %v318_v3 = vld [vmem:[%s6035_s1 + $0x8f8] sm:$0xff]  ;;  %v301_v11 = vld [vmem:[%s6035_s1 + $0x870] sm:$0xff] }
  0x86   :  { %1453 = vmatmul.mubr.f32.vlgmr.msra.gmra.mrb[6].mxu1 %v4554_v15  ;;  %3423 = vmatprep.subr.bf16.mxu0 %v3422_v59  ;;  %v324_v15 = vld [vmem:[%s6035_s1 + $0x928] sm:$0xff]  ;;  %v3472_v59 = vpack.c.bf16 %v330_v53, %v329_v50  ;;  %v3474_v0 = vpack.c.bf16 %v348_v45, %v347_v56  ;;  %v302_v10 = vld [vmem:[%s6035_s1 + $0x878] sm:$0xff]  ;;  %v373_v45 = vld [vmem:[%s6035_s1 + $0xab0] sm:$0xff] }
  0x87   :  { %3453 = vmatpush3.bf16.msra.mxu1 %v3452_v58  ;;  %1592 = vmatprep.mubr.f32.mxu1 %v772_v6  ;;  %v3460_v21 = vpack.c.bf16 %v324_v15, %v323_v12  ;;  %v3440_v58 = vpack.c.bf16 %v298_v49, %v297_v48  ;;  %v3444_v6 = vpack.c.bf16 %v300_v62, %v299_v61  ;;  %v333_v12 = vld [vmem:[%s6035_s1 + $0x970] sm:$0xff]  ;;  %v334_v15 = vld [vmem:[%s6035_s1 + $0x978] sm:$0xff]  ;;  %v404_v48 = vld [vmem:[%s6035_s1 + $0xba8] sm:$0xff] }
  0x88   :  { %3455 = vmatprep.subr.bf16.mxu1 %v3454_v63  ;;  %v331_v63 = vld [vmem:[%s6035_s1 + $0x960] sm:$0xff]  ;;  %v449_v18 = vld [vmem:[%s6035_s1 + $0xd10] sm:$0xff] }
  0x89   :  { %3425 = vmatpush3.bf16.msra.mxu0 %v3424_v7  ;;  %v26_v7 = vld [vmem:[%s6034_s0 + $0x28] sm:$0xff] }
  0x8a   :  { %3427 = vmatprep.subr.bf16.mxu0 %v3426_v9  ;;  %v3446_v9 = vpack.c.bf16 %v318_v3, %v317_v2  ;;  %v4959_v31 = vrot.slane %v26_v7, %v4050_v13  ;;  %v389_v2 = vld [vmem:[%s6035_s1 + $0xb30] sm:$0xff] }
  0x8b   :  { %3457 = vmatpush3.bf16.msra.mxu1 %v3456_v8  ;;  %v3476_v8 = vpack.c.bf16 %v332_v1, %v331_v63  ;;  %v358_v1 = vld [vmem:[%s6035_s1 + $0xa38] sm:$0xff] }
  0x8c   :  { %3459 = vmatprep.subr.bf16.mxu1 %v3458_v14  ;;  %v3478_v14 = vpack.c.bf16 %v350_v5, %v349_v4  ;;  %v390_v4 = vld [vmem:[%s6035_s1 + $0xb38] sm:$0xff]  ;;  %v375_v5 = vld [vmem:[%s6035_s1 + $0xac0] sm:$0xff] }
  0x8d   :  { %3429 = vmatpush3.bf16.msra.mxu0 %v3428_v20  ;;  %v773_v20 = vcombine.high %v26_v7, %v26_v7  ;;  %v407_v7 = vld [vmem:[%s6035_s1 + $0xbc0] sm:$0xff] }
  0x8e   :  { %3431 = vmatprep.subr.bf16.mxu0 %v3430_v22  ;;  %v3480_v22 = vpack.c.bf16 %v334_v15, %v333_v12  ;;  %v359_v12 = vld [vmem:[%s6035_s1 + $0xa40] sm:$0xff] }
  0x8f   :  { %3461 = vmatpush3.bf16.msra.mxu1 %v3460_v21  ;;  %v3448_v21 = vpack.c.bf16 %v302_v10, %v301_v11  ;;  %v3528_v11 = vpack.c.bf16 %v390_v4, %v389_v2  ;;  %v391_v15 = vld [vmem:[%s6035_s1 + $0xb40] sm:$0xff]  ;;  %v416_v2 = vld [vmem:[%s6035_s1 + $0xc08] sm:$0xff] }
  0x90   :  { %3463 = vmatprep.subr.bf16.mxu1 %v3462_v26  ;;  %v383_v26 = vld [vmem:[%s6035_s1 + $0xb00] sm:$0xff] }
  0x91   :  { %3433 = vmatpush3.bf16.msra.mxu0 %v3432_v32  ;;  %v401_v32 = vld [vmem:[%s6035_s1 + $0xb90] sm:$0xff]  ;;  %v3516_v36 = vpack.c.bf16 %v384_v28, %v383_v26  ;;  %v362_v26 = vld [vmem:[%s6035_s1 + $0xa58] sm:$0xff] }
  0x92   :  { %3435 = vmatprep.subr.bf16.mxu0 %v3434_v34  ;;  %v4968_v34 = vrot.slane %v773_v20, %v4050_v13  ;;  %v409_v20 = vld [vmem:[%s6035_s1 + $0xbd0] sm:$0xff] }
  0x93   :  { %3465 = vmatpush3.bf16.msra.mxu1 %v3464_v42  ;;  %v402_v42 = vld [vmem:[%s6035_s1 + $0xb98] sm:$0xff] }
  0x94   :  { %3467 = vmatprep.subr.bf16.mxu1 %v3466_v37  ;;  %v353_v37 = vld [vmem:[%s6035_s1 + $0xa10] sm:$0xff]  ;;  %v3518_v40 = vpack.c.bf16 %v402_v42, %v401_v32  ;;  %v789_v49 = vcombine.high %v4968_v34, %v4968_v34  ;;  %v380_v32 = vld [vmem:[%s6035_s1 + $0xae8] sm:$0xff]  ;;  %v411_v42 = vld [vmem:[%s6035_s1 + $0xbe0] sm:$0xff] }
  0x95   :  { %3437 = vmatpush3.bf16.msra.mxu0 %v3436_v44  ;;  %v372_v44 = vld [vmem:[%s6035_s1 + $0xaa8] sm:$0xff]  ;;  %v3488_v50 = vpack.c.bf16 %v354_v38, %v353_v37  ;;  %v3506_v37 = vpack.c.bf16 %v380_v32, %v379_v30  ;;  %v363_v38 = vld [vmem:[%s6035_s1 + $0xa60] sm:$0xff] }
  0x96   :  { %3439 = vmatprep.subr.bf16.mxu0 %v3438_v47  ;;  %v403_v47 = vld [vmem:[%s6035_s1 + $0xba0] sm:$0xff]  ;;  %v3490_v53 = vpack.c.bf16 %v372_v44, %v371_v43  ;;  %v396_v43 = vld [vmem:[%s6035_s1 + $0xb68] sm:$0xff]  ;;  %v381_v44 = vld [vmem:[%s6035_s1 + $0xaf0] sm:$0xff] }
  0x97   :  { %3469 = vmatpush3.bf16.msra.mxu1 %v3468_v46  ;;  %v788_v46 = vcombine.high %v4959_v31, %v4959_v31  ;;  %v3522_v56 = vpack.c.bf16 %v404_v48, %v403_v47  ;;  %v413_v47 = vld [vmem:[%s6035_s1 + $0xbf0] sm:$0xff]  ;;  %v414_v48 = vld [vmem:[%s6035_s1 + $0xbf8] sm:$0xff]  ;;  %v420_v30 = vld [vmem:[%s6035_s1 + $0xc28] sm:$0xff] }
  0x98   :  { %3471 = vmatprep.subr.bf16.mxu1 %v3470_v51  ;;  %v3520_v51 = vpack.c.bf16 %v386_v41, %v385_v39  ;;  %v364_v39 = vld [vmem:[%s6035_s1 + $0xa68] sm:$0xff]  ;;  %v451_v32 = vld [vmem:[%s6035_s1 + $0xd20] sm:$0xff] }
  0x99   :  { %3441 = vmatpush3.bf16.msra.mxu0 %v3440_v58  ;;  %v374_v58 = vld [vmem:[%s6035_s1 + $0xab8] sm:$0xff] }
  0x9a   :  { %3443 = vmatprep.subr.bf16.mxu0 %v3442_v60  ;;  %v406_v60 = vld [vmem:[%s6035_s1 + $0xbb8] sm:$0xff]  ;;  %v3494_v63 = vpack.c.bf16 %v374_v58, %v373_v45  ;;  %v431_v45 = vld [vmem:[%s6035_s1 + $0xc80] sm:$0xff]  ;;  %v432_v58 = vld [vmem:[%s6035_s1 + $0xc88] sm:$0xff] }
  0x9b   :  { %3473 = vmatpush3.bf16.msra.mxu1 %v3472_v59  ;;  %v405_v59 = vld [vmem:[%s6035_s1 + $0xbb0] sm:$0xff] }
  0x9c   :  { %3475 = vmatprep.subr.bf16.mxu1 %v3474_v0  ;;  %v357_v0 = vld [vmem:[%s6035_s1 + $0xa30] sm:$0xff]  ;;  %v3526_v3 = vpack.c.bf16 %v406_v60, %v405_v59  ;;  %v463_v59 = vld [vmem:[%s6035_s1 + $0xd80] sm:$0xff]  ;;  %v464_v60 = vld [vmem:[%s6035_s1 + $0xd88] sm:$0xff] }
  0x9d   :  { %3445 = vmatpush3.bf16.msra.mxu0 %v3444_v6  ;;  %v376_v6 = vld [vmem:[%s6035_s1 + $0xac8] sm:$0xff]  ;;  %v3578_v4 = vpack.c.bf16 %v464_v60, %v463_v59  ;;  %v441_v59 = vld [vmem:[%s6035_s1 + $0xcd0] sm:$0xff]  ;;  %v442_v60 = vld [vmem:[%s6035_s1 + $0xcd8] sm:$0xff] }
  0x9e   :  { %3447 = vmatprep.subr.bf16.mxu0 %v3446_v9  ;;  %v3496_v9 = vpack.c.bf16 %v358_v1, %v357_v0  ;;  %v3498_v10 = vpack.c.bf16 %v376_v6, %v375_v5  ;;  %v3546_v0 = vpack.c.bf16 %v432_v58, %v431_v45  ;;  %v415_v1 = vld [vmem:[%s6035_s1 + $0xc00] sm:$0xff]  ;;  %v448_v5 = vld [vmem:[%s6035_s1 + $0xd08] sm:$0xff]  ;;  %v433_v6 = vld [vmem:[%s6035_s1 + $0xc90] sm:$0xff] }
  0x9f   :  { %3477 = vmatpush3.bf16.msra.mxu1 %v3476_v8  ;;  %v408_v8 = vld [vmem:[%s6035_s1 + $0xbc8] sm:$0xff] }
  0xa0   :  { %3479 = vmatprep.subr.bf16.mxu1 %v3478_v14  ;;  %v360_v14 = vld [vmem:[%s6035_s1 + $0xa48] sm:$0xff]  ;;  %v3530_v16 = vpack.c.bf16 %v408_v8, %v407_v7  ;;  %v434_v7 = vld [vmem:[%s6035_s1 + $0xc98] sm:$0xff] }
  0xa1   :  { %3449 = vmatpush3.bf16.msra.mxu0 %v3448_v21  ;;  %v410_v21 = vld [vmem:[%s6035_s1 + $0xbd8] sm:$0xff]  ;;  %v456_v58 = vld [vmem:[%s6035_s1 + $0xd48] sm:$0xff] }
  0xa2   :  { %3483 = vmatprep.subr.bf16.mxu0 %v3482_v23  ;;  %v3532_v23 = vpack.c.bf16 %v392_v17, %v391_v15  ;;  %v3534_v28 = vpack.c.bf16 %v410_v21, %v409_v20  ;;  %v3550_v15 = vpack.c.bf16 %v434_v7, %v433_v6  ;;  %v418_v17 = vld [vmem:[%s6035_s1 + $0xc18] sm:$0xff]  ;;  %v435_v21 = vld [vmem:[%s6035_s1 + $0xca0] sm:$0xff] }
  0xa3   :  { %3481 = vmatpush3.bf16.msra.mxu1 %v3480_v22  ;;  %v3500_v22 = vpack.c.bf16 %v360_v14, %v359_v12  ;;  %v3548_v12 = vpack.c.bf16 %v416_v2, %v415_v1  ;;  %v450_v20 = vld [vmem:[%s6035_s1 + $0xd18] sm:$0xff]  ;;  %v3566_v1 = vpack.c.bf16 %v442_v60, %v441_v59  ;;  %v425_v2 = vld [vmem:[%s6035_s1 + $0xc50] sm:$0xff]  ;;  %v443_v7 = vld [vmem:[%s6035_s1 + $0xce0] sm:$0xff] }
  0xa4   :  { %3515 = vmatprep.subr.bf16.mxu1 %v3514_v27  ;;  %1523 = vmatmul.mubr.f32.vlgmr.msra.gmra.mrb[8].mxu0 %v4752_v54  ;;  %v355_v54 = vld [vmem:[%s6035_s1 + $0xa20] sm:$0xff]  ;;  %v393_v27 = vld [vmem:[%s6035_s1 + $0xb50] sm:$0xff]  ;;  %v458_v6 = vld [vmem:[%s6035_s1 + $0xd58] sm:$0xff] }
  0xa5   :  { %3485 = vmatpush3.bf16.msra.mxu0 %v3484_v35  ;;  %1662 = vmatprep.mubr.f32.mxu0 %v788_v46  ;;  %v3492_v61 = vpack.c.bf16 %v356_v33, %v355_v54  ;;  %v412_v35 = vld [vmem:[%s6035_s1 + $0xbe8] sm:$0xff]  ;;  %v382_v46 = vld [vmem:[%s6035_s1 + $0xaf8] sm:$0xff]  ;;  %v365_v54 = vld [vmem:[%s6035_s1 + $0xa70] sm:$0xff] }
  0xa6   :  { %1593 = vmatmul.mubr.f32.vlgmr.msra.gmra.mrb[8].mxu1 %v4761_v57  ;;  %3487 = vmatprep.subr.bf16.mxu0 %v3486_v52  ;;  %v388_v57 = vld [vmem:[%s6035_s1 + $0xb28] sm:$0xff]  ;;  %v3536_v52 = vpack.c.bf16 %v394_v29, %v393_v27  ;;  %v3538_v41 = vpack.c.bf16 %v412_v35, %v411_v42  ;;  %v366_v33 = vld [vmem:[%s6035_s1 + $0xa78] sm:$0xff]  ;;  %v437_v35 = vld [vmem:[%s6035_s1 + $0xcb0] sm:$0xff] }
  0xa7   :  { %3517 = vmatpush3.bf16.msra.mxu1 %v3516_v36  ;;  %1732 = vmatprep.mubr.f32.mxu1 %v789_v49  ;;  %v3524_v62 = vpack.c.bf16 %v388_v57, %v387_v55  ;;  %v3504_v36 = vpack.c.bf16 %v362_v26, %v361_v25  ;;  %v3508_v49 = vpack.c.bf16 %v364_v39, %v363_v38  ;;  %v397_v55 = vld [vmem:[%s6035_s1 + $0xb70] sm:$0xff]  ;;  %v398_v57 = vld [vmem:[%s6035_s1 + $0xb78] sm:$0xff]  ;;  %v468_v25 = vld [vmem:[%s6035_s1 + $0xda8] sm:$0xff] }
  0xa8   :  { %3519 = vmatprep.subr.bf16.mxu1 %v3518_v40  ;;  %v395_v40 = vld [vmem:[%s6035_s1 + $0xb60] sm:$0xff] }
  0xa9   :  { %3489 = vmatpush3.bf16.msra.mxu0 %v3488_v50  ;;  %v27_v50 = vld [vmem:[%s6034_s0 + $0x30] sm:$0xff] }
  0xaa   :  { %3491 = vmatprep.subr.bf16.mxu0 %v3490_v53  ;;  %v3510_v53 = vpack.c.bf16 %v382_v46, %v381_v44  ;;  %v5166_v8 = vrot.slane %v27_v50, %v4050_v13  ;;  %v453_v44 = vld [vmem:[%s6035_s1 + $0xd30] sm:$0xff] }
  0xab   :  { %3521 = vmatpush3.bf16.msra.mxu1 %v3520_v51  ;;  %v3540_v51 = vpack.c.bf16 %v396_v43, %v395_v40  ;;  %v422_v43 = vld [vmem:[%s6035_s1 + $0xc38] sm:$0xff] }
  0xac   :  { %3523 = vmatprep.subr.bf16.mxu1 %v3522_v56  ;;  %v3542_v56 = vpack.c.bf16 %v414_v48, %v413_v47  ;;  %v454_v47 = vld [vmem:[%s6035_s1 + $0xd38] sm:$0xff]  ;;  %v439_v48 = vld [vmem:[%s6035_s1 + $0xcc0] sm:$0xff] }
  0xad   :  { %3493 = vmatpush3.bf16.msra.mxu0 %v3492_v61  ;;  %v790_v61 = vcombine.high %v27_v50, %v27_v50  ;;  %v471_v50 = vld [vmem:[%s6035_s1 + $0xdc0] sm:$0xff] }
  0xae   :  { %3495 = vmatprep.subr.bf16.mxu0 %v3494_v63  ;;  %v3544_v63 = vpack.c.bf16 %v398_v57, %v397_v55  ;;  %v423_v55 = vld [vmem:[%s6035_s1 + $0xc40] sm:$0xff] }
  0xaf   :  { %3525 = vmatpush3.bf16.msra.mxu1 %v3524_v62  ;;  %v3512_v62 = vpack.c.bf16 %v366_v33, %v365_v54  ;;  %v3592_v54 = vpack.c.bf16 %v454_v47, %v453_v44  ;;  %v455_v57 = vld [vmem:[%s6035_s1 + $0xd40] sm:$0xff] }
  0xb0   :  { %3527 = vmatprep.subr.bf16.mxu1 %v3526_v3  ;;  %v447_v3 = vld [vmem:[%s6035_s1 + $0xd00] sm:$0xff] }
  0xb1   :  { %3497 = vmatpush3.bf16.msra.mxu0 %v3496_v9  ;;  %v465_v9 = vld [vmem:[%s6035_s1 + $0xd90] sm:$0xff]  ;;  %v3580_v14 = vpack.c.bf16 %v448_v5, %v447_v3  ;;  %v426_v3 = vld [vmem:[%s6035_s1 + $0xc58] sm:$0xff] }
  0xb2   :  { %3499 = vmatprep.subr.bf16.mxu0 %v3498_v10  ;;  %v5175_v10 = vrot.slane %v790_v61, %v4050_v13  ;;  %v473_v61 = vld [vmem:[%s6035_s1 + $0xdd0] sm:$0xff] }
  0xb3   :  { %3529 = vmatpush3.bf16.msra.mxu1 %v3528_v11  ;;  %v466_v11 = vld [vmem:[%s6035_s1 + $0xd98] sm:$0xff] }
  0xb4   :  { %3531 = vmatprep.subr.bf16.mxu1 %v3530_v16  ;;  %v417_v16 = vld [vmem:[%s6035_s1 + $0xc10] sm:$0xff]  ;;  %v3582_v19 = vpack.c.bf16 %v466_v11, %v465_v9  ;;  %v806_v26 = vcombine.high %v5175_v10, %v5175_v10  ;;  %v444_v9 = vld [vmem:[%s6035_s1 + $0xce8] sm:$0xff]  ;;  %v475_v11 = vld [vmem:[%s6035_s1 + $0xde0] sm:$0xff] }
  0xb5   :  { %3501 = vmatpush3.bf16.msra.mxu0 %v3500_v22  ;;  %v436_v22 = vld [vmem:[%s6035_s1 + $0xca8] sm:$0xff]  ;;  %v3552_v27 = vpack.c.bf16 %v418_v17, %v417_v16  ;;  %v3570_v16 = vpack.c.bf16 %v444_v9, %v443_v7  ;;  %v427_v17 = vld [vmem:[%s6035_s1 + $0xc60] sm:$0xff] }
  0xb6   :  { %3503 = vmatprep.subr.bf16.mxu0 %v3502_v24  ;;  %v467_v24 = vld [vmem:[%s6035_s1 + $0xda0] sm:$0xff]  ;;  %v3554_v29 = vpack.c.bf16 %v436_v22, %v435_v21  ;;  %v460_v21 = vld [vmem:[%s6035_s1 + $0xd68] sm:$0xff]  ;;  %v445_v22 = vld [vmem:[%s6035_s1 + $0xcf0] sm:$0xff] }
  0xb7   :  { %3533 = vmatpush3.bf16.msra.mxu1 %v3532_v23  ;;  %v805_v23 = vcombine.high %v5166_v8, %v5166_v8  ;;  %v3586_v42 = vpack.c.bf16 %v468_v25, %v467_v24  ;;  %v477_v24 = vld [vmem:[%s6035_s1 + $0xdf0] sm:$0xff]  ;;  %v478_v25 = vld [vmem:[%s6035_s1 + $0xdf8] sm:$0xff] }
  0xb8   :  { %3535 = vmatprep.subr.bf16.mxu1 %v3534_v28  ;;  %v3584_v28 = vpack.c.bf16 %v450_v20, %v449_v18  ;;  %v428_v18 = vld [vmem:[%s6035_s1 + $0xc68] sm:$0xff] }
  0xb9   :  { %3505 = vmatpush3.bf16.msra.mxu0 %v3504_v36  ;;  %v438_v36 = vld [vmem:[%s6035_s1 + $0xcb8] sm:$0xff] }
  0xba   :  { %3507 = vmatprep.subr.bf16.mxu0 %v3506_v37  ;;  %v470_v37 = vld [vmem:[%s6035_s1 + $0xdb8] sm:$0xff]  ;;  %v3558_v40 = vpack.c.bf16 %v438_v36, %v437_v35 }
  0xbb   :  { %3537 = vmatpush3.bf16.msra.mxu1 %v3536_v52  ;;  %v469_v52 = vld [vmem:[%s6035_s1 + $0xdb0] sm:$0xff] }
  0xbc   :  { %3539 = vmatprep.subr.bf16.mxu1 %v3538_v41  ;;  %v421_v41 = vld [vmem:[%s6035_s1 + $0xc30] sm:$0xff]  ;;  %v3590_v46 = vpack.c.bf16 %v470_v37, %v469_v52 }
  0xbd   :  { %3509 = vmatpush3.bf16.msra.mxu0 %v3508_v49  ;;  %v440_v49 = vld [vmem:[%s6035_s1 + $0xcc8] sm:$0xff] }
  0xbe   :  { %3511 = vmatprep.subr.bf16.mxu0 %v3510_v53  ;;  %v3560_v53 = vpack.c.bf16 %v422_v43, %v421_v41  ;;  %v3562_v33 = vpack.c.bf16 %v440_v49, %v439_v48 }
  0xbf   :  { %3541 = vmatpush3.bf16.msra.mxu1 %v3540_v51  ;;  %v472_v51 = vld [vmem:[%s6035_s1 + $0xdc8] sm:$0xff] }
  0xc0   :  { %3543 = vmatprep.subr.bf16.mxu1 %v3542_v56  ;;  %v424_v56 = vld [vmem:[%s6035_s1 + $0xc48] sm:$0xff]  ;;  %v3594_v45 = vpack.c.bf16 %v472_v51, %v471_v50 }
  0xc1   :  { %3513 = vmatpush3.bf16.msra.mxu0 %v3512_v62  ;;  %v474_v62 = vld [vmem:[%s6035_s1 + $0xdd8] sm:$0xff] }
  0xc2   :  { %3547 = vmatprep.subr.bf16.mxu0 %v3546_v0  ;;  %v3596_v0 = vpack.c.bf16 %v456_v58, %v455_v57  ;;  %v3598_v5 = vpack.c.bf16 %v474_v62, %v473_v61 }
  0xc3   :  { %3545 = vmatpush3.bf16.msra.mxu1 %v3544_v63  ;;  %v3564_v63 = vpack.c.bf16 %v424_v56, %v423_v55 }
  0xc4   :  { %3579 = vmatprep.subr.bf16.mxu1 %v3578_v4  ;;  %1663 = vmatmul.mubr.f32.vlgmr.msra.gmra.mrb[10].mxu0 %v4959_v31  ;;  %v419_v31 = vld [vmem:[%s6035_s1 + $0xc20] sm:$0xff]  ;;  %v457_v4 = vld [vmem:[%s6035_s1 + $0xd50] sm:$0xff] }
  0xc5   :  { %3549 = vmatpush3.bf16.msra.mxu0 %v3548_v12  ;;  %1802 = vmatprep.mubr.f32.mxu0 %v805_v23  ;;  %v3556_v38 = vpack.c.bf16 %v420_v30, %v419_v31  ;;  %v476_v12 = vld [vmem:[%s6035_s1 + $0xde8] sm:$0xff]  ;;  %v446_v23 = vld [vmem:[%s6035_s1 + $0xcf8] sm:$0xff] }
  0xc6   :  { %1733 = vmatmul.mubr.f32.vlgmr.msra.gmra.mrb[10].mxu1 %v4968_v34  ;;  %3551 = vmatprep.subr.bf16.mxu0 %v3550_v15  ;;  %v452_v34 = vld [vmem:[%s6035_s1 + $0xd28] sm:$0xff]  ;;  %v3600_v15 = vpack.c.bf16 %v458_v6, %v457_v4  ;;  %v3602_v20 = vpack.c.bf16 %v476_v12, %v475_v11  ;;  %v3574_v31 = vpack.c.bf16 %v446_v23, %v445_v22  ;;  %v430_v30 = vld [vmem:[%s6035_s1 + $0xc78] sm:$0xff] }
  0xc7   :  { %3581 = vmatpush3.bf16.msra.mxu1 %v3580_v14  ;;  %1872 = vmatprep.mubr.f32.mxu1 %v806_v26  ;;  %v3588_v39 = vpack.c.bf16 %v452_v34, %v451_v32  ;;  %v3568_v14 = vpack.c.bf16 %v426_v3, %v425_v2  ;;  %v3572_v26 = vpack.c.bf16 %v428_v18, %v427_v17  ;;  %v461_v32 = vld [vmem:[%s6035_s1 + $0xd70] sm:$0xff] }
  0xc8   :  { %3583 = vmatprep.subr.bf16.mxu1 %v3582_v19  ;;  %v459_v19 = vld [vmem:[%s6035_s1 + $0xd60] sm:$0xff] }
  0xc9   :  { %3553 = vmatpush3.bf16.msra.mxu0 %v3552_v27  ;;  %v429_v27 = vld [vmem:[%s6035_s1 + $0xc70] sm:$0xff] }
  0xca   :  { %3555 = vmatprep.subr.bf16.mxu0 %v3554_v29  ;;  %v3604_v29 = vpack.c.bf16 %v460_v21, %v459_v19 }
  0xcb   :  { %3585 = vmatpush3.bf16.msra.mxu1 %v3584_v28  ;;  %v28_v28 = vld [vmem:[%s6034_s0 + $0x38] sm:$0xff] }
  0xcc   :  { %3587 = vmatprep.subr.bf16.mxu1 %v3586_v42 }
  0xcd   :  { %3557 = vmatpush3.bf16.msra.mxu0 %v3556_v38 }
  0xce   :  { %3559 = vmatprep.subr.bf16.mxu0 %v3558_v40 }
  0xcf   :  { %3589 = vmatpush3.bf16.msra.mxu1 %v3588_v39 }
  0xd0   :  { %3591 = vmatprep.subr.bf16.mxu1 %v3590_v46 }
  0xd1   :  { %3561 = vmatpush3.bf16.msra.mxu0 %v3560_v53 }
  0xd2   :  { %3563 = vmatprep.subr.bf16.mxu0 %v3562_v33 }
  0xd3   :  { %3593 = vmatpush3.bf16.msra.mxu1 %v3592_v54 }
  0xd4   :  { %3595 = vmatprep.subr.bf16.mxu1 %v3594_v45 }
  0xd5   :  { %3565 = vmatpush3.bf16.msra.mxu0 %v3564_v63 }
  0xd6   :  { %3567 = vmatprep.subr.bf16.mxu0 %v3566_v1 }
  0xd7   :  { %3597 = vmatpush3.bf16.msra.mxu1 %v3596_v0 }
  0xd8   :  { %3599 = vmatprep.subr.bf16.mxu1 %v3598_v5 }
  0xd9   :  { %3569 = vmatpush3.bf16.msra.mxu0 %v3568_v14 }
  0xda   :  { %3571 = vmatprep.subr.bf16.mxu0 %v3570_v16 }
  0xdb   :  { %3601 = vmatpush3.bf16.msra.mxu1 %v3600_v15 }
  0xdc   :  { %10 = vsyncpa [#allocation3], 0  ;;  %3603 = vmatprep.subr.bf16.mxu1 %v3602_v20  ;;  %v3606_v42 = vpack.c.bf16 %v478_v25, %v477_v24  ;;  %v462_v34 = vld [vmem:[%s6035_s1 + $0xd78] sm:$0xff]  ;;  %v495_v35 = vld [vmem:[%s6035_s1 + $0xe80] sm:$0xff]  ;;  %v807_v38 = vcombine.high %v28_v28, %v28_v28  ;;  %v3576_v39 = vpack.c.bf16 %v430_v30, %v429_v27  ;;  %v5373_v51 = vrot.slane %v28_v28, %v4050_v13  ;;  %s3869_s8 = smov [#allocation2]  }
  0xdd   :  { %v496_v36 = vld [vmem:[%s6035_s1 + $0xe88] sm:$0xff]  ;;  %v527_v52 = vld [vmem:[%s6035_s1 + $0xf80] sm:$0xff]  ;;  %3573 = vmatpush3.bf16.msra.mxu0 %v3572_v26  ;;  %v3608_v40 = vpack.c.bf16 %v462_v34, %v461_v32  ;;  %v497_v49 = vld [vmem:[%s6035_s1 + $0xe90] sm:$0xff]  ;;  %vm3867_vm0 = vmmov 0   ;;  %vm2392_vm1 = vcmask 115712  }
  0xde   :  { %v528_v37 = vld [vmem:[%s6035_s1 + $0xf88] sm:$0xff]  ;;  %3575 = vmatprep.subr.bf16.mxu0 %v3574_v31  ;;  %v3610_v41 = vpack.c.bf16 %v496_v36, %v495_v35  ;;  %v479_v43 = vld [vmem:[%s6035_s1 + $0xe00] sm:$0xff]  ;;  %v498_v50 = vld [vmem:[%s6035_s1 + $0xe98] sm:$0xff]  ;;  %v5382_v33 = vrot.slane %v807_v38, %v4050_v13  ;;  %v822_v0 = vcombine.high %v5373_v51, %v5373_v51 }
  0xdf   :  { %3605 = vmatpush3.bf16.msra.mxu1 %v3604_v29  ;;  %v480_v44 = vld [vmem:[%s6035_s1 + $0xe08] sm:$0xff]  ;;  %v511_v46 = vld [vmem:[%s6035_s1 + $0xf00] sm:$0xff]  ;;  %v3642_v47 = vpack.c.bf16 %v528_v37, %v527_v52  ;;  %v529_v53 = vld [vmem:[%s6035_s1 + $0xf90] sm:$0xff]  ;;  %v3614_v57 = vpack.c.bf16 %v498_v50, %v497_v49 }
  0xe0   :  { %3607 = vmatprep.subr.bf16.mxu1 %v3606_v42  ;;  %v512_v48 = vld [vmem:[%s6035_s1 + $0xf08] sm:$0xff]  ;;  %v530_v54 = vld [vmem:[%s6035_s1 + $0xf98] sm:$0xff]  ;;  %v3612_v55 = vpack.c.bf16 %v480_v44, %v479_v43  ;;  %v481_v45 = vld [vmem:[%s6035_s1 + $0xe10] sm:$0xff]  ;;  %v823_v3 = vcombine.high %v5382_v33, %v5382_v33 }
  0xe1   :  { %3577 = vmatpush3.bf16.msra.mxu0 %v3576_v39  ;;  %v3644_v56 = vpack.c.bf16 %v512_v48, %v511_v46  ;;  %v482_v58 = vld [vmem:[%s6035_s1 + $0xe18] sm:$0xff]  ;;  %v513_v59 = vld [vmem:[%s6035_s1 + $0xf10] sm:$0xff]  ;;  %v3646_v60 = vpack.c.bf16 %v530_v54, %v529_v53  ;;  %v499_v62 = vld [vmem:[%s6035_s1 + $0xea0] sm:$0xff] }
  0xe2   :  { %3611 = vmatprep.subr.bf16.mxu0 %v3610_v41  ;;  %v514_v61 = vld [vmem:[%s6035_s1 + $0xf18] sm:$0xff]  ;;  %v500_v63 = vld [vmem:[%s6035_s1 + $0xea8] sm:$0xff]  ;;  %v531_v1 = vld [vmem:[%s6035_s1 + $0xfa0] sm:$0xff]  ;;  %v3616_v4 = vpack.c.bf16 %v482_v58, %v481_v45 }
  0xe3   :  { %3609 = vmatpush3.bf16.msra.mxu1 %v3608_v40  ;;  %v532_v2 = vld [vmem:[%s6035_s1 + $0xfa8] sm:$0xff]  ;;  %v3648_v5 = vpack.c.bf16 %v514_v61, %v513_v59  ;;  %v3618_v6 = vpack.c.bf16 %v500_v63, %v499_v62  ;;  %v515_v9 = vld [vmem:[%s6035_s1 + $0xf20] sm:$0xff]  ;;  %v501_v12 = vld [vmem:[%s6035_s1 + $0xeb0] sm:$0xff] }
  0xe4   :  { %3643 = vmatprep.subr.bf16.mxu1 %v3642_v47  ;;  %1803 = vmatmul.mubr.f32.vlgmr.msra.gmra.mrb[12].mxu0 %v5166_v8  ;;  %v483_v8 = vld [vmem:[%s6035_s1 + $0xe20] sm:$0xff]  ;;  %v484_v7 = vld [vmem:[%s6035_s1 + $0xe28] sm:$0xff]  ;;  %v3650_v11 = vpack.c.bf16 %v532_v2, %v531_v1  ;;  %v502_v14 = vld [vmem:[%s6035_s1 + $0xeb8] sm:$0xff] }
  0xe5   :  { %3613 = vmatpush3.bf16.msra.mxu0 %v3612_v55  ;;  %1942 = vmatprep.mubr.f32.mxu0 %v822_v0  ;;  %v533_v15 = vld [vmem:[%s6035_s1 + $0xfb0] sm:$0xff]  ;;  %v534_v16 = vld [vmem:[%s6035_s1 + $0xfb8] sm:$0xff]  ;;  %v3620_v17 = vpack.c.bf16 %v484_v7, %v483_v8  ;;  %v3622_v19 = vpack.c.bf16 %v502_v14, %v501_v12  ;;  %v503_v25 = vld [vmem:[%s6035_s1 + $0xec0] sm:$0xff] }
  0xe6   :  { %1873 = vmatmul.mubr.f32.vlgmr.msra.gmra.mrb[12].mxu1 %v5175_v10  ;;  %3615 = vmatprep.subr.bf16.mxu0 %v3614_v57  ;;  %v516_v10 = vld [vmem:[%s6035_s1 + $0xf28] sm:$0xff]  ;;  %v485_v20 = vld [vmem:[%s6035_s1 + $0xe30] sm:$0xff]  ;;  %v486_v21 = vld [vmem:[%s6035_s1 + $0xe38] sm:$0xff]  ;;  %v3654_v23 = vpack.c.bf16 %v534_v16, %v533_v15 }
  0xe7   :  { %3645 = vmatpush3.bf16.msra.mxu1 %v3644_v56  ;;  %2012 = vmatprep.mubr.f32.mxu1 %v823_v3  ;;  %v3652_v18 = vpack.c.bf16 %v516_v10, %v515_v9  ;;  %v517_v22 = vld [vmem:[%s6035_s1 + $0xf30] sm:$0xff]  ;;  %v518_v24 = vld [vmem:[%s6035_s1 + $0xf38] sm:$0xff]  ;;  %v504_v26 = vld [vmem:[%s6035_s1 + $0xec8] sm:$0xff]  ;;  %v3624_v29 = vpack.c.bf16 %v486_v21, %v485_v20 }
  0xe8   :  { %3647 = vmatprep.subr.bf16.mxu1 %v3646_v60  ;;  %v535_v27 = vld [vmem:[%s6035_s1 + $0xfc0] sm:$0xff]  ;;  %v536_v28 = vld [vmem:[%s6035_s1 + $0xfc8] sm:$0xff]  ;;  %v3656_v31 = vpack.c.bf16 %v518_v24, %v517_v22  ;;  %v3626_v30 = vpack.c.bf16 %v504_v26, %v503_v25  ;;  %v505_v52 = vld [vmem:[%s6035_s1 + $0xed0] sm:$0xff] }
  0xe9   :  { %3617 = vmatpush3.bf16.msra.mxu0 %v3616_v4  ;;  %v487_v32 = vld [vmem:[%s6035_s1 + $0xe40] sm:$0xff]  ;;  %v488_v42 = vld [vmem:[%s6035_s1 + $0xe48] sm:$0xff]  ;;  %v3658_v35 = vpack.c.bf16 %v536_v28, %v535_v27  ;;  %v506_v37 = vld [vmem:[%s6035_s1 + $0xed8] sm:$0xff] }
  0xea   :  { %3619 = vmatprep.subr.bf16.mxu0 %v3618_v6  ;;  %v519_v34 = vld [vmem:[%s6035_s1 + $0xf40] sm:$0xff]  ;;  %v520_v36 = vld [vmem:[%s6035_s1 + $0xf48] sm:$0xff]  ;;  %v537_v38 = vld [vmem:[%s6035_s1 + $0xfd0] sm:$0xff]  ;;  %v3628_v40 = vpack.c.bf16 %v488_v42, %v487_v32  ;;  %v3630_v43 = vpack.c.bf16 %v506_v37, %v505_v52 }
  0xeb   :  { %3649 = vmatpush3.bf16.msra.mxu1 %v3648_v5  ;;  %v538_v39 = vld [vmem:[%s6035_s1 + $0xfd8] sm:$0xff]  ;;  %v3660_v41 = vpack.c.bf16 %v520_v36, %v519_v34  ;;  %v489_v44 = vld [vmem:[%s6035_s1 + $0xe50] sm:$0xff]  ;;  %v507_v50 = vld [vmem:[%s6035_s1 + $0xee0] sm:$0xff] }
  0xec   :  { %3651 = vmatprep.subr.bf16.mxu1 %v3650_v11  ;;  %v490_v46 = vld [vmem:[%s6035_s1 + $0xe58] sm:$0xff]  ;;  %v521_v47 = vld [vmem:[%s6035_s1 + $0xf50] sm:$0xff]  ;;  %v3662_v48 = vpack.c.bf16 %v538_v39, %v537_v38  ;;  %v508_v53 = vld [vmem:[%s6035_s1 + $0xee8] sm:$0xff] }
  0xed   :  { %3621 = vmatpush3.bf16.msra.mxu0 %v3620_v17  ;;  %v522_v49 = vld [vmem:[%s6035_s1 + $0xf58] sm:$0xff]  ;;  %v539_v54 = vld [vmem:[%s6035_s1 + $0xfe0] sm:$0xff]  ;;  %v540_v55 = vld [vmem:[%s6035_s1 + $0xfe8] sm:$0xff]  ;;  %v3632_v56 = vpack.c.bf16 %v490_v46, %v489_v44  ;;  %v3634_v45 = vpack.c.bf16 %v508_v53, %v507_v50 }
  0xee   :  { %3623 = vmatprep.subr.bf16.mxu0 %v3622_v19  ;;  %v3664_v57 = vpack.c.bf16 %v522_v49, %v521_v47  ;;  %v491_v58 = vld [vmem:[%s6035_s1 + $0xe60] sm:$0xff]  ;;  %v492_v59 = vld [vmem:[%s6035_s1 + $0xe68] sm:$0xff]  ;;  %v3666_v62 = vpack.c.bf16 %v540_v55, %v539_v54  ;;  %v509_v0 = vld [vmem:[%s6035_s1 + $0xef0] sm:$0xff] }
  0xef   :  { %3653 = vmatpush3.bf16.msra.mxu1 %v3652_v18  ;;  %v523_v60 = vld [vmem:[%s6035_s1 + $0xf60] sm:$0xff]  ;;  %v524_v63 = vld [vmem:[%s6035_s1 + $0xf68] sm:$0xff]  ;;  %v510_v1 = vld [vmem:[%s6035_s1 + $0xef8] sm:$0xff]  ;;  %v3636_v9 = vpack.c.bf16 %v492_v59, %v491_v58 }
  0xf0   :  { %3655 = vmatprep.subr.bf16.mxu1 %v3654_v23  ;;  %v2408_v2 = vld [vmem:[%s6036_s2] ss:$0 sm:$0xff]  ;;  %v541_v5 = vld [vmem:[%s6035_s1 + $0xff0] sm:$0xff]  ;;  %v542_v6 = vld [vmem:[%s6035_s1 + $0xff8] sm:$0xff]  ;;  %v3668_v12 = vpack.c.bf16 %v524_v63, %v523_v60  ;;  %v3638_v14 = vpack.c.bf16 %v510_v1, %v509_v0 }
  0xf1   :  { %3625 = vmatpush3.bf16.msra.mxu0 %v3624_v29  ;;  %v29_v11 = vld [vmem:[%s6034_s0 + $0x40] sm:$0xff]  ;;  %v493_v15 = vld [vmem:[%s6035_s1 + $0xe70] sm:$0xff]  ;;  %v494_v16 = vld [vmem:[%s6035_s1 + $0xe78] sm:$0xff]  ;;  %v3670_v19 = vpack.c.bf16 %v542_v6, %v541_v5 }
  0xf2   :  { %3627 = vmatprep.subr.bf16.mxu0 %v3626_v30  ;;  %v525_v17 = vld [vmem:[%s6035_s1 + $0xf70] sm:$0xff]  ;;  %v526_v20 = vld [vmem:[%s6035_s1 + $0xf78] sm:$0xff]  ;;  %v559_v21 = vld [vmem:[%s6035_s1 + $0x1080] sm:$0xff]  ;;  %v824_v25 = vcombine.high %v29_v11, %v29_v11  ;;  %v3640_v27 = vpack.c.bf16 %v494_v16, %v493_v15  ;;  %v5585_v52 = vrot.slane %v29_v11, %v4050_v13 }
  0xf3   :  { %3657 = vmatpush3.bf16.msra.mxu1 %v3656_v31  ;;  %v560_v22 = vld [vmem:[%s6035_s1 + $0x1088] sm:$0xff]  ;;  %v591_v23 = vld [vmem:[%s6035_s1 + $0x1180] sm:$0xff]  ;;  %v3672_v28 = vpack.c.bf16 %v526_v20, %v525_v17  ;;  %v562_v36 = vld [vmem:[%s6035_s1 + $0x1098] sm:$0xff] }
  0xf4   :  { %3659 = vmatprep.subr.bf16.mxu1 %v3658_v35  ;;  %v592_v24 = vld [vmem:[%s6035_s1 + $0x1188] sm:$0xff]  ;;  %v3674_v29 = vpack.c.bf16 %v560_v22, %v559_v21  ;;  %v543_v31 = vld [vmem:[%s6035_s1 + $0x1000] sm:$0xff]  ;;  %v561_v35 = vld [vmem:[%s6035_s1 + $0x1090] sm:$0xff]  ;;  %v5594_v39 = vrot.slane %v824_v25, %v4050_v13  ;;  %v839_v54 = vcombine.high %v5585_v52, %v5585_v52 }
  0xf5   :  { %3629 = vmatpush3.bf16.msra.mxu0 %v3628_v40  ;;  %v544_v30 = vld [vmem:[%s6035_s1 + $0x1008] sm:$0xff]  ;;  %v575_v32 = vld [vmem:[%s6035_s1 + $0x1100] sm:$0xff]  ;;  %v3706_v42 = vpack.c.bf16 %v592_v24, %v591_v23  ;;  %v593_v37 = vld [vmem:[%s6035_s1 + $0x1190] sm:$0xff] }
  0xf6   :  { %3631 = vmatprep.subr.bf16.mxu0 %v3630_v43  ;;  %v576_v34 = vld [vmem:[%s6035_s1 + $0x1108] sm:$0xff]  ;;  %v594_v38 = vld [vmem:[%s6035_s1 + $0x1198] sm:$0xff]  ;;  %v3676_v40 = vpack.c.bf16 %v544_v30, %v543_v31  ;;  %v3678_v43 = vpack.c.bf16 %v562_v36, %v561_v35  ;;  %v545_v44 = vld [vmem:[%s6035_s1 + $0x1010] sm:$0xff] }
  0xf7   :  { %3661 = vmatpush3.bf16.msra.mxu1 %v3660_v41  ;;  %v2442_v61 = vpop.f32.mrb[0].mxu0  ;;  %v3708_v41 = vpack.c.bf16 %v576_v34, %v575_v32  ;;  %v546_v46 = vld [vmem:[%s6035_s1 + $0x1018] sm:$0xff]  ;;  %v577_v47 = vld [vmem:[%s6035_s1 + $0x1110] sm:$0xff]  ;;  %v563_v50 = vld [vmem:[%s6035_s1 + $0x10a0] sm:$0xff] }
  0xf8   :  { %3663 = vmatprep.subr.bf16.mxu1 %v3662_v48  ;;  %v2443_v3 = vpop.f32.mrb[1].mxu0  ;;  %v3710_v48 = vpack.c.bf16 %v594_v38, %v593_v37  ;;  %v578_v49 = vld [vmem:[%s6035_s1 + $0x1118] sm:$0xff]  ;;  %v564_v53 = vld [vmem:[%s6035_s1 + $0x10a8] sm:$0xff]  ;;  %v595_v55 = vld [vmem:[%s6035_s1 + $0x11a0] sm:$0xff] }
  0xf9   :  { %v2477_v4 = vpop.f32.mrb[0].mxu1  ;;  %v2444_v8 = vadd.f32 %v2443_v3, %v2442_v61  ;;  %3633 = vmatpush3.bf16.msra.mxu0 %v3632_v56  ;;  %v596_v56 = vld [vmem:[%s6035_s1 + $0x11a8] sm:$0xff]  ;;  %v3712_v58 = vpack.c.bf16 %v578_v49, %v577_v47  ;;  %v3682_v59 = vpack.c.bf16 %v564_v53, %v563_v50  ;;  %v579_v61 = vld [vmem:[%s6035_s1 + $0x1120] sm:$0xff]  ;;  %v565_v63 = vld [vmem:[%s6035_s1 + $0x10b0] sm:$0xff] }
  0xfa   :  { %v2478_v7 = vpop.f32.mrb[1].mxu1  ;;  %3635 = vmatprep.subr.bf16.mxu0 %v3634_v45  ;;  %v3680_v45 = vpack.c.bf16 %v546_v46, %v545_v44  ;;  %v548_v60 = vld [vmem:[%s6035_s1 + $0x1028] sm:$0xff]  ;;  %v566_v0 = vld [vmem:[%s6035_s1 + $0x10b8] sm:$0xff]  ;;  %v597_v1 = vld [vmem:[%s6035_s1 + $0x11b0] sm:$0xff] }
  0xfb   :  { %v2479_v10 = vadd.f32 %v2478_v7, %v2477_v4  ;;  %3665 = vmatpush3.bf16.msra.mxu1 %v3664_v57  ;;  %v965_v18 = vadd.f32 %v2444_v8, %v2408_v2  ;;  %v840_v57 = vcombine.high %v5594_v39, %v5594_v39  ;;  %v598_v2 = vld [vmem:[%s6035_s1 + $0x11b8] sm:$0xff]  ;;  %v3686_v5 = vpack.c.bf16 %v566_v0, %v565_v63  ;;  %v549_v6 = vld [vmem:[%s6035_s1 + $0x1030] sm:$0xff]  ;;  %v600_v15 = vld [vmem:[%s6035_s1 + $0x11c8] sm:$0xff] }
  0xfc   :  { %3667 = vmatprep.subr.bf16.mxu1 %v3666_v62  ;;  %v3714_v62 = vpack.c.bf16 %v596_v56, %v595_v55  ;;  %v550_v8 = vld [vmem:[%s6035_s1 + $0x1038] sm:$0xff]  ;;  %v581_v7 = vld [vmem:[%s6035_s1 + $0x1130] sm:$0xff]  ;;  %v552_v20 = vld [vmem:[%s6035_s1 + $0x1048] sm:$0xff] }
  0xfd   :  { %v5564_v26 = vadd.f32 %v2479_v10, %v965_v18  ;;  %3637 = vmatpush3.bf16.msra.mxu0 %v3636_v9  ;;  %v3718_v9 = vpack.c.bf16 %v598_v2, %v597_v1  ;;  %v582_v11 = vld [vmem:[%s6035_s1 + $0x1138] sm:$0xff]  ;;  %v567_v10 = vld [vmem:[%s6035_s1 + $0x10c0] sm:$0xff]  ;;  %v3688_v16 = vpack.c.bf16 %v550_v8, %v549_v6  ;;  %v584_v23 = vld [vmem:[%s6035_s1 + $0x1148] sm:$0xff] }
  0xfe   :  { %3639 = vmatprep.subr.bf16.mxu0 %v3638_v14  ;;  %v599_v14 = vld [vmem:[%s6035_s1 + $0x11c0] sm:$0xff]  ;;  %v3720_v17 = vpack.c.bf16 %v582_v11, %v581_v7  ;;  %v569_v24 = vld [vmem:[%s6035_s1 + $0x10d0] sm:$0xff]  ;;  %v570_v25 = vld [vmem:[%s6035_s1 + $0x10d8] sm:$0xff] }
  0xff   :  { %3669 = vmatpush3.bf16.msra.mxu1 %v3668_v12  ;;  %v568_v12 = vld [vmem:[%s6035_s1 + $0x10c8] sm:$0xff]  ;;  %v583_v21 = vld [vmem:[%s6035_s1 + $0x1140] sm:$0xff]  ;;  %v3722_v22 = vpack.c.bf16 %v600_v15, %v599_v14  ;;  %v3694_v30 = vpack.c.bf16 %v570_v25, %v569_v24  ;;  %v553_v32 = vld [vmem:[%s6035_s1 + $0x1050] sm:$0xff] }
 0x100   :  { %3671 = vmatprep.subr.bf16.mxu1 %v3670_v19  ;;  %v3690_v18 = vpack.c.bf16 %v568_v12, %v567_v10  ;;  %v551_v19 = vld [vmem:[%s6035_s1 + $0x1040] sm:$0xff]  ;;  %v3724_v31 = vpack.c.bf16 %v584_v23, %v583_v21  ;;  %v585_v34 = vld [vmem:[%s6035_s1 + $0x1150] sm:$0xff]  ;;  %v586_v36 = vld [vmem:[%s6035_s1 + $0x1158] sm:$0xff] }
 0x101   :  { %3641 = vmatpush3.bf16.msra.mxu0 %v3640_v27  ;;  %v601_v27 = vld [vmem:[%s6035_s1 + $0x11d0] sm:$0xff]  ;;  %v571_v37 = vld [vmem:[%s6035_s1 + $0x10e0] sm:$0xff]  ;;  %v572_v38 = vld [vmem:[%s6035_s1 + $0x10e8] sm:$0xff]  ;;  %v3728_v44 = vpack.c.bf16 %v586_v36, %v585_v34 }
 0x102   :  { %3675 = vmatprep.subr.bf16.mxu0 %v3674_v29  ;;  %v3692_v29 = vpack.c.bf16 %v552_v20, %v551_v19  ;;  %v3698_v46 = vpack.c.bf16 %v572_v38, %v571_v37  ;;  %v555_v47 = vld [vmem:[%s6035_s1 + $0x1060] sm:$0xff]  ;;  %v573_v55 = vld [vmem:[%s6035_s1 + $0x10f0] sm:$0xff]  ;;  %v574_v56 = vld [vmem:[%s6035_s1 + $0x10f8] sm:$0xff] }
 0x103   :  { %3673 = vmatpush3.bf16.msra.mxu1 %v3672_v28  ;;  %v602_v28 = vld [vmem:[%s6035_s1 + $0x11d8] sm:$0xff]  ;;  %v587_v49 = vld [vmem:[%s6035_s1 + $0x1160] sm:$0xff]  ;;  %v3702_v0 = vpack.c.bf16 %v574_v56, %v573_v55  ;;  %v557_v1 = vld [vmem:[%s6035_s1 + $0x1070] sm:$0xff] }
 0x104   :  { %3707 = vmatprep.subr.bf16.mxu1 %v3706_v42  ;;  %1943 = vmatmul.mubr.f32.vlgmr.msra.gmra.mrb[14].mxu0 %v5373_v51  ;;  %v547_v51 = vld [vmem:[%s6035_s1 + $0x1020] sm:$0xff]  ;;  %v554_v42 = vld [vmem:[%s6035_s1 + $0x1058] sm:$0xff]  ;;  %v3726_v35 = vpack.c.bf16 %v602_v28, %v601_v27  ;;  %v624_v7 = vld [vmem:[%s6035_s1 + $0x1288] sm:$0xff] }
 0x105   :  { %3677 = vmatpush3.bf16.msra.mxu0 %v3676_v40  ;;  %2082 = vmatprep.mubr.f32.mxu0 %v839_v54  ;;  %v3684_v3 = vpack.c.bf16 %v548_v60, %v547_v51  ;;  %v603_v40 = vld [vmem:[%s6035_s1 + $0x11e0] sm:$0xff]  ;;  %v588_v54 = vld [vmem:[%s6035_s1 + $0x1168] sm:$0xff]  ;;  %v558_v2 = vld [vmem:[%s6035_s1 + $0x1078] sm:$0xff] }
 0x106   :  { %2013 = vmatmul.mubr.f32.vlgmr.msra.gmra.mrb[14].mxu1 %v5382_v33  ;;  %3679 = vmatprep.subr.bf16.mxu0 %v3678_v43  ;;  %v580_v33 = vld [vmem:[%s6035_s1 + $0x1128] sm:$0xff]  ;;  %v3696_v43 = vpack.c.bf16 %v554_v42, %v553_v32  ;;  %v3732_v63 = vpack.c.bf16 %v588_v54, %v587_v49  ;;  %v590_v6 = vld [vmem:[%s6035_s1 + $0x1178] sm:$0xff]  ;;  %v623_v8 = vld [vmem:[%s6035_s1 + $0x1280] sm:$0xff]  ;;  %v3704_v12 = vpack.c.bf16 %v558_v2, %v557_v1 }
 0x107   :  { %3709 = vmatpush3.bf16.msra.mxu1 %v3708_v41  ;;  %2152 = vmatprep.mubr.f32.mxu1 %v840_v57  ;;  %v3716_v4 = vpack.c.bf16 %v580_v33, %v579_v61  ;;  %v604_v41 = vld [vmem:[%s6035_s1 + $0x11e8] sm:$0xff]  ;;  %v3738_v15 = vpack.c.bf16 %v624_v7, %v623_v8  ;;  %v625_v21 = vld [vmem:[%s6035_s1 + $0x1290] sm:$0xff]  ;;  %v658_v25 = vld [vmem:[%s6035_s1 + $0x1398] sm:$0xff] }
 0x108   :  { %3711 = vmatprep.subr.bf16.mxu1 %v3710_v48  ;;  %v556_v48 = vld [vmem:[%s6035_s1 + $0x1068] sm:$0xff]  ;;  %v3730_v53 = vpack.c.bf16 %v604_v41, %v603_v40  ;;  %v657_v24 = vld [vmem:[%s6035_s1 + $0x1390] sm:$0xff]  ;;  %v610_v32 = vld [vmem:[%s6035_s1 + $0x1218] sm:$0xff] }
 0x109   :  { %3681 = vmatpush3.bf16.msra.mxu0 %v3680_v45  ;;  %v3700_v61 = vpack.c.bf16 %v556_v48, %v555_v47  ;;  %v640_v20 = vld [vmem:[%s6035_s1 + $0x1308] sm:$0xff]  ;;  %v641_v42 = vld [vmem:[%s6035_s1 + $0x1310] sm:$0xff]  ;;  %v642_v34 = vld [vmem:[%s6035_s1 + $0x1318] sm:$0xff] }
 0x10a   :  { %3683 = vmatprep.subr.bf16.mxu0 %v3682_v59  ;;  %v606_v59 = vld [vmem:[%s6035_s1 + $0x11f8] sm:$0xff]  ;;  %v628_v36 = vld [vmem:[%s6035_s1 + $0x12a8] sm:$0xff]  ;;  %v659_v38 = vld [vmem:[%s6035_s1 + $0x13a0] sm:$0xff] }
 0x10b   :  { %3713 = vmatpush3.bf16.msra.mxu1 %v3712_v58  ;;  %v605_v58 = vld [vmem:[%s6035_s1 + $0x11f0] sm:$0xff]  ;;  %v660_v40 = vld [vmem:[%s6035_s1 + $0x13a8] sm:$0xff]  ;;  %v643_v48 = vld [vmem:[%s6035_s1 + $0x1320] sm:$0xff] }
 0x10c   :  { %3715 = vmatprep.subr.bf16.mxu1 %v3714_v62  ;;  %v30_v62 = vld [vmem:[%s6034_s0 + $0x48] sm:$0xff]  ;;  %v3778_v49 = vpack.c.bf16 %v660_v40, %v659_v38  ;;  %v661_v54 = vld [vmem:[%s6035_s1 + $0x13b0] sm:$0xff]  ;;  %v662_v55 = vld [vmem:[%s6035_s1 + $0x13b8] sm:$0xff]  ;;  %s2400_s0 = sshll.u32 %s3869_s8, 4  ;;  %s2401_s0 = int_to_ptr.vmem [resolvable:$true] %s2400_s0 }
 0x10d   :  { %3685 = vmatpush3.bf16.msra.mxu0 %v3684_v3  ;;  %v589_v3 = vld [vmem:[%s6035_s1 + $0x1170] sm:$0xff]  ;;  %v841_v11 = vcombine.high %v30_v62, %v30_v62  ;;  %v5795_v23 = vrot.slane %v30_v62, %v4050_v13  ;;  %v612_v47 = vld [vmem:[%s6035_s1 + $0x1228] sm:$0xff]  ;;  %v631_v62 = vld [vmem:[%s6035_s1 + $0x12c0] sm:$0xff]  ;;  %s3841_s9 = scalar_lea.vmem %s2401_s0, 32  ;;  %p3846_p1 = scmp.lt.s32.totalorder %s2401_s0, %s2401_s0 }
 0x10e   :  { %3687 = vmatprep.subr.bf16.mxu0 %v3686_v5  ;;  %v3734_v5 = vpack.c.bf16 %v606_v59, %v605_v58  ;;  %v3736_v14 = vpack.c.bf16 %v590_v6, %v589_v3  ;;  %v613_v58 = vld [vmem:[%s6035_s1 + $0x1230] sm:$0xff]  ;;  %v614_v59 = vld [vmem:[%s6035_s1 + $0x1238] sm:$0xff]  ;;  %v647_v6 = vld [vmem:[%s6035_s1 + $0x1340] sm:$0xff]  ;;  %p3842_p0 = scmp.ne.s32.totalorder %s2401_s0, %s3841_s9  ;;  %p3847_p2 = scmp.lt.s32.totalorder %s3841_s9, %s3841_s9 }
 0x10f   :  { %3717 = vmatpush3.bf16.msra.mxu1 %v3716_v4  ;;  %v5804_v27 = vrot.slane %v841_v11, %v4050_v13  ;;  %v3774_v13 = vpack.c.bf16 %v658_v25, %v657_v24  ;;  %v856_v37 = vcombine.high %v5795_v23, %v5795_v23  ;;  %v3752_v1 = vpack.c.bf16 %v614_v59, %v613_v58  ;;  %v648_v7 = vld [vmem:[%s6035_s1 + $0x1348] sm:$0xff]  ;;  %v665_v11 = vld [vmem:[%s6035_s1 + $0x13d0] sm:$0xff]  ;;  %v667_v25 = vld [vmem:[%s6035_s1 + $0x13e0] sm:$0xff] }
 0x110   :  { %3719 = vmatprep.subr.bf16.mxu1 %v3718_v9  ;;  %v655_v9 = vld [vmem:[%s6035_s1 + $0x1380] sm:$0xff]  ;;  %v636_v24 = vld [vmem:[%s6035_s1 + $0x12e8] sm:$0xff]  ;;  %v638_v38 = vld [vmem:[%s6035_s1 + $0x12f8] sm:$0xff]  ;;  %p3848_p3 = por %p3847_p2, %p3846_p1 }
 0x111   :  { %3689 = vmatpush3.bf16.msra.mxu0 %v3688_v16  ;;  %v607_v16 = vld [vmem:[%s6035_s1 + $0x1200] sm:$0xff]  ;;  %v857_v41 = vcombine.high %v5804_v27, %v5804_v27 }
 0x112   :  { %3691 = vmatprep.subr.bf16.mxu0 %v3690_v18  ;;  %v639_v18 = vld [vmem:[%s6035_s1 + $0x1300] sm:$0xff]  ;;  %p3849_p4 = pnand %p3848_p3, %p3842_p0 }
 0x113   :  { %3721 = vmatpush3.bf16.msra.mxu1 %v3720_v17  ;;  %v608_v17 = vld [vmem:[%s6035_s1 + $0x1208] sm:$0xff] }
 0x114   :  { %3723 = vmatprep.subr.bf16.mxu1 %v3722_v22  ;;  %v626_v22 = vld [vmem:[%s6035_s1 + $0x1298] sm:$0xff]  ;;  %v3740_v28 = vpack.c.bf16 %v608_v17, %v607_v16  ;;  %v617_v17 = vld [vmem:[%s6035_s1 + $0x1250] sm:$0xff] }
 0x115   :  { %3693 = vmatpush3.bf16.msra.mxu0 %v3692_v29  ;;  %v3772_v29 = vpack.c.bf16 %v640_v20, %v639_v18  ;;  %v618_v18 = vld [vmem:[%s6035_s1 + $0x1258] sm:$0xff] }
 0x116   :  { %3695 = vmatprep.subr.bf16.mxu0 %v3694_v30  ;;  %v609_v30 = vld [vmem:[%s6035_s1 + $0x1210] sm:$0xff] }
 0x117   :  { %3725 = vmatpush3.bf16.msra.mxu1 %v3724_v31  ;;  %v2512_v50 = vpop.f32.mrb[2].mxu0  ;;  %v3742_v31 = vpack.c.bf16 %v626_v22, %v625_v21  ;;  %v650_v21 = vld [vmem:[%s6035_s1 + $0x1358] sm:$0xff]  ;;  %v635_v22 = vld [vmem:[%s6035_s1 + $0x12e0] sm:$0xff] }
 0x118   :  { %3727 = vmatprep.subr.bf16.mxu1 %v3726_v35  ;;  %v2513_v57 = vpop.f32.mrb[3].mxu0  ;;  %v627_v35 = vld [vmem:[%s6035_s1 + $0x12a0] sm:$0xff] }
 0x119   :  { %v2547_v45 = vpop.f32.mrb[2].mxu1  ;;  %v2514_v51 = vadd.f32 %v2513_v57, %v2512_v50  ;;  %3697 = vmatpush3.bf16.msra.mxu0 %v3696_v43  ;;  %v3744_v43 = vpack.c.bf16 %v610_v32, %v609_v30  ;;  %v629_v50 = vld [vmem:[%s6035_s1 + $0x12b0] sm:$0xff]  ;;  %v3762_v30 = vpack.c.bf16 %v636_v24, %v635_v22  ;;  %v619_v32 = vld [vmem:[%s6035_s1 + $0x1260] sm:$0xff]  ;;  %v2308_v22 = vld [vmem:[%s6037_s3 + $0x48] sm:$0xff] }
 0x11a   :  { %v2548_v60 = vpop.f32.mrb[3].mxu1  ;;  %3699 = vmatprep.subr.bf16.mxu0 %v3698_v46  ;;  %v3746_v46 = vpack.c.bf16 %v628_v36, %v627_v35  ;;  %v652_v36 = vld [vmem:[%s6035_s1 + $0x1368] sm:$0xff] }
 0x11b   :  { %v2549_v33 = vadd.f32 %v2548_v60, %v2547_v45  ;;  %3729 = vmatpush3.bf16.msra.mxu1 %v3728_v44  ;;  %v1105_v4 = vadd.f32 %v2514_v51, %v5564_v26  ;;  %v656_v26 = vld [vmem:[%s6035_s1 + $0x1388] sm:$0xff]  ;;  %v3776_v44 = vpack.c.bf16 %v642_v34, %v641_v42  ;;  %v645_v51 = vld [vmem:[%s6035_s1 + $0x1330] sm:$0xff]  ;;  %v3782_v60 = vpack.c.bf16 %v662_v55, %v661_v54 }
 0x11c   :  { %3731 = vmatprep.subr.bf16.mxu1 %v3730_v53  ;;  %v3770_v19 = vpack.c.bf16 %v656_v26, %v655_v9  ;;  %v630_v53 = vld [vmem:[%s6035_s1 + $0x12b8] sm:$0xff]  ;;  %v633_v9 = vld [vmem:[%s6035_s1 + $0x12d0] sm:$0xff]  ;;  %v620_v42 = vld [vmem:[%s6035_s1 + $0x1268] sm:$0xff] }
 0x11d   :  { %v5774_v10 = vadd.f32 %v2549_v33, %v1105_v4  ;;  %3701 = vmatpush3.bf16.msra.mxu0 %v3700_v61  ;;  %v3750_v45 = vpack.c.bf16 %v630_v53, %v629_v50  ;;  %v646_v61 = vld [vmem:[%s6035_s1 + $0x1338] sm:$0xff]  ;;  %v632_v33 = vld [vmem:[%s6035_s1 + $0x12c8] sm:$0xff]  ;;  %v615_v4 = vld [vmem:[%s6035_s1 + $0x1240] sm:$0xff] }
 0x11e   :  { %3703 = vmatprep.subr.bf16.mxu0 %v3702_v0  ;;  %v664_v0 = vld [vmem:[%s6035_s1 + $0x13c8] sm:$0xff]  ;;  %v3784_v2 = vpack.c.bf16 %v646_v61, %v645_v51  ;;  %v3754_v3 = vpack.c.bf16 %v632_v33, %v631_v62  ;;  %v634_v26 = vld [vmem:[%s6035_s1 + $0x12d8] sm:$0xff]  ;;  %v621_v50 = vld [vmem:[%s6035_s1 + $0x1270] sm:$0xff] }
 0x11f   :  { %3733 = vmatpush3.bf16.msra.mxu1 %v3732_v63  ;;  %v663_v63 = vld [vmem:[%s6035_s1 + $0x13c0] sm:$0xff]  ;;  %v3758_v16 = vpack.c.bf16 %v634_v26, %v633_v9  ;;  %v622_v53 = vld [vmem:[%s6035_s1 + $0x1278] sm:$0xff]  ;;  %v2301_v9 = vld [vmem:[%s6037_s3 + $0x10] sm:$0xff]  ;;  %v3866_v26 = vmov 0.0|0.0  }
 0x120   :  { %3735 = vmatprep.subr.bf16.mxu1 %v3734_v5  ;;  %v616_v5 = vld [vmem:[%s6035_s1 + $0x1248] sm:$0xff]  ;;  %v3786_v8 = vpack.c.bf16 %v664_v0, %v663_v63  ;;  %v3768_v58 = vpack.c.bf16 %v622_v53, %v621_v50 }
 0x121   :  { %3705 = vmatpush3.bf16.msra.mxu0 %v3704_v12  ;;  %v666_v12 = vld [vmem:[%s6035_s1 + $0x13d8] sm:$0xff] }
 0x122   :  { %3739 = vmatprep.subr.bf16.mxu0 %v3738_v15  ;;  %v3788_v15 = vpack.c.bf16 %v648_v7, %v647_v6  ;;  %v3790_v20 = vpack.c.bf16 %v666_v12, %v665_v11  ;;  %v2302_v12 = vld [vmem:[%s6037_s3 + $0x18] sm:$0xff] }
 0x123   :  { %3737 = vmatpush3.bf16.msra.mxu1 %v3736_v14  ;;  %v3756_v14 = vpack.c.bf16 %v616_v5, %v615_v4 }
 0x124   :  { %3771 = vmatprep.subr.bf16.mxu1 %v3770_v19  ;;  %2083 = vmatmul.mubr.f32.vlgmr.msra.gmra.mrb[16].mxu0 %v5585_v52  ;;  %v611_v52 = vld [vmem:[%s6035_s1 + $0x1220] sm:$0xff]  ;;  %v649_v19 = vld [vmem:[%s6035_s1 + $0x1350] sm:$0xff] }
 0x125   :  { %3741 = vmatpush3.bf16.msra.mxu0 %v3740_v28  ;;  %2222 = vmatprep.mubr.f32.mxu0 %v856_v37  ;;  %v3748_v56 = vpack.c.bf16 %v612_v47, %v611_v52  ;;  %v668_v28 = vld [vmem:[%s6035_s1 + $0x13e8] sm:$0xff]  ;;  %v637_v37 = vld [vmem:[%s6035_s1 + $0x12f0] sm:$0xff]  ;;  %v3764_v47 = vpack.c.bf16 %v620_v42, %v619_v32 }
 0x126   :  { %2153 = vmatmul.mubr.f32.vlgmr.msra.gmra.mrb[16].mxu1 %v5594_v39  ;;  %3743 = vmatprep.subr.bf16.mxu0 %v3742_v31  ;;  %v644_v39 = vld [vmem:[%s6035_s1 + $0x1328] sm:$0xff]  ;;  %v3792_v31 = vpack.c.bf16 %v650_v21, %v649_v19  ;;  %v3794_v35 = vpack.c.bf16 %v668_v28, %v667_v25  ;;  %v2306_v19 = vld [vmem:[%s6037_s3 + $0x38] sm:$0xff]  ;;  %v2307_v21 = vld [vmem:[%s6037_s3 + $0x40] sm:$0xff] }
 0x127   :  { %3773 = vmatpush3.bf16.msra.mxu1 %v3772_v29  ;;  %2292 = vmatprep.mubr.f32.mxu1 %v857_v41  ;;  %v3780_v57 = vpack.c.bf16 %v644_v39, %v643_v48  ;;  %v3760_v29 = vpack.c.bf16 %v618_v18, %v617_v17  ;;  %v3766_v39 = vpack.c.bf16 %v638_v38, %v637_v37  ;;  %v2305_v18 = vld [vmem:[%s6037_s3 + $0x30] sm:$0xff]  ;;  %v2310_v28 = vld [vmem:[%s6037_s3 + $0x58] sm:$0xff]  ;;  %v2312_v32 = vld [vmem:[%s6037_s3 + $0x68] sm:$0xff] }
 0x128   :  { %3775 = vmatprep.subr.bf16.mxu1 %v3774_v13  ;;  %v651_v13 = vld [vmem:[%s6035_s1 + $0x1360] sm:$0xff]  ;;  %v3815_v24 = vpack.c.bf16 %v2308_v22, %v2307_v21  ;;  %v2309_v25 = vld [vmem:[%s6037_s3 + $0x50] sm:$0xff] }
 0x129   :  { %3745 = vmatpush3.bf16.msra.mxu0 %v3744_v43  ;;  %v669_v43 = vld [vmem:[%s6035_s1 + $0x13f0] sm:$0xff] }
 0x12a   :  { %3747 = vmatprep.subr.bf16.mxu0 %v3746_v46 }
 0x12b   :  { %3777 = vmatpush3.bf16.msra.mxu1 %v3776_v44  ;;  %v670_v44 = vld [vmem:[%s6035_s1 + $0x13f8] sm:$0xff] }
 0x12c   :  { %3779 = vmatprep.subr.bf16.mxu1 %v3778_v49  ;;  %v3796_v49 = vpack.c.bf16 %v652_v36, %v651_v13  ;;  %v3798_v55 = vpack.c.bf16 %v670_v44, %v669_v43 }
 0x12d   :  { %3749 = vmatpush3.bf16.msra.mxu0 %v3748_v56  ;;  %v653_v56 = vld [vmem:[%s6035_s1 + $0x1370] sm:$0xff] }
 0x12e   :  { %3751 = vmatprep.subr.bf16.mxu0 %v3750_v45 }
 0x12f   :  { %3781 = vmatpush3.bf16.msra.mxu1 %v3780_v57  ;;  %v654_v57 = vld [vmem:[%s6035_s1 + $0x1378] sm:$0xff] }
 0x130   :  { %3783 = vmatprep.subr.bf16.mxu1 %v3782_v60  ;;  %v3800_v59 = vpack.c.bf16 %v654_v57, %v653_v56 }
 0x131   :  { %3753 = vmatpush3.bf16.msra.mxu0 %v3752_v1 }
 0x132   :  { %3755 = vmatprep.subr.bf16.mxu0 %v3754_v3 }
 0x133   :  { %3785 = vmatpush3.bf16.msra.mxu1 %v3784_v2 }
 0x134   :  { %3787 = vmatprep.subr.bf16.mxu1 %v3786_v8 }
 0x135   :  { %3757 = vmatpush3.bf16.msra.mxu0 %v3756_v14  ;;  %v3806_v14 = vpack.c.bf16 %v2302_v12, %v2301_v9 }
 0x136   :  { %3759 = vmatprep.subr.bf16.mxu0 %v3758_v16  ;;  %v2304_v16 = vld [vmem:[%s6037_s3 + $0x28] sm:$0xff] }
 0x137   :  { %3789 = vmatpush3.bf16.msra.mxu1 %v3788_v15  ;;  %v2582_v34 = vpop.f32.mrb[4].mxu0  ;;  %v2303_v15 = vld [vmem:[%s6037_s3 + $0x20] sm:$0xff] }
 0x138   :  { %3791 = vmatprep.subr.bf16.mxu1 %v3790_v20  ;;  %v2583_v40 = vpop.f32.mrb[5].mxu0  ;;  %v3809_v17 = vpack.c.bf16 %v2304_v16, %v2303_v15  ;;  %v3812_v20 = vpack.c.bf16 %v2306_v19, %v2305_v18 }
 0x139   :  { %v2617_v41 = vpop.f32.mrb[4].mxu1  ;;  %v2584_v46 = vadd.f32 %v2583_v40, %v2582_v34  ;;  %3761 = vmatpush3.bf16.msra.mxu0 %v3760_v29  ;;  %v3818_v29 = vpack.c.bf16 %v2310_v28, %v2309_v25  ;;  %v2313_v40 = vld [vmem:[%s6037_s3 + $0x70] sm:$0xff] }
 0x13a   :  { %v2618_v52 = vpop.f32.mrb[5].mxu1  ;;  %3763 = vmatprep.subr.bf16.mxu0 %v3762_v30  ;;  %v2311_v30 = vld [vmem:[%s6037_s3 + $0x60] sm:$0xff] }
 0x13b   :  { %v2619_v48 = vadd.f32 %v2618_v52, %v2617_v41  ;;  %3793 = vmatpush3.bf16.msra.mxu1 %v3792_v31  ;;  %v1245_v54 = vadd.f32 %v2584_v46, %v5774_v10  ;;  %v3821_v34 = vpack.c.bf16 %v2312_v32, %v2311_v30  ;;  %v2314_v41 = vld [vmem:[%s6037_s3 + $0x78] sm:$0xff]  ;;  %v3868_v46 = vmov 0.0  }
 0x13c   :  { %3795 = vmatprep.subr.bf16.mxu1 %v3794_v35  ;;  %v3824_v43 = vpack.c.bf16 %v2314_v41, %v2313_v40 }
 0x13d   :  { %v1315_v45 = vadd.f32 %v2619_v48, %v1245_v54  ;;  %3765 = vmatpush3.bf16.msra.mxu0 %v3764_v47 }
 0x13e   :  { %3767 = vmatprep.subr.bf16.mxu0 %v3766_v39 }
 0x13f   :  { %3797 = vmatpush3.bf16.msra.mxu1 %v3796_v49 }
 0x140   :  { %3799 = vmatprep.subr.bf16.mxu1 %v3798_v55 }
 0x141   :  { %3769 = vmatpush3.bf16.msra.mxu0 %v3768_v58 }
 0x142   :  { %3802 = vmatprep.subr.bf16.mxu0 %v3866_v26 }
 0x143   :  { %3801 = vmatpush3.bf16.msra.mxu1 %v3800_v59 }
 0x144   :  { %2223 = vmatmul.mubr.f32.vlgmr.msra.gmra.mrb[18].mxu0 %v5795_v23  ;;  %v2299_v23 = vld [vmem:[%s6037_s3] sm:$0xff] }
 0x145   :  { %3159 = vmatprep.mubr.msk.f32.mxu0 %vm3867_vm0, %v3868_v46 }
 0x146   :  { %2293 = vmatmul.mubr.f32.vlgmr.msra.gmra.mrb[18].mxu1 %v5804_v27  ;;  %v2300_v27 = vld [vmem:[%s6037_s3 + $0x8] sm:$0xff] }
 0x147   :  { %v3803_v11 = vpack.c.bf16 %v2300_v27, %v2299_v23 }
 0x149   :  { %3804 = vmatpush3.bf16.msra.mxu0 %v3803_v11 }
 0x14a   :  { %3805 = vmatprep.subr.bf16.mxu0 %v3866_v26 }
 0x14d   :  { %3807 = vmatpush3.bf16.msra.mxu0 %v3806_v14 }
 0x14e   :  { %3808 = vmatprep.subr.bf16.mxu0 %v3866_v26 }
 0x151   :  { %3810 = vmatpush3.bf16.msra.mxu0 %v3809_v17 }
 0x152   :  { %3811 = vmatprep.subr.bf16.mxu0 %v3866_v26 }
 0x155   :  { %3813 = vmatpush3.bf16.msra.mxu0 %v3812_v20 }
 0x156   :  { %3814 = vmatprep.subr.bf16.mxu0 %v3866_v26 }
 0x157   :  { %v2652_v10 = vpop.f32.mrb[6].mxu0 }
 0x158   :  { %v2653_v51 = vpop.f32.mrb[7].mxu0 }
 0x159   :  { %v2687_v60 = vpop.f32.mrb[6].mxu1  ;;  %v2654_v61 = vadd.f32 %v2653_v51, %v2652_v10  ;;  %3816 = vmatpush3.bf16.msra.mxu0 %v3815_v24 }
 0x15a   :  { %v2688_v62 = vpop.f32.mrb[7].mxu1  ;;  %3817 = vmatprep.subr.bf16.mxu0 %v3866_v26 }
 0x15b   :  { %v2689_v33 = vadd.f32 %v2688_v62, %v2687_v60  ;;  %v1385_v63 = vadd.f32 %v2654_v61, %v1315_v45 }
 0x15d   :  { %v1455_v0 = vadd.f32 %v2689_v33, %v1385_v63  ;;  %3819 = vmatpush3.bf16.msra.mxu0 %v3818_v29 }
 0x15e   :  { %3820 = vmatprep.subr.bf16.mxu0 %v3866_v26 }
 0x161   :  { %3822 = vmatpush3.bf16.msra.mxu0 %v3821_v34 }
 0x162   :  { %3823 = vmatprep.subr.bf16.mxu0 %v3866_v26  ;;  %v2409_v26 = vld [vmem:[%s6038_s4] ss:$0 sm:$0xff] }
 0x165   :  { %3825 = vmatpush3.bf16.msra.mxu0 %v3824_v43 }
 0x177   :  { %v2722_v1 = vpop.f32.mrb[8].mxu0 }
 0x178   :  { %v2723_v2 = vpop.f32.mrb[9].mxu0 }
 0x179   :  { %v2757_v3 = vpop.f32.mrb[8].mxu1  ;;  %v2724_v4 = vadd.f32 %v2723_v2, %v2722_v1 }
 0x17a   :  { %v2758_v5 = vpop.f32.mrb[9].mxu1 }
 0x17b   :  { %v2759_v6 = vadd.f32 %v2758_v5, %v2757_v3  ;;  %v1525_v8 = vadd.f32 %v2724_v4, %v1455_v0 }
 0x17d   :  { %v1595_v7 = vadd.f32 %v2759_v6, %v1525_v8 }
 0x197   :  { %v2792_v31 = vpop.f32.mrb[10].mxu0 }
 0x198   :  { %v2793_v42 = vpop.f32.mrb[11].mxu0 }
 0x199   :  { %v2827_v13 = vpop.f32.mrb[10].mxu1  ;;  %v2794_v35 = vadd.f32 %v2793_v42, %v2792_v31 }
 0x19a   :  { %v2828_v36 = vpop.f32.mrb[11].mxu1 }
 0x19b   :  { %v2829_v37 = vadd.f32 %v2828_v36, %v2827_v13  ;;  %v1665_v38 = vadd.f32 %v2794_v35, %v1595_v7 }
 0x19d   :  { %v1735_v44 = vadd.f32 %v2829_v37, %v1665_v38 }
 0x1b7   :  { %v2862_v52 = vpop.f32.mrb[12].mxu0 }
 0x1b8   :  { %v2863_v47 = vpop.f32.mrb[13].mxu0 }
 0x1b9   :  { %v2897_v48 = vpop.f32.mrb[12].mxu1  ;;  %v2864_v49 = vadd.f32 %v2863_v47, %v2862_v52 }
 0x1ba   :  { %v2898_v39 = vpop.f32.mrb[13].mxu1 }
 0x1bb   :  { %v2899_v50 = vadd.f32 %v2898_v39, %v2897_v48  ;;  %v1805_v53 = vadd.f32 %v2864_v49, %v1735_v44 }
 0x1bd   :  { %v1875_v54 = vadd.f32 %v2899_v50, %v1805_v53 }
 0x1d7   :  { %v2932_v55 = vpop.f32.mrb[14].mxu0 }
 0x1d8   :  { %v2933_v56 = vpop.f32.mrb[15].mxu0 }
 0x1d9   :  { %v2967_v57 = vpop.f32.mrb[14].mxu1  ;;  %v2934_v45 = vadd.f32 %v2933_v56, %v2932_v55 }
 0x1da   :  { %v2968_v58 = vpop.f32.mrb[15].mxu1 }
 0x1db   :  { %v2969_v59 = vadd.f32 %v2968_v58, %v2967_v57  ;;  %v1945_v10 = vadd.f32 %v2934_v45, %v1875_v54 }
 0x1dd   :  { %v2015_v51 = vadd.f32 %v2969_v59, %v1945_v10 }
 0x1f7   :  { %v3002_v60 = vpop.f32.mrb[16].mxu0 }
 0x1f8   :  { %v3003_v61 = vpop.f32.mrb[17].mxu0 }
 0x1f9   :  { %v3037_v62 = vpop.f32.mrb[16].mxu1  ;;  %v3004_v33 = vadd.f32 %v3003_v61, %v3002_v60 }
 0x1fa   :  { %v3038_v63 = vpop.f32.mrb[17].mxu1 }
 0x1fb   :  { %v3039_v0 = vadd.f32 %v3038_v63, %v3037_v62  ;;  %v2085_v1 = vadd.f32 %v3004_v33, %v2015_v51 }
 0x1fd   :  { %v2155_v2 = vadd.f32 %v3039_v0, %v2085_v1 }
 0x217   :  { %v3072_v3 = vpop.f32.mrb[18].mxu0 }
 0x218   :  { %v3073_v4 = vpop.f32.mrb[19].mxu0 }
 0x219   :  { %v3107_v5 = vpop.f32.mrb[18].mxu1  ;;  %v3074_v6 = vadd.f32 %v3073_v4, %v3072_v3 }
 0x21a   :  { %v3108_v8 = vpop.f32.mrb[19].mxu1 }
 0x21b   :  { %v3109_v7 = vadd.f32 %v3108_v8, %v3107_v5  ;;  %v2225_v23 = vadd.f32 %v3074_v6, %v2155_v2 }
 0x21d   :  { %v2295_v27 = vadd.f32 %v3109_v7, %v2225_v23 }
 0x21f   :  { %v2298_v9 = vmax.f32 %v2295_v27, 0.0 }
 0x221   :  { %3160 = vmatmul.mubr.f32.vlgmr.msra.gmra.mrb[20].mxu0 %v2298_v9 }
 0x2f4   :  { %v2388_v11 = vpop.f32.mrb[20].mxu0 }
 0x2f5   :  { %v2389_v12 = vadd.f32 %v2409_v26, %v2388_v11  ;;  %v3161_v14 = vpop.f32.mrb[21].mxu0 }
 0x2f7   :  { %2393 = vst.msk [vmem:[#allocation2] sm:$0x3] %vm2392_vm1, %v2389_v12 }
 0x2f8   :  { %3852 = shalt.err (!%p3849_p4)
}
 0x2f9   :  { %s3853_s12 = scalar_lea.hbm %s6039_s5, 32 }
 0x2fa   :  { %p3854_p5 = scmp.ne.s32.totalorder %s6039_s5, %s3853_s12  ;;  %p3857_p6 = scmp.lt.u32.totalorder %s3853_s12, %s6039_s5 }
 0x2fc   :  { %p3859_p7 = pnand %p3857_p6, %p3854_p5 }
 0x2fe   :  { %3862 = shalt.err (!%p3859_p7)
}
 0x2ff   :  { %2403 = dma.vmem_to_hbm [thread:$0]  %s2401_s0, 32, %s6039_s5, [#allocation3]  }
 0x300   :  { %3863 = dma.done.wait [#allocation3], 32  }
 0x301   :  { %3864 = vsyncadd [#allocation3], 4294967264 }
 0x302   :  { %2407 = vsyncpa [#allocation3], 1 }

// kernel: simple_net_forward.2
= control target key start
LH: loop header
LB: loop body
LE: loop exit
PB: predicated region body
PF: predicated region fallthrough
CT: control target
= control target key end

     0   :  { %s8344_s18 = smov 0   ;;  %s11789_s0 = inlined_call_operand.vmem [shape: f32[2,2,40,512], index: 0, kind: input, shape index: {}]   ;;  %s11790_s1 = inlined_call_operand.vmem [shape: f32[10,25], index: 1, kind: input, shape index: {}]   ;;  %s11791_s2 = inlined_call_operand.vmem [shape: f32[10,1], index: 2, kind: input, shape index: {}]   ;;  %s11792_s3 = inlined_call_operand.vmem [shape: f32[20,250], index: 3, kind: input, shape index: {}]   ;;  %s11793_s4 = inlined_call_operand.vmem [shape: f32[20,1], index: 4, kind: input, shape index: {}]   ;;  %s11794_s5 = inlined_call_operand.vmem [shape: f32[2,20,256], index: 5, kind: output, shape index: {}]  }
   0x1 LB: > { %s7669_s19 = sadd.s32 4294967295, %s8300_s18   ;;  %p7673_p0 = scmp.ge.s32.totalorder %s8300_s18, 1  ;;  %s8300_s18 = sphi %s8344_s18, %s15_s18  }
   0x2   : > { %p187_p1 = scmp.lt.s32.totalorder %s8300_s18, 3 }
   0x4   : > { %p188_p2 = pnand %p7673_p0, %p187_p1 }
   0x6   : > { %191 = sbr.rel (%p188_p2) target bundleno = 1950 (0x79e), region = 40 }
   0xd   : > { %p215_p3 = scmp.lt.s32.totalorder %s7669_s19, 1  ;;  %v8302_v0 = vmov 0.0   ;;  %v227_v1 = vld [vmem:[%s11791_s2] sm:$0xff]  ;;  %v8303_v2 = vmov 0   ;;  %v228_v3 = vld [vmem:[%s11791_s2 + $0x8] sm:$0x3]  ;;  %v2207_v30 = vlaneseq }
   0xe   : > { %350 = vmatprep.mubr.f32.mxu0 %v8302_v0  ;;  %427 = vmatprep.mubr.f32.mxu1 %v8302_v0  ;;  %vm655_vm0 = vcmask 1042432   ;;  %vm273_vm1 = vcmask 1040384   ;;  %vm266_vm2 = vcmask 203776   ;;  %vm8304_vm3 = vmmov 1   ;;  %v8425_v41 = vld [vmem:[%s11790_s1] sm:$0xff]  ;;  %s8305_s7 = smov 49  }
   0xf   : > { %s11903_s19 = smov (!%p215_p3, %s7669_s19), 1  ;;  %8260 = vset.pattern.permute.xlu0 %v8303_v2  ;;  %8291 = vset.pattern.permute.xlu1 %v8303_v2  ;;  %vm8400_vm4 = vmpackc.low %vm273_vm1, %vm8304_vm3  ;;  %vm1223_vm5 = vcmask 1045504   ;;  %s8306_s8 = smov 47   ;;  %vm238_vm10 = vcmask 523264   ;;  %vm244_vm11 = vcmask 1048064   ;;  %vm1158_vm12 = vcmask 1041408  }
  0x10   : > { %1102 = vperm.xlu0 %8260, %v227_v1   ;;  %s8238_s22 = smul.u32 320, %s11903_s19  ;;  %s8307_s9 = smov 65   ;;  %239 = vst.msk [vmem:[#allocation2] sm:$0xff] %vm238_vm10, %v8302_v0  ;;  %240 = vst.msk [vmem:[#allocation2 + $0x18] sm:$0xff] %vm238_vm10, %v8302_v0  ;;  %vm2140_vm13 = vcmask 1043456   ;;  %vm1181_vm14 = vcmask 1048066  }
  0x11   : > { %s8308_s10 = smov 63   ;;  %s8309_s11 = smov 81   ;;  %241 = vst.msk [vmem:[#allocation2 + $0x30] sm:$0xff] %vm238_vm10, %v8302_v0  ;;  %242 = vst.msk [vmem:[#allocation2 + $0x48] sm:$0xff] %vm238_vm10, %v8302_v0  ;;  %vm1149_vm15 = vcmask 1041920  }
  0x12   : > { %s8366_s27 = scalar_lea.vmem %s11789_s0, %s8238_s22  ;;  %s8310_s12 = smov 79   ;;  %243 = vst.msk [vmem:[#allocation2 + $0x60] sm:$0xff] %vm238_vm10, %v8302_v0 }
  0x13   : > { %v251_v4 = vld [vmem:[%s8366_s27 + $0x8] sm:$0xff]  ;;  %v253_v6 = vld [vmem:[%s8366_s27 + $0x18] sm:$0xff]  ;;  %v250_v10 = vld [vmem:[%s8366_s27] sm:$0xff]  ;;  %245 = vst.msk [vmem:[#allocation2 + $0x10] sm:$0xff] %vm244_vm11, %v8302_v0  ;;  %s8311_s13 = smov 64   ;;  %s8312_s14 = smov 80  }
  0x14   : > { %v8370_v5 = vld [vmem:[%s8366_s27 + $0x28] sm:$0xff]  ;;  %1107 = vperm.xlu0 %8260, %v228_v3   ;;  %v8376_v9 = vld [vmem:[%s8366_s27 + $0x38] sm:$0xff]  ;;  %v254_v11 = vld [vmem:[%s8366_s27 + $0x20] sm:$0xff]  ;;  %246 = vst.msk [vmem:[#allocation2 + $0x28] sm:$0xff] %vm244_vm11, %v8302_v0  ;;  %s8313_s15 = smov 48  }
  0x15   : > { %v7814_v7 = vpack.c.bf16 %v8370_v5, %v251_v4  ;;  %v660_v8 = vrot.slane %v8370_v5, 5  ;;  %v7824_v12 = vpack.c.bf16 %v8376_v9, %v253_v6  ;;  %v666_v13 = vrot.slane %v8376_v9, 5  ;;  %v8383_v14 = vld [vmem:[%s8366_s27 + $0x40] sm:$0xff]  ;;  %v252_v18 = vld [vmem:[%s8366_s27 + $0x10] sm:$0xff]  ;;  %v8395_v28 = vld [vmem:[%s8366_s27 + $0x48] sm:$0xff]  ;;  %247 = vst.msk [vmem:[#allocation2 + $0x40] sm:$0xff] %vm244_vm11, %v8302_v0 }
  0x16   : > { %v7816_v15 = vpack.c.bf16 %v254_v11, %v250_v10  ;;  %v631_v16 = vld [vmem:[%s8366_s27] sm:$0xe0]  ;;  %v657_v17 = vrot.slane %v254_v11, 5  ;;  %v668_v20 = vrot.slane %v8383_v14, 5  ;;  %v256_v21 = vld [vmem:[%s8366_s27 + $0x30] sm:$0xff]  ;;  %v8406_v32 = vld [vmem:[%s8366_s27 + $0x58] sm:$0xff] }
  0x17   : > { %7815 = vmatprep.subr.bf16.mxu0 %v7814_v7  ;;  %v656_v19 = vrot.slane %v631_v16, 5  ;;  %v8390_v22 = vld [vmem:[%s8366_s27 + $0x50] sm:$0xff]  ;;  %7825 = vmatprep.subr.bf16.mxu1 %v7824_v12  ;;  %v7826_v24 = vpack.c.bf16 %v256_v21, %v252_v18  ;;  %v663_v26 = vrot.slane %v256_v21, 5  ;;  %v263_v29 = vld [vmem:[%s8366_s27 + $0x68] sm:$0x1]  ;;  %v670_v35 = vrot.slane %v8395_v28, 5 }
  0x18   : > { %v633_v23 = vld [vmem:[%s8366_s27 + $0x10] sm:$0xe0]  ;;  %7817 = vmatpush1.bf16.msra.mxu0 %v7816_v15  ;;  %v672_v27 = vrot.slane %v8390_v22, 5  ;;  %v7818_v31 = vpack.c.bf16 %v263_v29, %v8395_v28  ;;  %v265_v33 = vld [vmem:[%s8366_s27 + $0x78] sm:$0x1]  ;;  %v8417_v37 = vsel %vm655_vm0, %v657_v17, %v668_v20  ;;  %v7685_v42 = vld [vmem:[%s8366_s27 + $0xa8] sm:$0xff] }
  0x19   : > { %v662_v25 = vrot.slane %v633_v23, 5  ;;  %v262_v34 = vld [vmem:[%s8366_s27 + $0x60] sm:$0x1]  ;;  %v8412_v36 = vsel %vm655_vm0, %v656_v19, %v657_v17  ;;  %7827 = vmatpush1.bf16.msra.mxu1 %v7826_v24  ;;  %v7828_v38 = vpack.c.bf16 %v265_v33, %v8406_v32  ;;  %v264_v40 = vld [vmem:[%s8366_s27 + $0x70] sm:$0x1]  ;;  %v8429_v43 = vld [vmem:[%s8366_s27 + $0xc8] sm:$0xff]  ;;  %v671_v1 = vsel %vm655_vm0, %v660_v8, %v670_v35 }
  0x1a   : > { %v7821_v39 = vpack.c.bf16 %v262_v34, %v8383_v14  ;;  %v8437_v45 = vsel %vm655_vm0, %v663_v26, %v672_v27  ;;  %7820 = vmatprep.subr.msk.bf16.mxu0 %vm8400_vm4, %v7818_v31  ;;  %v7831_v46 = vpack.c.bf16 %v264_v40, %v8390_v22  ;;  %v7834_v47 = vpack.c.bf16 %v8429_v43, %v7685_v42  ;;  %v7687_v48 = vld [vmem:[%s8366_s27 + $0xb8] sm:$0xff]  ;;  %v7684_v50 = vld [vmem:[%s8366_s27 + $0xa0] sm:$0xff]  ;;  %v7686_v55 = vld [vmem:[%s8366_s27 + $0xb0] sm:$0xff] }
  0x1b   : > { %v8432_v44 = vsel %vm655_vm0, %v662_v25, %v663_v26  ;;  %v8445_v49 = vld [vmem:[%s8366_s27 + $0xd8] sm:$0xff]  ;;  %7830 = vmatprep.subr.msk.bf16.mxu1 %vm8400_vm4, %v7828_v38  ;;  %v894_v51 = vrot.slane %v8429_v43, 5  ;;  %v8456_v54 = vld [vmem:[%s8366_s27 + $0xc0] sm:$0xff]  ;;  %v8460_v56 = vld [vmem:[%s8366_s27 + $0xd0] sm:$0xff]  ;;  %v674_v57 = vrot.slane %v8406_v32, 5  ;;  %v7856_v11 = vpack.c.bf16 %v8417_v37, %v8412_v36  ;;  %248 = vst.msk [vmem:[#allocation2 + $0x58] sm:$0xff] %vm244_vm11, %v8302_v0 }
  0x1c   : > { %7823 = vmatpush1.bf16.msk.msra.mxu0 %vm8400_vm4, %v7821_v39  ;;  %v7844_v52 = vpack.c.bf16 %v8445_v49, %v7687_v48  ;;  %v900_v53 = vrot.slane %v8445_v49, 5  ;;  %v7836_v58 = vpack.c.bf16 %v8456_v54, %v7684_v50  ;;  %v891_v59 = vrot.slane %v8456_v54, 5  ;;  %v8467_v61 = vld [vmem:[%s8366_s27 + $0xe8] sm:$0xff]  ;;  %v8471_v63 = vld [vmem:[%s8366_s27 + $0xf8] sm:$0xff]  ;;  %v8489_v7 = vld [vmem:[%s8366_s27 + $0xe0] sm:$0xff]  ;;  %249 = vst.msk [vmem:[#allocation2 + $0x70] sm:$0xff] %vm244_vm11, %v8302_v0 }
  0x1d   : > { %7835 = vmatprep.subr.bf16.mxu0 %v7834_v47  ;;  %v897_v60 = vrot.slane %v8460_v56, 5  ;;  %v7697_v62 = vld [vmem:[%s8366_s27 + $0x108] sm:$0x1]  ;;  %7833 = vmatpush1.bf16.msk.msra.mxu1 %vm8400_vm4, %v7831_v46  ;;  %v7846_v2 = vpack.c.bf16 %v8460_v56, %v7686_v55  ;;  %v7699_v6 = vld [vmem:[%s8366_s27 + $0x118] sm:$0x1]  ;;  %v904_v12 = vrot.slane %v8467_v61, 5  ;;  %v675_v19 = vsel %vm655_vm0, %v666_v13, %v674_v57 }
  0x1e   : > { %v8484_v3 = vld [vmem:[%s11790_s1 + $0x8] sm:$0x3]  ;;  %v7838_v4 = vpack.c.bf16 %v7697_v62, %v8467_v61  ;;  %v7696_v10 = vld [vmem:[%s8366_s27 + $0x100] sm:$0x1]  ;;  %7845 = vmatprep.subr.bf16.mxu1 %v7844_v52  ;;  %v7848_v15 = vpack.c.bf16 %v7699_v6, %v8471_v63  ;;  %v8499_v16 = vld [vmem:[%s8366_s27 + $0xf0] sm:$0xff]  ;;  %v7866_v21 = vpack.c.bf16 %v8437_v45, %v8432_v44  ;;  %v908_v23 = vrot.slane %v8471_v63, 5 }
  0x1f   : > { %7678 = vmatmul.mubr.msk.f32.vlgmr.msra.gmra.mrb[0].mxu0 %vm266_vm2, %v8425_v41  ;;  %v7698_v17 = vld [vmem:[%s8366_s27 + $0x110] sm:$0x1]  ;;  %v632_v18 = vld [vmem:[%s8366_s27 + $0x8] sm:$0xe0]  ;;  %v7841_v24 = vpack.c.bf16 %v7696_v10, %v8489_v7  ;;  %v634_v29 = vld [vmem:[%s8366_s27 + $0x18] sm:$0xe0]  ;;  %v8528_v42 = vsel %vm655_vm0, %v894_v51, %v904_v12 }
  0x20   : > { %7837 = vmatpush1.bf16.msra.mxu0 %v7836_v58  ;;  %356 = vmatprep.mubr.f32.mxu0 %v8302_v0  ;;  %v7851_v25 = vpack.c.bf16 %v7698_v17, %v8499_v16  ;;  %v659_v26 = vrot.slane %v632_v18, 5  ;;  %v636_v31 = vld [vmem:[%s8366_s27 + $0x68] sm:$0x3f]  ;;  %v902_v33 = vrot.slane %v8489_v7, 5  ;;  %v665_v34 = vrot.slane %v634_v29, 5 }
  0x21   : > { %7682 = vmatmul.mubr.msk.f32.vlgmr.msra.gmra.mrb[0].mxu1 %vm266_vm2, %v8425_v41  ;;  %7840 = vmatprep.subr.msk.bf16.mxu0 %vm8400_vm4, %v7838_v4  ;;  %v678_v38 = vrot.slane %v636_v31, 5  ;;  %v638_v39 = vld [vmem:[%s8366_s27 + $0x78] sm:$0x3f]  ;;  %v635_v40 = vld [vmem:[%s8366_s27 + $0x60] sm:$0x3f]  ;;  %v8535_v46 = vsel %vm655_vm0, %v900_v53, %v908_v23 }
  0x22   : > { %7847 = vmatpush1.bf16.msra.mxu1 %v7846_v2  ;;  %433 = vmatprep.mubr.f32.mxu1 %v8302_v0  ;;  %v661_v47 = vsel %vm655_vm0, %v659_v26, %v660_v8  ;;  %v682_v48 = vrot.slane %v638_v39, 5  ;;  %v676_v50 = vrot.slane %v635_v40, 5  ;;  %v637_v52 = vld [vmem:[%s8366_s27 + $0x70] sm:$0x3f]  ;;  %v7717_v55 = vld [vmem:[%s8366_s27 + $0xa8] sm:$0xe0]  ;;  %v8548_v58 = vsel %vm655_vm0, %v891_v59, %v902_v33 }
  0x23   : > { %7679 = vmatmul.mubr.msk.f32.gmra.mrb[2].mxu0 %vm266_vm2, %v8484_v3  ;;  %7850 = vmatprep.subr.msk.bf16.mxu1 %vm8400_vm4, %v7848_v15  ;;  %v7854_v5 = vpack.c.bf16 %v671_v1, %v661_v47  ;;  %v667_v8 = vsel %vm655_vm0, %v665_v34, %v666_v13  ;;  %v679_v62 = vsel %vm655_vm0, %v670_v35, %v678_v38  ;;  %v680_v2 = vrot.slane %v637_v52, 5  ;;  %v7719_v4 = vld [vmem:[%s8366_s27 + $0xb8] sm:$0xe0]  ;;  %v7716_v6 = vld [vmem:[%s8366_s27 + $0xa0] sm:$0xe0] }
  0x24   : > { %7843 = vmatpush1.bf16.msk.msra.mxu0 %vm8400_vm4, %v7841_v24  ;;  %533 = vmatprep.mubr.f32.mxu0 %v8302_v0  ;;  %v7864_v1 = vpack.c.bf16 %v675_v19, %v667_v8  ;;  %v7858_v10 = vpack.c.bf16 %v678_v38, %v679_v62  ;;  %v683_v9 = vsel %vm655_vm0, %v674_v57, %v682_v48  ;;  %v893_v13 = vrot.slane %v7717_v55, 5  ;;  %v7718_v35 = vld [vmem:[%s8366_s27 + $0xb0] sm:$0xe0]  ;;  %v7721_v24 = vld [vmem:[%s8366_s27 + $0x108] sm:$0x3f]  ;;  %v8649_v8 = vld [vmem:[%s8366_s27 + $0x60] sm:$0xff] }
  0x25   : > { %7683 = vmatmul.mubr.msk.f32.gmra.mrb[2].mxu1 %vm266_vm2, %v8484_v3  ;;  %7855 = vmatprep.subr.bf16.mxu0 %v7854_v5  ;;  %v7868_v15 = vpack.c.bf16 %v682_v48, %v683_v9  ;;  %v677_v17 = vsel %vm655_vm0, %v668_v20, %v676_v50  ;;  %v681_v18 = vsel %vm655_vm0, %v672_v27, %v680_v2  ;;  %v899_v19 = vrot.slane %v7719_v4, 5  ;;  %v7723_v57 = vld [vmem:[%s8366_s27 + $0x118] sm:$0x3f]  ;;  %v7720_v34 = vld [vmem:[%s8366_s27 + $0x100] sm:$0x3f] }
  0x26   : > { %7853 = vmatpush1.bf16.msk.msra.mxu1 %vm8400_vm4, %v7851_v25  ;;  %610 = vmatprep.mubr.f32.mxu1 %v8302_v0  ;;  %v7861_v26 = vpack.c.bf16 %v676_v50, %v677_v17  ;;  %v7871_v29 = vpack.c.bf16 %v680_v2, %v681_v18  ;;  %v895_v31 = vsel %vm655_vm0, %v893_v13, %v894_v51  ;;  %v890_v20 = vrot.slane %v7716_v6, 5  ;;  %v7722_v43 = vld [vmem:[%s8366_s27 + $0x110] sm:$0x3f]  ;;  %v1194_v48 = vld [vmem:[%s8366_s27 + $0x38] sm:$0xfc] }
  0x27   : > { %7702 = vmatmul.mubr.msk.f32.vlgmr.msra.gmra.mrb[4].mxu0 %vm266_vm2, %v8425_v41  ;;  %7865 = vmatprep.subr.bf16.mxu1 %v7864_v1  ;;  %v7874_v27 = vpack.c.bf16 %v8528_v42, %v895_v31  ;;  %v901_v25 = vsel %vm655_vm0, %v899_v19, %v900_v53  ;;  %v896_v38 = vrot.slane %v7718_v35, 5  ;;  %v906_v39 = vrot.slane %v8499_v16, 5  ;;  %v1192_v42 = vld [vmem:[%s8366_s27 + $0x28] sm:$0xfc]  ;;  %v8632_v50 = vld [vmem:[%s8366_s27 + $0x78] sm:$0xff]  ;;  %v8659_v1 = vld [vmem:[%s8366_s27 + $0x70] sm:$0xff] }
  0x28   : > { %7857 = vmatpush1.bf16.msra.mxu0 %v7856_v11  ;;  %539 = vmatprep.mubr.f32.mxu0 %v8302_v0  ;;  %v7884_v51 = vpack.c.bf16 %v8535_v46, %v901_v25  ;;  %v892_v40 = vsel %vm655_vm0, %v890_v20, %v891_v59  ;;  %v912_v49 = vrot.slane %v7721_v24, 5  ;;  %v916_v53 = vrot.slane %v7723_v57, 5  ;;  %v8617_v11 = vld [vmem:[%s8366_s27 + $0x68] sm:$0xff]  ;;  %v1193_v6 = vld [vmem:[%s8366_s27 + $0x30] sm:$0xfc] }
  0x29   : > { %7706 = vmatmul.mubr.msk.f32.vlgmr.msra.gmra.mrb[4].mxu1 %vm266_vm2, %v8425_v41  ;;  %7860 = vmatprep.subr.msk.bf16.mxu0 %vm8400_vm4, %v7858_v10  ;;  %v7876_v36 = vpack.c.bf16 %v8548_v58, %v892_v40  ;;  %v8611_v37 = vsel %vm655_vm0, %v896_v38, %v897_v60  ;;  %v907_v54 = vsel %vm655_vm0, %v897_v60, %v906_v39  ;;  %v910_v59 = vrot.slane %v7720_v34, 5  ;;  %v1206_v17 = vld [vmem:[%s8366_s27 + $0x98] sm:$0x7]  ;;  %v7741_v25 = vld [vmem:[%s8366_s27 + $0xc8] sm:$0xfc] }
  0x2a   : > { %7867 = vmatpush1.bf16.msra.mxu1 %v7866_v21  ;;  %616 = vmatprep.mubr.f32.mxu1 %v8302_v0  ;;  %v7886_v46 = vpack.c.bf16 %v907_v54, %v8611_v37  ;;  %v913_v47 = vsel %vm655_vm0, %v904_v12, %v912_v49  ;;  %v917_v56 = vsel %vm655_vm0, %v908_v23, %v916_v53  ;;  %v914_v60 = vrot.slane %v7722_v43, 5  ;;  %v1191_v23 = vld [vmem:[%s8366_s27 + $0x20] sm:$0xfc]  ;;  %v7743_v37 = vld [vmem:[%s8366_s27 + $0xd8] sm:$0xfc] }
  0x2b   : > { %7703 = vmatmul.mubr.msk.f32.gmra.mrb[6].mxu0 %vm266_vm2, %v8484_v3  ;;  %7870 = vmatprep.subr.msk.bf16.mxu1 %vm8400_vm4, %v7868_v15  ;;  %v7878_v44 = vpack.c.bf16 %v912_v49, %v913_v47  ;;  %v7888_v45 = vpack.c.bf16 %v916_v53, %v917_v56  ;;  %v911_v12 = vsel %vm655_vm0, %v902_v33, %v910_v59  ;;  %v1227_v21 = vrot.slane %v1192_v42, 2  ;;  %v1204_v15 = vld [vmem:[%s8366_s27 + $0x88] sm:$0x7] }
  0x2c   : > { %7863 = vmatpush1.bf16.msk.msra.mxu0 %vm8400_vm4, %v7861_v26  ;;  %768 = vmatprep.mubr.f32.mxu0 %v8302_v0  ;;  %v7881_v52 = vpack.c.bf16 %v910_v59, %v911_v12  ;;  %v915_v55 = vsel %vm655_vm0, %v906_v39, %v914_v60  ;;  %v1228_v58 = vrot.slane %v8395_v28, 2  ;;  %v1238_v5 = vrot.slane %v8617_v11, 2  ;;  %v1203_v26 = vld [vmem:[%s8366_s27 + $0x80] sm:$0x7] }
  0x2d   : > { %7707 = vmatmul.mubr.msk.f32.gmra.mrb[6].mxu1 %vm266_vm2, %v8484_v3  ;;  %7875 = vmatprep.subr.bf16.mxu0 %v7874_v27  ;;  %v8653_v33 = vpack.c.bf16 %v914_v60, %v915_v55  ;;  %v1233_v62 = vrot.slane %v1194_v48, 2  ;;  %v1234_v2 = vrot.slane %v8406_v32, 2  ;;  %v1242_v4 = vrot.slane %v8632_v50, 2  ;;  %v7740_v12 = vld [vmem:[%s8366_s27 + $0xc0] sm:$0xfc] }
  0x2e   : > { %7873 = vmatpush1.bf16.msk.msra.mxu1 %vm8400_vm4, %v7871_v29  ;;  %845 = vmatprep.mubr.f32.mxu1 %v8302_v0  ;;  %v1229_v10 = vsel %vm1223_vm5, %v1227_v21, %v1228_v58  ;;  %v1239_v9 = vsel %vm1223_vm5, %v1228_v58, %v1238_v5  ;;  %v1224_v13 = vrot.slane %v1191_v23, 2  ;;  %v1225_v35 = vrot.slane %v8383_v14, 2  ;;  %v1205_v29 = vld [vmem:[%s8366_s27 + $0x90] sm:$0x7]  ;;  %v8713_v58 = vld [vmem:[%s8366_s27 + $0x100] sm:$0xff] }
  0x2f   : > { %7710 = vmatmul.mubr.msk.f32.vlgmr.msra.gmra.mrb[8].mxu0 %vm266_vm2, %v8425_v41  ;;  %7885 = vmatprep.subr.bf16.mxu1 %v7884_v51  ;;  %v7894_v18 = vpack.c.bf16 %v1239_v9, %v1229_v10  ;;  %v1235_v19 = vsel %vm1223_vm5, %v1233_v62, %v1234_v2  ;;  %v1243_v24 = vsel %vm1223_vm5, %v1234_v2, %v1242_v4  ;;  %v1236_v57 = vrot.slane %v8649_v8, 2  ;;  %v8723_v10 = vld [vmem:[%s8366_s27 + $0x110] sm:$0xff]  ;;  %v7753_v9 = vld [vmem:[%s8366_s27 + $0x128] sm:$0x7] }
  0x30   : > { %7877 = vmatpush1.bf16.msra.mxu0 %v7876_v36  ;;  %774 = vmatprep.mubr.f32.mxu0 %v8302_v0  ;;  %v7904_v31 = vpack.c.bf16 %v1243_v24, %v1235_v19  ;;  %v1226_v20 = vsel %vm1223_vm5, %v1224_v13, %v1225_v35  ;;  %v1230_v34 = vrot.slane %v1193_v6, 2  ;;  %v1231_v27 = vrot.slane %v8390_v22, 2  ;;  %v8689_v36 = vld [vmem:[%s8366_s27 + $0x108] sm:$0xff] }
  0x31   : > { %7714 = vmatmul.mubr.msk.f32.vlgmr.msra.gmra.mrb[8].mxu1 %vm266_vm2, %v8425_v41  ;;  %7880 = vmatprep.subr.msk.bf16.mxu0 %vm8400_vm4, %v7878_v44  ;;  %v1237_v38 = vsel %vm1223_vm5, %v1225_v35, %v1236_v57  ;;  %v1240_v39 = vrot.slane %v8659_v1, 2  ;;  %v1246_v43 = vrot.slane %v1204_v15, 2  ;;  %v1250_v51 = vrot.slane %v1206_v17, 2  ;;  %v7755_v17 = vld [vmem:[%s8366_s27 + $0x138] sm:$0x7] }
  0x32   : > { %7887 = vmatpush1.bf16.msra.mxu1 %v7886_v46  ;;  %851 = vmatprep.mubr.f32.mxu1 %v8302_v0  ;;  %v7896_v40 = vpack.c.bf16 %v1237_v38, %v1226_v20  ;;  %v1232_v49 = vsel %vm1223_vm5, %v1230_v34, %v1231_v27  ;;  %v1244_v53 = vrot.slane %v1203_v26, 2  ;;  %v1248_v42 = vrot.slane %v1205_v29, 2  ;;  %v7752_v26 = vld [vmem:[%s8366_s27 + $0x120] sm:$0x7] }
  0x33   : > { %7711 = vmatmul.mubr.msk.f32.gmra.mrb[10].mxu0 %vm266_vm2, %v8484_v3  ;;  %7890 = vmatprep.subr.msk.bf16.mxu1 %vm8400_vm4, %v7888_v45  ;;  %v1241_v54 = vsel %vm1223_vm5, %v1231_v27, %v1240_v39  ;;  %v1247_v59 = vsel %vm1223_vm5, %v1238_v5, %v1246_v43  ;;  %v1251_v46 = vsel %vm1223_vm5, %v1242_v4, %v1250_v51  ;;  %v1461_v47 = vrot.slane %v7741_v25, 2  ;;  %v8704_v45 = vld [vmem:[%s8366_s27 + $0x118] sm:$0xff]  ;;  %v7742_v5 = vld [vmem:[%s8366_s27 + $0xd0] sm:$0xfc] }
  0x34   : > { %7883 = vmatpush1.bf16.msk.msra.mxu0 %vm8400_vm4, %v7881_v52  ;;  %1002 = vmatprep.mubr.f32.mxu0 %v8302_v0  ;;  %v7906_v56 = vpack.c.bf16 %v1241_v54, %v1232_v49  ;;  %v7898_v60 = vpack.c.bf16 %v1246_v43, %v1247_v59  ;;  %v7908_v48 = vpack.c.bf16 %v1250_v51, %v1251_v46  ;;  %v1462_v44 = vrot.slane %v8467_v61, 2  ;;  %v7754_v27 = vld [vmem:[%s8366_s27 + $0x130] sm:$0x7]  ;;  %v1669_v51 = vld [vmem:[%s8366_s27 + $0x28] sm:$0x80] }
  0x35   : > { %7715 = vmatmul.mubr.msk.f32.gmra.mrb[10].mxu1 %vm266_vm2, %v8484_v3  ;;  %7895 = vmatprep.subr.bf16.mxu0 %v7894_v18  ;;  %v1245_v21 = vsel %vm1223_vm5, %v1236_v57, %v1244_v53  ;;  %v1249_v23 = vsel %vm1223_vm5, %v1240_v39, %v1248_v42  ;;  %v1472_v52 = vrot.slane %v8689_v36, 2  ;;  %v1467_v55 = vrot.slane %v7743_v37, 2 }
  0x36   : > { %7893 = vmatpush1.bf16.msk.msra.mxu1 %vm8400_vm4, %v8653_v33  ;;  %1079 = vmatprep.mubr.f32.mxu1 %v8302_v0  ;;  %v7901_v62 = vpack.c.bf16 %v1244_v53, %v1245_v21  ;;  %v7911_v2 = vpack.c.bf16 %v1248_v42, %v1249_v23  ;;  %v1463_v4 = vsel %vm1223_vm5, %v1461_v47, %v1462_v44  ;;  %v1468_v6 = vrot.slane %v8471_v63, 2  ;;  %v1671_v47 = vld [vmem:[%s8366_s27 + $0x38] sm:$0x80] }
  0x37   : > { %7726 = vmatmul.mubr.msk.f32.vlgmr.msra.gmra.mrb[12].mxu0 %vm266_vm2, %v8425_v41  ;;  %7905 = vmatprep.subr.bf16.mxu1 %v7904_v31  ;;  %v1473_v13 = vsel %vm1223_vm5, %v1462_v44, %v1472_v52  ;;  %v1476_v33 = vrot.slane %v8704_v45, 2  ;;  %v1458_v35 = vrot.slane %v7740_v12, 2  ;;  %v1459_v15 = vrot.slane %v8489_v7, 2  ;;  %v1668_v12 = vld [vmem:[%s8366_s27 + $0x20] sm:$0x80] }
  0x38   : > { %7897 = vmatpush1.bf16.msra.mxu0 %v7896_v40  ;;  %1008 = vmatprep.mubr.f32.mxu0 %v8302_v0  ;;  %v7914_v18 = vpack.c.bf16 %v1473_v13, %v1463_v4  ;;  %v1469_v19 = vsel %vm1223_vm5, %v1467_v55, %v1468_v6  ;;  %v1470_v24 = vrot.slane %v8713_v58, 2  ;;  %v1464_v57 = vrot.slane %v7742_v5, 2 }
  0x39   : > { %7730 = vmatmul.mubr.msk.f32.vlgmr.msra.gmra.mrb[12].mxu1 %vm266_vm2, %v8425_v41  ;;  %7900 = vmatprep.subr.msk.bf16.mxu0 %vm8400_vm4, %v7898_v60  ;;  %v1477_v29 = vsel %vm1223_vm5, %v1468_v6, %v1476_v33  ;;  %v1460_v31 = vsel %vm1223_vm5, %v1458_v35, %v1459_v15  ;;  %v1465_v20 = vrot.slane %v8499_v16, 2  ;;  %v1474_v34 = vrot.slane %v8723_v10, 2  ;;  %v1670_v6 = vld [vmem:[%s8366_s27 + $0x30] sm:$0x80]  ;;  %v1675_v35 = vld [vmem:[%s8366_s27 + $0x98] sm:$0xff] }
  0x3a   : > { %7907 = vmatpush1.bf16.msra.mxu1 %v7906_v56  ;;  %1085 = vmatprep.mubr.f32.mxu1 %v8302_v0  ;;  %v7924_v25 = vpack.c.bf16 %v1477_v29, %v1469_v19  ;;  %v1471_v38 = vsel %vm1223_vm5, %v1459_v15, %v1470_v24  ;;  %v1480_v39 = vrot.slane %v7753_v9, 2  ;;  %v1484_v43 = vrot.slane %v7755_v17, 2  ;;  %v1674_v19 = vld [vmem:[%s8366_s27 + $0x90] sm:$0xff]  ;;  %v7773_v29 = vld [vmem:[%s8366_s27 + $0xc8] sm:$0x80] }
  0x3b   : > { %7727 = vmatmul.mubr.msk.f32.gmra.mrb[14].mxu0 %vm266_vm2, %v8484_v3  ;;  %7910 = vmatprep.subr.msk.bf16.mxu1 %vm8400_vm4, %v7908_v48  ;;  %v7916_v40 = vpack.c.bf16 %v1471_v38, %v1460_v31  ;;  %v1466_v49 = vsel %vm1223_vm5, %v1464_v57, %v1465_v20  ;;  %v1475_v53 = vsel %vm1223_vm5, %v1465_v20, %v1474_v34  ;;  %v1478_v42 = vrot.slane %v7752_v26, 2 }
  0x3c   : > { %7903 = vmatpush1.bf16.msk.msra.mxu0 %vm8400_vm4, %v7901_v62  ;;  %1336 = vmatprep.mubr.f32.mxu0 %v8302_v0  ;;  %v7926_v37 = vpack.c.bf16 %v1475_v53, %v1466_v49  ;;  %v1481_v54 = vsel %vm1223_vm5, %v1472_v52, %v1480_v39  ;;  %v1485_v59 = vsel %vm1223_vm5, %v1476_v33, %v1484_v43  ;;  %v1482_v46 = vrot.slane %v7754_v27, 2  ;;  %v1673_v33 = vld [vmem:[%s8366_s27 + $0x88] sm:$0xff] }
  0x3d   : > { %7731 = vmatmul.mubr.msk.f32.gmra.mrb[14].mxu1 %vm266_vm2, %v8484_v3  ;;  %7915 = vmatprep.subr.bf16.mxu0 %v7914_v18  ;;  %v7918_v56 = vpack.c.bf16 %v1480_v39, %v1481_v54  ;;  %v7928_v60 = vpack.c.bf16 %v1484_v43, %v1485_v59  ;;  %v1479_v48 = vsel %vm1223_vm5, %v1470_v24, %v1478_v42  ;;  %v1687_v44 = vrot.slane %v1669_v51, 7  ;;  %v1672_v18 = vld [vmem:[%s8366_s27 + $0x80] sm:$0xff]  ;;  %v7775_v39 = vld [vmem:[%s8366_s27 + $0xd8] sm:$0x80] }
  0x3e   : > { %7913 = vmatpush1.bf16.msk.msra.mxu1 %vm8400_vm4, %v7911_v2  ;;  %1413 = vmatprep.mubr.f32.mxu1 %v8302_v0  ;;  %v7921_v21 = vpack.c.bf16 %v1478_v42, %v1479_v48  ;;  %v1483_v23 = vsel %vm1223_vm5, %v1474_v34, %v1482_v46  ;;  %v1688_v52 = vrot.slane %v8395_v28, 7  ;;  %v1698_v55 = vrot.slane %v8617_v11, 7  ;;  %v7772_v54 = vld [vmem:[%s8366_s27 + $0xc0] sm:$0x80] }
  0x3f   : > { %7734 = vmatmul.mubr.msk.f32.vlgmr.msra.gmra.mrb[16].mxu0 %vm266_vm2, %v8425_v41  ;;  %7925 = vmatprep.subr.bf16.mxu1 %v7924_v25  ;;  %v7931_v5 = vpack.c.bf16 %v1482_v46, %v1483_v23  ;;  %v1693_v62 = vrot.slane %v1671_v47, 7  ;;  %v1694_v4 = vrot.slane %v8406_v32, 7  ;;  %v1702_v2 = vrot.slane %v8632_v50, 7 }
  0x40   : > { %7917 = vmatpush1.bf16.msra.mxu0 %v7916_v40  ;;  %1342 = vmatprep.mubr.f32.mxu0 %v8302_v0  ;;  %v1689_v28 = vsel %vm273_vm1, %v1687_v44, %v1688_v52  ;;  %v1699_v11 = vsel %vm273_vm1, %v1688_v52, %v1698_v55  ;;  %v1684_v9 = vrot.slane %v1668_v12, 7  ;;  %v1685_v13 = vrot.slane %v8383_v14, 7 }
  0x41   : > { %7738 = vmatmul.mubr.msk.f32.vlgmr.msra.gmra.mrb[16].mxu1 %vm266_vm2, %v8425_v41  ;;  %7920 = vmatprep.subr.msk.bf16.mxu0 %vm8400_vm4, %v7918_v56  ;;  %v7934_v32 = vpack.c.bf16 %v1699_v11, %v1689_v28  ;;  %v1695_v50 = vsel %vm273_vm1, %v1693_v62, %v1694_v4  ;;  %v1703_v15 = vsel %vm273_vm1, %v1694_v4, %v1702_v2  ;;  %v1696_v17 = vrot.slane %v8649_v8, 7 }
  0x42   : > { %7927 = vmatpush1.bf16.msra.mxu1 %v7926_v37  ;;  %1419 = vmatprep.mubr.f32.mxu1 %v8302_v0  ;;  %v7944_v14 = vpack.c.bf16 %v1703_v15, %v1695_v50  ;;  %v1686_v24 = vsel %vm273_vm1, %v1684_v9, %v1685_v13  ;;  %v1690_v57 = vrot.slane %v1670_v6, 7  ;;  %v1691_v26 = vrot.slane %v8390_v22, 7  ;;  %v7776_v6 = vld [vmem:[%s8366_s27 + $0x120] sm:$0xff]  ;;  %v7778_v9 = vld [vmem:[%s8366_s27 + $0x130] sm:$0xff] }
  0x43   : > { %7735 = vmatmul.mubr.msk.f32.gmra.mrb[18].mxu0 %vm266_vm2, %v8484_v3  ;;  %7930 = vmatprep.subr.msk.bf16.mxu1 %vm8400_vm4, %v7928_v60  ;;  %v1697_v8 = vsel %vm273_vm1, %v1685_v13, %v1696_v17  ;;  %v1700_v31 = vrot.slane %v8659_v1, 7  ;;  %v1706_v20 = vrot.slane %v1673_v33, 7  ;;  %v1710_v34 = vrot.slane %v1675_v35, 7  ;;  %v7774_v60 = vld [vmem:[%s8366_s27 + $0xd0] sm:$0x80] }
  0x44   : > { %7923 = vmatpush1.bf16.msk.msra.mxu0 %vm8400_vm4, %v7921_v21  ;;  %1570 = vmatprep.mubr.f32.mxu0 %v8302_v0  ;;  %v7936_v27 = vpack.c.bf16 %v1697_v8, %v1686_v24  ;;  %v1692_v22 = vsel %vm273_vm1, %v1690_v57, %v1691_v26  ;;  %v1704_v25 = vrot.slane %v1672_v18, 7  ;;  %v1708_v38 = vrot.slane %v1674_v19, 7 }
  0x45   : > { %7739 = vmatmul.mubr.msk.f32.gmra.mrb[18].mxu1 %vm266_vm2, %v8484_v3  ;;  %7935 = vmatprep.subr.bf16.mxu0 %v7934_v32  ;;  %v1701_v1 = vsel %vm273_vm1, %v1691_v26, %v1700_v31  ;;  %v1707_v43 = vsel %vm273_vm1, %v1698_v55, %v1706_v20  ;;  %v1711_v51 = vsel %vm273_vm1, %v1702_v2, %v1710_v34  ;;  %v1913_v40 = vrot.slane %v7773_v29, 7  ;;  %v7777_v55 = vld [vmem:[%s8366_s27 + $0x128] sm:$0xff] }
  0x46   : > { %7933 = vmatpush1.bf16.msk.msra.mxu1 %vm8400_vm4, %v7931_v5  ;;  %1647 = vmatprep.mubr.f32.mxu1 %v8302_v0  ;;  %v7946_v49 = vpack.c.bf16 %v1701_v1, %v1692_v22  ;;  %v7938_v53 = vpack.c.bf16 %v1706_v20, %v1707_v43  ;;  %v7948_v42 = vpack.c.bf16 %v1710_v34, %v1711_v51  ;;  %v1914_v37 = vrot.slane %v8467_v61, 7  ;;  %v7779_v5 = vld [vmem:[%s8366_s27 + $0x138] sm:$0xff] }
  0x47   : > { %7758 = vmatmul.mubr.msk.f32.vlgmr.msra.gmra.mrb[20].mxu0 %vm266_vm2, %v8425_v41  ;;  %7945 = vmatprep.subr.bf16.mxu1 %v7944_v14  ;;  %v1705_v59 = vsel %vm273_vm1, %v1696_v17, %v1704_v25  ;;  %v1709_v46 = vsel %vm273_vm1, %v1700_v31, %v1708_v38  ;;  %v1924_v47 = vrot.slane %v8689_v36, 7  ;;  %v1919_v56 = vrot.slane %v7775_v39, 7 }
  0x48   : > { %7937 = vmatpush1.bf16.msra.mxu0 %v7936_v27  ;;  %1576 = vmatprep.mubr.f32.mxu0 %v8302_v0  ;;  %v7941_v48 = vpack.c.bf16 %v1704_v25, %v1705_v59  ;;  %v7951_v61 = vpack.c.bf16 %v1708_v38, %v1709_v46  ;;  %v1915_v44 = vsel %vm273_vm1, %v1913_v40, %v1914_v37  ;;  %v1920_v12 = vrot.slane %v8471_v63, 7 }
  0x49   : > { %7762 = vmatmul.mubr.msk.f32.vlgmr.msra.gmra.mrb[20].mxu1 %vm266_vm2, %v8425_v41  ;;  %7940 = vmatprep.subr.msk.bf16.mxu0 %vm8400_vm4, %v7938_v53  ;;  %v1925_v36 = vsel %vm273_vm1, %v1914_v37, %v1924_v47  ;;  %v1928_v21 = vrot.slane %v8704_v45, 7  ;;  %v1910_v23 = vrot.slane %v7772_v54, 7  ;;  %v1911_v52 = vrot.slane %v8489_v7, 7 }
  0x4a   : > { %7947 = vmatpush1.bf16.msra.mxu1 %v7946_v49  ;;  %1653 = vmatprep.mubr.f32.mxu1 %v8302_v0  ;;  %v7954_v63 = vpack.c.bf16 %v1925_v36, %v1915_v44  ;;  %v1921_v62 = vsel %vm273_vm1, %v1919_v56, %v1920_v12  ;;  %v1922_v4 = vrot.slane %v8713_v58, 7  ;;  %v1916_v2 = vrot.slane %v7774_v60, 7 }
  0x4b   : > { %7759 = vmatmul.mubr.msk.f32.gmra.mrb[22].mxu0 %vm266_vm2, %v8484_v3  ;;  %7950 = vmatprep.subr.msk.bf16.mxu1 %vm8400_vm4, %v7948_v42  ;;  %v1929_v7 = vsel %vm273_vm1, %v1920_v12, %v1928_v21  ;;  %v1912_v45 = vsel %vm273_vm1, %v1910_v23, %v1911_v52  ;;  %v1917_v28 = vrot.slane %v8499_v16, 7  ;;  %v1926_v11 = vrot.slane %v8723_v10, 7 }
  0x4c   : > { %7943 = vmatpush1.bf16.msk.msra.mxu0 %vm8400_vm4, %v7941_v48  ;;  %1796 = vmatprep.mubr.f32.mxu0 %v8302_v0  ;;  %v7964_v58 = vpack.c.bf16 %v1929_v7, %v1921_v62  ;;  %v1923_v13 = vsel %vm273_vm1, %v1911_v52, %v1922_v4  ;;  %v1932_v33 = vrot.slane %v7777_v55, 7  ;;  %v1936_v35 = vrot.slane %v7779_v5, 7 }
  0x4d   : > { %7763 = vmatmul.mubr.msk.f32.gmra.mrb[22].mxu1 %vm266_vm2, %v8484_v3  ;;  %7955 = vmatprep.subr.bf16.mxu0 %v7954_v63  ;;  %v7956_v32 = vpack.c.bf16 %v1923_v13, %v1912_v45  ;;  %v1918_v16 = vsel %vm273_vm1, %v1916_v2, %v1917_v28  ;;  %v1927_v10 = vsel %vm273_vm1, %v1917_v28, %v1926_v11  ;;  %v1930_v50 = vrot.slane %v7776_v6, 7 }
  0x4e   : > { %7953 = vmatpush1.bf16.msk.msra.mxu1 %vm8400_vm4, %v7951_v61  ;;  %1873 = vmatprep.mubr.f32.mxu1 %v8302_v0  ;;  %v7966_v15 = vpack.c.bf16 %v1927_v10, %v1918_v16  ;;  %v1933_v17 = vsel %vm273_vm1, %v1924_v47, %v1932_v33  ;;  %v1937_v18 = vsel %vm273_vm1, %v1928_v21, %v1936_v35  ;;  %v1934_v19 = vrot.slane %v7778_v9, 7 }
  0x4f   : > { %7766 = vmatmul.mubr.msk.f32.vlgmr.msra.gmra.mrb[24].mxu0 %vm266_vm2, %v8425_v41  ;;  %7965 = vmatprep.subr.bf16.mxu1 %v7964_v58  ;;  %v7958_v14 = vpack.c.bf16 %v1932_v33, %v1933_v17  ;;  %v7968_v24 = vpack.c.bf16 %v1936_v35, %v1937_v18  ;;  %v1931_v57 = vsel %vm273_vm1, %v1922_v4, %v1930_v50  ;;  %v2208_v31 = vand.u32 127, %v2207_v30 }
  0x50   : > { %7957 = vmatpush1.bf16.msra.mxu0 %v7956_v32  ;;  %1802 = vmatprep.mubr.f32.mxu0 %v8302_v0  ;;  %v7961_v26 = vpack.c.bf16 %v1930_v50, %v1931_v57  ;;  %v1935_v29 = vsel %vm273_vm1, %v1926_v11, %v1934_v19  ;;  %vm1184_vm0 = vcmask 523266   ;;  %vm1186_vm1 = vcmask 1043968  }
  0x51   : > { %7770 = vmatmul.mubr.msk.f32.vlgmr.msra.gmra.mrb[24].mxu1 %vm266_vm2, %v8425_v41  ;;  %7960 = vmatprep.subr.msk.bf16.mxu0 %vm8400_vm4, %v7958_v14  ;;  %v7971_v8 = vpack.c.bf16 %v1934_v19, %v1935_v29  ;;  %v2209_v20 = vadd.s32 128, %v2208_v31  ;;  %v2214_v34 = vand.u32 15, %v2208_v31 }
  0x52   : > { %7967 = vmatpush1.bf16.msra.mxu1 %v7966_v15  ;;  %1879 = vmatprep.mubr.f32.mxu1 %v8302_v0 }
  0x53   : > { %7767 = vmatmul.mubr.msk.f32.gmra.mrb[26].mxu0 %vm266_vm2, %v8484_v3  ;;  %7970 = vmatprep.subr.msk.bf16.mxu1 %vm8400_vm4, %v7968_v24  ;;  %v2221_v27 = vand.u32 15, %v2209_v20  ;;  %vm2240_vm6 = vcmp.ne.s32.totalorder %v2214_v34, 15  ;;  %vm2234_vm8 = vcmp.ne.s32.totalorder %v2214_v34, 0 }
  0x54   : > { %7963 = vmatpush1.bf16.msk.msra.mxu0 %vm8400_vm4, %v7961_v26  ;;  %2022 = vmatprep.mubr.f32.mxu0 %v8302_v0  ;;  %v7790_v22 = vsel %vm2240_vm6, 1.0, %v8302_v0  ;;  %v7788_v38 = vsel %vm2234_vm8, 1.0, %v8302_v0  ;;  %vm2258_vm6 = vcmask 384000   ;;  %vm2166_vm8 = vcmask 523268  }
  0x55   : > { %7771 = vmatmul.mubr.msk.f32.gmra.mrb[26].mxu1 %vm266_vm2, %v8484_v3  ;;  %vm2241_vm7 = vcmp.ne.s32.totalorder %v2221_v27, 15  ;;  %vm2235_vm9 = vcmp.ne.s32.totalorder %v2221_v27, 0 }
  0x56   : > { %7973 = vmatpush1.bf16.msk.msra.mxu1 %vm8400_vm4, %v7971_v8  ;;  %2099 = vmatprep.mubr.f32.mxu1 %v8302_v0  ;;  %v7791_v25 = vsel %vm2241_vm7, 1.0, %v8302_v0  ;;  %v7789_v39 = vsel %vm2235_vm9, 1.0, %v8302_v0  ;;  %vm1189_vm4 = vcmask 519168   ;;  %vm2163_vm7 = vcmask 1048068  }
  0x57   : > { %7782 = vmatmul.mubr.msk.f32.vlgmr.msra.gmra.mrb[28].mxu0 %vm266_vm2, %v8425_v41  ;;  %vm2199_vm9 = vcmask 1048070  }
  0x58   : > { %2028 = vmatprep.mubr.f32.mxu0 %v8302_v0 }
  0x59   : > { %7786 = vmatmul.mubr.msk.f32.vlgmr.msra.gmra.mrb[28].mxu1 %vm266_vm2, %v8425_v41  ;;  %v8266_v41 = vpack.i.bf16 %v7791_v25, %v7790_v22 }
  0x5a   : > { %2105 = vmatprep.mubr.f32.mxu1 %v8302_v0 }
  0x5b   : > { %7783 = vmatmul.mubr.msk.f32.gmra.mrb[30].mxu0 %vm266_vm2, %v8484_v3  ;;  %8267 = vrot.lane.b32.xlu1 %v8266_v41, %s8305_s7 }
  0x5d   : > { %7787 = vmatmul.mubr.msk.f32.gmra.mrb[30].mxu1 %vm266_vm2, %v8484_v3  ;;  %v8261_v3 = vpack.i.bf16 %v7789_v39, %v7788_v38  ;;  %vm1152_vm2 = vcmask 517120  }
  0x5f   : > { %8262 = vrot.lane.b32.xlu0 %v8261_v3, %s8306_s8  ;;  %8277 = vrot.lane.b32.xlu1 %v8266_v41, %s8307_s9 }
  0x63   : > { %8272 = vrot.lane.b32.xlu0 %v8261_v3, %s8308_s10  ;;  %8287 = vrot.lane.b32.xlu1 %v8266_v41, %s8309_s11 }
  0x67   : > { %8282 = vrot.lane.b32.xlu0 %v8261_v3, %s8310_s12 }
  0x8f   : > { %v8921_v15 = vpop.permute.xlu0 %1102 }
  0x93   : > { %v8928_v3 = vpop.permute.xlu0 %1107 }
  0xf2   : > { %v352_v1 = vpop.f32.mrb[0].mxu0 }
  0xf3   : > { %v354_v43 = vpop.f32.mrb[1].mxu0 }
  0xf4   : > { %v429_v51 = vpop.f32.mrb[0].mxu1 }
  0xf5   : > { %v431_v40 = vpop.f32.mrb[1].mxu1 }
  0xf6   : > { %v358_v49 = vpop.f32.mrb[2].mxu0 }
  0xf7   : > { %v360_v53 = vpop.f32.mrb[3].mxu0 }
  0xf8   : > { %v435_v42 = vpop.f32.mrb[2].mxu1 }
  0xf9   : > { %v437_v37 = vpop.f32.mrb[3].mxu1 }
  0xfa   : > { %v535_v54 = vpop.f32.mrb[4].mxu0 }
  0xfb   : > { %v623_v59 = vmax.f32 %v352_v1, %v535_v54  ;;  %v537_v46 = vpop.f32.mrb[5].mxu0 }
  0xfc   : > { %v624_v47 = vmax.f32 %v354_v43, %v537_v46  ;;  %v612_v56 = vpop.f32.mrb[4].mxu1 }
  0xfd   : > { %v625_v60 = vmax.f32 %v429_v51, %v612_v56  ;;  %v614_v48 = vpop.f32.mrb[5].mxu1 }
  0xfe   : > { %v541_v61 = vpop.f32.mrb[6].mxu0  ;;  %v626_v44 = vmax.f32 %v431_v40, %v614_v48 }
  0xff   : > { %v627_v12 = vmax.f32 %v358_v49, %v541_v61  ;;  %v543_v36 = vpop.f32.mrb[7].mxu0 }
 0x100   : > { %v628_v0 = vmax.f32 %v360_v53, %v543_v36  ;;  %v618_v21 = vpop.f32.mrb[6].mxu1 }
 0x101   : > { %v629_v23 = vmax.f32 %v435_v42, %v618_v21  ;;  %v620_v52 = vpop.f32.mrb[7].mxu1 }
 0x102   : > { %v770_v55 = vpop.f32.mrb[8].mxu0  ;;  %v630_v5 = vmax.f32 %v437_v37, %v620_v52 }
 0x103   : > { %v858_v63 = vmax.f32 %v623_v59, %v770_v55  ;;  %v772_v62 = vpop.f32.mrb[9].mxu0 }
 0x104   : > { %v859_v4 = vmax.f32 %v624_v47, %v772_v62  ;;  %v847_v2 = vpop.f32.mrb[8].mxu1 }
 0x105   : > { %v860_v6 = vmax.f32 %v625_v60, %v847_v2  ;;  %v849_v7 = vpop.f32.mrb[9].mxu1 }
 0x106   : > { %v861_v45 = vmax.f32 %v626_v44, %v849_v7  ;;  %v776_v28 = vpop.f32.mrb[10].mxu0 }
 0x107   : > { %v862_v11 = vmax.f32 %v627_v12, %v776_v28  ;;  %v778_v9 = vpop.f32.mrb[11].mxu0 }
 0x108   : > { %v863_v58 = vmax.f32 %v628_v0, %v778_v9  ;;  %v853_v13 = vpop.f32.mrb[10].mxu1 }
 0x109   : > { %v864_v33 = vmax.f32 %v629_v23, %v853_v13  ;;  %v855_v35 = vpop.f32.mrb[11].mxu1 }
 0x10a   : > { %v865_v32 = vmax.f32 %v630_v5, %v855_v35  ;;  %v1004_v16 = vpop.f32.mrb[12].mxu0 }
 0x10b   : > { %v1092_v10 = vmax.f32 %v858_v63, %v1004_v16  ;;  %v1006_v50 = vpop.f32.mrb[13].mxu0 }
 0x10c   : > { %v1081_v17 = vpop.f32.mrb[12].mxu1  ;;  %v1093_v18 = vmax.f32 %v859_v4, %v1006_v50 }
 0x10d   : > { %v1110_v19 = vadd.f32 %v8921_v15, %v1092_v10  ;;  %v1094_v14 = vmax.f32 %v860_v6, %v1081_v17  ;;  %v1083_v24 = vpop.f32.mrb[13].mxu1 }
 0x10e   : > { %v1111_v57 = vadd.f32 %v8921_v15, %v1093_v18  ;;  %v1095_v26 = vmax.f32 %v861_v45, %v1083_v24  ;;  %v1010_v29 = vpop.f32.mrb[14].mxu0 }
 0x10f   : > { %v1118_v8 = vmax.f32 %v1110_v19, 0.0  ;;  %v1112_v30 = vadd.f32 %v8921_v15, %v1094_v14  ;;  %v1096_v31 = vmax.f32 %v862_v11, %v1010_v29  ;;  %v1012_v20 = vpop.f32.mrb[15].mxu0 }
 0x110   : > { %v1113_v34 = vadd.f32 %v8921_v15, %v1095_v26  ;;  %v1087_v27 = vpop.f32.mrb[14].mxu1  ;;  %v1097_v22 = vmax.f32 %v863_v58, %v1012_v20  ;;  %v1119_v39 = vmax.f32 %v1111_v57, 0.0 }
 0x111   : > { %v1120_v25 = vmax.f32 %v1112_v30, 0.0  ;;  %v1098_v41 = vmax.f32 %v864_v33, %v1087_v27  ;;  %v1089_v38 = vpop.f32.mrb[15].mxu1  ;;  %1130 = vrot.lane.b32.xlu1 %v1118_v8, %s8311_s13  ;;  %v1114_v49 = vadd.f32 %v8928_v3, %v1096_v31 }
 0x112   : > { %v1099_v1 = vmax.f32 %v865_v32, %v1089_v38  ;;  %v1338_v43 = vpop.f32.mrb[16].mxu0  ;;  %v1121_v40 = vmax.f32 %v1113_v34, 0.0  ;;  %v1115_v44 = vadd.f32 %v8928_v3, %v1097_v22 }
 0x113   : > { %v1159_v51 = vrot.slane %v1120_v25, 6  ;;  %v1116_v53 = vadd.f32 %v8928_v3, %v1098_v41  ;;  %v1340_v42 = vpop.f32.mrb[17].mxu0  ;;  %v1122_v48 = vmax.f32 %v1114_v49, 0.0 }
 0x114   : > { %v1117_v37 = vadd.f32 %v8928_v3, %v1099_v1  ;;  %v1415_v54 = vpop.f32.mrb[16].mxu1  ;;  %v1160_v60 = vrot.slane %v1121_v40, 6  ;;  %v1123_v5 = vmax.f32 %v1115_v44, 0.0 }
 0x115   : > { %v1124_v59 = vmax.f32 %v1116_v53, 0.0  ;;  %1165 = vrot.lane.b32.xlu0 %v1159_v51, %s8311_s13  ;;  %1132 = vrot.lane.b32.xlu1 %v1119_v39, %s8311_s13  ;;  %v1417_v46 = vpop.f32.mrb[17].mxu1 }
 0x116   : > { %v1125_v47 = vmax.f32 %v1117_v37, 0.0  ;;  %v1344_v56 = vpop.f32.mrb[18].mxu0 }
 0x117   : > { %v1161_v61 = vrot.slane %v1124_v59, 6  ;;  %v1346_v12 = vpop.f32.mrb[19].mxu0 }
 0x118   : > { %v1163_v36 = vrot.slane %v1125_v47, 6  ;;  %v1421_v0 = vpop.f32.mrb[18].mxu1 }
 0x119   : > { %1134 = vrot.lane.b32.xlu0 %v1122_v48, %s8311_s13  ;;  %1167 = vrot.lane.b32.xlu1 %v1160_v60, %s8311_s13  ;;  %v1162_v21 = vsel %vm1158_vm12, %v1159_v51, %v1161_v61  ;;  %v1423_v23 = vpop.f32.mrb[19].mxu1 }
 0x11a   : > { %v1164_v52 = vsel %vm1158_vm12, %v1160_v60, %v1163_v36  ;;  %v1572_v55 = vpop.f32.mrb[20].mxu0 }
 0x11b   : > { %v1660_v63 = vmax.f32 %v1338_v43, %v1572_v55  ;;  %v1574_v62 = vpop.f32.mrb[21].mxu0 }
 0x11c   : > { %v1649_v4 = vpop.f32.mrb[20].mxu1  ;;  %v1661_v2 = vmax.f32 %v1340_v42, %v1574_v62 }
 0x11d   : > { %1169 = vrot.lane.b32.xlu0 %v1162_v21, %s8311_s13  ;;  %1136 = vrot.lane.b32.xlu1 %v1123_v5, %s8311_s13  ;;  %v1662_v6 = vmax.f32 %v1415_v54, %v1649_v4  ;;  %v1651_v7 = vpop.f32.mrb[21].mxu1 }
 0x11e   : > { %v1663_v45 = vmax.f32 %v1417_v46, %v1651_v7  ;;  %v1578_v28 = vpop.f32.mrb[22].mxu0 }
 0x11f   : > { %v1664_v11 = vmax.f32 %v1344_v56, %v1578_v28  ;;  %v1580_v9 = vpop.f32.mrb[23].mxu0 }
 0x120   : > { %v1655_v58 = vpop.f32.mrb[22].mxu1  ;;  %v1665_v13 = vmax.f32 %v1346_v12, %v1580_v9 }
 0x121   : > { %1171 = vrot.lane.b32.xlu1 %v1164_v52, %s8311_s13  ;;  %v1666_v33 = vmax.f32 %v1421_v0, %v1655_v58  ;;  %v1657_v35 = vpop.f32.mrb[23].mxu1 }
 0x122   : > { %v1667_v32 = vmax.f32 %v1423_v23, %v1657_v35  ;;  %v1798_v16 = vpop.f32.mrb[24].mxu0 }
 0x123   : > { %v1886_v10 = vmax.f32 %v1660_v63, %v1798_v16  ;;  %v1800_v50 = vpop.f32.mrb[25].mxu0 }
 0x124   : > { %v1875_v17 = vpop.f32.mrb[24].mxu1  ;;  %v1887_v18 = vmax.f32 %v1661_v2, %v1800_v50 }
 0x125   : > { %v1888_v19 = vmax.f32 %v1662_v6, %v1875_v17  ;;  %v1877_v14 = vpop.f32.mrb[25].mxu1 }
 0x126   : > { %v1889_v24 = vmax.f32 %v1663_v45, %v1877_v14  ;;  %v1804_v57 = vpop.f32.mrb[26].mxu0 }
 0x127   : > { %v1890_v26 = vmax.f32 %v1664_v11, %v1804_v57  ;;  %v1806_v29 = vpop.f32.mrb[27].mxu0 }
 0x128   : > { %v1881_v8 = vpop.f32.mrb[26].mxu1  ;;  %v1891_v30 = vmax.f32 %v1665_v13, %v1806_v29  ;;  %v8268_v13 = vpop.permute.xlu1 %8267 }
 0x129   : > { %v1892_v31 = vmax.f32 %v1666_v33, %v1881_v8  ;;  %v1883_v20 = vpop.f32.mrb[27].mxu1  ;;  %v8963_v33 = vpop.permute.xlu0 %8262  ;;  %v8977_v14 = vunpack.i.l.bf16 %v8268_v13 }
 0x12a   : > { %v1893_v34 = vmax.f32 %v1667_v32, %v1883_v20  ;;  %v2024_v27 = vpop.f32.mrb[28].mxu0 }
 0x12b   : > { %v2112_v22 = vmax.f32 %v1886_v10, %v2024_v27  ;;  %v2026_v25 = vpop.f32.mrb[29].mxu0  ;;  %11844 = vst [vmem:[#allocation4_spill] sm:$0xff] %v8977_v14 }
 0x12c   : > { %v2101_v41 = vpop.f32.mrb[28].mxu1  ;;  %v2113_v38 = vmax.f32 %v1887_v18, %v2026_v25  ;;  %v8965_v35 = vpop.permute.xlu1 %8277 }
 0x12d   : > { %v2120_v39 = vadd.f32 %v2112_v22, %v8921_v15  ;;  %v2114_v1 = vmax.f32 %v1888_v19, %v2101_v41  ;;  %v2103_v43 = vpop.f32.mrb[29].mxu1  ;;  %v8967_v32 = vpop.permute.xlu0 %8272 }
 0x12e   : > { %v2121_v51 = vadd.f32 %v2113_v38, %v8921_v15  ;;  %v2115_v40 = vmax.f32 %v1889_v24, %v2103_v43  ;;  %v2030_v49 = vpop.f32.mrb[30].mxu0 }
 0x12f   : > { %v2128_v53 = vmax.f32 %v2120_v39, 0.0  ;;  %v2122_v42 = vadd.f32 %v2114_v1, %v8921_v15  ;;  %v2116_v37 = vmax.f32 %v1890_v26, %v2030_v49  ;;  %v2032_v54 = vpop.f32.mrb[31].mxu0 }
 0x130   : > { %v2129_v59 = vmax.f32 %v2121_v51, 0.0  ;;  %v2123_v46 = vadd.f32 %v2115_v40, %v8921_v15  ;;  %v2107_v47 = vpop.f32.mrb[30].mxu1  ;;  %v2117_v56 = vmax.f32 %v1891_v30, %v2032_v54  ;;  %v8288_v16 = vpop.permute.xlu1 %8287  ;;  %v9015_v51 = vunpack.i.h.bf16 %v8268_v13 }
 0x131   : > { %v2141_v60 = vrot.slane %v2128_v53, 4  ;;  %v2130_v48 = vmax.f32 %v2122_v42, 0.0  ;;  %v2124_v61 = vadd.f32 %v2116_v37, %v8928_v3  ;;  %v2118_v44 = vmax.f32 %v1892_v31, %v2107_v47  ;;  %v2109_v12 = vpop.f32.mrb[31].mxu1  ;;  %v8969_v10 = vpop.permute.xlu0 %8282 }
 0x132   : > { %v2142_v36 = vrot.slane %v2129_v59, 4  ;;  %v2131_v0 = vmax.f32 %v2123_v46, 0.0  ;;  %v2125_v21 = vadd.f32 %v2117_v56, %v8928_v3  ;;  %v2119_v23 = vmax.f32 %v1893_v34, %v2109_v12  ;;  %11846 = vst [vmem:[#allocation6_spill] sm:$0xff] %v9015_v51 }
 0x133   : > { %v2132_v52 = vmax.f32 %v2124_v61, 0.0  ;;  %v2126_v55 = vadd.f32 %v2118_v44, %v8928_v3  ;;  %2147 = vrot.lane.b32.xlu0 %v2141_v60, %s8311_s13  ;;  %v2177_v63 = vrot.slane %v2130_v48, 2  ;;  %v8993_v34 = vunpack.i.l.bf16 %v8963_v33 }
 0x134   : > { %v2133_v5 = vmax.f32 %v2125_v21, 0.0  ;;  %v2127_v15 = vadd.f32 %v2119_v23, %v8928_v3  ;;  %2149 = vrot.lane.b32.xlu1 %v2142_v36, %s8311_s13  ;;  %v2178_v2 = vrot.slane %v2131_v0, 2  ;;  %v8998_v22 = vunpack.i.l.bf16 %v8288_v16 }
 0x135   : > { %v2143_v62 = vrot.slane %v2132_v52, 4  ;;  %v2134_v4 = vmax.f32 %v2126_v55, 0.0  ;;  %v9021_v49 = vunpack.i.l.bf16 %v8969_v10  ;;  %v9028_v42 = vunpack.i.h.bf16 %v8288_v16 }
 0x136   : > { %v2145_v6 = vrot.slane %v2133_v5, 4  ;;  %v2135_v7 = vmax.f32 %v2127_v15, 0.0  ;;  %11845 = vst [vmem:[#allocation5_spill] sm:$0xff] %v8998_v22  ;;  %v9038_v59 = vunpack.i.h.bf16 %v8963_v33 }
 0x137   : > { %v2179_v45 = vrot.slane %v2134_v4, 2  ;;  %2183 = vrot.lane.b32.xlu0 %v2177_v63, %s8311_s13  ;;  %v2144_v28 = vsel %vm2140_vm13, %v2141_v60, %v2143_v62  ;;  %11847 = vst [vmem:[#allocation7_spill] sm:$0xff] %v9028_v42 }
 0x138   : > { %v2181_v11 = vrot.slane %v2135_v7, 2  ;;  %2185 = vrot.lane.b32.xlu1 %v2178_v2, %s8311_s13  ;;  %v2146_v9 = vsel %vm2140_vm13, %v2142_v36, %v2145_v6  ;;  %v9047_v56 = vsel %vm2258_vm6, %v8993_v34, %v9038_v59 }
 0x139   : > { %v2180_v3 = vsel %vm1223_vm5, %v2177_v63, %v2179_v45  ;;  %v9072_v63 = vunpack.i.h.bf16 %v8969_v10 }
 0x13a   : > { %v2182_v58 = vsel %vm1223_vm5, %v2178_v2, %v2181_v11  ;;  %v9076_v2 = vunpack.i.l.bf16 %v8965_v35 }
 0x13b   : > { %2151 = vrot.lane.b32.xlu0 %v2144_v28, %s8311_s13 }
 0x13c   : > { %2153 = vrot.lane.b32.xlu1 %v2146_v9, %s8311_s13 }
 0x13f   : > { %2187 = vrot.lane.b32.xlu0 %v2180_v3, %s8311_s13 }
 0x140   : > { %2189 = vrot.lane.b32.xlu1 %v2182_v58, %s8311_s13 }
 0x183   : > { %v1131_v50 = vpop.permute.xlu1 %1130 }
 0x184   : > { %1146 = vst.msk [vmem:[#allocation2] sm:$0xff] %vm244_vm11, %v1131_v50 }
 0x187   : > { %v1166_v17 = vpop.permute.xlu0 %1165  ;;  %v1133_v18 = vpop.permute.xlu1 %1132 }
 0x188   : > { %1182 = vst.msk [vmem:[#allocation2 + $0x18] sm:$0xfc] %vm1181_vm14, %v1166_v17  ;;  %v8973_v19 = vsel %vm238_vm10, %v1131_v50, %v1133_v18  ;;  %vm2202_vm14 = vcmask 523270   ;;  %v9110_v50 = vunpack.i.l.bf16 %v8967_v32 }
 0x189   : > { %1148 = vst.msk [vmem:[#allocation2 + $0x10] sm:$0xff] %vm238_vm10, %v1133_v18  ;;  %1147 = vst [vmem:[#allocation2 + $0x8] sm:$0xff] %v8973_v19  ;;  %v2264_v44 = vmul.f32 %v9047_v56, %v8973_v19  ;;  %v9066_v23 = vrot.slane %v8973_v19, 4 }
 0x18b   : > { %v1135_v24 = vpop.permute.xlu0 %1134  ;;  %v1168_v57 = vpop.permute.xlu1 %1167  ;;  %v8979_v26 = vld [vmem:[#allocation2] sm:$0xff] }
 0x18c   : > { %1150 = vst.msk [vmem:[#allocation2 + $0x18] sm:$0x3] %vm1149_vm15, %v1135_v24  ;;  %v1173_v29 = vsel %vm238_vm10, %v1166_v17, %v1168_v57  ;;  %2854 = vrot.lane.b32.xlu1 %v8979_v26, %s8311_s13  ;;  %v8986_v8 = vmul.f32 %v8977_v14, %v8979_v26  ;;  %v2263_v25 = vmul.f32 %v8993_v34, %v8979_v26  ;;  %v9010_v1 = vrot.slane %v8979_v26, 4 }
 0x18d   : > { %1185 = vst.msk [vmem:[#allocation2 + $0x28] sm:$0xfc] %vm1184_vm0, %v1168_v57  ;;  %1183 = vst [vmem:[#allocation2 + $0x20] sm:$0xfc] %v1173_v29  ;;  %v3413_v39 = vmul.f32 %v8998_v22, %v8979_v26  ;;  %v3675_v43 = vrot.slane %v8979_v26, 6  ;;  %v3230_v37 = vmul.f32 %v9021_v49, %v8979_v26  ;;  %vm2168_vm15 = vcmask 1046016  }
 0x18e   : > { %2462 = vrot.lane.b32.xlu0 %v8986_v8, %s8310_s12  ;;  %vm2171_vm0 = vcmask 521216   ;;  %v9087_v28 = vmul.f32 %v9076_v2, %v8979_v26  ;;  %v9130_v57 = vmul.f32 %v9110_v50, %v8979_v26 }
 0x18f   : > { %v1170_v30 = vpop.permute.xlu0 %1169  ;;  %v1137_v31 = vpop.permute.xlu1 %1136  ;;  %v2878_v40 = vld [vmem:[#allocation2 + $0x18] sm:$0xfc] }
 0x190   : > { %v8990_v20 = vld [vmem:[#allocation2 + $0x10] sm:$0xff]  ;;  %1187 = vst.msk [vmem:[#allocation2 + $0x30] sm:$0xf] %vm1186_vm1, %v1170_v30  ;;  %v1139_v27 = vsel %vm238_vm10, %v1135_v24, %v1137_v31  ;;  %v2300_v9 = vld [vmem:[#allocation2 + $0x18] sm:$0xfc]  ;;  %v11813_v3 = vrot.slane %v9087_v28, 4 }
 0x191   : > { %1153 = vst.msk [vmem:[#allocation2 + $0x28] sm:$0x3] %vm1152_vm2, %v1137_v31  ;;  %2858 = vrot.lane.b32.xlu1 %v8990_v20, %s8311_s13  ;;  %1151 = vst [vmem:[#allocation2 + $0x20] sm:$0x3] %v1139_v27  ;;  %v9026_v53 = vmul.f32 %v9015_v51, %v8990_v20  ;;  %v3415_v54 = vmul.f32 %v9028_v42, %v8990_v20  ;;  %v11816_v46 = vrot.slane %v8990_v20, 6  ;;  %v9060_v0 = vrot.slane %v8990_v20, 4 }
 0x192   : > { %2856 = vrot.lane.b32.xlu0 %v8973_v19, %s8311_s13  ;;  %v2265_v48 = vmul.f32 %v9038_v59, %v8990_v20  ;;  %v3232_v7 = vmul.f32 %v9072_v63, %v8990_v20  ;;  %v2306_v13 = vmul.f32 %v8993_v34, %v2300_v9  ;;  %v9102_v33 = vld [vmem:[#allocation2 + $0x18] sm:$0xfc]  ;;  %vm2445_vm1 = vcmask 400384  }
 0x193   : > { %v1172_v41 = vpop.permute.xlu1 %1171  ;;  %v2845_v4 = vld [vmem:[#allocation2 + $0x18] sm:$0x3]  ;;  %v11808_v10 = vrot.slane %v9102_v33, 4  ;;  %v9118_v17 = vsel %vm2445_vm1, %v8977_v14, %v9015_v51  ;;  %v9120_v18 = vld [vmem:[#allocation2 + $0x18] sm:$0xfc]  ;;  %v11809_v27 = vrot.slane %v8986_v8, 2 }
 0x194   : > { %v1174_v38 = vsel %vm238_vm10, %v1170_v30, %v1172_v41  ;;  %1190 = vst.msk [vmem:[#allocation2 + $0x40] sm:$0xf] %vm1189_vm4, %v1172_v41  ;;  %v2880_v15 = vld [vmem:[#allocation2 + $0x28] sm:$0xfc]  ;;  %v2879_v11 = vld [vmem:[#allocation2 + $0x20] sm:$0xfc]  ;;  %v9126_v24 = vmul.f32 %v9118_v17, %v8973_v19 }
 0x195   : > { %2275 = vrot.lane.b32.xlu1 %v2263_v25, %s8309_s11  ;;  %1188 = vst [vmem:[#allocation2 + $0x38] sm:$0xf] %v1174_v38  ;;  %11848 = vst [vmem:[#allocation8_spill] sm:$0xff] %v9118_v17  ;;  %v11805_v29 = vrot.slane %v9120_v18, 6  ;;  %v11814_v30 = vrot.slane %v9130_v57, 4  ;;  %v9144_v25 = vunpack.i.h.bf16 %v8965_v35  ;;  %vm2287_vm2 = vcmask 662528  }
 0x196   : > { %3425 = vrot.lane.b32.xlu0 %v3413_v39, %s8306_s8  ;;  %v3266_v31 = vld [vmem:[#allocation2 + $0x18] sm:$0xfc]  ;;  %vm2740_vm4 = vcmask 515072  }
 0x197   : > { %v3272_v41 = vmul.f32 %v9021_v49, %v3266_v31  ;;  %v9150_v38 = vld [vmem:[#allocation2 + $0x18] sm:$0xfc]  ;;  %v9155_v39 = vmul.f32 %v9144_v25, %v8990_v20  ;;  %v9227_v31 = vld [vmem:[#allocation2 + $0x28] sm:$0xfc] }
 0x198   : > { %v11802_v35 = vrot.slane %v9150_v38, 4  ;;  %v3668_v26 = vld [vmem:[#allocation2 + $0x28] sm:$0x3] }
 0x199   : > { %2363 = vrot.lane.b32.xlu1 %v9010_v1, %s8312_s14 }
 0x19a   : > { %3684 = vrot.lane.b32.xlu0 %v3675_v43, %s8312_s14 }
 0x19d   : > { %2890 = vrot.lane.b32.xlu1 %v2878_v40, %s8311_s13  ;;  %v2847_v40 = vld [vmem:[#allocation2 + $0x28] sm:$0x3] }
 0x19e   : > { %2466 = vrot.lane.b32.xlu0 %v9026_v53, %s8310_s12 }
 0x1a1   : > { %3242 = vrot.lane.b32.xlu1 %v3230_v37, %s8305_s7  ;;  %v11807_v37 = vrot.slane %v9155_v39, 4 }
 0x1a2   : > { %3429 = vrot.lane.b32.xlu0 %v3415_v54, %s8306_s8  ;;  %v9166_v54 = vsel %vm2287_vm2, %v8998_v22, %v9028_v42 }
 0x1a5   : > { %3329 = vrot.lane.b32.xlu1 %v9010_v1, %s8313_s15  ;;  %v2148_v47 = vpop.permute.xlu0 %2147 }
 0x1a6   : > { %2164 = vst.msk [vmem:[#allocation2 + $0x30] sm:$0xf0] %vm2163_vm7, %v2148_v47  ;;  %3688 = vrot.lane.b32.xlu0 %v11816_v46, %s8312_s14  ;;  %v2150_v60 = vpop.permute.xlu1 %2149  ;;  %vm2778_vm7 = vcmask 531456  }
 0x1a7   : > { %v2155_v61 = vsel %vm238_vm10, %v2148_v47, %v2150_v60  ;;  %2167 = vst.msk [vmem:[#allocation2 + $0x40] sm:$0xf0] %vm2166_vm8, %v2150_v60  ;;  %v9168_v47 = vld [vmem:[#allocation2 + $0x28] sm:$0xfc]  ;;  %v3414_v60 = vmul.f32 %v9166_v54, %v8973_v19  ;;  %vm2375_vm8 = vcmask 654336  }
 0x1a8   : > { %2165 = vst [vmem:[#allocation2 + $0x38] sm:$0xf0] %v2155_v61  ;;  %v11810_v61 = vrot.slane %v8973_v19, 6 }
 0x1a9   : > { %2279 = vrot.lane.b32.xlu1 %v2265_v48, %s8309_s11  ;;  %v2184_v12 = vpop.permute.xlu0 %2183  ;;  %v11797_v48 = vrot.slane %v9168_v47, 6 }
 0x1aa   : > { %2200 = vst.msk [vmem:[#allocation2 + $0x48] sm:$0xc0] %vm2199_vm9, %v2184_v12  ;;  %2277 = vrot.lane.b32.xlu0 %v2264_v44, %s8309_s11  ;;  %v2186_v36 = vpop.permute.xlu1 %2185  ;;  %v2302_v44 = vld [vmem:[#allocation2 + $0x28] sm:$0xfc]  ;;  %vm3341_vm9 = vcmask 392192  }
 0x1ab   : > { %v2191_v21 = vsel %vm238_vm10, %v2184_v12, %v2186_v36  ;;  %2203 = vst.msk [vmem:[#allocation2 + $0x58] sm:$0xc0] %vm2202_vm14, %v2186_v36  ;;  %v11804_v12 = vrot.slane %v9026_v53, 2  ;;  %v2249_v36 = vld [vmem:[#allocation2 + $0x18] sm:$0x3]  ;;  %vm10506_vm14 = vmpackc.low %vm1158_vm12, %vm8304_vm3  ;;  %vm3513_vm3 = vcmask 998400  }
 0x1ac   : > { %2201 = vst [vmem:[#allocation2 + $0x50] sm:$0xc0] %v2191_v21  ;;  %v2308_v21 = vmul.f32 %v9038_v59, %v2302_v44  ;;  %v2436_v44 = vld [vmem:[#allocation2 + $0x18] sm:$0x3] }
 0x1ad   : > { %2367 = vrot.lane.b32.xlu1 %v9060_v0, %s8312_s14  ;;  %v2152_v52 = vpop.permute.xlu0 %2151 }
 0x1ae   : > { %2169 = vst.msk [vmem:[#allocation2 + $0x48] sm:$0x3f] %vm2168_vm15, %v2152_v52  ;;  %2365 = vrot.lane.b32.xlu0 %v9066_v23, %s8312_s14  ;;  %v2154_v55 = vpop.permute.xlu1 %2153 }
 0x1af   : > { %v2156_v5 = vsel %vm238_vm10, %v2152_v52, %v2154_v55  ;;  %2172 = vst.msk [vmem:[#allocation2 + $0x58] sm:$0x3f] %vm2171_vm0, %v2154_v55  ;;  %v9189_v52 = vld [vmem:[#allocation2 + $0x28] sm:$0xfc]  ;;  %v9192_v55 = vunpack.i.h.bf16 %v8967_v32 }
 0x1b0   : > { %2170 = vst [vmem:[#allocation2 + $0x50] sm:$0x3f] %v2156_v5  ;;  %v2266_v5 = vmul.f32 %v8993_v34, %v2249_v36  ;;  %v2791_v36 = vld [vmem:[#allocation2 + $0x18] sm:$0xfc] }
 0x1b1   : > { %2894 = vrot.lane.b32.xlu1 %v2880_v15, %s8311_s13  ;;  %v2188_v62 = vpop.permute.xlu0 %2187  ;;  %v2301_v15 = vld [vmem:[#allocation2 + $0x20] sm:$0xfc] }
 0x1b2   : > { %2204 = vst.msk [vmem:[#allocation2 + $0x60] sm:$0xff] %vm244_vm11, %v2188_v62  ;;  %2860 = vrot.lane.b32.xlu0 %v2845_v4, %s8311_s13  ;;  %v2190_v6 = vpop.permute.xlu1 %2189  ;;  %vm2474_vm11 = vcmask 646144   ;;  %v9200_v4 = vmul.f32 %v9192_v55, %v8990_v20  ;;  %v2307_v32 = vmul.f32 %v2301_v15, %v9047_v56  ;;  %v2453_v15 = vmul.f32 %v8977_v14, %v2436_v44  ;;  %v2251_v44 = vld [vmem:[#allocation2 + $0x28] sm:$0x3] }
 0x1b3   : > { %v2192_v45 = vsel %vm238_vm10, %v2188_v62, %v2190_v6  ;;  %2206 = vst.msk [vmem:[#allocation2 + $0x70] sm:$0xff] %vm238_vm10, %v2190_v6  ;;  %v9096_v58 = vsel %vm2474_vm11, %v9021_v49, %v9072_v63  ;;  %v11801_v62 = vrot.slane %v9189_v52, 4  ;;  %v9206_v6 = vld [vmem:[#allocation2 + $0x20] sm:$0xfc] }
 0x1b4   : > { %2205 = vst [vmem:[#allocation2 + $0x68] sm:$0xff] %v2192_v45  ;;  %v3231_v16 = vmul.f32 %v9096_v58, %v8973_v19  ;;  %v11806_v45 = vrot.slane %v9200_v4, 4  ;;  %v11795_v9 = vrot.slane %v9206_v6, 4 }
 0x1b5   : > { %3246 = vrot.lane.b32.xlu1 %v3232_v7, %s8305_s7  ;;  %v9211_v7 = vsel %vm2740_vm4, %v9110_v50, %v9192_v55 }
 0x1b6   : > { %2892 = vrot.lane.b32.xlu0 %v2879_v11, %s8311_s13  ;;  %v3268_v11 = vld [vmem:[#allocation2 + $0x28] sm:$0xfc] }
 0x1b9   : > { %3333 = vrot.lane.b32.xlu1 %v9060_v0, %s8313_s15 }
 0x1ba   : > { %2949 = vrot.lane.b32.xlu0 %v11813_v3, %s8308_s10 }
 0x1bd   : > { %2318 = vrot.lane.b32.xlu1 %v2306_v13, %s8309_s11  ;;  %v9221_v13 = vmul.f32 %v9211_v7, %v8973_v19 }
 0x1be   : > { %3244 = vrot.lane.b32.xlu0 %v3231_v16, %s8305_s7  ;;  %v3274_v16 = vmul.f32 %v9072_v63, %v3268_v11 }
 0x1c1   : > { %2409 = vrot.lane.b32.xlu1 %v11808_v10, %s8312_s14  ;;  %v2438_v10 = vld [vmem:[#allocation2 + $0x28] sm:$0x3] }
 0x1c2   : > { %3331 = vrot.lane.b32.xlu0 %v9066_v23, %s8313_s15 }
 0x1c5   : > { %2464 = vrot.lane.b32.xlu1 %v9126_v24, %s8310_s12 }
 0x1c6   : > { %3729 = vrot.lane.b32.xlu0 %v11805_v29, %s8312_s14 }
 0x1c9   : > { %2766 = vrot.lane.b32.xlu1 %v11814_v30, %s8307_s9 }
 0x1ca   : > { %3780 = vrot.lane.b32.xlu0 %v11809_v27, %s8310_s12  ;;  %v2793_v27 = vld [vmem:[#allocation2 + $0x28] sm:$0xfc] }
 0x1cd   : > { %3284 = vrot.lane.b32.xlu1 %v3272_v41, %s8305_s7  ;;  %v11800_v41 = vrot.slane %v9221_v13, 4 }
 0x1ce   : > { %2864 = vrot.lane.b32.xlu0 %v2847_v40, %s8311_s13  ;;  %v3219_v40 = vld [vmem:[#allocation2 + $0x18] sm:$0x3] }
 0x1d1   : > { %3375 = vrot.lane.b32.xlu1 %v11802_v35, %s8313_s15 }
 0x1d2   : > { %2953 = vrot.lane.b32.xlu0 %v11807_v37, %s8308_s10  ;;  %v2347_v37 = vld [vmem:[#allocation2 + $0x28] sm:$0x3] }
 0x1d5   : > { %3427 = vrot.lane.b32.xlu1 %v3414_v60, %s8306_s8  ;;  %v11798_v60 = vrot.slane %v9227_v31, 4 }
 0x1d6   : > { %3733 = vrot.lane.b32.xlu0 %v11797_v48, %s8312_s14 }
 0x1d9   : > { %3686 = vrot.lane.b32.xlu1 %v11810_v61, %s8312_s14 }
 0x1da   : > { %3784 = vrot.lane.b32.xlu0 %v11804_v12, %s8310_s12  ;;  %v3311_v12 = vld [vmem:[#allocation2 + $0x18] sm:$0x3] }
 0x1dd   : > { %2322 = vrot.lane.b32.xlu1 %v2308_v21, %s8309_s11  ;;  %v3233_v21 = vmul.f32 %v9021_v49, %v3219_v40 }
 0x1de   : > { %2281 = vrot.lane.b32.xlu0 %v2266_v5, %s8309_s11  ;;  %v3267_v5 = vld [vmem:[#allocation2 + $0x20] sm:$0xfc] }
 0x1df   : > { %v3273_v11 = vmul.f32 %v3267_v5, %v9096_v58  ;;  %v2345_v5 = vld [vmem:[#allocation2 + $0x18] sm:$0x3] }
 0x1e1   : > { %2413 = vrot.lane.b32.xlu1 %v11801_v62, %s8312_s14  ;;  %v9277_v62 = vld [vmem:[#allocation2 + $0x20] sm:$0xfc] }
 0x1e2   : > { %2320 = vrot.lane.b32.xlu0 %v2307_v32, %s8309_s11  ;;  %v9242_v32 = vmul.f32 %v9110_v50, %v2791_v36  ;;  %v9257_v36 = vsel %vm2778_vm7, %v9076_v2, %v9144_v25 }
 0x1e5   : > { %2770 = vrot.lane.b32.xlu1 %v11806_v45, %s8307_s9  ;;  %v11812_v45 = vrot.slane %v9126_v24, 2 }
 0x1e6   : > { %2411 = vrot.lane.b32.xlu0 %v11795_v9, %s8312_s14  ;;  %v11796_v9 = vrot.slane %v9242_v32, 4 }
 0x1e9   : > { %3288 = vrot.lane.b32.xlu1 %v3274_v16, %s8305_s7  ;;  %v9246_v16 = vld [vmem:[#allocation2 + $0x20] sm:$0xfc] }
 0x1ea   : > { %2768 = vrot.lane.b32.xlu0 %v11800_v41, %s8307_s9  ;;  %v11799_v40 = vrot.slane %v9246_v16, 4 }
 0x1ed   : > { %3379 = vrot.lane.b32.xlu1 %v11798_v60, %s8313_s15  ;;  %v3402_v60 = vld [vmem:[#allocation2 + $0x18] sm:$0x3] }
 0x1ee   : > { %3248 = vrot.lane.b32.xlu0 %v3233_v21, %s8305_s7  ;;  %v9264_v21 = vmul.f32 %v9257_v36, %v8973_v19 }
 0x1f0   : > { %v11803_v48 = vrot.slane %v9264_v21, 4 }
 0x1f1   : > { %2468 = vrot.lane.b32.xlu1 %v2453_v15, %s8310_s12  ;;  %v2846_v15 = vld [vmem:[#allocation2 + $0x20] sm:$0x3] }
 0x1f2   : > { %3286 = vrot.lane.b32.xlu0 %v3273_v11, %s8305_s7  ;;  %v2268_v11 = vmul.f32 %v9038_v59, %v2251_v44 }
 0x1f5   : > { %2818 = vrot.lane.b32.xlu1 %v11796_v9, %s8307_s9  ;;  %v2357_v9 = vrot.slane %v2345_v5, 4  ;;  %v2881_v5 = vld [vmem:[#allocation2 + $0x30] sm:$0xf] }
 0x1f6   : > { %3377 = vrot.lane.b32.xlu0 %v11799_v40, %s8313_s15 }
 0x1f7   : > { %v2358_v40 = vsel %vm2140_vm13, %v9010_v1, %v2357_v9 }
 0x1f9   : > { %2862 = vrot.lane.b32.xlu1 %v2846_v15, %s8311_s13  ;;  %v3416_v15 = vmul.f32 %v8998_v22, %v3402_v60 }
 0x1fa   : > { %2285 = vrot.lane.b32.xlu0 %v2268_v11, %s8309_s11  ;;  %v3221_v11 = vld [vmem:[#allocation2 + $0x28] sm:$0x3] }
 0x1fb   : > { %v3235_v60 = vmul.f32 %v9072_v63, %v3221_v11  ;;  %v9304_v11 = vmul.f32 %v9192_v55, %v2793_v27 }
 0x1fd   : > { %2951 = vrot.lane.b32.xlu1 %v11803_v48, %s8308_s10  ;;  %v11811_v48 = vrot.slane %v9277_v62, 6 }
 0x1fe   : > { %2369 = vrot.lane.b32.xlu0 %v2358_v40, %s8312_s14  ;;  %v2855_v41 = vpop.permute.xlu1 %2854 }
 0x200   : > { %v9279_v44 = vpop.permute.xlu0 %2462 }
 0x201   : > { %3431 = vrot.lane.b32.xlu1 %v3416_v15, %s8306_s8  ;;  %v3323_v15 = vrot.slane %v3311_v12, 4  ;;  %v2361_v12 = vrot.slane %v2347_v37, 4  ;;  %v11815_v37 = vrot.slane %v9304_v11, 4 }
 0x202   : > { %2896 = vrot.lane.b32.xlu0 %v2881_v5, %s8311_s13 }
 0x203   : > { %v2859_v35 = vpop.permute.xlu1 %2858 }
 0x204   : > { %v2857_v9 = vpop.permute.xlu0 %2856 }
 0x205   : > { %3731 = vrot.lane.b32.xlu1 %v11811_v48, %s8312_s14  ;;  %v2866_v40 = vsel %vm238_vm10, %v2855_v41, %v2857_v9  ;;  %v2867_v29 = vsel %vm238_vm10, %v2857_v9, %v2859_v35  ;;  %v3324_v35 = vsel %vm2140_vm13, %v9010_v1, %v3323_v15  ;;  %v2455_v41 = vmul.f32 %v9015_v51, %v2438_v10  ;;  %v2792_v48 = vld [vmem:[#allocation2 + $0x20] sm:$0xfc]  ;;  %v3404_v15 = vld [vmem:[#allocation2 + $0x28] sm:$0x3] }
 0x206   : > { %2874 = vst [vmem:[#allocation3 + $0xf0] sm:$0xff] %v2866_v40  ;;  %2875 = vst [vmem:[#allocation3 + $0xf8] sm:$0xff] %v2867_v29  ;;  %3252 = vrot.lane.b32.xlu0 %v3235_v60, %s8305_s7  ;;  %v2362_v60 = vsel %vm2140_vm13, %v9060_v0, %v2361_v12  ;;  %v2437_v40 = vld [vmem:[#allocation2 + $0x20] sm:$0x3]  ;;  %v3666_v12 = vld [vmem:[#allocation2 + $0x18] sm:$0x3] }
 0x207   : > { %v9291_v5 = vpop.permute.xlu1 %2275  ;;  %v2454_v27 = vmul.f32 %v9118_v17, %v2437_v40  ;;  %v3313_v40 = vld [vmem:[#allocation2 + $0x28] sm:$0x3] }
 0x208   : > { %11849 = vst [vmem:[#allocation9_spill] sm:$0xff] %v9291_v5  ;;  %v9294_v61 = vpop.permute.xlu0 %3425 }
 0x209   : > { %3782 = vrot.lane.b32.xlu1 %v11812_v45, %s8310_s12  ;;  %v3678_v45 = vrot.slane %v3666_v12, 6  ;;  %v2883_v12 = vld [vmem:[#allocation2 + $0x40] sm:$0xf] }
 0x20a   : > { %3335 = vrot.lane.b32.xlu0 %v3324_v35, %s8313_s15  ;;  %v9322_v35 = vmul.f32 %v2792_v48, %v9211_v7 }
 0x20b   : > { %v2364_v29 = vpop.permute.xlu1 %2363 }
 0x20c   : > { %v9306_v9 = vpop.permute.xlu0 %3684  ;;  %v11817_v30 = vrot.slane %v9322_v35, 4 }
 0x20d   : > { %11850 = vst [vmem:[#allocation10_spill] sm:$0xff] %v9306_v9  ;;  %2472 = vrot.lane.b32.xlu1 %v2455_v41, %s8310_s12 }
 0x20e   : > { %2373 = vrot.lane.b32.xlu0 %v2362_v60, %s8312_s14  ;;  %v3418_v60 = vmul.f32 %v9028_v42, %v3404_v15  ;;  %v3220_v42 = vld [vmem:[#allocation2 + $0x20] sm:$0x3] }
 0x20f   : > { %v9312_v1 = vpop.permute.xlu1 %2890 }
 0x210   : > { %v9315_v10 = vpop.permute.xlu0 %2466 }
 0x211   : > { %2822 = vrot.lane.b32.xlu1 %v11815_v37, %s8307_s9  ;;  %v2250_v37 = vld [vmem:[#allocation2 + $0x20] sm:$0x3] }
 0x212   : > { %2470 = vrot.lane.b32.xlu0 %v2454_v27, %s8310_s12  ;;  %v3679_v27 = vsel %vm1158_vm12, %v3675_v43, %v3678_v45  ;;  %v3403_v45 = vld [vmem:[#allocation2 + $0x20] sm:$0x3] }
 0x213   : > { %v9325_v41 = vpop.permute.xlu1 %3242 }
 0x214   : > { %v9328_v3 = vpop.permute.xlu0 %3429 }
 0x215   : > { %3435 = vrot.lane.b32.xlu1 %v3418_v60, %s8306_s8  ;;  %v3327_v60 = vrot.slane %v3313_v40, 4  ;;  %v3234_v40 = vmul.f32 %v9096_v58, %v3220_v42 }
 0x216   : > { %2820 = vrot.lane.b32.xlu0 %v11817_v30, %s8307_s9  ;;  %v2267_v30 = vmul.f32 %v9047_v56, %v2250_v37  ;;  %v3417_v37 = vmul.f32 %v9166_v54, %v3403_v45 }
 0x217   : > { %v9335_v48 = vpop.permute.xlu1 %3329  ;;  %v3328_v43 = vsel %vm2140_vm13, %v9060_v0, %v3327_v60  ;;  %v2303_v0 = vld [vmem:[#allocation2 + $0x30] sm:$0xf] }
 0x218   : > { %v9340_v15 = vpop.permute.xlu0 %3688 }
 0x219   : > { %11851 = vst [vmem:[#allocation11_spill] sm:$0xff] %v9340_v15  ;;  %3690 = vrot.lane.b32.xlu1 %v3679_v27, %s8312_s14  ;;  %v3682_v15 = vrot.slane %v3668_v26, 6  ;;  %v11854_v26 = vrot.slane %v8990_v20, 6 }
 0x21a   : > { %2900 = vrot.lane.b32.xlu0 %v2883_v12, %s8311_s13  ;;  %v2733_v12 = vld [vmem:[#allocation2 + $0x18] sm:$0x3] }
 0x21b   : > { %v9344_v46 = vpop.permute.xlu1 %2279  ;;  %v2748_v60 = vmul.f32 %v9110_v50, %v2733_v12 }
 0x21c   : > { %11852 = vst [vmem:[#allocation12_spill] sm:$0xff] %v9344_v46  ;;  %v9347_v22 = vpop.permute.xlu0 %2277  ;;  %v2346_v46 = vld [vmem:[#allocation2 + $0x20] sm:$0x3] }
 0x21d   : > { %11853 = vst [vmem:[#allocation13_spill] sm:$0xff] %v9347_v22  ;;  %2283 = vrot.lane.b32.xlu1 %v2267_v30, %s8309_s11  ;;  %v2760_v45 = vrot.slane %v2748_v60, 4 }
 0x21e   : > { %3339 = vrot.lane.b32.xlu0 %v3328_v43, %s8313_s15  ;;  %v3683_v43 = vsel %vm1158_vm12, %v11854_v26, %v3682_v15  ;;  %v3667_v26 = vld [vmem:[#allocation2 + $0x20] sm:$0x3] }
 0x21f   : > { %v2368_v27 = vpop.permute.xlu1 %2367 }
 0x220   : > { %v2366_v9 = vpop.permute.xlu0 %2365 }
 0x221   : > { %3250 = vrot.lane.b32.xlu1 %v3234_v40, %s8305_s7  ;;  %v2376_v30 = vsel %vm2375_vm8, %v2364_v29, %v2366_v9  ;;  %v2377_v5 = vsel %vm2375_vm8, %v2366_v9, %v2368_v27  ;;  %v2359_v40 = vrot.slane %v2346_v46, 4  ;;  %v2309_v29 = vmul.f32 %v8993_v34, %v2303_v0  ;;  %v2917_v9 = vld [vmem:[#allocation2 + $0x18] sm:$0x3]  ;;  %v3269_v0 = vld [vmem:[#allocation2 + $0x30] sm:$0xf] }
 0x222   : > { %2384 = vst [vmem:[#allocation3 + $0x20] sm:$0xf0] %v2376_v30  ;;  %2385 = vst [vmem:[#allocation3 + $0x28] sm:$0xf0] %v2377_v5  ;;  %3433 = vrot.lane.b32.xlu0 %v3417_v37, %s8306_s8  ;;  %v2931_v12 = vmul.f32 %v9076_v2, %v2917_v9  ;;  %v11855_v37 = vrot.slane %v9130_v57, 4  ;;  %v3680_v57 = vrot.slane %v3667_v26, 6 }
 0x223   : > { %v2895_v42 = vpop.permute.xlu1 %2894  ;;  %v2360_v5 = vsel %vm2140_vm13, %v9066_v23, %v2359_v40  ;;  %v3756_v9 = vld [vmem:[#allocation2 + $0x18] sm:$0x3]  ;;  %v11857_v26 = vrot.slane %v8973_v19, 6 }
 0x224   : > { %v9363_v22 = vpop.permute.xlu0 %2860  ;;  %v2761_v30 = vsel %vm2140_vm13, %v11855_v37, %v2760_v45  ;;  %v2943_v40 = vrot.slane %v2931_v12, 4  ;;  %v3762_v12 = vmul.f32 %v8977_v14, %v3756_v9  ;;  %v2919_v37 = vld [vmem:[#allocation2 + $0x28] sm:$0x3] }
 0x225   : > { %3694 = vrot.lane.b32.xlu1 %v3683_v43, %s8312_s14  ;;  %v2882_v43 = vld [vmem:[#allocation2 + $0x38] sm:$0xf] }
 0x226   : > { %2324 = vrot.lane.b32.xlu0 %v2309_v29, %s8309_s11 }
 0x227   : > { %v3247_v27 = vpop.permute.xlu1 %3246 }
 0x228   : > { %v2893_v20 = vpop.permute.xlu0 %2892 }
 0x229   : > { %2371 = vrot.lane.b32.xlu1 %v2360_v5, %s8312_s14  ;;  %v2902_v46 = vsel %vm238_vm10, %v9312_v1, %v2893_v20  ;;  %v2903_v15 = vsel %vm238_vm10, %v2893_v20, %v2895_v42  ;;  %v3275_v1 = vmul.f32 %v9021_v49, %v3269_v0  ;;  %v3312_v42 = vld [vmem:[#allocation2 + $0x20] sm:$0x3]  ;;  %v11856_v5 = vrot.slane %v9087_v28, 4 }
 0x22a   : > { %2910 = vst [vmem:[#allocation3 + $0x100] sm:$0xfc] %v2902_v46  ;;  %2911 = vst [vmem:[#allocation3 + $0x108] sm:$0xfc] %v2903_v15  ;;  %2772 = vrot.lane.b32.xlu0 %v2761_v30, %s8307_s9  ;;  %v3325_v46 = vrot.slane %v3312_v42, 4 }
 0x22b   : > { %v3334_v60 = vpop.permute.xlu1 %3333  ;;  %v2944_v20 = vsel %vm2140_vm13, %v11856_v5, %v2943_v40  ;;  %v2391_v40 = vld [vmem:[#allocation2 + $0x30] sm:$0xf]  ;;  %v2735_v42 = vld [vmem:[#allocation2 + $0x28] sm:$0x3] }
 0x22c   : > { %v9379_v29 = vpop.permute.xlu0 %2949  ;;  %v3326_v9 = vsel %vm2140_vm13, %v9066_v23, %v3325_v46 }
 0x22d   : > { %2898 = vrot.lane.b32.xlu1 %v2882_v43, %s8311_s13  ;;  %v3681_v43 = vsel %vm1158_vm12, %v11857_v26, %v3680_v57  ;;  %v3711_v26 = vld [vmem:[#allocation2 + $0x30] sm:$0xf] }
 0x22e   : > { %3290 = vrot.lane.b32.xlu0 %v3275_v1, %s8305_s7  ;;  %v2305_v1 = vld [vmem:[#allocation2 + $0x40] sm:$0xf] }
 0x22f   : > { %v9384_v45 = vpop.permute.xlu1 %2318  ;;  %v2311_v19 = vmul.f32 %v9038_v59, %v2305_v1  ;;  %v11859_v1 = vrot.slane %v9102_v33, 4  ;;  %v11861_v33 = vrot.slane %v9200_v4, 4  ;;  %v2734_v4 = vld [vmem:[#allocation2 + $0x20] sm:$0x3] }
 0x230   : > { %v3245_v15 = vpop.permute.xlu0 %3244 }
 0x231   : > { %2955 = vrot.lane.b32.xlu1 %v2944_v20, %s8308_s10  ;;  %v3254_v30 = vsel %vm2445_vm1, %v9325_v41, %v3245_v15  ;;  %v3255_v0 = vsel %vm2445_vm1, %v3245_v15, %v3247_v27  ;;  %v3774_v41 = vrot.slane %v3762_v12, 2  ;;  %v2933_v27 = vmul.f32 %v9144_v25, %v2919_v37 }
 0x232   : > { %3262 = vst [vmem:[#allocation3 + $0x190] sm:$0xff] %v3254_v30  ;;  %3263 = vst [vmem:[#allocation3 + $0x198] sm:$0xff] %v3255_v0  ;;  %3692 = vrot.lane.b32.xlu0 %v3681_v43, %s8312_s14  ;;  %v2403_v15 = vrot.slane %v2391_v40, 4  ;;  %v2750_v30 = vmul.f32 %v9192_v55, %v2735_v42  ;;  %v11858_v37 = vrot.slane %v8986_v8, 2  ;;  %v3758_v43 = vld [vmem:[#allocation2 + $0x28] sm:$0x3] }
 0x233   : > { %v9398_v28 = vpop.permute.xlu1 %2409  ;;  %v2947_v0 = vrot.slane %v2933_v27, 4  ;;  %v11860_v8 = vrot.slane %v9155_v39, 4  ;;  %v11862_v39 = vrot.slane %v9120_v18, 6 }
 0x234   : > { %v3332_v5 = vpop.permute.xlu0 %3331  ;;  %v2764_v40 = vrot.slane %v2750_v30, 4 }
 0x235   : > { %3337 = vrot.lane.b32.xlu1 %v3326_v9, %s8313_s15  ;;  %v3342_v57 = vsel %vm3341_vm9, %v9335_v48, %v3332_v5  ;;  %v3343_v20 = vsel %vm3341_vm9, %v3332_v5, %v3334_v60  ;;  %v3775_v48 = vsel %vm1223_vm5, %v11858_v37, %v3774_v41  ;;  %v2948_v42 = vsel %vm2140_vm13, %v11860_v8, %v2947_v0  ;;  %v2918_v0 = vld [vmem:[#allocation2 + $0x20] sm:$0x3] }
 0x236   : > { %3350 = vst [vmem:[#allocation3 + $0x1b0] sm:$0xf0] %v3342_v57  ;;  %3351 = vst [vmem:[#allocation3 + $0x1b8] sm:$0xf0] %v3343_v20  ;;  %2328 = vrot.lane.b32.xlu0 %v2311_v19, %s8309_s11  ;;  %v3723_v9 = vrot.slane %v3711_v26, 6  ;;  %v3764_v41 = vmul.f32 %v9015_v51, %v3758_v43  ;;  %v2765_v5 = vsel %vm2140_vm13, %v11861_v33, %v2764_v40  ;;  %v11863_v26 = vrot.slane %v9026_v53, 2 }
 0x237   : > { %v2465_v23 = vpop.permute.xlu1 %2464  ;;  %v3271_v19 = vld [vmem:[#allocation2 + $0x40] sm:$0xf]  ;;  %v3357_v20 = vld [vmem:[#allocation2 + $0x30] sm:$0xf]  ;;  %v2304_v43 = vld [vmem:[#allocation2 + $0x38] sm:$0xf] }
 0x238   : > { %v2475_v46 = vsel %vm2474_vm11, %v9279_v44, %v2465_v23  ;;  %v2476_v12 = vsel %vm2474_vm11, %v2465_v23, %v9315_v10  ;;  %v9417_v60 = vpop.permute.xlu0 %3729  ;;  %v2404_v44 = vsel %vm2140_vm13, %v11859_v1, %v2403_v15  ;;  %v3724_v15 = vsel %vm1158_vm12, %v11862_v39, %v3723_v9 }
 0x239   : > { %2483 = vst [vmem:[#allocation3 + $0x50] sm:$0xff] %v2475_v46  ;;  %2484 = vst [vmem:[#allocation3 + $0x58] sm:$0xff] %v2476_v12  ;;  %3786 = vrot.lane.b32.xlu1 %v3775_v48, %s8310_s12  ;;  %v3778_v30 = vrot.slane %v3764_v41, 2  ;;  %v3277_v46 = vmul.f32 %v9072_v63, %v3271_v19  ;;  %v3369_v12 = vrot.slane %v3357_v20, 4  ;;  %v2393_v48 = vld [vmem:[#allocation2 + $0x40] sm:$0xf]  ;;  %v2749_v1 = vmul.f32 %v9211_v7, %v2734_v4 }
 0x23a   : > { %2415 = vrot.lane.b32.xlu0 %v2404_v44, %s8312_s14  ;;  %v11864_v40 = vrot.slane %v9150_v38, 4  ;;  %v2932_v9 = vmul.f32 %v9257_v36, %v2918_v0  ;;  %v2310_v53 = vmul.f32 %v2304_v43, %v9047_v56  ;;  %v11865_v20 = vrot.slane %v9189_v52, 4 }
 0x23b   : > { %v9424_v10 = vpop.permute.xlu1 %2766  ;;  %v3779_v18 = vsel %vm1223_vm5, %v11863_v26, %v3778_v30  ;;  %v2762_v19 = vrot.slane %v2749_v1, 4  ;;  %v11867_v52 = vrot.slane %v9264_v21, 4  ;;  %v11868_v21 = vrot.slane %v9227_v31, 4 }
 0x23c   : > { %v9430_v27 = vpop.permute.xlu0 %3780  ;;  %v3370_v8 = vsel %vm2140_vm13, %v11864_v40, %v3369_v12  ;;  %v3270_v12 = vld [vmem:[#allocation2 + $0x38] sm:$0xf] }
 0x23d   : > { %2959 = vrot.lane.b32.xlu1 %v2948_v42, %s8308_s10  ;;  %v2407_v42 = vrot.slane %v2393_v48, 4  ;;  %v3615_v48 = vld [vmem:[#allocation2 + $0x30] sm:$0xf] }
 0x23e   : > { %2776 = vrot.lane.b32.xlu0 %v2765_v5, %s8307_s9  ;;  %v3621_v40 = vmul.f32 %v8993_v34, %v3615_v48 }
 0x23f   : > { %v9437_v57 = vpop.permute.xlu1 %3284  ;;  %v2408_v39 = vsel %vm2140_vm13, %v11865_v20, %v2407_v42 }
 0x240   : > { %v9442_v23 = vpop.permute.xlu0 %2864 }
 0x241   : > { %3735 = vrot.lane.b32.xlu1 %v3724_v15, %s8312_s14  ;;  %v2945_v15 = vrot.slane %v2932_v9, 4  ;;  %v3713_v9 = vld [vmem:[#allocation2 + $0x40] sm:$0xf] }
 0x242   : > { %3294 = vrot.lane.b32.xlu0 %v3277_v46, %s8305_s7  ;;  %v3757_v46 = vld [vmem:[#allocation2 + $0x20] sm:$0x3]  ;;  %v3727_v20 = vrot.slane %v3713_v9, 6 }
 0x243   : > { %v9447_v37 = vpop.permute.xlu1 %3375  ;;  %v2946_v26 = vsel %vm2140_vm13, %v11867_v52, %v2945_v15  ;;  %v3763_v43 = vmul.f32 %v3757_v46, %v9118_v17 }
 0x244   : > { %v9453_v44 = vpop.permute.xlu0 %2953 }
 0x245   : > { %3790 = vrot.lane.b32.xlu1 %v3779_v18, %s8310_s12 }
 0x246   : > { %3381 = vrot.lane.b32.xlu0 %v3370_v8, %s8313_s15  ;;  %v2794_v8 = vld [vmem:[#allocation2 + $0x30] sm:$0xf] }
 0x247   : > { %v3428_v41 = vpop.permute.xlu1 %3427 }
 0x248   : > { %v3437_v33 = vsel %vm2258_vm6, %v9294_v61, %v3428_v41  ;;  %v3438_v5 = vsel %vm2258_vm6, %v3428_v41, %v9328_v3  ;;  %v9466_v38 = vpop.permute.xlu0 %3733  ;;  %v3359_v61 = vld [vmem:[#allocation2 + $0x40] sm:$0xf]  ;;  %v11866_v3 = vrot.slane %v9221_v13, 4  ;;  %v3276_v13 = vmul.f32 %v3270_v12, %v9096_v58 }
 0x249   : > { %3445 = vst [vmem:[#allocation3 + $0x1e0] sm:$0xff] %v3437_v33  ;;  %3446 = vst [vmem:[#allocation3 + $0x1e8] sm:$0xff] %v3438_v5  ;;  %2326 = vrot.lane.b32.xlu1 %v2310_v53, %s8309_s11  ;;  %v3373_v18 = vrot.slane %v3359_v61, 4  ;;  %v3776_v53 = vrot.slane %v3763_v43, 2  ;;  %v2800_v33 = vmul.f32 %v9110_v50, %v2794_v8  ;;  %v3612_v61 = vld [vmem:[#allocation2 + $0x18] sm:$0xfc] }
 0x24a   : > { %2419 = vrot.lane.b32.xlu0 %v2408_v39, %s8312_s14  ;;  %v2763_v4 = vsel %vm2140_vm13, %v11866_v3, %v2762_v19  ;;  %v3631_v19 = vrot.slane %v3621_v40, 2  ;;  %v3807_v39 = vld [vmem:[#allocation2 + $0x30] sm:$0xf]  ;;  %v11869_v3 = vrot.slane %v9126_v24, 2  ;;  %v2392_v24 = vld [vmem:[#allocation2 + $0x38] sm:$0xf] }
 0x24b   : > { %v9473_v30 = vpop.permute.xlu1 %3686  ;;  %v3374_v41 = vsel %vm2140_vm13, %v11868_v21, %v3373_v18  ;;  %v2812_v12 = vrot.slane %v2800_v33, 4  ;;  %v3813_v52 = vmul.f32 %v8977_v14, %v3807_v39  ;;  %v11871_v40 = vrot.slane %v9242_v32, 4  ;;  %v3712_v21 = vld [vmem:[#allocation2 + $0x38] sm:$0xf] }
 0x24c   : > { %v9478_v0 = vpop.permute.xlu0 %3784 }
 0x24d   : > { %2774 = vrot.lane.b32.xlu1 %v2763_v4, %s8307_s9  ;;  %v3777_v4 = vsel %vm1223_vm5, %v11869_v3, %v3776_v53  ;;  %v2813_v8 = vsel %vm2140_vm13, %v11871_v40, %v2812_v12  ;;  %v3823_v9 = vrot.slane %v3813_v52, 2  ;;  %v2405_v53 = vrot.slane %v2392_v24, 4  ;;  %v3617_v52 = vld [vmem:[#allocation2 + $0x40] sm:$0xf]  ;;  %v2795_v40 = vld [vmem:[#allocation2 + $0x38] sm:$0xf] }
 0x24e   : > { %2957 = vrot.lane.b32.xlu0 %v2946_v26, %s8308_s10  ;;  %v11870_v26 = vrot.slane %v9168_v47, 6 }
 0x24f   : > { %v2323_v1 = vpop.permute.xlu1 %2322 }
 0x250   : > { %v9488_v42 = vpop.permute.xlu0 %2281  ;;  %v3728_v18 = vsel %vm1158_vm12, %v11870_v26, %v3727_v20  ;;  %v3358_v20 = vld [vmem:[#allocation2 + $0x38] sm:$0xf] }
 0x251   : > { %3292 = vrot.lane.b32.xlu1 %v3276_v13, %s8305_s7 }
 0x252   : > { %3385 = vrot.lane.b32.xlu0 %v3374_v41, %s8313_s15 }
 0x253   : > { %v2414_v5 = vpop.permute.xlu1 %2413 }
 0x254   : > { %v2321_v15 = vpop.permute.xlu0 %2320 }
 0x255   : > { %3645 = vrot.lane.b32.xlu1 %v3631_v19, %s8309_s11  ;;  %v2330_v46 = vsel %vm2287_vm2, %v9384_v45, %v2321_v15  ;;  %v2331_v31 = vsel %vm2287_vm2, %v2321_v15, %v2323_v1  ;;  %v3618_v45 = vmul.f32 %v8993_v34, %v3612_v61  ;;  %v3725_v15 = vrot.slane %v3712_v21, 6 }
 0x256   : > { %2338 = vst [vmem:[#allocation3 + $0x10] sm:$0xfc] %v2330_v46  ;;  %2339 = vst [vmem:[#allocation3 + $0x18] sm:$0xfc] %v2331_v31  ;;  %3788 = vrot.lane.b32.xlu0 %v3777_v4, %s8310_s12  ;;  %v2796_v46 = vld [vmem:[#allocation2 + $0x40] sm:$0xf] }
 0x257   : > { %v2771_v48 = vpop.permute.xlu1 %2770  ;;  %v3630_v41 = vrot.slane %v3618_v45, 2  ;;  %v11872_v31 = vrot.slane %v9206_v6, 4  ;;  %v3371_v4 = vrot.slane %v3358_v20, 4  ;;  %v2802_v26 = vmul.f32 %v9192_v55, %v2796_v46 }
 0x258   : > { %v2412_v43 = vpop.permute.xlu0 %2411  ;;  %v3623_v6 = vmul.f32 %v9038_v59, %v3617_v52  ;;  %v11874_v45 = vrot.slane %v9246_v16, 4 }
 0x259   : > { %3739 = vrot.lane.b32.xlu1 %v3728_v18, %s8312_s14  ;;  %v2421_v1 = vsel %vm2375_vm8, %v9398_v28, %v2412_v43  ;;  %v2422_v13 = vsel %vm2375_vm8, %v2412_v43, %v2414_v5  ;;  %v3804_v28 = vld [vmem:[#allocation2 + $0x18] sm:$0xfc]  ;;  %v3632_v39 = vsel %vm1223_vm5, %v3630_v41, %v3631_v19  ;;  %v2406_v3 = vsel %vm2140_vm13, %v11872_v31, %v2405_v53 }
 0x25a   : > { %2429 = vst [vmem:[#allocation3 + $0x30] sm:$0xc0] %v2421_v1  ;;  %2430 = vst [vmem:[#allocation3 + $0x38] sm:$0xc0] %v2422_v13  ;;  %2824 = vrot.lane.b32.xlu0 %v2813_v8, %s8307_s9  ;;  %v3810_v12 = vmul.f32 %v8977_v14, %v3804_v28  ;;  %v11873_v19 = vrot.slane %v9277_v62, 6  ;;  %v3372_v43 = vsel %vm2140_vm13, %v11874_v45, %v3371_v4  ;;  %v2816_v53 = vrot.slane %v2802_v26, 4 }
 0x25b   : > { %v3289_v47 = vpop.permute.xlu1 %3288  ;;  %v3809_v1 = vld [vmem:[#allocation2 + $0x40] sm:$0xf]  ;;  %v3614_v62 = vld [vmem:[#allocation2 + $0x28] sm:$0xfc] }
 0x25c   : > { %v2769_v33 = vpop.permute.xlu0 %2768  ;;  %v3822_v24 = vrot.slane %v3810_v12, 2  ;;  %v3815_v20 = vmul.f32 %v9015_v51, %v3809_v1  ;;  %v3620_v28 = vmul.f32 %v9038_v59, %v3614_v62  ;;  %v3613_v4 = vld [vmem:[#allocation2 + $0x20] sm:$0xfc] }
 0x25d   : > { %3837 = vrot.lane.b32.xlu1 %v3823_v9, %s8310_s12  ;;  %v2779_v5 = vsel %vm2778_vm7, %v9424_v10, %v2769_v33  ;;  %v2780_v32 = vsel %vm2778_vm7, %v2769_v33, %v2771_v48  ;;  %v3726_v48 = vsel %vm1158_vm12, %v11873_v19, %v3725_v15  ;;  %v3637_v33 = vrot.slane %v3623_v6, 2 }
 0x25e   : > { %2787 = vst [vmem:[#allocation3 + $0xc0] sm:$0xf0] %v2779_v5  ;;  %2788 = vst [vmem:[#allocation3 + $0xc8] sm:$0xf0] %v2780_v32  ;;  %3639 = vrot.lane.b32.xlu0 %v3632_v39, %s8309_s11  ;;  %v3824_v41 = vsel %vm1223_vm5, %v3822_v24, %v3823_v9  ;;  %v2801_v5 = vmul.f32 %v2795_v40, %v9211_v7  ;;  %v3616_v32 = vld [vmem:[#allocation2 + $0x38] sm:$0xf]  ;;  %v3619_v6 = vmul.f32 %v3613_v4, %v9047_v56 }
 0x25f   : > { %v3380_v61 = vpop.permute.xlu1 %3379  ;;  %v11875_v39 = vrot.slane %v9304_v11, 4  ;;  %v3829_v31 = vrot.slane %v3815_v20, 2  ;;  %v3806_v11 = vld [vmem:[#allocation2 + $0x28] sm:$0xfc]  ;;  %v2974_v4 = vld [vmem:[#allocation2 + $0x38] sm:$0xf0] }
 0x260   : > { %v9527_v10 = vpop.permute.xlu0 %3248  ;;  %v2814_v52 = vrot.slane %v2801_v5, 4 }
 0x261   : > { %2417 = vrot.lane.b32.xlu1 %v2406_v3, %s8312_s14  ;;  %v2817_v15 = vsel %vm2140_vm13, %v11875_v39, %v2816_v53  ;;  %v3622_v3 = vmul.f32 %v3616_v32, %v9047_v56  ;;  %v9602_v39 = vld [vmem:[#allocation2 + $0x38] sm:$0xf0] }
 0x262   : > { %3737 = vrot.lane.b32.xlu0 %v3726_v48, %s8312_s14  ;;  %v3808_v48 = vld [vmem:[#allocation2 + $0x38] sm:$0xf] }
 0x263   : > { %v9535_v18 = vpop.permute.xlu1 %2468  ;;  %v3634_v45 = vrot.slane %v3622_v3, 2  ;;  %v3814_v40 = vmul.f32 %v3808_v48, %v9118_v17  ;;  %v11830_v3 = vrot.slane %v9602_v39, 6  ;;  %v3909_v48 = vld [vmem:[#allocation2 + $0x48] sm:$0x3f] }
 0x264   : > { %v3287_v13 = vpop.permute.xlu0 %3286 }
 0x265   : > { %3383 = vrot.lane.b32.xlu1 %v3372_v43, %s8313_s15  ;;  %v3296_v8 = vsel %vm2445_vm1, %v9437_v57, %v3287_v13  ;;  %v3297_v21 = vsel %vm2445_vm1, %v3287_v13, %v3289_v47  ;;  %v3805_v43 = vld [vmem:[#allocation2 + $0x20] sm:$0xfc]  ;;  %v11876_v13 = vrot.slane %v9322_v35, 4  ;;  %v3826_v53 = vrot.slane %v3814_v40, 2 }
 0x266   : > { %3304 = vst [vmem:[#allocation3 + $0x1a0] sm:$0xfc] %v3296_v8  ;;  %3305 = vst [vmem:[#allocation3 + $0x1a8] sm:$0xfc] %v3297_v21  ;;  %3831 = vrot.lane.b32.xlu0 %v3824_v41, %s8310_s12  ;;  %v3633_v21 = vrot.slane %v3619_v6, 2  ;;  %v3811_v41 = vmul.f32 %v3805_v43, %v9118_v17 }
 0x267   : > { %v9547_v16 = vpop.permute.xlu1 %2818  ;;  %v2815_v62 = vsel %vm2140_vm13, %v11876_v13, %v2814_v52  ;;  %v9625_v43 = vld [vmem:[#allocation2 + $0x40] sm:$0xf0] }
 0x268   : > { %v3378_v57 = vpop.permute.xlu0 %3377 }
 0x269   : > { %3649 = vrot.lane.b32.xlu1 %v3637_v33, %s8309_s11  ;;  %v3387_v47 = vsel %vm3341_vm9, %v9447_v37, %v3378_v57  ;;  %v3388_v9 = vsel %vm3341_vm9, %v3378_v57, %v3380_v61  ;;  %v3636_v61 = vrot.slane %v3620_v28, 2  ;;  %v3825_v28 = vrot.slane %v3811_v41, 2 }
 0x26a   : > { %3395 = vst [vmem:[#allocation3 + $0x1c0] sm:$0xc0] %v3387_v47  ;;  %3396 = vst [vmem:[#allocation3 + $0x1c8] sm:$0xc0] %v3388_v9  ;;  %2828 = vrot.lane.b32.xlu0 %v2817_v15, %s8307_s9  ;;  %v3907_v9 = vld [vmem:[#allocation2 + $0x38] sm:$0xf0] }
 0x26b   : > { %v2863_v46 = vpop.permute.xlu1 %2862  ;;  %v3638_v26 = vsel %vm1223_vm5, %v3636_v61, %v3637_v33  ;;  %v3827_v32 = vsel %vm1223_vm5, %v3825_v28, %v3826_v53  ;;  %v9614_v61 = vld [vmem:[#allocation2 + $0x30] sm:$0xf0] }
 0x26c   : > { %v2868_v12 = vsel %vm238_vm10, %v9363_v22, %v2863_v46  ;;  %v2869_v37 = vsel %vm238_vm10, %v2863_v46, %v9442_v23  ;;  %v9565_v19 = vpop.permute.xlu0 %2285  ;;  %v3812_v23 = vmul.f32 %v9015_v51, %v3806_v11  ;;  %v3906_v46 = vld [vmem:[#allocation2 + $0x30] sm:$0xf0]  ;;  %v9618_v11 = vmul.f32 %v2974_v4, %v9211_v7 }
 0x26d   : > { %2876 = vst [vmem:[#allocation3 + $0x100] sm:$0x3] %v2868_v12  ;;  %2877 = vst [vmem:[#allocation3 + $0x108] sm:$0x3] %v2869_v37  ;;  %3841 = vrot.lane.b32.xlu1 %v3829_v31, %s8310_s12  ;;  %v3908_v37 = vld [vmem:[#allocation2 + $0x40] sm:$0xf0] }
 0x26e   : > { %3643 = vrot.lane.b32.xlu0 %v3638_v26, %s8309_s11  ;;  %v3828_v35 = vrot.slane %v3812_v23, 2  ;;  %v3166_v26 = vld [vmem:[#allocation2 + $0x38] sm:$0xf0]  ;;  %v11824_v13 = vrot.slane %v9618_v11, 6 }
 0x26f   : > { %v2952_v22 = vpop.permute.xlu1 %2951 }
 0x270   : > { %v2961_v24 = vsel %vm2740_vm4, %v9379_v29, %v2952_v22  ;;  %v2962_v1 = vsel %vm2740_vm4, %v2952_v22, %v9453_v44  ;;  %v9580_v8 = vpop.permute.xlu0 %2369  ;;  %v3635_v44 = vsel %vm1223_vm5, %v3633_v21, %v3634_v45  ;;  %v3830_v20 = vsel %vm1223_vm5, %v3828_v35, %v3829_v31  ;;  %v3165_v35 = vld [vmem:[#allocation2 + $0x30] sm:$0xf0] }
 0x271   : > { %2969 = vst [vmem:[#allocation3 + $0x110] sm:$0xf0] %v2961_v24  ;;  %2970 = vst [vmem:[#allocation3 + $0x118] sm:$0xf0] %v2962_v1  ;;  %2826 = vrot.lane.b32.xlu1 %v2815_v62, %s8307_s9  ;;  %v2601_v22 = vrot.slane %v9614_v61, 6  ;;  %v9632_v62 = vmul.f32 %v3166_v26, %v9257_v36 }
 0x272   : > { %3647 = vrot.lane.b32.xlu0 %v3634_v45, %s8309_s11  ;;  %v2973_v24 = vld [vmem:[#allocation2 + $0x30] sm:$0xf0] }
 0x273   : > { %v9585_v29 = vpop.permute.xlu1 %3431  ;;  %v9639_v21 = vmul.f32 %v9110_v50, %v2973_v24 }
 0x274   : > { %v9588_v33 = vpop.permute.xlu0 %2896 }
 0x275   : > { %3641 = vrot.lane.b32.xlu1 %v3635_v44, %s8309_s11 }
 0x276   : > { %3835 = vrot.lane.b32.xlu0 %v3830_v20, %s8310_s12  ;;  %v11823_v20 = vrot.slane %v9632_v62, 6 }
 0x277   : > { %v9593_v5 = vpop.permute.xlu1 %3731 }
 0x278   : > { %v9596_v57 = vpop.permute.xlu0 %3252 }
 0x279   : > { %3833 = vrot.lane.b32.xlu1 %v3827_v32, %s8310_s12  ;;  %v9657_v32 = vmul.f32 %v9076_v2, %v3165_v35 }
 0x27a   : > { %3839 = vrot.lane.b32.xlu0 %v3826_v53, %s8310_s12 }
 0x27b   : > { %v9600_v47 = vpop.permute.xlu1 %3782  ;;  %v11827_v26 = vrot.slane %v9657_v32, 6 }
 0x27c   : > { %v9604_v15 = vpop.permute.xlu0 %3335 }
 0x27d   : > { %3920 = vrot.lane.b32.xlu1 %v3907_v9, %s8312_s14  ;;  %v2975_v9 = vld [vmem:[#allocation2 + $0x40] sm:$0xf0] }
 0x27e   : > { %3918 = vrot.lane.b32.xlu0 %v3906_v46, %s8312_s14 }
 0x27f   : > { %v2473_v31 = vpop.permute.xlu1 %2472 }
 0x280   : > { %v9609_v12 = vpop.permute.xlu0 %2373 }
 0x281   : > { %2612 = vrot.lane.b32.xlu1 %v11830_v3, %s8312_s14 }
 0x282   : > { %3922 = vrot.lane.b32.xlu0 %v3908_v37, %s8312_s14  ;;  %v3911_v37 = vld [vmem:[#allocation2 + $0x58] sm:$0x3f] }
 0x283   : > { %v2823_v52 = vpop.permute.xlu1 %2822 }
 0x284   : > { %v2471_v6 = vpop.permute.xlu0 %2470 }
 0x285   : > { %3924 = vrot.lane.b32.xlu1 %v3909_v48, %s8312_s14  ;;  %v2477_v45 = vsel %vm2474_vm11, %v9535_v18, %v2471_v6  ;;  %v2478_v23 = vsel %vm2474_vm11, %v2471_v6, %v2473_v31  ;;  %v2603_v18 = vrot.slane %v9625_v43, 6  ;;  %v9673_v6 = vmul.f32 %v9192_v55, %v2975_v9 }
 0x286   : > { %2485 = vst [vmem:[#allocation3 + $0x60] sm:$0x3] %v2477_v45  ;;  %2486 = vst [vmem:[#allocation3 + $0x68] sm:$0x3] %v2478_v23  ;;  %2610 = vrot.lane.b32.xlu0 %v2601_v22, %s8312_s14  ;;  %v3167_v45 = vld [vmem:[#allocation2 + $0x40] sm:$0xf0] }
 0x287   : > { %v3436_v1 = vpop.permute.xlu1 %3435  ;;  %v9688_v35 = vmul.f32 %v9144_v25, %v3167_v45  ;;  %v11879_v45 = vld [vmem:[#allocation12_spill] sm:$0xff] }
 0x288   : > { %v2821_v40 = vpop.permute.xlu0 %2820 }
 0x289   : > { %3002 = vrot.lane.b32.xlu1 %v11824_v13, %s8307_s9  ;;  %v2830_v41 = vsel %vm2778_vm7, %v9547_v16, %v2821_v40  ;;  %v2831_v44 = vsel %vm2778_vm7, %v2821_v40, %v2823_v52  ;;  %v11828_v16 = vrot.slane %v9639_v21, 6  ;;  %v9666_v52 = vld [vmem:[#allocation2 + $0x60] sm:$0xff]  ;;  %v9683_v40 = vld [vmem:[#allocation2 + $0x48] sm:$0x3f] }
 0x28a   : > { %2838 = vst [vmem:[#allocation3 + $0xd0] sm:$0xc0] %v2830_v41  ;;  %2839 = vst [vmem:[#allocation3 + $0xd8] sm:$0xc0] %v2831_v44  ;;  %2614 = vrot.lane.b32.xlu0 %v2603_v18, %s8312_s14  ;;  %v11826_v44 = vrot.slane %v9673_v6, 6 }
 0x28b   : > { %v9647_v53 = vpop.permute.xlu1 %3690 }
 0x28c   : > { %v9650_v28 = vpop.permute.xlu0 %2900 }
 0x28d   : > { %3194 = vrot.lane.b32.xlu1 %v11823_v20, %s8308_s10 }
 0x28e   : > { %3000 = vrot.lane.b32.xlu0 %v11828_v16, %s8307_s9 }
 0x28f   : > { %v2284_v46 = vpop.permute.xlu1 %2283 }
 0x290   : > { %v2290_v31 = vsel %vm2287_vm2, %v9488_v42, %v2284_v46  ;;  %v2291_v4 = vsel %vm2287_vm2, %v2284_v46, %v9565_v19  ;;  %v9668_v48 = vpop.permute.xlu0 %3339  ;;  %v2647_v19 = vrot.slane %v9666_v52, 6  ;;  %v3088_v46 = vrot.slane %v9683_v40, 2 }
 0x291   : > { %2298 = vst [vmem:[#allocation3 + $0x10] sm:$0x3] %v2290_v31  ;;  %2299 = vst [vmem:[#allocation3 + $0x18] sm:$0x3] %v2291_v4  ;;  %3928 = vrot.lane.b32.xlu1 %v3911_v37, %s8312_s14  ;;  %v11877_v31 = vld [vmem:[#allocation13_spill] sm:$0xff]  ;;  %v11825_v40 = vrot.slane %v9688_v35, 6 }
 0x292   : > { %3192 = vrot.lane.b32.xlu0 %v11827_v26, %s8308_s10  ;;  %v11878_v4 = vld [vmem:[#allocation9_spill] sm:$0xff] }
 0x293   : > { %v3251_v42 = vpop.permute.xlu1 %3250  ;;  %v2288_v37 = vsel %vm2287_vm2, %v11878_v4, %v11877_v31 }
 0x294   : > { %v3256_v23 = vsel %vm2445_vm1, %v9527_v10, %v3251_v42  ;;  %v3257_v24 = vsel %vm2445_vm1, %v3251_v42, %v9596_v57  ;;  %v3434_v41 = vpop.permute.xlu0 %3433 }
 0x295   : > { %3264 = vst [vmem:[#allocation3 + $0x1a0] sm:$0x3] %v3256_v23  ;;  %3265 = vst [vmem:[#allocation3 + $0x1a8] sm:$0x3] %v3257_v24  ;;  %2661 = vrot.lane.b32.xlu1 %v2647_v19, %s8312_s14  ;;  %v3439_v9 = vsel %vm2258_vm6, %v9585_v29, %v3434_v41  ;;  %v3440_v10 = vsel %vm2258_vm6, %v3434_v41, %v3436_v1  ;;  %v2289_v29 = vsel %vm2287_vm2, %v11877_v31, %v11879_v45  ;;  %v11880_v1 = vld [vmem:[#allocation10_spill] sm:$0xff]  ;;  %v11881_v23 = vld [vmem:[#allocation11_spill] sm:$0xff] }
 0x296   : > { %3447 = vst [vmem:[#allocation3 + $0x1f0] sm:$0x3] %v3439_v9  ;;  %3448 = vst [vmem:[#allocation3 + $0x1f8] sm:$0x3] %v3440_v10  ;;  %3004 = vrot.lane.b32.xlu0 %v11826_v44, %s8307_s9  ;;  %v3696_v42 = vsel %vm2375_vm8, %v11880_v1, %v9473_v30  ;;  %v3697_v24 = vsel %vm2375_vm8, %v9473_v30, %v11881_v23  ;;  %v2592_v31 = vld [vmem:[#allocation2 + $0x48] sm:$0x3f] }
 0x297   : > { %v9696_v57 = vpop.permute.xlu1 %3694  ;;  %v3133_v30 = vrot.slane %v9666_v52, 2  ;;  %v9798_v44 = vld [vmem:[#allocation2 + $0x50] sm:$0x3f] }
 0x298   : > { %v3452_v41 = vld [vmem:[#allocation3 + $0x18] sm:$0xff]  ;;  %v3451_v9 = vld [vmem:[#allocation3 + $0x10] sm:$0xff]  ;;  %v9711_v10 = vpop.permute.xlu0 %2324 }
 0x299   : > { %3102 = vrot.lane.b32.xlu1 %v3088_v46, %s8311_s13  ;;  %v7974_v4 = vpack.c.bf16 %v3452_v41, %v2289_v29  ;;  %3705 = vst [vmem:[#allocation3 + $0x18] sm:$0xfc] %v3697_v24  ;;  %v7976_v20 = vpack.c.bf16 %v3451_v9, %v2288_v37  ;;  %3704 = vst [vmem:[#allocation3 + $0x10] sm:$0xfc] %v3696_v42  ;;  %v2604_v29 = vrot.slane %v2592_v31, 6 }
 0x29a   : > { %3196 = vrot.lane.b32.xlu0 %v11825_v40, %s8308_s10  ;;  %v2634_v42 = vld [vmem:[#allocation2 + $0x48] sm:$0xc0]  ;;  %v3910_v24 = vld [vmem:[#allocation2 + $0x50] sm:$0x3f] }
 0x29b   : > { %7975 = vmatprep.subr.bf16.mxu0 %v7974_v4  ;;  %v2372_v45 = vpop.permute.xlu1 %2371  ;;  %v9734_v4 = vld [vmem:[#allocation2 + $0x70] sm:$0xff] }
 0x29c   : > { %v2378_v1 = vsel %vm2375_vm8, %v9580_v8, %v2372_v45  ;;  %v2379_v23 = vsel %vm2375_vm8, %v2372_v45, %v9609_v12  ;;  %7977 = vmatpush1.bf16.msra.mxu0 %v7976_v20  ;;  %v9723_v37 = vpop.permute.xlu0 %2772  ;;  %v2605_v12 = vsel %vm1158_vm12, %v2601_v22, %v2604_v29  ;;  %v2646_v20 = vrot.slane %v2634_v42, 6  ;;  %v3075_v45 = vld [vmem:[#allocation2 + $0x30] sm:$0xf0]  ;;  %v3080_v29 = vld [vmem:[#allocation2 + $0x58] sm:$0x3f] }
 0x29d   : > { %2386 = vst [vmem:[#allocation3 + $0x30] sm:$0x3f] %v2378_v1  ;;  %2387 = vst [vmem:[#allocation3 + $0x38] sm:$0x3f] %v2379_v23  ;;  %3147 = vrot.lane.b32.xlu1 %v3133_v30, %s8311_s13  ;;  %v2653_v61 = vrot.slane %v9734_v4, 6  ;;  %v3792_v22 = vsel %vm2474_vm11, %v9430_v27, %v9600_v47  ;;  %v3087_v23 = vrot.slane %v3075_v45, 2 }
 0x29e   : > { %3926 = vrot.lane.b32.xlu0 %v3910_v24, %s8312_s14  ;;  %v2648_v1 = vsel %vm1158_vm12, %v2646_v20, %v2647_v19  ;;  %v2490_v20 = vld [vmem:[#allocation2 + $0x48] sm:$0x3f] }
 0x29f   : > { %v2899_v41 = vpop.permute.xlu1 %2898 }
 0x2a0   : > { %v2904_v9 = vsel %vm238_vm10, %v9588_v33, %v2899_v41  ;;  %v2905_v8 = vsel %vm238_vm10, %v2899_v41, %v9650_v28  ;;  %v9736_v31 = vpop.permute.xlu0 %3290  ;;  %v3793_v28 = vsel %vm2474_vm11, %v9600_v47, %v9478_v0  ;;  %v3120_v41 = vld [vmem:[#allocation2 + $0x48] sm:$0xc0] }
 0x2a1   : > { %2912 = vst [vmem:[#allocation3 + $0x110] sm:$0xf] %v2904_v9  ;;  %2913 = vst [vmem:[#allocation3 + $0x118] sm:$0xf] %v2905_v8  ;;  %2616 = vrot.lane.b32.xlu1 %v2605_v12, %s8312_s14  ;;  %v3089_v9 = vsel %vm1223_vm5, %v3087_v23, %v3088_v46  ;;  %v3094_v8 = vrot.slane %v3080_v29, 2  ;;  %v3132_v12 = vrot.slane %v3120_v41, 2 }
 0x2a2   : > { %2655 = vrot.lane.b32.xlu0 %v2648_v1, %s8312_s14  ;;  %v2636_v1 = vld [vmem:[#allocation2 + $0x58] sm:$0xc0]  ;;  %v9776_v41 = vld [vmem:[#allocation2 + $0x68] sm:$0xff] }
 0x2a3   : > { %v9741_v33 = vpop.permute.xlu1 %2955  ;;  %v3134_v46 = vsel %vm1223_vm5, %v3132_v12, %v3133_v30  ;;  %v3077_v12 = vld [vmem:[#allocation2 + $0x40] sm:$0xf0] }
 0x2a4   : > { %v9750_v42 = vld [vmem:[#allocation3 + $0x38] sm:$0xff]  ;;  %v9752_v24 = vld [vmem:[#allocation3 + $0x30] sm:$0xff]  ;;  %v9754_v19 = vpop.permute.xlu0 %3692 }
 0x2a5   : > { %2665 = vrot.lane.b32.xlu1 %v2653_v61, %s8312_s14  ;;  %3801 = vst [vmem:[#allocation3 + $0x38] sm:$0xc0] %v3793_v28  ;;  %3800 = vst [vmem:[#allocation3 + $0x30] sm:$0xc0] %v3792_v22  ;;  %v3139_v28 = vrot.slane %v9734_v4, 2 }
 0x2a6   : > { %3096 = vrot.lane.b32.xlu0 %v3089_v9, %s8311_s13 }
 0x2a7   : > { %v3338_v27 = vpop.permute.xlu1 %3337 }
 0x2a8   : > { %v3344_v0 = vsel %vm3341_vm9, %v9604_v15, %v3338_v27  ;;  %v3345_v47 = vsel %vm3341_vm9, %v3338_v27, %v9668_v48  ;;  %v2329_v45 = vpop.permute.xlu0 %2328  ;;  %v9770_v15 = vmul.f32 %v8993_v34, %v2490_v20  ;;  %v2652_v48 = vrot.slane %v2636_v1, 6 }
 0x2a9   : > { %3352 = vst [vmem:[#allocation3 + $0x1c0] sm:$0x3f] %v3344_v0  ;;  %3353 = vst [vmem:[#allocation3 + $0x1c8] sm:$0x3f] %v3345_v47  ;;  %3106 = vrot.lane.b32.xlu1 %v3094_v8, %s8311_s13  ;;  %v9782_v27 = vmul.f32 %v8993_v34, %v9666_v52  ;;  %v11829_v47 = vrot.slane %v9776_v41, 6 }
 0x2aa   : > { %3141 = vrot.lane.b32.xlu0 %v3134_v46, %s8311_s13  ;;  %v2654_v29 = vsel %vm1158_vm12, %v2652_v48, %v2653_v61  ;;  %v11833_v9 = vrot.slane %v9770_v15, 2  ;;  %v2594_v61 = vld [vmem:[#allocation2 + $0x58] sm:$0x3f]  ;;  %v3093_v46 = vrot.slane %v3077_v12, 2 }
 0x2ab   : > { %v9766_v22 = vpop.permute.xlu1 %3786  ;;  %v11832_v1 = vrot.slane %v9782_v27, 2  ;;  %v2608_v48 = vrot.slane %v2594_v61, 6 }
 0x2ac   : > { %v9772_v23 = vpop.permute.xlu0 %2415  ;;  %v3095_v40 = vsel %vm1223_vm5, %v3093_v46, %v3094_v8  ;;  %v3122_v8 = vld [vmem:[#allocation2 + $0x58] sm:$0xc0] }
 0x2ad   : > { %3151 = vrot.lane.b32.xlu1 %v3139_v28, %s8311_s13  ;;  %v2609_v12 = vsel %vm1158_vm12, %v2603_v18, %v2608_v48  ;;  %v3138_v48 = vrot.slane %v3122_v8, 2 }
 0x2ae   : > { %2659 = vrot.lane.b32.xlu0 %v2654_v29, %s8312_s14  ;;  %v2682_v29 = vld [vmem:[#allocation2 + $0x48] sm:$0x3f] }
 0x2af   : > { %v2960_v30 = vpop.permute.xlu1 %2959  ;;  %v9804_v16 = vmul.f32 %v8977_v14, %v2682_v29  ;;  %v9819_v29 = vmul.f32 %v9110_v50, %v9666_v52 }
 0x2b0   : > { %v2777_v0 = vpop.permute.xlu0 %2776 }
 0x2b1   : > { %2520 = vrot.lane.b32.xlu1 %v11833_v9, %s8309_s11  ;;  %v2698_v46 = vrot.slane %v9804_v16, 2  ;;  %v3043_v9 = vrot.slane %v9819_v29, 6  ;;  %v3459_v16 = vld [vmem:[#allocation3 + $0x50] sm:$0xff] }
 0x2b2   : > { %2663 = vrot.lane.b32.xlu0 %v11829_v47, %s8312_s14  ;;  %v11831_v47 = vrot.slane %v9798_v44, 2 }
 0x2b3   : > { %v9791_v20 = vpop.permute.xlu1 %3735 }
 0x2b4   : > { %v3295_v13 = vpop.permute.xlu0 %3294 }
 0x2b5   : > { %2571 = vrot.lane.b32.xlu1 %v11832_v1, %s8309_s11 }
 0x2b6   : > { %3100 = vrot.lane.b32.xlu0 %v3095_v40, %s8311_s13 }
 0x2b7   : > { %v9801_v26 = vpop.permute.xlu1 %3790 }
 0x2b8   : > { %v9809_v61 = vpop.permute.xlu0 %3381 }
 0x2b9   : > { %2620 = vrot.lane.b32.xlu1 %v2609_v12, %s8312_s14  ;;  %v2487_v12 = vld [vmem:[#allocation2 + $0x30] sm:$0xf0] }
 0x2ba   : > { %3104 = vrot.lane.b32.xlu0 %v11831_v47, %s8311_s13  ;;  %v3140_v47 = vsel %vm1223_vm5, %v3138_v48, %v3139_v28  ;;  %v11835_v28 = vrot.slane %v9776_v41, 2 }
 0x2bb   : > { %v2327_v40 = vpop.permute.xlu1 %2326 }
 0x2bc   : > { %v2332_v43 = vsel %vm2287_vm2, %v9711_v10, %v2327_v40  ;;  %v2333_v18 = vsel %vm2287_vm2, %v2327_v40, %v2329_v45  ;;  %v9824_v3 = vpop.permute.xlu0 %2419  ;;  %v2493_v10 = vmul.f32 %v8993_v34, %v2487_v12  ;;  %v2492_v45 = vld [vmem:[#allocation2 + $0x58] sm:$0x3f]  ;;  %v3874_v12 = vrot.slane %v9782_v27, 4 }
 0x2bd   : > { %2340 = vst [vmem:[#allocation3 + $0x20] sm:$0xf] %v2332_v43  ;;  %2341 = vst [vmem:[#allocation3 + $0x28] sm:$0xf] %v2333_v18  ;;  %2712 = vrot.lane.b32.xlu1 %v2698_v46, %s8310_s12  ;;  %v2538_v43 = vld [vmem:[#allocation2 + $0x48] sm:$0xc0] }
 0x2be   : > { %3145 = vrot.lane.b32.xlu0 %v3140_v47, %s8311_s13 }
 0x2bf   : > { %v2775_v1 = vpop.permute.xlu1 %2774 }
 0x2c0   : > { %v2781_v8 = vsel %vm2778_vm7, %v9723_v37, %v2775_v1  ;;  %v2782_v40 = vsel %vm2778_vm7, %v2775_v1, %v2777_v0  ;;  %v2958_v18 = vpop.permute.xlu0 %2957  ;;  %v9845_v37 = vmul.f32 %v9038_v59, %v2492_v45  ;;  %v3741_v0 = vsel %vm2375_vm8, %v9417_v60, %v9593_v5 }
 0x2c1   : > { %2789 = vst [vmem:[#allocation3 + $0xd0] sm:$0x3f] %v2781_v8  ;;  %2790 = vst [vmem:[#allocation3 + $0xd8] sm:$0x3f] %v2782_v40  ;;  %3057 = vrot.lane.b32.xlu1 %v3043_v9, %s8307_s9  ;;  %v2963_v47 = vsel %vm2740_vm4, %v9741_v33, %v2958_v18  ;;  %v2964_v48 = vsel %vm2740_vm4, %v2958_v18, %v2960_v30  ;;  %v3742_v1 = vsel %vm2375_vm8, %v9593_v5, %v9466_v38 }
 0x2c2   : > { %2971 = vst [vmem:[#allocation3 + $0x120] sm:$0x3f] %v2963_v47  ;;  %2972 = vst [vmem:[#allocation3 + $0x128] sm:$0x3f] %v2964_v48  ;;  %3149 = vrot.lane.b32.xlu0 %v11835_v28, %s8311_s13  ;;  %v2505_v30 = vrot.slane %v2493_v10, 2  ;;  %v2544_v8 = vmul.f32 %v8993_v34, %v2538_v43  ;;  %v3698_v45 = vsel %vm2375_vm8, %v9647_v53, %v9754_v19  ;;  %v2512_v43 = vrot.slane %v9845_v37, 2 }
 0x2c3   : > { %v3293_v33 = vpop.permute.xlu1 %3292  ;;  %v3699_v60 = vsel %vm2375_vm8, %v9754_v19, %v9696_v57  ;;  %v9882_v47 = vmul.f32 %v9038_v59, %v9734_v4  ;;  %v2593_v48 = vld [vmem:[#allocation2 + $0x50] sm:$0x3f] }
 0x2c4   : > { %v3453_v40 = vld [vmem:[#allocation3 + $0x20] sm:$0xff]  ;;  %v3454_v38 = vld [vmem:[#allocation3 + $0x28] sm:$0xff]  ;;  %v3298_v5 = vsel %vm2445_vm1, %v9736_v31, %v3293_v33  ;;  %v3299_v18 = vsel %vm2445_vm1, %v3293_v33, %v3295_v13  ;;  %v9866_v10 = vpop.permute.xlu0 %3385  ;;  %v11882_v31 = vrot.slane %v9770_v15, 2  ;;  %v11883_v15 = vrot.slane %v9782_v27, 2  ;;  %v3168_v27 = vld [vmem:[#allocation2 + $0x48] sm:$0x3f] }
 0x2c5   : > { %3706 = vst [vmem:[#allocation3 + $0x20] sm:$0xf] %v3698_v45  ;;  %3707 = vst [vmem:[#allocation3 + $0x28] sm:$0xf] %v3699_v60  ;;  %3888 = vrot.lane.b32.xlu1 %v3874_v12, %s8309_s11  ;;  %v7978_v53 = vpack.c.bf16 %v9750_v42, %v3454_v38  ;;  %v7980_v57 = vpack.c.bf16 %v9752_v24, %v3453_v40  ;;  %v2556_v42 = vrot.slane %v2544_v8, 2  ;;  %v2606_v33 = vrot.slane %v2593_v48, 6 }
 0x2c6   : > { %3749 = vst [vmem:[#allocation3 + $0x20] sm:$0xf0] %v3741_v0  ;;  %3750 = vst [vmem:[#allocation3 + $0x28] sm:$0xf0] %v3742_v1  ;;  %v2507_v13 = vsel %vm1223_vm5, %v2505_v30, %v11882_v31  ;;  %v2679_v24 = vld [vmem:[#allocation2 + $0x30] sm:$0xf0] }
 0x2c7   : > { %3306 = vst [vmem:[#allocation3 + $0x1b0] sm:$0xf] %v3298_v5  ;;  %3307 = vst [vmem:[#allocation3 + $0x1b8] sm:$0xf] %v3299_v18  ;;  %2514 = vrot.lane.b32.xlu0 %v2507_v13, %s8309_s11  ;;  %7979 = vmatprep.subr.bf16.mxu0 %v7978_v53  ;;  %v9877_v19 = vpop.permute.xlu1 %3645  ;;  %v2558_v1 = vsel %vm1223_vm5, %v2556_v42, %v11883_v15  ;;  %v11834_v45 = vrot.slane %v9882_v47, 2  ;;  %v2685_v8 = vmul.f32 %v8977_v14, %v2679_v24 }
 0x2c8   : > { %7981 = vmatpush1.bf16.msra.mxu0 %v7980_v57  ;;  %v9884_v0 = vpop.permute.xlu0 %3788  ;;  %v2635_v60 = vld [vmem:[#allocation2 + $0x50] sm:$0xc0]  ;;  %v2684_v40 = vld [vmem:[#allocation2 + $0x58] sm:$0x3f]  ;;  %v3024_v5 = vld [vmem:[#allocation2 + $0x48] sm:$0xc0] }
 0x2c9   : > { %2524 = vrot.lane.b32.xlu1 %v2512_v43, %s8309_s11  ;;  %v2976_v18 = vld [vmem:[#allocation2 + $0x48] sm:$0x3f]  ;;  %v11884_v53 = vrot.slane %v9602_v39, 6  ;;  %v2649_v31 = vrot.slane %v2635_v60, 6  ;;  %v9907_v48 = vmul.f32 %v9015_v51, %v2684_v40  ;;  %v11885_v42 = vrot.slane %v9776_v41, 6 }
 0x2ca   : > { %v2697_v15 = vrot.slane %v2685_v8, 2  ;;  %v3855_v39 = vld [vmem:[#allocation2 + $0x48] sm:$0xc0] }
 0x2cb   : > { %2565 = vrot.lane.b32.xlu0 %v2558_v1, %s8309_s11  ;;  %v3740_v30 = vpop.permute.xlu1 %3739  ;;  %v2607_v57 = vsel %vm1158_vm12, %v11884_v53, %v2606_v33  ;;  %v2651_v24 = vsel %vm1158_vm12, %v2649_v31, %v11885_v42  ;;  %v3030_v1 = vmul.f32 %v9110_v50, %v3024_v5  ;;  %v2704_v40 = vrot.slane %v9907_v48, 2  ;;  %v2489_v31 = vld [vmem:[#allocation2 + $0x40] sm:$0xf0]  ;;  %v3460_v42 = vld [vmem:[#allocation3 + $0x58] sm:$0xff] }
 0x2cc   : > { %v9895_v38 = vpop.permute.xlu0 %2824  ;;  %v2699_v33 = vsel %vm1223_vm5, %v2697_v15, %v2698_v46  ;;  %v3861_v8 = vmul.f32 %v8993_v34, %v3855_v39 }
 0x2cd   : > { %2575 = vrot.lane.b32.xlu1 %v11834_v45, %s8309_s11  ;;  %v2982_v45 = vmul.f32 %v9110_v50, %v2976_v18  ;;  %v3042_v53 = vrot.slane %v3030_v1, 6  ;;  %v9939_v1 = vmul.f32 %v9192_v55, %v9734_v4 }
 0x2cf   : > { %2618 = vrot.lane.b32.xlu0 %v2607_v57, %s8312_s14  ;;  %v9904_v13 = vpop.permute.xlu1 %3837  ;;  %v2994_v57 = vrot.slane %v2982_v45, 6 }
 0x2d0   : > { %v9914_v28 = vpop.permute.xlu0 %3639 }
 0x2d1   : > { %2657 = vrot.lane.b32.xlu1 %v2651_v24, %s8312_s14 }
 0x2d3   : > { %2706 = vrot.lane.b32.xlu0 %v2699_v33, %s8310_s12  ;;  %v2418_v60 = vpop.permute.xlu1 %2417  ;;  %v2495_v33 = vmul.f32 %v9038_v59, %v2489_v31 }
 0x2d4   : > { %v2423_v5 = vsel %vm2375_vm8, %v9772_v23, %v2418_v60  ;;  %v2424_v18 = vsel %vm2375_vm8, %v2418_v60, %v9824_v3  ;;  %v3738_v24 = vpop.permute.xlu0 %3737  ;;  %v3044_v3 = vsel %vm1158_vm12, %v3042_v53, %v3043_v9  ;;  %v11886_v9 = vrot.slane %v9639_v21, 6  ;;  %v3076_v53 = vld [vmem:[#allocation2 + $0x38] sm:$0xf0] }
 0x2d5   : > { %2716 = vrot.lane.b32.xlu1 %v2704_v40, %s8310_s12  ;;  %v7982_v46 = vpack.c.bf16 %v3460_v42, %v2424_v18  ;;  %v7984_v15 = vpack.c.bf16 %v3459_v16, %v2423_v5  ;;  %v3743_v39 = vsel %vm2375_vm8, %v9791_v20, %v3738_v24  ;;  %v3744_v23 = vsel %vm2375_vm8, %v3738_v24, %v3740_v30  ;;  %v2540_v42 = vld [vmem:[#allocation2 + $0x58] sm:$0xc0]  ;;  %v3121_v24 = vld [vmem:[#allocation2 + $0x50] sm:$0xc0] }
 0x2d6   : > { %3751 = vst [vmem:[#allocation3 + $0x30] sm:$0x3f] %v3743_v39  ;;  %3752 = vst [vmem:[#allocation3 + $0x38] sm:$0x3f] %v3744_v23  ;;  %v2995_v30 = vsel %vm1158_vm12, %v11886_v9, %v2994_v57  ;;  %v3873_v60 = vrot.slane %v3861_v8, 4  ;;  %v3049_v21 = vrot.slane %v9939_v1, 6  ;;  %v2546_v23 = vmul.f32 %v9038_v59, %v2540_v42 }
 0x2d7   : > { %3051 = vrot.lane.b32.xlu0 %v3044_v3, %s8307_s9  ;;  %v3384_v45 = vpop.permute.xlu1 %3383  ;;  %7983 = vmatprep.subr.bf16.mxu0 %v7982_v46  ;;  %v2511_v57 = vrot.slane %v2495_v33, 2  ;;  %v3090_v16 = vrot.slane %v3076_v53, 2  ;;  %v3174_v3 = vmul.f32 %v9076_v2, %v3168_v27  ;;  %v2681_v53 = vld [vmem:[#allocation2 + $0x40] sm:$0xf0] }
 0x2d8   : > { %v3389_v20 = vsel %vm3341_vm9, %v9809_v61, %v3384_v45  ;;  %v3390_v29 = vsel %vm3341_vm9, %v3384_v45, %v9866_v10  ;;  %7985 = vmatpush1.bf16.msra.mxu0 %v7984_v15  ;;  %v9949_v5 = vpop.permute.xlu0 %3831  ;;  %v3875_v18 = vsel %vm2140_vm13, %v3873_v60, %v3874_v12  ;;  %v2491_v61 = vld [vmem:[#allocation2 + $0x50] sm:$0x3f]  ;;  %v11887_v15 = vrot.slane %v9798_v44, 2 }
 0x2d9   : > { %3397 = vst [vmem:[#allocation3 + $0x1d0] sm:$0xff] %v3389_v20  ;;  %3398 = vst [vmem:[#allocation3 + $0x1d8] sm:$0xff] %v3390_v29  ;;  %3006 = vrot.lane.b32.xlu1 %v2995_v30, %s8307_s9  ;;  %v9961_v31 = vmul.f32 %v2491_v61, %v9047_v56  ;;  %v2513_v12 = vsel %vm1223_vm5, %v2511_v57, %v2512_v43  ;;  %v3135_v43 = vrot.slane %v3121_v24, 2  ;;  %v11888_v20 = vrot.slane %v9776_v41, 2  ;;  %v2978_v57 = vld [vmem:[#allocation2 + $0x58] sm:$0x3f] }
 0x2da   : > { %v3092_v39 = vsel %vm1223_vm5, %v3090_v16, %v11887_v15  ;;  %v2562_v30 = vrot.slane %v2546_v23, 2  ;;  %v3186_v60 = vrot.slane %v3174_v3, 6  ;;  %v9988_v61 = vmul.f32 %v9776_v41, %v9047_v56  ;;  %v3170_v23 = vld [vmem:[#allocation2 + $0x58] sm:$0x3f]  ;;  %v2683_v3 = vld [vmem:[#allocation2 + $0x50] sm:$0x3f] }
 0x2db   : > { %3882 = vrot.lane.b32.xlu0 %v3875_v18, %s8309_s11  ;;  %v3650_v10 = vpop.permute.xlu1 %3649  ;;  %v2509_v37 = vrot.slane %v9961_v31, 2  ;;  %v3137_v44 = vsel %vm1223_vm5, %v3135_v43, %v11888_v20  ;;  %v11890_v16 = vrot.slane %v9657_v32, 6  ;;  %v2687_v15 = vmul.f32 %v9015_v51, %v2681_v53 }
 0x2dc   : > { %v2829_v8 = vpop.permute.xlu0 %2828  ;;  %v3880_v32 = vrot.slane %v9882_v47, 4 }
 0x2dd   : > { %3061 = vrot.lane.b32.xlu1 %v3049_v21, %s8307_s9  ;;  %v3187_v24 = vsel %vm1158_vm12, %v11890_v16, %v3186_v60 }
 0x2df   : > { %2518 = vrot.lane.b32.xlu0 %v2513_v12, %s8309_s11  ;;  %v9967_v46 = vpop.permute.xlu1 %3841 }
 0x2e0   : > { %v3644_v45 = vpop.permute.xlu0 %3643 }
 0x2e1   : > { %3098 = vrot.lane.b32.xlu1 %v3092_v39, %s8311_s13  ;;  %v2984_v39 = vmul.f32 %v9192_v55, %v2978_v57 }
 0x2e3   : > { %2522 = vrot.lane.b32.xlu0 %v2509_v37, %s8309_s11  ;;  %v2827_v33 = vpop.permute.xlu1 %2826  ;;  %v2998_v20 = vrot.slane %v2984_v39, 6 }
 0x2e4   : > { %v2832_v29 = vsel %vm2778_vm7, %v9895_v38, %v2827_v33  ;;  %v2833_v9 = vsel %vm2778_vm7, %v2827_v33, %v2829_v8  ;;  %v3648_v18 = vpop.permute.xlu0 %3647  ;;  %v11889_v8 = vrot.slane %v9882_v47, 2  ;;  %v2703_v33 = vrot.slane %v2687_v15, 2 }
 0x2e5   : > { %2840 = vst [vmem:[#allocation3 + $0xe0] sm:$0xff] %v2832_v29  ;;  %2841 = vst [vmem:[#allocation3 + $0xe8] sm:$0xff] %v2833_v9  ;;  %3143 = vrot.lane.b32.xlu1 %v3137_v44, %s8311_s13  ;;  %v3653_v42 = vsel %vm2287_vm2, %v9877_v19, %v3648_v18  ;;  %v3654_v38 = vsel %vm2287_vm2, %v3648_v18, %v3650_v10  ;;  %v2560_v10 = vrot.slane %v9988_v61, 2  ;;  %v11891_v15 = vrot.slane %v9673_v6, 6 }
 0x2e6   : > { %v2564_v27 = vsel %vm1223_vm5, %v2562_v30, %v11889_v8  ;;  %3661 = vst [vmem:[#allocation3 + $0x10] sm:$0x3] %v3653_v42  ;;  %3662 = vst [vmem:[#allocation3 + $0x18] sm:$0x3] %v3654_v38  ;;  %v3176_v44 = vmul.f32 %v9144_v25, %v3170_v23  ;;  %v10015_v9 = vmul.f32 %v2683_v3, %v9118_v17  ;;  %v3026_v30 = vld [vmem:[#allocation2 + $0x58] sm:$0xc0] }
 0x2e7   : > { %2569 = vrot.lane.b32.xlu0 %v2564_v27, %s8309_s11  ;;  %v3642_v12 = vpop.permute.xlu1 %3641  ;;  %v2705_v53 = vsel %vm1223_vm5, %v2703_v33, %v2704_v40  ;;  %v4789_v38 = vld [vmem:[#allocation3 + $0x38] sm:$0xff]  ;;  %v3032_v48 = vmul.f32 %v9192_v55, %v3026_v30  ;;  %v4788_v3 = vld [vmem:[#allocation3 + $0x30] sm:$0xff] }
 0x2e8   : > { %v3836_v19 = vpop.permute.xlu0 %3835  ;;  %v3651_v60 = vsel %vm2287_vm2, %v9914_v28, %v3642_v12  ;;  %v3652_v18 = vsel %vm2287_vm2, %v3642_v12, %v3644_v45  ;;  %v2999_v28 = vsel %vm1158_vm12, %v11891_v15, %v2998_v20  ;;  %v3190_v39 = vrot.slane %v3176_v44, 6  ;;  %v4787_v45 = vld [vmem:[#allocation3 + $0x28] sm:$0xff]  ;;  %v4786_v44 = vld [vmem:[#allocation3 + $0x20] sm:$0xff]  ;;  %v2539_v30 = vld [vmem:[#allocation2 + $0x50] sm:$0xc0] }
 0x2e9   : > { %3198 = vrot.lane.b32.xlu1 %v3187_v24, %s8308_s10  ;;  %v2488_v24 = vld [vmem:[#allocation2 + $0x38] sm:$0xf0]  ;;  %v2701_v40 = vrot.slane %v10015_v9, 2  ;;  %v8044_v23 = vpack.c.bf16 %v4789_v38, %v4787_v45  ;;  %v11892_v9 = vrot.slane %v9688_v35, 6 }
 0x2ea   : > { %v2494_v6 = vmul.f32 %v2488_v24, %v9047_v56  ;;  %v2545_v24 = vmul.f32 %v2539_v30, %v9047_v56  ;;  %v2680_v15 = vld [vmem:[#allocation2 + $0x38] sm:$0xf0] }
 0x2eb   : > { %2573 = vrot.lane.b32.xlu0 %v2560_v10, %s8309_s11  ;;  %v3834_v43 = vpop.permute.xlu1 %3833 }
 0x2ec   : > { %v10009_v29 = vpop.permute.xlu0 %3839  ;;  %v3844_v33 = vsel %vm2474_vm11, %v3834_v43, %v3836_v19  ;;  %v3843_v19 = vsel %vm2474_vm11, %v9949_v5, %v3834_v43  ;;  %v2508_v35 = vrot.slane %v2494_v6, 2  ;;  %v3794_v5 = vsel %vm2474_vm11, %v9766_v22, %v9884_v0 }
 0x2ed   : > { %3892 = vrot.lane.b32.xlu1 %v3880_v32, %s8309_s11  ;;  %v4785_v57 = vld [vmem:[#allocation3 + $0x18] sm:$0xff]  ;;  %v4784_v42 = vld [vmem:[#allocation3 + $0x10] sm:$0xff]  ;;  %v2559_v22 = vrot.slane %v2545_v24, 2 }
 0x2ee   : > { %v8040_v27 = vpack.c.bf16 %v4785_v57, %v3652_v18  ;;  %v8042_v16 = vpack.c.bf16 %v4784_v42, %v3651_v60  ;;  %v3795_v60 = vsel %vm2474_vm11, %v9884_v0, %v9801_v26  ;;  %v3191_v18 = vsel %vm1158_vm12, %v11892_v9, %v3190_v39 }
 0x2ef   : > { %2710 = vrot.lane.b32.xlu0 %v2705_v53, %s8310_s12  ;;  %v10024_v8 = vpop.permute.xlu1 %3920  ;;  %v3048_v53 = vrot.slane %v3032_v48, 6  ;;  %v8046_v57 = vpack.c.bf16 %v4788_v3, %v4786_v44  ;;  %v8048_v38 = vpack.c.bf16 %v3844_v33, %v3795_v60  ;;  %v2510_v1 = vsel %vm1223_vm5, %v2508_v35, %v2509_v37  ;;  %v2977_v3 = vld [vmem:[#allocation2 + $0x50] sm:$0x3f] }
 0x2f0   : > { %v10030_v12 = vpop.permute.xlu0 %3918  ;;  %8041 = vmatprep.subr.bf16.mxu1 %v8040_v27  ;;  %v3034_v27 = vmul.f32 %v9211_v7, %v9776_v41  ;;  %v2686_v0 = vmul.f32 %v2680_v15, %v9118_v17  ;;  %v2561_v37 = vsel %vm1223_vm5, %v2559_v22, %v2560_v10  ;;  %v3856_v10 = vld [vmem:[#allocation2 + $0x50] sm:$0xc0]  ;;  %v11894_v22 = vrot.slane %v9632_v62, 6  ;;  %v3979_v62 = vld [vmem:[#allocation2 + $0x38] sm:$0xf0] }
 0x2f1   : > { %3010 = vrot.lane.b32.xlu1 %v2999_v28, %s8307_s9  ;;  %8043 = vmatpush1.bf16.msra.mxu1 %v8042_v16  ;;  %v3857_v16 = vld [vmem:[#allocation2 + $0x58] sm:$0xc0]  ;;  %v3050_v26 = vsel %vm1158_vm12, %v3048_v53, %v3049_v21  ;;  %v8050_v28 = vpack.c.bf16 %v3843_v19, %v3794_v5  ;;  %v11893_v5 = vrot.slane %v9618_v11, 6 }
 0x2f2   : > { %8045 = vmatprep.subr.bf16.mxu1 %v8044_v23  ;;  %v3863_v21 = vmul.f32 %v9038_v59, %v3857_v16  ;;  %v3046_v45 = vrot.slane %v3034_v27, 6  ;;  %v3025_v23 = vld [vmem:[#allocation2 + $0x50] sm:$0xc0]  ;;  %v2700_v9 = vrot.slane %v2686_v0, 2  ;;  %v3862_v16 = vmul.f32 %v3856_v10, %v9047_v56 }
 0x2f3   : > { %2714 = vrot.lane.b32.xlu0 %v2701_v40, %s8310_s12  ;;  %v2613_v20 = vpop.permute.xlu1 %2612  ;;  %v3031_v44 = vmul.f32 %v3025_v23, %v9211_v7  ;;  %v3943_v23 = vld [vmem:[#allocation2 + $0x50] sm:$0xc0]  ;;  %v3985_v10 = vmul.f32 %v3979_v62, %v9118_v17 }
 0x2f4   : > { %v10045_v42 = vpop.permute.xlu0 %3922  ;;  %v3879_v33 = vrot.slane %v3863_v21, 4  ;;  %v2702_v19 = vsel %vm1223_vm5, %v2700_v9, %v2701_v40  ;;  %v3978_v9 = vld [vmem:[#allocation2 + $0x30] sm:$0xf0] }
 0x2f5   : > { %3202 = vrot.lane.b32.xlu1 %v3191_v18, %s8308_s10  ;;  %8047 = vmatpush1.bf16.msra.mxu1 %v8046_v57  ;;  %v2983_v18 = vmul.f32 %v2977_v3, %v9211_v7  ;;  %v3169_v57 = vld [vmem:[#allocation2 + $0x50] sm:$0x3f]  ;;  %v3045_v27 = vrot.slane %v3031_v44, 6  ;;  %v3981_v44 = vld [vmem:[#allocation2 + $0x48] sm:$0x3f] }
 0x2f6   : > { %8049 = vmatprep.subr.bf16.mxu1 %v8048_v38  ;;  %v3881_v60 = vsel %vm2140_vm13, %v3879_v33, %v3880_v32 }
 0x2f7   : > { %3055 = vrot.lane.b32.xlu0 %v3050_v26, %s8307_s9  ;;  %v10058_v43 = vpop.permute.xlu1 %3924  ;;  %v2996_v32 = vrot.slane %v2983_v18, 6  ;;  %v3175_v26 = vmul.f32 %v3169_v57, %v9257_v36  ;;  %v3047_v40 = vsel %vm1158_vm12, %v3045_v27, %v3046_v45  ;;  %v3944_v18 = vld [vmem:[#allocation2 + $0x58] sm:$0xc0] }
 0x2f8   : > { %v2611_v39 = vpop.permute.xlu0 %2610 }
 0x2f9   : > { %2516 = vrot.lane.b32.xlu1 %v2510_v1, %s8309_s11  ;;  %v2622_v48 = vsel %vm2375_vm8, %v2611_v39, %v2613_v20  ;;  %8051 = vmatpush1.bf16.msra.mxu1 %v8050_v28  ;;  %v2997_v15 = vsel %vm1158_vm12, %v11893_v5, %v2996_v32  ;;  %v3876_v1 = vrot.slane %v3862_v16, 4  ;;  %v3188_v28 = vrot.slane %v3175_v26, 6 }
 0x2fa   : > { %2630 = vst [vmem:[#allocation3 + $0x80] sm:$0xc0] %v2622_v48  ;;  %v3999_v32 = vrot.slane %v3985_v10, 4  ;;  %v4040_v10 = vmul.f32 %v9015_v51, %v9734_v4 }
 0x2fb   : > { %3059 = vrot.lane.b32.xlu0 %v3046_v45, %s8307_s9  ;;  %v3003_v31 = vpop.permute.xlu1 %3002  ;;  %v3189_v11 = vsel %vm1158_vm12, %v11894_v22, %v3188_v28  ;;  %v4039_v22 = vmul.f32 %v9776_v41, %v9118_v17 }
 0x2fc   : > { %v2615_v6 = vpop.permute.xlu0 %2614 }
 0x2fd   : > { %2567 = vrot.lane.b32.xlu1 %v2561_v37, %s8309_s11  ;;  %v2623_v30 = vsel %vm2375_vm8, %v2613_v20, %v2615_v6  ;;  %v3877_v20 = vrot.slane %v9988_v61, 4  ;;  %v3982_v37 = vld [vmem:[#allocation2 + $0x50] sm:$0x3f]  ;;  %v3942_v6 = vld [vmem:[#allocation2 + $0x48] sm:$0xc0]  ;;  %v4051_v62 = vrot.slane %v4039_v22, 4 }
 0x2fe   : > { %2631 = vst [vmem:[#allocation3 + $0x88] sm:$0xc0] %v2623_v30  ;;  %v3988_v30 = vmul.f32 %v3982_v37, %v9118_v17 }
 0x2ff   : > { %3886 = vrot.lane.b32.xlu0 %v3881_v60, %s8309_s11  ;;  %v3195_v53 = vpop.permute.xlu1 %3194  ;;  %v3878_v39 = vsel %vm2140_vm13, %v3876_v1, %v3877_v20 }
 0x300   : > { %v3001_v38 = vpop.permute.xlu0 %3000 }
 0x301   : > { %2708 = vrot.lane.b32.xlu1 %v2702_v19, %s8310_s12  ;;  %v3012_v47 = vsel %vm2778_vm7, %v3001_v38, %v3003_v31  ;;  %v3983_v19 = vld [vmem:[#allocation2 + $0x58] sm:$0x3f]  ;;  %v4000_v38 = vrot.slane %v3988_v30, 4  ;;  %v4031_v30 = vld [vmem:[#allocation2 + $0x58] sm:$0xc0] }
 0x302   : > { %3020 = vst [vmem:[#allocation3 + $0x120] sm:$0xc0] %v3012_v47  ;;  %v3980_v47 = vld [vmem:[#allocation2 + $0x40] sm:$0xf0]  ;;  %v3989_v26 = vmul.f32 %v9015_v51, %v3983_v19 }
 0x303   : > { %3890 = vrot.lane.b32.xlu0 %v3877_v20, %s8309_s11  ;;  %v10086_v35 = vpop.permute.xlu1 %3928  ;;  %v3984_v20 = vmul.f32 %v8977_v14, %v3978_v9  ;;  %v3986_v5 = vmul.f32 %v9015_v51, %v3980_v47 }
 0x304   : > { %v3193_v24 = vpop.permute.xlu0 %3192  ;;  %v4003_v28 = vrot.slane %v3989_v26, 4 }
 0x305   : > { %3053 = vrot.lane.b32.xlu1 %v3047_v40, %s8307_s9  ;;  %v3204_v61 = vsel %vm2740_vm4, %v3193_v24, %v3195_v53  ;;  %v4001_v24 = vsel %vm2140_vm13, %v3999_v32, %v4000_v38 }
 0x306   : > { %3212 = vst [vmem:[#allocation3 + $0x170] sm:$0xc0] %v3204_v61  ;;  %v3996_v61 = vrot.slane %v3984_v20, 4  ;;  %v4037_v20 = vmul.f32 %v9015_v51, %v4031_v30 }
 0x307   : > { %3008 = vrot.lane.b32.xlu0 %v2997_v15, %s8307_s9  ;;  %v10095_v21 = vpop.permute.xlu1 %2661 }
 0x308   : > { %v3005_v48 = vpop.permute.xlu0 %3004 }
 0x309   : > { %3884 = vrot.lane.b32.xlu1 %v3878_v39, %s8309_s11  ;;  %v3013_v45 = vsel %vm2778_vm7, %v3003_v31, %v3005_v48  ;;  %v4030_v48 = vld [vmem:[#allocation2 + $0x50] sm:$0xc0] }
 0x30a   : > { %3021 = vst [vmem:[#allocation3 + $0x128] sm:$0xc0] %v3013_v45  ;;  %v4002_v45 = vrot.slane %v3986_v5, 4  ;;  %v4036_v37 = vmul.f32 %v4030_v48, %v9118_v17 }
 0x30b   : > { %3200 = vrot.lane.b32.xlu0 %v3189_v11, %s8308_s10  ;;  %v10104_v0 = vpop.permute.xlu1 %3102 }
 0x30c   : > { %v3197_v3 = vpop.permute.xlu0 %3196  ;;  %v4050_v9 = vrot.slane %v4036_v37, 4 }
 0x30d   : > { %3956 = vrot.lane.b32.xlu1 %v3943_v23, %s8312_s14  ;;  %v3205_v33 = vsel %vm2740_vm4, %v3195_v53, %v3197_v3  ;;  %v3987_v53 = vmul.f32 %v8977_v14, %v3981_v44  ;;  %v4029_v23 = vld [vmem:[#allocation2 + $0x48] sm:$0xc0]  ;;  %v4004_v3 = vsel %vm2140_vm13, %v4002_v45, %v4003_v28 }
 0x30e   : > { %3213 = vst [vmem:[#allocation3 + $0x178] sm:$0xc0] %v3205_v33  ;;  %v4038_v33 = vmul.f32 %v8977_v14, %v9666_v52  ;;  %v4035_v44 = vmul.f32 %v8977_v14, %v4029_v23 }
 0x30f   : > { %3954 = vrot.lane.b32.xlu0 %v3942_v6, %s8312_s14  ;;  %v10109_v31 = vpop.permute.xlu1 %3147  ;;  %v3997_v16 = vrot.slane %v3987_v53, 4  ;;  %v4052_v53 = vsel %vm2140_vm13, %v4050_v9, %v4051_v62 }
 0x310   : > { %v10112_v60 = vpop.permute.xlu0 %3926  ;;  %v4047_v19 = vrot.slane %v4035_v44, 4  ;;  %v4082_v44 = vld [vmem:[#allocation2 + $0x28] sm:$0xfc] }
 0x311   : > { %3960 = vrot.lane.b32.xlu1 %v9666_v52, %s8312_s14  ;;  %v3998_v1 = vsel %vm2140_vm13, %v3996_v61, %v3997_v16  ;;  %v4081_v61 = vld [vmem:[#allocation2 + $0x20] sm:$0xfc] }
 0x312   : > { %v4087_v48 = vmul.f32 %v4081_v61, %v9211_v7 }
 0x313   : > { %3958 = vrot.lane.b32.xlu0 %v3944_v18, %s8312_s14  ;;  %v10119_v57 = vpop.permute.xlu1 %2616  ;;  %v4048_v18 = vrot.slane %v4038_v33, 4 }
 0x314   : > { %v10122_v27 = vpop.permute.xlu0 %2655  ;;  %v4099_v9 = vrot.slane %v4087_v48, 6 }
 0x315   : > { %3964 = vrot.lane.b32.xlu1 %v9734_v4, %s8312_s14  ;;  %v4049_v26 = vsel %vm2140_vm13, %v4047_v19, %v4048_v18  ;;  %v4054_v4 = vrot.slane %v4040_v10, 4 }
 0x317   : > { %3962 = vrot.lane.b32.xlu0 %v9776_v41, %s8312_s14  ;;  %v2666_v40 = vpop.permute.xlu1 %2665 }
 0x318   : > { %v10131_v15 = vpop.permute.xlu0 %3096 }
 0x319   : > { %4007 = vrot.lane.b32.xlu1 %v4001_v24, %s8310_s12  ;;  %v4053_v24 = vrot.slane %v4037_v20, 4 }
 0x31b   : > { %4005 = vrot.lane.b32.xlu0 %v3998_v1, %s8310_s12  ;;  %v3107_v39 = vpop.permute.xlu1 %3106  ;;  %v4083_v1 = vld [vmem:[#allocation2 + $0x30] sm:$0xf] }
 0x31c   : > { %v10138_v11 = vpop.permute.xlu0 %3141  ;;  %v4089_v45 = vmul.f32 %v9110_v50, %v4083_v1 }
 0x31d   : > { %4011 = vrot.lane.b32.xlu1 %v3997_v16, %s8310_s12 }
 0x31e   : > { %v4101_v10 = vrot.slane %v4089_v45, 6  ;;  %v4134_v45 = vld [vmem:[#allocation2 + $0x18] sm:$0x3] }
 0x31f   : > { %4009 = vrot.lane.b32.xlu0 %v4004_v3, %s8310_s12  ;;  %v10146_v6 = vpop.permute.xlu1 %3151  ;;  %v4085_v3 = vld [vmem:[#allocation2 + $0x40] sm:$0xf] }
 0x320   : > { %v10149_v41 = vpop.permute.xlu0 %2659 }
 0x321   : > { %4015 = vrot.lane.b32.xlu1 %v4003_v28, %s8310_s12  ;;  %v4080_v28 = vld [vmem:[#allocation2 + $0x18] sm:$0xfc] }
 0x322   : > { %v4086_v23 = vmul.f32 %v9110_v50, %v4080_v28  ;;  %v4132_v28 = vld [vmem:[#allocation2 + $0x8] sm:$0xff] }
 0x323   : > { %4013 = vrot.lane.b32.xlu0 %v4000_v38, %s8310_s12  ;;  %v10155_v52 = vpop.permute.xlu1 %2520 }
 0x324   : > { %v2664_v47 = vpop.permute.xlu0 %2663  ;;  %v4098_v20 = vrot.slane %v4086_v23, 6  ;;  %v4144_v23 = vrot.slane %v4132_v28, 2 }
 0x325   : > { %4058 = vrot.lane.b32.xlu1 %v4052_v53, %s8310_s12  ;;  %v2669_v32 = vsel %vm2375_vm8, %v10095_v21, %v2664_v47  ;;  %v2670_v16 = vsel %vm2375_vm8, %v2664_v47, %v2666_v40  ;;  %v4055_v21 = vsel %vm2140_vm13, %v4053_v24, %v4054_v4  ;;  %v4091_v53 = vmul.f32 %v9192_v55, %v4085_v3 }
 0x326   : > { %2677 = vst [vmem:[#allocation3 + $0xb0] sm:$0x3] %v2669_v32  ;;  %2678 = vst [vmem:[#allocation3 + $0xb8] sm:$0x3] %v2670_v16  ;;  %v4146_v3 = vrot.slane %v4134_v45, 2 }
 0x327   : > { %4056 = vrot.lane.b32.xlu0 %v4049_v26, %s8310_s12  ;;  %v10165_v38 = vpop.permute.xlu1 %2571  ;;  %v4105_v32 = vrot.slane %v4091_v53, 6  ;;  %v4135_v53 = vld [vmem:[#allocation2 + $0x20] sm:$0x3]  ;;  %v4176_v45 = vld [vmem:[#allocation2 + $0x18] sm:$0xfc] }
 0x328   : > { %v10167_v5 = vpop.permute.xlu0 %3100  ;;  %v4188_v51 = vrot.slane %v4176_v45, 2 }
 0x329   : > { %4062 = vrot.lane.b32.xlu1 %v4048_v18, %s8310_s12  ;;  %v4084_v18 = vld [vmem:[#allocation2 + $0x38] sm:$0xf] }
 0x32b   : > { %4060 = vrot.lane.b32.xlu0 %v4055_v21, %s8310_s12  ;;  %v10172_v40 = vpop.permute.xlu1 %2620 }
 0x32c   : > { %v3105_v22 = vpop.permute.xlu0 %3104 }
 0x32d   : > { %4066 = vrot.lane.b32.xlu1 %v4054_v4, %s8310_s12  ;;  %v3110_v37 = vsel %vm238_vm10, %v10104_v0, %v3105_v22  ;;  %v3111_v33 = vsel %vm238_vm10, %v3105_v22, %v3107_v39  ;;  %v4088_v0 = vmul.f32 %v9192_v55, %v4082_v44  ;;  %v4090_v39 = vmul.f32 %v4084_v18, %v9211_v7  ;;  %v4131_v22 = vld [vmem:[#allocation2] sm:$0xff]  ;;  %v4136_v44 = vld [vmem:[#allocation2 + $0x28] sm:$0x3]  ;;  %v4133_v18 = vld [vmem:[#allocation2 + $0x10] sm:$0xff] }
 0x32e   : > { %3118 = vst [vmem:[#allocation3 + $0x160] sm:$0xf] %v3110_v37  ;;  %3119 = vst [vmem:[#allocation3 + $0x168] sm:$0xf] %v3111_v33  ;;  %v4143_v33 = vrot.slane %v4131_v22, 2 }
 0x32f   : > { %4064 = vrot.lane.b32.xlu0 %v4051_v62, %s8310_s12  ;;  %v10182_v30 = vpop.permute.xlu1 %2712  ;;  %v4102_v62 = vsel %vm1158_vm12, %v4098_v20, %v4101_v10  ;;  %v4100_v26 = vrot.slane %v4088_v0, 6  ;;  %v4103_v61 = vrot.slane %v4090_v39, 6  ;;  %v4145_v39 = vrot.slane %v4133_v18, 2 }
 0x330   : > { %v10185_v19 = vpop.permute.xlu0 %3145 }
 0x331   : > { %4109 = vrot.lane.b32.xlu1 %v4099_v9, %s8307_s9  ;;  %v4106_v21 = vsel %vm1158_vm12, %v4100_v26, %v4105_v32  ;;  %v4148_v32 = vrot.slane %v4135_v53, 2  ;;  %v4181_v53 = vld [vmem:[#allocation2 + $0x40] sm:$0xf] }
 0x333   : > { %4107 = vrot.lane.b32.xlu0 %v4098_v20, %s8307_s9  ;;  %v10191_v47 = vpop.permute.xlu1 %3057  ;;  %v4150_v20 = vrot.slane %v4136_v44, 2 }
 0x334   : > { %v3150_v16 = vpop.permute.xlu0 %3149 }
 0x335   : > { %4113 = vrot.lane.b32.xlu1 %v4102_v62, %s8307_s9  ;;  %v3155_v4 = vsel %vm238_vm10, %v10109_v31, %v3150_v16  ;;  %v3156_v24 = vsel %vm238_vm10, %v3150_v16, %v10146_v6  ;;  %v4104_v31 = vsel %vm1158_vm12, %v4099_v9, %v4103_v61  ;;  %v4147_v9 = vsel %vm1223_vm5, %v4143_v33, %v4146_v3  ;;  %v4180_v62 = vld [vmem:[#allocation2 + $0x38] sm:$0xf] }
 0x336   : > { %3163 = vst [vmem:[#allocation3 + $0x170] sm:$0x3f] %v3155_v4  ;;  %3164 = vst [vmem:[#allocation3 + $0x178] sm:$0x3f] %v3156_v24  ;;  %v4179_v4 = vld [vmem:[#allocation2 + $0x30] sm:$0xf]  ;;  %v4151_v24 = vsel %vm1223_vm5, %v4145_v39, %v4150_v20 }
 0x337   : > { %4111 = vrot.lane.b32.xlu0 %v4100_v26, %s8307_s9  ;;  %v10200_v1 = vpop.permute.xlu1 %3888  ;;  %v4177_v26 = vld [vmem:[#allocation2 + $0x20] sm:$0xfc]  ;;  %v4192_v61 = vrot.slane %v4180_v62, 2  ;;  %v4178_v20 = vld [vmem:[#allocation2 + $0x28] sm:$0xfc]  ;;  %v4195_v62 = vrot.slane %v4181_v53, 2  ;;  %v4227_v53 = vmul.f32 %v9076_v2, %v4131_v22 }
 0x338   : > { %v4191_v3 = vrot.slane %v4177_v26, 2 }
 0x339   : > { %v10203_v48 = vpop.permute.xlu0 %2514  ;;  %4117 = vrot.lane.b32.xlu1 %v4106_v21, %s8307_s9  ;;  %v4239_v22 = vrot.slane %v4227_v53, 6 }
 0x33b   : > { %4115 = vrot.lane.b32.xlu0 %v4104_v31, %s8307_s9  ;;  %v10208_v6 = vpop.permute.xlu1 %2524  ;;  %v4149_v31 = vsel %vm1223_vm5, %v4144_v23, %v4148_v32  ;;  %v4194_v32 = vrot.slane %v4178_v20, 2 }
 0x33d   : > { %v10210_v37 = vpop.permute.xlu0 %2565  ;;  %4154 = vrot.lane.b32.xlu1 %v4144_v23, %s8311_s13 }
 0x33f   : > { %4152 = vrot.lane.b32.xlu0 %v4143_v33, %s8311_s13  ;;  %v10214_v10 = vpop.permute.xlu1 %2575  ;;  %v4189_v33 = vrot.slane %v4179_v4, 2  ;;  %v4224_v4 = vld [vmem:[#allocation2 + $0x18] sm:$0x3] }
 0x341   : > { %v10217_v0 = vpop.permute.xlu0 %2618  ;;  %4158 = vrot.lane.b32.xlu1 %v4147_v9, %s8311_s13  ;;  %v4193_v9 = vsel %vm1223_vm5, %v4191_v3, %v4192_v61 }
 0x343   : > { %4156 = vrot.lane.b32.xlu0 %v4145_v39, %s8311_s13  ;;  %v10221_v16 = vpop.permute.xlu1 %2657  ;;  %v4190_v39 = vsel %vm1223_vm5, %v4188_v51, %v4189_v33  ;;  %v4230_v51 = vmul.f32 %v9076_v2, %v4224_v4 }
 0x345   : > { %v10224_v21 = vpop.permute.xlu0 %2706  ;;  %4162 = vrot.lane.b32.xlu1 %v4151_v24, %s8311_s13  ;;  %v4196_v24 = vsel %vm1223_vm5, %v4194_v32, %v4195_v62 }
 0x347   : > { %4160 = vrot.lane.b32.xlu0 %v4149_v31, %s8311_s13  ;;  %v10229_v44 = vpop.permute.xlu1 %2716  ;;  %v4228_v31 = vmul.f32 %v4132_v28, %v9257_v36 }
 0x349   : > { %v10232_v14 = vpop.permute.xlu0 %3051  ;;  %4199 = vrot.lane.b32.xlu1 %v4193_v9, %s8311_s13  ;;  %v4226_v9 = vld [vmem:[#allocation2 + $0x28] sm:$0x3]  ;;  %v4240_v20 = vrot.slane %v4228_v31, 6 }
 0x34a   : > { %v4232_v4 = vmul.f32 %v9144_v25, %v4226_v9 }
 0x34b   : > { %4197 = vrot.lane.b32.xlu0 %v4190_v39, %s8311_s13  ;;  %v10237_v23 = vpop.permute.xlu1 %3006  ;;  %v4225_v39 = vld [vmem:[#allocation2 + $0x20] sm:$0x3] }
 0x34c   : > { %v4231_v17 = vmul.f32 %v4225_v39, %v9257_v36  ;;  %v4246_v9 = vrot.slane %v4232_v4, 6  ;;  %v4275_v39 = vld [vmem:[#allocation2 + $0x30] sm:$0xf] }
 0x34d   : > { %v10239_v26 = vpop.permute.xlu0 %3882  ;;  %4203 = vrot.lane.b32.xlu1 %v4189_v33, %s8311_s13  ;;  %v4281_v4 = vmul.f32 %v9076_v2, %v4275_v39 }
 0x34f   : > { %4201 = vrot.lane.b32.xlu0 %v4196_v24, %s8311_s13  ;;  %v10244_v45 = vpop.permute.xlu1 %3061  ;;  %v4242_v24 = vrot.slane %v4230_v51, 6 }
 0x351   : > { %v10248_v3 = vpop.permute.xlu0 %2518  ;;  %4207 = vrot.lane.b32.xlu1 %v4195_v62, %s8311_s13 }
 0x353   : > { %4205 = vrot.lane.b32.xlu0 %v4192_v61, %s8311_s13  ;;  %v3099_v33 = vpop.permute.xlu1 %3098  ;;  %v4229_v61 = vmul.f32 %v9144_v25, %v4133_v18  ;;  %v4243_v18 = vsel %vm1158_vm12, %v4239_v22, %v4242_v24 }
 0x354   : > { %v3108_v32 = vsel %vm238_vm10, %v10131_v15, %v3099_v33  ;;  %v3109_v28 = vsel %vm238_vm10, %v3099_v33, %v10167_v5 }
 0x355   : > { %3116 = vst [vmem:[#allocation3 + $0x150] sm:$0xfc] %v3108_v32  ;;  %3117 = vst [vmem:[#allocation3 + $0x158] sm:$0xfc] %v3109_v28  ;;  %v2523_v62 = vpop.permute.xlu0 %2522  ;;  %4250 = vrot.lane.b32.xlu1 %v4240_v20, %s8308_s10  ;;  %v4241_v33 = vrot.slane %v4229_v61, 6  ;;  %v4244_v32 = vrot.slane %v4231_v17, 6 }
 0x356   : > { %v2528_v31 = vsel %vm2287_vm2, %v10155_v52, %v2523_v62  ;;  %v2529_v15 = vsel %vm2287_vm2, %v2523_v62, %v10208_v6  ;;  %v4273_v52 = vld [vmem:[#allocation2 + $0x20] sm:$0xfc]  ;;  %v4272_v28 = vld [vmem:[#allocation2 + $0x18] sm:$0xfc] }
 0x357   : > { %2536 = vst [vmem:[#allocation3 + $0x70] sm:$0xf] %v2528_v31  ;;  %2537 = vst [vmem:[#allocation3 + $0x78] sm:$0xf] %v2529_v15  ;;  %4248 = vrot.lane.b32.xlu0 %v4239_v22, %s8308_s10  ;;  %v3144_v5 = vpop.permute.xlu1 %3143  ;;  %v4247_v24 = vsel %vm1158_vm12, %v4241_v33, %v4246_v9  ;;  %v4278_v22 = vmul.f32 %v9076_v2, %v4272_v28  ;;  %v4277_v31 = vld [vmem:[#allocation2 + $0x40] sm:$0xf]  ;;  %v4245_v15 = vsel %vm1158_vm12, %v4240_v20, %v4244_v32 }
 0x358   : > { %v3153_v51 = vsel %vm238_vm10, %v10138_v11, %v3144_v5  ;;  %v3154_v53 = vsel %vm238_vm10, %v3144_v5, %v10185_v19  ;;  %v4279_v19 = vmul.f32 %v4273_v52, %v9257_v36  ;;  %v4274_v5 = vld [vmem:[#allocation2 + $0x28] sm:$0xfc]  ;;  %v4293_v9 = vrot.slane %v4281_v4, 6 }
 0x359   : > { %3161 = vst [vmem:[#allocation3 + $0x160] sm:$0xf0] %v3153_v51  ;;  %3162 = vst [vmem:[#allocation3 + $0x168] sm:$0xf0] %v3154_v53  ;;  %v10271_v6 = vpop.permute.xlu0 %2569  ;;  %4254 = vrot.lane.b32.xlu1 %v4243_v18, %s8308_s10  ;;  %v4276_v51 = vld [vmem:[#allocation2 + $0x38] sm:$0xf]  ;;  %v4283_v52 = vmul.f32 %v9144_v25, %v4277_v31 }
 0x35a   : > { %v4291_v18 = vrot.slane %v4279_v19, 6  ;;  %v4282_v20 = vmul.f32 %v4276_v51, %v9257_v36  ;;  %v4323_v51 = vld [vmem:[#allocation2 + $0x48] sm:$0xc0] }
 0x35b   : > { %4252 = vrot.lane.b32.xlu0 %v4241_v33, %s8308_s10  ;;  %v10275_v11 = vpop.permute.xlu1 %3198  ;;  %v4297_v28 = vrot.slane %v4283_v52, 6 }
 0x35c   : > { %v4295_v4 = vrot.slane %v4282_v20, 6 }
 0x35d   : > { %v2574_v62 = vpop.permute.xlu0 %2573  ;;  %4258 = vrot.lane.b32.xlu1 %v4247_v24, %s8308_s10 }
 0x35e   : > { %v2579_v17 = vsel %vm2287_vm2, %v10165_v38, %v2574_v62  ;;  %v2580_v61 = vsel %vm2287_vm2, %v2574_v62, %v10214_v10  ;;  %v4290_v38 = vrot.slane %v4278_v22, 6  ;;  %v4280_v10 = vmul.f32 %v9144_v25, %v4274_v5 }
 0x35f   : > { %2587 = vst [vmem:[#allocation3 + $0x80] sm:$0x3f] %v2579_v17  ;;  %2588 = vst [vmem:[#allocation3 + $0x88] sm:$0x3f] %v2580_v61  ;;  %4256 = vrot.lane.b32.xlu0 %v4245_v15, %s8308_s10  ;;  %v10288_v53 = vpop.permute.xlu1 %3892  ;;  %v3932_v62 = vsel %vm2375_vm8, %v10058_v43, %v10112_v60  ;;  %v3933_v22 = vsel %vm2375_vm8, %v10112_v60, %v10086_v35  ;;  %v4324_v60 = vld [vmem:[#allocation2 + $0x50] sm:$0xc0] }
 0x360   : > { %v4294_v32 = vsel %vm1158_vm12, %v4290_v38, %v4293_v9  ;;  %v4292_v24 = vrot.slane %v4280_v10, 6  ;;  %v4330_v9 = vmul.f32 %v4324_v60, %v9211_v7  ;;  %v10329_v10 = vld [vmem:[#allocation2 + $0x60] sm:$0xff]  ;;  %v4368_v60 = vld [vmem:[#allocation2 + $0x48] sm:$0x3f] }
 0x361   : > { %v10291_v33 = vpop.permute.xlu0 %2710  ;;  %4301 = vrot.lane.b32.xlu1 %v4291_v18, %s8308_s10 }
 0x362   : > { %v4298_v35 = vsel %vm1158_vm12, %v4292_v24, %v4297_v28 }
 0x363   : > { %4299 = vrot.lane.b32.xlu0 %v4290_v38, %s8308_s10  ;;  %v10297_v39 = vpop.permute.xlu1 %3010 }
 0x365   : > { %v2715_v19 = vpop.permute.xlu0 %2714  ;;  %4305 = vrot.lane.b32.xlu1 %v4294_v32, %s8308_s10 }
 0x366   : > { %v10307_v31 = vld [vmem:[#allocation3 + $0x80] sm:$0xff]  ;;  %v10309_v17 = vld [vmem:[#allocation3 + $0x88] sm:$0xff]  ;;  %v2720_v61 = vsel %vm2474_vm11, %v10182_v30, %v2715_v19  ;;  %v2721_v15 = vsel %vm2474_vm11, %v2715_v19, %v10229_v44  ;;  %v4296_v30 = vsel %vm1158_vm12, %v4291_v18, %v4295_v4  ;;  %v4329_v18 = vmul.f32 %v9110_v50, %v4323_v51 }
 0x367   : > { %3940 = vst [vmem:[#allocation3 + $0x80] sm:$0x3f] %v3932_v62  ;;  %3941 = vst [vmem:[#allocation3 + $0x88] sm:$0x3f] %v3933_v22  ;;  %4303 = vrot.lane.b32.xlu0 %v4292_v24, %s8308_s10  ;;  %v10316_v43 = vpop.permute.xlu1 %3202  ;;  %v4325_v19 = vld [vmem:[#allocation2 + $0x58] sm:$0xc0]  ;;  %v3846_v51 = vsel %vm2474_vm11, %v10009_v29, %v9967_v46 }
 0x368   : > { %2728 = vst [vmem:[#allocation3 + $0xc0] sm:$0xf] %v2720_v61  ;;  %2729 = vst [vmem:[#allocation3 + $0xc8] sm:$0xf] %v2721_v15  ;;  %v10344_v62 = vld [vmem:[#allocation2 + $0x70] sm:$0xff]  ;;  %v4331_v22 = vmul.f32 %v9192_v55, %v4325_v19  ;;  %v10350_v61 = vld [vmem:[#allocation2 + $0x68] sm:$0xff]  ;;  %v3930_v19 = vsel %vm2375_vm8, %v10030_v12, %v10024_v8 }
 0x369   : > { %v10319_v5 = vpop.permute.xlu0 %3055  ;;  %4309 = vrot.lane.b32.xlu1 %v4298_v35, %s8308_s10  ;;  %v4366_v15 = vld [vmem:[#allocation2 + $0x38] sm:$0xf0]  ;;  %v4378_v46 = vrot.slane %v4368_v60, 4 }
 0x36b   : > { %4307 = vrot.lane.b32.xlu0 %v4296_v30, %s8308_s10  ;;  %v2517_v44 = vpop.permute.xlu1 %2516  ;;  %v3845_v30 = vsel %vm2474_vm11, %v9904_v13, %v10009_v29  ;;  %v4333_v13 = vmul.f32 %v10350_v61, %v9211_v7 }
 0x36c   : > { %v2526_v52 = vsel %vm2287_vm2, %v10203_v48, %v2517_v44  ;;  %v2527_v38 = vsel %vm2287_vm2, %v2517_v44, %v10248_v3  ;;  %v4332_v3 = vmul.f32 %v9110_v50, %v10329_v10 }
 0x36d   : > { %2534 = vst [vmem:[#allocation3 + $0x60] sm:$0xfc] %v2526_v52  ;;  %2535 = vst [vmem:[#allocation3 + $0x68] sm:$0xfc] %v2527_v38  ;;  %v3060_v20 = vpop.permute.xlu0 %3059  ;;  %4343 = vrot.lane.b32.xlu1 %v4330_v9, %s8307_s9  ;;  %v4365_v52 = vld [vmem:[#allocation2 + $0x30] sm:$0xf0] }
 0x36e   : > { %v3065_v32 = vsel %vm2778_vm7, %v10191_v47, %v3060_v20  ;;  %v3066_v28 = vsel %vm2778_vm7, %v3060_v20, %v10244_v45  ;;  %v10346_v47 = vld [vmem:[#allocation2 + $0x50] sm:$0x3f] }
 0x36f   : > { %3073 = vst [vmem:[#allocation3 + $0x150] sm:$0x3] %v3065_v32  ;;  %3074 = vst [vmem:[#allocation3 + $0x158] sm:$0x3] %v3066_v28  ;;  %4341 = vrot.lane.b32.xlu0 %v4329_v18, %s8307_s9  ;;  %v2568_v48 = vpop.permute.xlu1 %2567  ;;  %v4381_v35 = vrot.slane %v10346_v47, 4  ;;  %v4380_v32 = vrot.slane %v4366_v15, 4 }
 0x370   : > { %v2577_v24 = vsel %vm2287_vm2, %v10210_v37, %v2568_v48  ;;  %v2578_v4 = vsel %vm2287_vm2, %v2568_v48, %v10271_v6  ;;  %v4334_v6 = vmul.f32 %v9192_v55, %v10344_v62  ;;  %v4370_v28 = vld [vmem:[#allocation2 + $0x58] sm:$0x3f]  ;;  %v3931_v48 = vsel %vm2375_vm8, %v10024_v8, %v10045_v42 }
 0x371   : > { %2585 = vst [vmem:[#allocation3 + $0x70] sm:$0xf0] %v2577_v24  ;;  %2586 = vst [vmem:[#allocation3 + $0x78] sm:$0xf0] %v2578_v4  ;;  %v3887_v45 = vpop.permute.xlu0 %3886  ;;  %4347 = vrot.lane.b32.xlu1 %v4332_v3, %s8307_s9  ;;  %v2625_v8 = vsel %vm2375_vm8, %v10217_v0, %v10172_v40  ;;  %v2624_v40 = vsel %vm2375_vm8, %v10119_v57, %v10217_v0  ;;  %v4411_v0 = vld [vmem:[#allocation2 + $0x50] sm:$0xc0] }
 0x372   : > { %v7990_v60 = vpack.c.bf16 %v2625_v8, %v10309_v17 }
 0x373   : > { %4345 = vrot.lane.b32.xlu0 %v4331_v22, %s8307_s9  ;;  %v2709_v37 = vpop.permute.xlu1 %2708 }
 0x374   : > { %v2718_v44 = vsel %vm2474_vm11, %v10224_v21, %v2709_v37  ;;  %v2719_v9 = vsel %vm2474_vm11, %v2709_v37, %v10291_v33  ;;  %v3462_v38 = vld [vmem:[#allocation3 + $0x68] sm:$0xff]  ;;  %v3461_v20 = vld [vmem:[#allocation3 + $0x60] sm:$0xff]  ;;  %v4382_v21 = vsel %vm2140_vm13, %v4380_v32, %v4381_v35  ;;  %v4377_v33 = vrot.slane %v4365_v52, 4 }
 0x375   : > { %2726 = vst [vmem:[#allocation3 + $0xb0] sm:$0xfc] %v2718_v44  ;;  %2727 = vst [vmem:[#allocation3 + $0xb8] sm:$0xfc] %v2719_v9  ;;  %v3891_v18 = vpop.permute.xlu0 %3890  ;;  %4351 = vrot.lane.b32.xlu1 %v4334_v6, %s8307_s9  ;;  %v4367_v6 = vld [vmem:[#allocation2 + $0x40] sm:$0xf0]  ;;  %v2667_v32 = vsel %vm2375_vm8, %v10122_v27, %v10221_v16 }
 0x376   : > { %3854 = vst [vmem:[#allocation3 + $0x68] sm:$0x3] %v3846_v51  ;;  %3853 = vst [vmem:[#allocation3 + $0x60] sm:$0x3] %v3845_v30  ;;  %v3896_v4 = vsel %vm2287_vm2, %v10200_v1, %v3891_v18  ;;  %v3897_v22 = vsel %vm2287_vm2, %v3891_v18, %v10288_v53  ;;  %v4379_v42 = vsel %vm2140_vm13, %v4377_v33, %v4378_v46  ;;  %v4384_v1 = vrot.slane %v4370_v28, 4  ;;  %v3476_v28 = vld [vmem:[#allocation3 + $0xd8] sm:$0xff] }
 0x377   : > { %4349 = vrot.lane.b32.xlu0 %v4333_v13, %s8307_s9  ;;  %v10370_v29 = vpop.permute.xlu1 %3053  ;;  %v4383_v44 = vrot.slane %v4367_v6, 4  ;;  %v4426_v18 = vrot.slane %v10350_v61, 4  ;;  %v3474_v13 = vld [vmem:[#allocation3 + $0xc8] sm:$0xff]  ;;  %v4425_v33 = vrot.slane %v4411_v0, 4 }
 0x378   : > { %v3463_v3 = vld [vmem:[#allocation3 + $0x70] sm:$0xff]  ;;  %v3464_v24 = vld [vmem:[#allocation3 + $0x78] sm:$0xff] }
 0x379   : > { %3938 = vst [vmem:[#allocation3 + $0x70] sm:$0xf0] %v3930_v19  ;;  %3939 = vst [vmem:[#allocation3 + $0x78] sm:$0xf0] %v3931_v48  ;;  %v10385_v15 = vpop.permute.xlu0 %3008  ;;  %4388 = vrot.lane.b32.xlu1 %v4382_v21, %s8311_s13  ;;  %v7986_v12 = vpack.c.bf16 %v3464_v24, %v3462_v38  ;;  %v7988_v37 = vpack.c.bf16 %v3463_v3, %v3461_v20  ;;  %v4385_v17 = vsel %vm2140_vm13, %v4383_v44, %v4384_v1  ;;  %v3478_v24 = vld [vmem:[#allocation3 + $0xe8] sm:$0xff] }
 0x37a   : > { %3904 = vst [vmem:[#allocation3 + $0x70] sm:$0xf] %v3896_v4  ;;  %3905 = vst [vmem:[#allocation3 + $0x78] sm:$0xf] %v3897_v22  ;;  %v4423_v19 = vrot.slane %v10329_v10, 4  ;;  %v7998_v3 = vpack.c.bf16 %v3476_v28, %v3474_v13  ;;  %v4427_v4 = vsel %vm2140_vm13, %v4425_v33, %v4426_v18  ;;  %v4429_v44 = vrot.slane %v10344_v62, 4 }
 0x37b   : > { %4386 = vrot.lane.b32.xlu0 %v4379_v42, %s8311_s13  ;;  %7987 = vmatprep.subr.bf16.mxu0 %v7986_v12  ;;  %v3885_v53 = vpop.permute.xlu1 %3884  ;;  %v3482_v13 = vld [vmem:[#allocation3 + $0x108] sm:$0xff]  ;;  %v3481_v28 = vld [vmem:[#allocation3 + $0x100] sm:$0xff] }
 0x37c   : > { %v3894_v30 = vsel %vm2287_vm2, %v10239_v26, %v3885_v53  ;;  %v3895_v51 = vsel %vm2287_vm2, %v3885_v53, %v3887_v45  ;;  %7989 = vmatpush1.bf16.msra.mxu0 %v7988_v37  ;;  %v3472_v9 = vld [vmem:[#allocation3 + $0xb8] sm:$0xff]  ;;  %v2668_v26 = vsel %vm2375_vm8, %v10221_v16, %v10149_v41  ;;  %v7992_v45 = vpack.c.bf16 %v2624_v40, %v10307_v31  ;;  %v3471_v57 = vld [vmem:[#allocation3 + $0xb0] sm:$0xff]  ;;  %v3473_v16 = vld [vmem:[#allocation3 + $0xc0] sm:$0xff] }
 0x37d   : > { %3902 = vst [vmem:[#allocation3 + $0x60] sm:$0xfc] %v3894_v30  ;;  %3903 = vst [vmem:[#allocation3 + $0x68] sm:$0xfc] %v3895_v51  ;;  %v10400_v52 = vpop.permute.xlu0 %3200  ;;  %4392 = vrot.lane.b32.xlu1 %v4378_v46, %s8311_s13  ;;  %7991 = vmatprep.subr.bf16.mxu0 %v7990_v60  ;;  %v7994_v20 = vpack.c.bf16 %v3472_v9, %v2668_v26  ;;  %v4410_v41 = vld [vmem:[#allocation2 + $0x48] sm:$0xc0]  ;;  %v7996_v21 = vpack.c.bf16 %v3471_v57, %v2667_v32 }
 0x37e   : > { %v4422_v22 = vrot.slane %v4410_v41, 4  ;;  %v3480_v51 = vld [vmem:[#allocation3 + $0xf8] sm:$0xff]  ;;  %v3477_v26 = vld [vmem:[#allocation3 + $0xe0] sm:$0xff]  ;;  %v3483_v41 = vld [vmem:[#allocation3 + $0x110] sm:$0xff] }
 0x37f   : > { %4390 = vrot.lane.b32.xlu0 %v4385_v17, %s8311_s13  ;;  %v3957_v38 = vpop.permute.xlu1 %3956  ;;  %v8002_v40 = vpack.c.bf16 %v3480_v51, %v3478_v24  ;;  %v3486_v24 = vld [vmem:[#allocation3 + $0x128] sm:$0xff] }
 0x380   : > { %7993 = vmatpush1.bf16.msra.mxu0 %v7992_v45  ;;  %v4424_v60 = vsel %vm2140_vm13, %v4422_v22, %v4423_v19  ;;  %v3484_v45 = vld [vmem:[#allocation3 + $0x118] sm:$0xff] }
 0x381   : > { %v3955_v46 = vpop.permute.xlu0 %3954  ;;  %4396 = vrot.lane.b32.xlu1 %v4384_v1, %s8311_s13  ;;  %7995 = vmatprep.subr.bf16.mxu0 %v7994_v20  ;;  %v4797_v27 = vld [vmem:[#allocation3 + $0x78] sm:$0xff]  ;;  %v4796_v6 = vld [vmem:[#allocation3 + $0x70] sm:$0xff]  ;;  %v4412_v1 = vld [vmem:[#allocation2 + $0x58] sm:$0xc0] }
 0x382   : > { %v3966_v31 = vsel %vm2375_vm8, %v3955_v46, %v3957_v38  ;;  %v4428_v17 = vrot.slane %v4412_v1, 4  ;;  %v8006_v46 = vpack.c.bf16 %v3484_v45, %v3482_v13  ;;  %v3492_v1 = vld [vmem:[#allocation3 + $0x158] sm:$0xff] }
 0x383   : > { %3974 = vst [vmem:[#allocation3 + $0x80] sm:$0xc0] %v3966_v31  ;;  %4394 = vrot.lane.b32.xlu0 %v4381_v35, %s8311_s13  ;;  %v3961_v48 = vpop.permute.xlu1 %3960  ;;  %v3475_v35 = vld [vmem:[#allocation3 + $0xd0] sm:$0xff]  ;;  %v3015_v31 = vsel %vm2778_vm7, %v10385_v15, %v10297_v39  ;;  %v3014_v39 = vsel %vm2778_vm7, %v10237_v23, %v10385_v15  ;;  %v3485_v15 = vld [vmem:[#allocation3 + $0x120] sm:$0xff] }
 0x384   : > { %7997 = vmatpush1.bf16.msra.mxu0 %v7996_v21  ;;  %v4795_v12 = vld [vmem:[#allocation3 + $0x68] sm:$0xff]  ;;  %v4794_v37 = vld [vmem:[#allocation3 + $0x60] sm:$0xff]  ;;  %v8000_v30 = vpack.c.bf16 %v3475_v35, %v3473_v16  ;;  %v4430_v57 = vsel %vm2140_vm13, %v4428_v17, %v4429_v44  ;;  %v8008_v16 = vpack.c.bf16 %v3483_v41, %v3481_v28  ;;  %v3491_v17 = vld [vmem:[#allocation3 + $0x150] sm:$0xff]  ;;  %v3207_v41 = vsel %vm2740_vm4, %v10400_v52, %v10316_v43 }
 0x385   : > { %v3959_v8 = vpop.permute.xlu0 %3958  ;;  %4433 = vrot.lane.b32.xlu1 %v4427_v4, %s8311_s13  ;;  %7999 = vmatprep.subr.bf16.mxu0 %v7998_v3  ;;  %v8052_v47 = vpack.c.bf16 %v4797_v27, %v4795_v12  ;;  %v8054_v42 = vpack.c.bf16 %v4796_v6, %v4794_v37  ;;  %v4456_v21 = vld [vmem:[#allocation2 + $0x38] sm:$0xf0]  ;;  %v8010_v6 = vpack.c.bf16 %v3015_v31, %v3486_v24  ;;  %v4498_v31 = vld [vmem:[#allocation2 + $0x50] sm:$0xc0]  ;;  %v4497_v24 = vld [vmem:[#allocation2 + $0x48] sm:$0xc0] }
 0x386   : > { %v3967_v53 = vsel %vm2375_vm8, %v3957_v38, %v3959_v8  ;;  %v3479_v38 = vld [vmem:[#allocation3 + $0xf0] sm:$0xff]  ;;  %v4462_v37 = vmul.f32 %v4456_v21, %v9257_v36 }
 0x387   : > { %3975 = vst [vmem:[#allocation3 + $0x88] sm:$0xc0] %v3967_v53  ;;  %4431 = vrot.lane.b32.xlu0 %v4424_v60, %s8311_s13  ;;  %8053 = vmatprep.subr.bf16.mxu1 %v8052_v47  ;;  %v3965_v9 = vpop.permute.xlu1 %3964  ;;  %v8004_v0 = vpack.c.bf16 %v3479_v38, %v3477_v26  ;;  %v4458_v47 = vld [vmem:[#allocation2 + $0x48] sm:$0x3f]  ;;  %v4457_v53 = vld [vmem:[#allocation2 + $0x40] sm:$0xf0]  ;;  %v3063_v60 = vsel %vm2778_vm7, %v10232_v14, %v10370_v29 }
 0x388   : > { %8001 = vmatpush1.bf16.msra.mxu0 %v8000_v30  ;;  %8055 = vmatpush1.bf16.msra.mxu1 %v8054_v42  ;;  %v8012_v42 = vpack.c.bf16 %v3014_v39, %v3485_v15  ;;  %v4464_v30 = vmul.f32 %v9076_v2, %v4458_v47  ;;  %v4463_v26 = vmul.f32 %v9144_v25, %v4457_v53  ;;  %v4459_v38 = vld [vmem:[#allocation2 + $0x50] sm:$0x3f]  ;;  %v4540_v15 = vld [vmem:[#allocation2 + $0x20] sm:$0xfc]  ;;  %v3503_v53 = vld [vmem:[#allocation3 + $0x1b0] sm:$0xff] }
 0x389   : > { %v3963_v20 = vpop.permute.xlu0 %3962  ;;  %4437 = vrot.lane.b32.xlu1 %v4423_v19, %s8311_s13  ;;  %8003 = vmatprep.subr.bf16.mxu0 %v8002_v40  ;;  %v4455_v19 = vld [vmem:[#allocation2 + $0x30] sm:$0xf0]  ;;  %v4465_v28 = vmul.f32 %v4459_v38, %v9257_v36 }
 0x38a   : > { %v3968_v3 = vsel %vm2375_vm8, %v3961_v48, %v3963_v20  ;;  %v3969_v27 = vsel %vm2375_vm8, %v3963_v20, %v3965_v9  ;;  %v4798_v22 = vld [vmem:[#allocation3 + $0x80] sm:$0xff]  ;;  %v3064_v48 = vsel %vm2778_vm7, %v10370_v29, %v10319_v5  ;;  %v4461_v23 = vmul.f32 %v9076_v2, %v4455_v19  ;;  %v3494_v9 = vld [vmem:[#allocation3 + $0x168] sm:$0xff]  ;;  %v3496_v20 = vld [vmem:[#allocation3 + $0x178] sm:$0xff] }
 0x38b   : > { %4435 = vrot.lane.b32.xlu0 %v4430_v57, %s8311_s13  ;;  %v10430_v32 = vpop.permute.xlu1 %4007  ;;  %v8014_v51 = vpack.c.bf16 %v3492_v1, %v3064_v48  ;;  %v8016_v29 = vpack.c.bf16 %v3491_v17, %v3063_v60  ;;  %v8018_v13 = vpack.c.bf16 %v3496_v20, %v3494_v9  ;;  %v3495_v19 = vld [vmem:[#allocation3 + $0x170] sm:$0xff]  ;;  %v4543_v48 = vld [vmem:[#allocation2 + $0x38] sm:$0xf]  ;;  %v4542_v60 = vld [vmem:[#allocation2 + $0x30] sm:$0xf] }
 0x38c   : > { %8005 = vmatpush1.bf16.msra.mxu0 %v8004_v0  ;;  %v3501_v9 = vld [vmem:[#allocation3 + $0x1a0] sm:$0xff]  ;;  %v4544_v20 = vld [vmem:[#allocation2 + $0x40] sm:$0xf] }
 0x38d   : > { %v10435_v33 = vpop.permute.xlu0 %4005  ;;  %4441 = vrot.lane.b32.xlu1 %v4429_v44, %s8311_s13  ;;  %8007 = vmatprep.subr.bf16.mxu0 %v8006_v46  ;;  %v4460_v44 = vld [vmem:[#allocation2 + $0x58] sm:$0x3f] }
 0x38e   : > { %v4799_v4 = vld [vmem:[#allocation3 + $0x88] sm:$0xff]  ;;  %v4466_v0 = vmul.f32 %v9144_v25, %v4460_v44  ;;  %v3493_v46 = vld [vmem:[#allocation3 + $0x160] sm:$0xff] }
 0x38f   : > { %4439 = vrot.lane.b32.xlu0 %v4426_v18, %s8311_s13  ;;  %v4012_v12 = vpop.permute.xlu1 %4011  ;;  %v8056_v8 = vpack.c.bf16 %v3969_v27, %v4799_v4  ;;  %v8058_v18 = vpack.c.bf16 %v3968_v3, %v4798_v22  ;;  %v8020_v27 = vpack.c.bf16 %v3495_v19, %v3493_v46  ;;  %v3206_v4 = vsel %vm2740_vm4, %v10275_v11, %v10400_v52  ;;  %v3502_v52 = vld [vmem:[#allocation3 + $0x1a8] sm:$0xff]  ;;  %v3505_v19 = vld [vmem:[#allocation3 + $0x1c0] sm:$0xff] }
 0x390   : > { %8009 = vmatpush1.bf16.msra.mxu0 %v8008_v16  ;;  %v3500_v16 = vld [vmem:[#allocation3 + $0x198] sm:$0xff]  ;;  %v4504_v22 = vmul.f32 %v4498_v31, %v9257_v36 }
 0x391   : > { %v10450_v35 = vpop.permute.xlu0 %4009  ;;  %4475 = vrot.lane.b32.xlu1 %v4462_v37, %s8308_s10  ;;  %8011 = vmatprep.subr.bf16.mxu0 %v8010_v6  ;;  %v8022_v39 = vpack.c.bf16 %v3500_v16, %v3207_v41  ;;  %v4503_v6 = vmul.f32 %v9076_v2, %v4497_v24  ;;  %v3512_v41 = vld [vmem:[#allocation3 + $0x1f8] sm:$0x3]  ;;  %v4541_v16 = vld [vmem:[#allocation2 + $0x28] sm:$0xfc] }
 0x392   : > { %8057 = vmatprep.subr.bf16.mxu1 %v8056_v8  ;;  %v3499_v8 = vld [vmem:[#allocation3 + $0x190] sm:$0xff]  ;;  %v4018_v24 = vsel %vm2474_vm11, %v10430_v32, %v10450_v35  ;;  %v4017_v35 = vsel %vm2474_vm11, %v10435_v33, %v10430_v32 }
 0x393   : > { %4473 = vrot.lane.b32.xlu0 %v4461_v23, %s8308_s10  ;;  %v4016_v5 = vpop.permute.xlu1 %4015  ;;  %8059 = vmatpush1.bf16.msra.mxu1 %v8058_v18  ;;  %v8024_v11 = vpack.c.bf16 %v3499_v8, %v3206_v4  ;;  %v4499_v23 = vld [vmem:[#allocation2 + $0x58] sm:$0xc0] }
 0x394   : > { %8013 = vmatpush1.bf16.msra.mxu0 %v8012_v42  ;;  %v4506_v42 = vmul.f32 %v9076_v2, %v10329_v10  ;;  %v4505_v44 = vmul.f32 %v9144_v25, %v4499_v23 }
 0x395   : > { %v4014_v40 = vpop.permute.xlu0 %4013  ;;  %4479 = vrot.lane.b32.xlu1 %v4464_v30, %s8308_s10  ;;  %8015 = vmatprep.subr.bf16.mxu0 %v8014_v51  ;;  %v10483_v30 = vmul.f32 %v4543_v48, %v9096_v58  ;;  %v3511_v48 = vld [vmem:[#allocation3 + $0x1f0] sm:$0x3] }
 0x396   : > { %v4019_v45 = vsel %vm2474_vm11, %v4012_v12, %v4014_v40  ;;  %v4020_v14 = vsel %vm2474_vm11, %v4014_v40, %v4016_v5  ;;  %v3504_v12 = vld [vmem:[#allocation3 + $0x1b8] sm:$0xff]  ;;  %v4546_v40 = vmul.f32 %v4540_v15, %v9096_v58 }
 0x397   : > { %4027 = vst [vmem:[#allocation3 + $0xb0] sm:$0x3] %v4019_v45  ;;  %4028 = vst [vmem:[#allocation3 + $0xb8] sm:$0x3] %v4020_v14  ;;  %4477 = vrot.lane.b32.xlu0 %v4463_v26, %s8308_s10  ;;  %v4059_v57 = vpop.permute.xlu1 %4058  ;;  %v8026_v1 = vpack.c.bf16 %v3504_v12, %v3502_v52  ;;  %v3508_v5 = vld [vmem:[#allocation3 + $0x1d8] sm:$0xff]  ;;  %v8028_v45 = vpack.c.bf16 %v3503_v53, %v3501_v9  ;;  %v3506_v14 = vld [vmem:[#allocation3 + $0x1c8] sm:$0xff]  ;;  %v4547_v52 = vmul.f32 %v9072_v63, %v4541_v16 }
 0x398   : > { %8017 = vmatpush1.bf16.msra.mxu0 %v8016_v29  ;;  %v4539_v26 = vld [vmem:[#allocation2 + $0x18] sm:$0xfc]  ;;  %v4548_v29 = vmul.f32 %v9021_v49, %v4542_v60  ;;  %v4561_v46 = vrot.slane %v10483_v30, 2 }
 0x399   : > { %v4057_v21 = vpop.permute.xlu0 %4056  ;;  %4483 = vrot.lane.b32.xlu1 %v4466_v0, %s8308_s10  ;;  %8019 = vmatprep.subr.bf16.mxu0 %v8018_v13  ;;  %v8030_v0 = vpack.c.bf16 %v3508_v5, %v3506_v14  ;;  %v3507_v13 = vld [vmem:[#allocation3 + $0x1d0] sm:$0xff]  ;;  %v4545_v31 = vmul.f32 %v9021_v49, %v4539_v26  ;;  %v4563_v60 = vrot.slane %v4547_v52, 2 }
 0x39a   : > { %v4068_v3 = vsel %vm2474_vm11, %v4057_v21, %v4059_v57  ;;  %v4558_v12 = vrot.slane %v4548_v29, 2 }
 0x39b   : > { %4076 = vst [vmem:[#allocation3 + $0xb0] sm:$0xfc] %v4068_v3  ;;  %4481 = vrot.lane.b32.xlu0 %v4465_v28, %s8308_s10  ;;  %v4063_v43 = vpop.permute.xlu1 %4062  ;;  %v4507_v28 = vmul.f32 %v10350_v61, %v9257_v36  ;;  %v4560_v3 = vrot.slane %v4546_v40, 2  ;;  %v10529_v40 = vld [vmem:[#allocation2 + $0x8] sm:$0xff] }
 0x39c   : > { %8021 = vmatpush1.bf16.msra.mxu0 %v8020_v27  ;;  %v3510_v27 = vld [vmem:[#allocation3 + $0x1e8] sm:$0xff]  ;;  %v4603_v29 = vrot.slane %v10529_v40, 6 }
 0x39d   : > { %v4061_v37 = vpop.permute.xlu0 %4060  ;;  %4517 = vrot.lane.b32.xlu1 %v4504_v22, %s8308_s10  ;;  %8023 = vmatprep.subr.bf16.mxu0 %v8022_v39 }
 0x39e   : > { %v4069_v47 = vsel %vm2474_vm11, %v4059_v57, %v4061_v37  ;;  %v4508_v57 = vmul.f32 %v9144_v25, %v10344_v62  ;;  %v4550_v62 = vmul.f32 %v9072_v63, %v4544_v20 }
 0x39f   : > { %4077 = vst [vmem:[#allocation3 + $0xb8] sm:$0xfc] %v4069_v47  ;;  %4515 = vrot.lane.b32.xlu0 %v4503_v6, %s8308_s10  ;;  %v4067_v18 = vpop.permute.xlu1 %4066  ;;  %v8034_v6 = vpack.c.bf16 %v3512_v41, %v3510_v27  ;;  %v4562_v47 = vsel %vm1223_vm5, %v4560_v3, %v4561_v46  ;;  %v10540_v41 = vld [vmem:[#allocation2 + $0x10] sm:$0xff] }
 0x3a0   : > { %8025 = vmatpush1.bf16.msra.mxu0 %v8024_v11  ;;  %v4557_v11 = vrot.slane %v4545_v31, 2  ;;  %v4564_v33 = vrot.slane %v4550_v62, 2  ;;  %v4604_v3 = vrot.slane %v10540_v41, 6 }
 0x3a1   : > { %v4065_v51 = vpop.permute.xlu0 %4064  ;;  %4521 = vrot.lane.b32.xlu1 %v4506_v42, %s8308_s10  ;;  %8027 = vmatprep.subr.bf16.mxu0 %v8026_v1 }
 0x3a2   : > { %v4070_v10 = vsel %vm2474_vm11, %v4063_v43, %v4065_v51  ;;  %v4071_v17 = vsel %vm2474_vm11, %v4065_v51, %v4067_v18  ;;  %v8032_v43 = vpack.c.bf16 %v3507_v13, %v3505_v19  ;;  %v4804_v39 = vld [vmem:[#allocation3 + $0xb0] sm:$0xff]  ;;  %v3509_v18 = vld [vmem:[#allocation3 + $0x1e0] sm:$0xff]  ;;  %v4559_v1 = vsel %vm1223_vm5, %v4557_v11, %v4558_v12 }
 0x3a3   : > { %4078 = vst [vmem:[#allocation3 + $0xc0] sm:$0xf] %v4070_v10  ;;  %4079 = vst [vmem:[#allocation3 + $0xc8] sm:$0xf] %v4071_v17  ;;  %4519 = vrot.lane.b32.xlu0 %v4505_v44, %s8308_s10  ;;  %v4110_v38 = vpop.permute.xlu1 %4109  ;;  %v8062_v15 = vpack.c.bf16 %v4804_v39, %v4017_v35  ;;  %v8037_v32 = vpack.c.bf16 %v3511_v48, %v3509_v18  ;;  %v4565_v44 = vsel %vm1223_vm5, %v4563_v60, %v4564_v33  ;;  %v4593_v10 = vld [vmem:[#allocation2 + $0x18] sm:$0x3] }
 0x3a4   : > { %8029 = vmatpush1.bf16.msra.mxu0 %v8028_v45  ;;  %v10533_v45 = vld [vmem:[#allocation2] sm:$0xff]  ;;  %v4605_v20 = vrot.slane %v4593_v10, 6 }
 0x3a5   : > { %v4108_v21 = vpop.permute.xlu0 %4107  ;;  %4525 = vrot.lane.b32.xlu1 %v4508_v57, %s8308_s10  ;;  %8031 = vmatprep.subr.bf16.mxu0 %v8030_v0  ;;  %v4602_v57 = vrot.slane %v10533_v45, 6  ;;  %v4595_v0 = vld [vmem:[#allocation2 + $0x28] sm:$0x3] }
 0x3a6   : > { %v4119_v4 = vsel %vm2778_vm7, %v4108_v21, %v4110_v38  ;;  %v4805_v61 = vld [vmem:[#allocation3 + $0xb8] sm:$0xff]  ;;  %v4594_v21 = vld [vmem:[#allocation2 + $0x20] sm:$0x3] }
 0x3a7   : > { %4127 = vst [vmem:[#allocation3 + $0xc0] sm:$0xf0] %v4119_v4  ;;  %4523 = vrot.lane.b32.xlu0 %v4507_v28, %s8308_s10  ;;  %v4114_v37 = vpop.permute.xlu1 %4113  ;;  %v8060_v8 = vpack.c.bf16 %v4805_v61, %v4018_v24  ;;  %v4609_v28 = vrot.slane %v4595_v0, 6  ;;  %v4607_v27 = vrot.slane %v4594_v21, 6  ;;  %v4636_v24 = vld [vmem:[#allocation2 + $0x20] sm:$0xfc] }
 0x3a8   : > { %8033 = vmatpush1.bf16.msra.mxu0 %v8032_v43  ;;  %v4638_v61 = vld [vmem:[#allocation2 + $0x30] sm:$0xf]  ;;  %v4648_v48 = vrot.slane %v4636_v24, 6 }
 0x3a9   : > { %v4112_v23 = vpop.permute.xlu0 %4111  ;;  %4568 = vrot.lane.b32.xlu1 %v4562_v47, %s8305_s7  ;;  %8036 = vmatprep.subr.msk.bf16.mxu0 %vm10506_vm14, %v8034_v6  ;;  %v4610_v62 = vsel %vm1158_vm12, %v4604_v3, %v4609_v28  ;;  %v4608_v39 = vsel %vm1158_vm12, %v4603_v29, %v4607_v27  ;;  %v4635_v6 = vld [vmem:[#allocation2 + $0x18] sm:$0xfc]  ;;  %v4650_v52 = vrot.slane %v4638_v61, 6  ;;  %v4685_v28 = vld [vmem:[#allocation2 + $0x28] sm:$0x3] }
 0x3aa   : > { %v4120_v42 = vsel %vm2778_vm7, %v4110_v38, %v4112_v23  ;;  %8061 = vmatprep.subr.bf16.mxu1 %v8060_v8  ;;  %v4647_v18 = vrot.slane %v4635_v6, 6 }
 0x3ab   : > { %4128 = vst [vmem:[#allocation3 + $0xc8] sm:$0xf0] %v4120_v42  ;;  %8063 = vmatpush1.bf16.msra.mxu1 %v8062_v15  ;;  %4566 = vrot.lane.b32.xlu0 %v4559_v1, %s8305_s7  ;;  %v4118_v53 = vpop.permute.xlu1 %4117  ;;  %v4640_v42 = vld [vmem:[#allocation2 + $0x40] sm:$0xf] }
 0x3ac   : > { %8039 = vmatpush1.bf16.msk.msra.mxu0 %vm10506_vm14, %v8037_v32 }
 0x3ad   : > { %v4116_v5 = vpop.permute.xlu0 %4115  ;;  %4572 = vrot.lane.b32.xlu1 %v4558_v12, %s8305_s7 }
 0x3ae   : > { %v4121_v30 = vsel %vm2778_vm7, %v4114_v37, %v4116_v5  ;;  %v4122_v51 = vsel %vm2778_vm7, %v4116_v5, %v4118_v53  ;;  %v4806_v47 = vld [vmem:[#allocation3 + $0xc0] sm:$0xff] }
 0x3af   : > { %4129 = vst [vmem:[#allocation3 + $0xd0] sm:$0x3f] %v4121_v30  ;;  %4130 = vst [vmem:[#allocation3 + $0xd8] sm:$0x3f] %v4122_v51  ;;  %4570 = vrot.lane.b32.xlu0 %v4565_v44, %s8305_s7  ;;  %v4155_v9 = vpop.permute.xlu1 %4154  ;;  %v4639_v5 = vld [vmem:[#allocation2 + $0x38] sm:$0xf]  ;;  %v4651_v51 = vsel %vm1158_vm12, %v4647_v18, %v4650_v52 }
 0x3b0   : > { %v4654_v44 = vrot.slane %v4640_v42, 6 }
 0x3b1   : > { %v4153_v26 = vpop.permute.xlu0 %4152  ;;  %4576 = vrot.lane.b32.xlu1 %v4564_v33, %s8305_s7  ;;  %v4637_v33 = vld [vmem:[#allocation2 + $0x28] sm:$0xfc] }
 0x3b2   : > { %v4164_v17 = vsel %vm238_vm10, %v4153_v26, %v4155_v9  ;;  %v4807_v12 = vld [vmem:[#allocation3 + $0xc8] sm:$0xff]  ;;  %v4649_v10 = vrot.slane %v4637_v33, 6 }
 0x3b3   : > { %4172 = vst [vmem:[#allocation3 + $0xd0] sm:$0xc0] %v4164_v17  ;;  %4574 = vrot.lane.b32.xlu0 %v4561_v46, %s8305_s7  ;;  %v4159_v14 = vpop.permute.xlu1 %4158  ;;  %v4606_v46 = vsel %vm1158_vm12, %v4602_v57, %v4605_v20  ;;  %v4683_v17 = vld [vmem:[#allocation2 + $0x18] sm:$0x3] }
 0x3b4   : > { %v4655_v0 = vsel %vm1158_vm12, %v4649_v10, %v4654_v44 }
 0x3b5   : > { %v4157_v38 = vpop.permute.xlu0 %4156  ;;  %4613 = vrot.lane.b32.xlu1 %v4603_v29, %s8313_s15 }
 0x3b6   : > { %v4165_v13 = vsel %vm238_vm10, %v4155_v9, %v4157_v38 }
 0x3b7   : > { %4173 = vst [vmem:[#allocation3 + $0xd8] sm:$0xc0] %v4165_v13  ;;  %4611 = vrot.lane.b32.xlu0 %v4602_v57, %s8313_s15  ;;  %v4163_v31 = vpop.permute.xlu1 %4162  ;;  %v4687_v57 = vmul.f32 %v10529_v40, %v9166_v54  ;;  %v11897_v13 = vld [vmem:[#allocation5_spill] sm:$0xff] }
 0x3b9   : > { %v4161_v19 = vpop.permute.xlu0 %4160  ;;  %4617 = vrot.lane.b32.xlu1 %v4606_v46, %s8313_s15  ;;  %v4686_v46 = vmul.f32 %v11897_v13, %v10533_v45 }
 0x3ba   : > { %v4808_v43 = vld [vmem:[#allocation3 + $0xd0] sm:$0xff]  ;;  %v4167_v1 = vsel %vm238_vm10, %v4161_v19, %v4163_v31  ;;  %v4166_v53 = vsel %vm238_vm10, %v4159_v14, %v4161_v19  ;;  %v4652_v14 = vrot.slane %v4639_v5, 6  ;;  %v4689_v31 = vmul.f32 %v11897_v13, %v4683_v17 }
 0x3bb   : > { %4615 = vrot.lane.b32.xlu0 %v4604_v3, %s8313_s15  ;;  %v4200_v16 = vpop.permute.xlu1 %4199  ;;  %v8066_v11 = vpack.c.bf16 %v4808_v43, %v4806_v47  ;;  %v4734_v47 = vld [vmem:[#allocation2 + $0x30] sm:$0xf]  ;;  %v4733_v17 = vld [vmem:[#allocation2 + $0x28] sm:$0xfc] }
 0x3bc   : > { %v4653_v3 = vsel %vm1158_vm12, %v4648_v48, %v4652_v14  ;;  %v4701_v24 = vrot.slane %v4689_v31, 2 }
 0x3bd   : > { %v4198_v4 = vpop.permute.xlu0 %4197  ;;  %4621 = vrot.lane.b32.xlu1 %v4610_v62, %s8313_s15  ;;  %v4684_v62 = vld [vmem:[#allocation2 + $0x20] sm:$0x3] }
 0x3be   : > { %v4809_v37 = vld [vmem:[#allocation3 + $0xd8] sm:$0xff]  ;;  %v4209_v23 = vsel %vm238_vm10, %v4198_v4, %v4200_v16 }
 0x3bf   : > { %4619 = vrot.lane.b32.xlu0 %v4608_v39, %s8313_s15  ;;  %v4204_v8 = vpop.permute.xlu1 %4203  ;;  %v8064_v35 = vpack.c.bf16 %v4809_v37, %v4807_v12  ;;  %v8070_v9 = vpack.c.bf16 %v4209_v23, %v4166_v53  ;;  %v11898_v4 = vld [vmem:[#allocation7_spill] sm:$0xff]  ;;  %v4698_v39 = vrot.slane %v4686_v46, 2  ;;  %v4735_v37 = vld [vmem:[#allocation2 + $0x38] sm:$0xf] }
 0x3c0   : > { %v4691_v43 = vmul.f32 %v11898_v4, %v4685_v28  ;;  %v4688_v12 = vmul.f32 %v11898_v4, %v10540_v41  ;;  %v10581_v23 = vmul.f32 %v4735_v37, %v9166_v54  ;;  %v4945_v28 = vld [vmem:[#allocation2 + $0x50] sm:$0x3f] }
 0x3c1   : > { %v4202_v15 = vpop.permute.xlu0 %4201  ;;  %4658 = vrot.lane.b32.xlu1 %v4648_v48, %s8313_s15  ;;  %8065 = vmatprep.subr.bf16.mxu1 %v8064_v35  ;;  %v4732_v48 = vld [vmem:[#allocation2 + $0x20] sm:$0xfc]  ;;  %v4941_v37 = vld [vmem:[#allocation2 + $0x30] sm:$0xf0] }
 0x3c2   : > { %v4210_v32 = vsel %vm238_vm10, %v4200_v16, %v4202_v15  ;;  %8067 = vmatpush1.bf16.msra.mxu1 %v8066_v11  ;;  %v4699_v16 = vrot.slane %v4687_v57, 2  ;;  %v4702_v11 = vsel %vm1223_vm5, %v4698_v39, %v4701_v24  ;;  %v4705_v52 = vrot.slane %v4691_v43, 2  ;;  %v4944_v24 = vld [vmem:[#allocation2 + $0x48] sm:$0x3f] }
 0x3c3   : > { %4656 = vrot.lane.b32.xlu0 %v4647_v18, %s8313_s15  ;;  %v4208_v60 = vpop.permute.xlu1 %4207  ;;  %v8068_v30 = vpack.c.bf16 %v4210_v32, %v4167_v1  ;;  %v4700_v18 = vrot.slane %v4688_v12, 2  ;;  %v4738_v42 = vmul.f32 %v4732_v48, %v9166_v54  ;;  %v4731_v1 = vld [vmem:[#allocation2 + $0x18] sm:$0xfc]  ;;  %v4753_v44 = vrot.slane %v10581_v23, 2 }
 0x3c4   : > { %v4947_v23 = vmul.f32 %v8993_v34, %v4941_v37 }
 0x3c5   : > { %v4206_v26 = vpop.permute.xlu0 %4205  ;;  %4662 = vrot.lane.b32.xlu1 %v4651_v51, %s8313_s15  ;;  %8069 = vmatprep.subr.bf16.mxu1 %v8068_v30  ;;  %v4736_v30 = vld [vmem:[#allocation2 + $0x40] sm:$0xf]  ;;  %v4706_v51 = vsel %vm1223_vm5, %v4700_v18, %v4705_v52 }
 0x3c6   : > { %v4211_v29 = vsel %vm238_vm10, %v4204_v8, %v4206_v26  ;;  %v4212_v20 = vsel %vm238_vm10, %v4206_v26, %v4208_v60  ;;  %8071 = vmatpush1.bf16.msra.mxu1 %v8070_v9  ;;  %v4690_v8 = vmul.f32 %v4684_v62, %v9166_v54  ;;  %v4740_v60 = vmul.f32 %v11897_v13, %v4734_v47 }
 0x3c7   : > { %4219 = vst [vmem:[#allocation3 + $0x100] sm:$0x3] %v4211_v29  ;;  %4220 = vst [vmem:[#allocation3 + $0x108] sm:$0x3] %v4212_v20  ;;  %4660 = vrot.lane.b32.xlu0 %v4649_v10, %s8313_s15  ;;  %v4251_v38 = vpop.permute.xlu1 %4250  ;;  %v4737_v9 = vmul.f32 %v11897_v13, %v4731_v1  ;;  %v4752_v10 = vrot.slane %v4738_v42, 2 }
 0x3c8   : > { %v4703_v53 = vrot.slane %v4690_v8, 2  ;;  %v4750_v14 = vrot.slane %v4740_v60, 2  ;;  %v4943_v42 = vld [vmem:[#allocation2 + $0x40] sm:$0xf0] }
 0x3c9   : > { %v4249_v21 = vpop.permute.xlu0 %4248  ;;  %4666 = vrot.lane.b32.xlu1 %v4655_v0, %s8313_s15  ;;  %v4754_v0 = vsel %vm1223_vm5, %v4752_v10, %v4753_v44  ;;  %v4749_v31 = vrot.slane %v4737_v9, 2 }
 0x3ca   : > { %v4260_v19 = vsel %vm2740_vm4, %v4249_v21, %v4251_v38  ;;  %v4704_v20 = vsel %vm1223_vm5, %v4699_v16, %v4703_v53  ;;  %v4739_v21 = vmul.f32 %v11898_v4, %v4733_v17  ;;  %v4959_v17 = vrot.slane %v4947_v23, 4 }
 0x3cb   : > { %4268 = vst [vmem:[#allocation3 + $0x100] sm:$0xfc] %v4260_v19  ;;  %4664 = vrot.lane.b32.xlu0 %v4653_v3, %s8313_s15  ;;  %v4255_v27 = vpop.permute.xlu1 %4254  ;;  %v4751_v3 = vsel %vm1223_vm5, %v4749_v31, %v4750_v14  ;;  %v4993_v31 = vld [vmem:[#allocation2 + $0x50] sm:$0xc0] }
 0x3cc   : > { %v4755_v43 = vrot.slane %v4739_v21, 2  ;;  %v10627_v21 = vld [vmem:[#allocation2 + $0x60] sm:$0xff] }
 0x3cd   : > { %v4253_v61 = vpop.permute.xlu0 %4252  ;;  %4709 = vrot.lane.b32.xlu1 %v4699_v16, %s8306_s8  ;;  %v4942_v16 = vld [vmem:[#allocation2 + $0x38] sm:$0xf0] }
 0x3ce   : > { %v4261_v6 = vsel %vm2740_vm4, %v4251_v38, %v4253_v61  ;;  %v4742_v38 = vmul.f32 %v11898_v4, %v4736_v30  ;;  %v10604_v61 = vmul.f32 %v4945_v28, %v9047_v56  ;;  %v4948_v12 = vmul.f32 %v4942_v16, %v9047_v56 }
 0x3cf   : > { %4269 = vst [vmem:[#allocation3 + $0x108] sm:$0xfc] %v4261_v6  ;;  %4707 = vrot.lane.b32.xlu0 %v4698_v39, %s8306_s8  ;;  %v4259_v35 = vpop.permute.xlu1 %4258  ;;  %v4999_v16 = vmul.f32 %v4993_v31, %v9047_v56 }
 0x3d0   : > { %v4963_v52 = vrot.slane %v10604_v61, 4 }
 0x3d1   : > { %v4257_v15 = vpop.permute.xlu0 %4256  ;;  %4713 = vrot.lane.b32.xlu1 %v4702_v11, %s8306_s8  ;;  %v4946_v11 = vld [vmem:[#allocation2 + $0x58] sm:$0x3f] }
 0x3d2   : > { %v4262_v32 = vsel %vm2740_vm4, %v4255_v27, %v4257_v15  ;;  %v4263_v33 = vsel %vm2740_vm4, %v4257_v15, %v4259_v35  ;;  %v4756_v27 = vrot.slane %v4742_v38, 2  ;;  %v4950_v35 = vmul.f32 %v8993_v34, %v4944_v24  ;;  %v4814_v9 = vld [vmem:[#allocation3 + $0x100] sm:$0xff] }
 0x3d3   : > { %4270 = vst [vmem:[#allocation3 + $0x110] sm:$0xf] %v4262_v32  ;;  %4271 = vst [vmem:[#allocation3 + $0x118] sm:$0xf] %v4263_v33  ;;  %4711 = vrot.lane.b32.xlu0 %v4700_v18, %s8306_s8  ;;  %v4302_v5 = vpop.permute.xlu1 %4301  ;;  %v4962_v32 = vrot.slane %v4948_v12, 4 }
 0x3d4   : > { %v4757_v48 = vsel %vm1223_vm5, %v4755_v43, %v4756_v27  ;;  %v4960_v60 = vrot.slane %v4950_v35, 4  ;;  %v10639_v43 = vld [vmem:[#allocation2 + $0x70] sm:$0xff]  ;;  %v5013_v35 = vrot.slane %v4999_v16, 4 }
 0x3d5   : > { %v4300_v26 = vpop.permute.xlu0 %4299  ;;  %4717 = vrot.lane.b32.xlu1 %v4706_v51, %s8306_s8  ;;  %v5003_v23 = vmul.f32 %v9038_v59, %v10639_v43 }
 0x3d6   : > { %v4311_v29 = vsel %vm2740_vm4, %v4300_v26, %v4302_v5  ;;  %v4815_v33 = vld [vmem:[#allocation3 + $0x108] sm:$0xff]  ;;  %v4964_v26 = vsel %vm2140_vm13, %v4962_v32, %v4963_v52 }
 0x3d7   : > { %4319 = vst [vmem:[#allocation3 + $0x110] sm:$0xf0] %v4311_v29  ;;  %4715 = vrot.lane.b32.xlu0 %v4704_v20, %s8306_s8  ;;  %v4306_v57 = vpop.permute.xlu1 %4305  ;;  %v4949_v29 = vmul.f32 %v9038_v59, %v4943_v42 }
 0x3d9   : > { %v4304_v46 = vpop.permute.xlu0 %4303  ;;  %4760 = vrot.lane.b32.xlu1 %v4754_v0, %s8306_s8 }
 0x3da   : > { %v4312_v19 = vsel %vm2740_vm4, %v4302_v5, %v4304_v46  ;;  %v4952_v5 = vmul.f32 %v9038_v59, %v4946_v11  ;;  %v4965_v46 = vrot.slane %v4949_v29, 4 }
 0x3db   : > { %4320 = vst [vmem:[#allocation3 + $0x118] sm:$0xf0] %v4312_v19  ;;  %4758 = vrot.lane.b32.xlu0 %v4751_v3, %s8306_s8  ;;  %v4310_v62 = vpop.permute.xlu1 %4309  ;;  %v4992_v3 = vld [vmem:[#allocation2 + $0x48] sm:$0xc0] }
 0x3dd   : > { %v4308_v39 = vpop.permute.xlu0 %4307  ;;  %4764 = vrot.lane.b32.xlu1 %v4750_v14, %s8306_s8  ;;  %v10622_v14 = vld [vmem:[#allocation2 + $0x68] sm:$0xff] }
 0x3de   : > { %v4313_v6 = vsel %vm2740_vm4, %v4306_v57, %v4308_v39  ;;  %v4314_v8 = vsel %vm2740_vm4, %v4308_v39, %v4310_v62  ;;  %v4816_v18 = vld [vmem:[#allocation3 + $0x110] sm:$0xff]  ;;  %v4966_v57 = vrot.slane %v4952_v5, 4  ;;  %v5002_v28 = vmul.f32 %v10622_v14, %v9047_v56 }
 0x3df   : > { %4321 = vst [vmem:[#allocation3 + $0x120] sm:$0x3f] %v4313_v6  ;;  %4322 = vst [vmem:[#allocation3 + $0x128] sm:$0x3f] %v4314_v8  ;;  %4762 = vrot.lane.b32.xlu0 %v4757_v48, %s8306_s8  ;;  %v4344_v47 = vpop.permute.xlu1 %4343  ;;  %v8074_v10 = vpack.c.bf16 %v4816_v18, %v4814_v9  ;;  %v5001_v62 = vmul.f32 %v8993_v34, %v10627_v21  ;;  %v4998_v39 = vmul.f32 %v8993_v34, %v4992_v3  ;;  %v4994_v8 = vld [vmem:[#allocation2 + $0x58] sm:$0xc0] }
 0x3e0   : > { %v5014_v61 = vrot.slane %v5002_v28, 4  ;;  %v5017_v5 = vrot.slane %v5003_v23, 4  ;;  %v5043_v28 = vld [vmem:[#allocation2 + $0x30] sm:$0xf0]  ;;  %v5046_v3 = vld [vmem:[#allocation2 + $0x48] sm:$0x3f] }
 0x3e1   : > { %v4342_v15 = vpop.permute.xlu0 %4341  ;;  %4768 = vrot.lane.b32.xlu1 %v4756_v27, %s8306_s8  ;;  %v4967_v27 = vsel %vm2140_vm13, %v4965_v46, %v4966_v57 }
 0x3e2   : > { %v4353_v1 = vsel %vm2778_vm7, %v4342_v15, %v4344_v47  ;;  %v4817_v53 = vld [vmem:[#allocation3 + $0x118] sm:$0xff]  ;;  %v5015_v42 = vsel %vm2140_vm13, %v5013_v35, %v5014_v61 }
 0x3e3   : > { %4361 = vst [vmem:[#allocation3 + $0x120] sm:$0xc0] %v4353_v1  ;;  %4766 = vrot.lane.b32.xlu0 %v4753_v44, %s8306_s8  ;;  %v4348_v30 = vpop.permute.xlu1 %4347  ;;  %v8072_v51 = vpack.c.bf16 %v4817_v53, %v4815_v33  ;;  %v4961_v44 = vsel %vm2140_vm13, %v4959_v17, %v4960_v60  ;;  %v5010_v1 = vrot.slane %v4998_v39, 4  ;;  %v5000_v33 = vmul.f32 %v9038_v59, %v4994_v8 }
 0x3e5   : > { %v4346_v20 = vpop.permute.xlu0 %4345  ;;  %4970 = vrot.lane.b32.xlu1 %v4964_v26, %s8309_s11  ;;  %8073 = vmatprep.subr.bf16.mxu1 %v8072_v51  ;;  %v5016_v51 = vrot.slane %v5000_v33, 4  ;;  %v5119_v33 = vld [vmem:[#allocation2 + $0x50] sm:$0x3f] }
 0x3e6   : > { %v4354_v38 = vsel %vm2778_vm7, %v4344_v47, %v4346_v20  ;;  %8075 = vmatpush1.bf16.msra.mxu1 %v8074_v10  ;;  %v5011_v47 = vrot.slane %v5001_v62, 4  ;;  %v10668_v20 = vld [vmem:[%s11792_s3] sm:$0xff] }
 0x3e7   : > { %4362 = vst [vmem:[#allocation3 + $0x128] sm:$0xc0] %v4354_v38  ;;  %4968 = vrot.lane.b32.xlu0 %v4961_v44, %s8309_s11  ;;  %v4352_v0 = vpop.permute.xlu1 %4351  ;;  %v5018_v17 = vsel %vm2140_vm13, %v5016_v51, %v5017_v5 }
 0x3e9   : > { %v4350_v19 = vpop.permute.xlu0 %4349  ;;  %4974 = vrot.lane.b32.xlu1 %v4960_v60, %s8309_s11  ;;  %v5012_v60 = vsel %vm2140_vm13, %v5010_v1, %v5011_v47 }
 0x3ea   : > { %v4355_v12 = vsel %vm2778_vm7, %v4348_v30, %v4350_v19  ;;  %v4818_v6 = vld [vmem:[#allocation3 + $0x120] sm:$0xff]  ;;  %v4356_v48 = vsel %vm2778_vm7, %v4350_v19, %v4352_v0 }
 0x3eb   : > { %4972 = vrot.lane.b32.xlu0 %v4967_v27, %s8309_s11  ;;  %v10637_v24 = vpop.permute.xlu1 %4388  ;;  %v8078_v32 = vpack.c.bf16 %v4355_v12, %v4818_v6  ;;  %v5044_v0 = vld [vmem:[#allocation2 + $0x38] sm:$0xf0] }
 0x3ec   : > { %v5048_v12 = vld [vmem:[#allocation2 + $0x58] sm:$0x3f] }
 0x3ed   : > { %v10643_v37 = vpop.permute.xlu0 %4386  ;;  %4978 = vrot.lane.b32.xlu1 %v4966_v57, %s8309_s11 }
 0x3ee   : > { %v4819_v11 = vld [vmem:[#allocation3 + $0x128] sm:$0xff]  ;;  %v4398_v23 = vsel %vm238_vm10, %v10643_v37, %v10637_v24  ;;  %v5116_v37 = vld [vmem:[#allocation2 + $0x38] sm:$0xf0] }
 0x3ef   : > { %4976 = vrot.lane.b32.xlu0 %v4963_v52, %s8309_s11  ;;  %v4393_v15 = vpop.permute.xlu1 %4392  ;;  %v8076_v18 = vpack.c.bf16 %v4356_v48, %v4819_v11  ;;  %v230_v52 = vld [vmem:[%s11792_s3 + $0x8] sm:$0xff] }
 0x3f0   : > { %7794 = vmatprep.mubr.msk.f32.mxu0 %vm3513_vm3, %v230_v52  ;;  %7799 = vmatprep.mubr.msk.f32.mxu1 %vm3513_vm3, %v230_v52 }
 0x3f1   : > { %v4391_v53 = vpop.permute.xlu0 %4390  ;;  %5021 = vrot.lane.b32.xlu1 %v5015_v42, %s8309_s11  ;;  %8077 = vmatprep.subr.bf16.mxu1 %v8076_v18  ;;  %v5080_v42 = vld [vmem:[#allocation2 + $0x50] sm:$0xc0] }
 0x3f2   : > { %8079 = vmatpush1.bf16.msra.mxu1 %v8078_v32  ;;  %3594 = vmatmul.mubr.f32.vlgmr.msra.gmra.mrb[32].mxu0 %v10668_v20  ;;  %v4399_v48 = vsel %vm238_vm10, %v10637_v24, %v4391_v53 }
 0x3f3   : > { %5019 = vrot.lane.b32.xlu0 %v5012_v60, %s8309_s11  ;;  %v4397_v30 = vpop.permute.xlu1 %4396  ;;  %v5079_v60 = vld [vmem:[#allocation2 + $0x48] sm:$0xc0] }
 0x3f5   : > { %v4395_v9 = vpop.permute.xlu0 %4394  ;;  %5025 = vrot.lane.b32.xlu1 %v5011_v47, %s8309_s11  ;;  %v5047_v47 = vld [vmem:[#allocation2 + $0x50] sm:$0x3f] }
 0x3f6   : > { %v4400_v26 = vsel %vm238_vm10, %v4393_v15, %v4395_v9  ;;  %v4401_v10 = vsel %vm238_vm10, %v4395_v9, %v4397_v30  ;;  %v11899_v30 = vld [vmem:[#allocation8_spill] sm:$0xff]  ;;  %v5115_v9 = vld [vmem:[#allocation2 + $0x30] sm:$0xf0] }
 0x3f7   : > { %4408 = vst [vmem:[#allocation3 + $0x150] sm:$0x3] %v4400_v26  ;;  %4409 = vst [vmem:[#allocation3 + $0x158] sm:$0x3] %v4401_v10  ;;  %5023 = vrot.lane.b32.xlu0 %v5018_v17, %s8309_s11  ;;  %v4434_v29 = vpop.permute.xlu1 %4433  ;;  %v5125_v52 = vmul.f32 %v5119_v33, %v11899_v30  ;;  %v5081_v17 = vld [vmem:[#allocation2 + $0x58] sm:$0xc0]  ;;  %v5173_v33 = vmul.f32 %v10529_v40, %v9211_v7 }
 0x3f9   : > { %v4432_v38 = vpop.permute.xlu0 %4431  ;;  %5029 = vrot.lane.b32.xlu1 %v5017_v5, %s8309_s11  ;;  %v5118_v5 = vld [vmem:[#allocation2 + $0x48] sm:$0x3f] }
 0x3fa   : > { %v4443_v44 = vsel %vm238_vm10, %v4432_v38, %v4434_v29  ;;  %v11900_v38 = vld [vmem:[#allocation4_spill] sm:$0xff] }
 0x3fb   : > { %4451 = vst [vmem:[#allocation3 + $0x150] sm:$0xfc] %v4443_v44  ;;  %5027 = vrot.lane.b32.xlu0 %v5014_v61, %s8309_s11  ;;  %v4438_v57 = vpop.permute.xlu1 %4437  ;;  %v5045_v61 = vld [vmem:[#allocation2 + $0x40] sm:$0xf0]  ;;  %v5124_v44 = vmul.f32 %v11900_v38, %v5118_v5  ;;  %v5171_v5 = vld [vmem:[#allocation2 + $0x28] sm:$0x3] }
 0x3fd   : > { %v4436_v31 = vpop.permute.xlu0 %4435  ;;  %5057 = vrot.lane.b32.xlu1 %v5044_v0, %s8312_s14  ;;  %v5120_v0 = vld [vmem:[#allocation2 + $0x58] sm:$0x3f] }
 0x3fe   : > { %v4444_v46 = vsel %vm238_vm10, %v4434_v29, %v4436_v31  ;;  %v5122_v29 = vmul.f32 %v5116_v37, %v11899_v30  ;;  %v5137_v31 = vrot.slane %v5125_v52, 4  ;;  %v5172_v37 = vmul.f32 %v9110_v50, %v10533_v45 }
 0x3ff   : > { %4452 = vst [vmem:[#allocation3 + $0x158] sm:$0xfc] %v4444_v46  ;;  %5055 = vrot.lane.b32.xlu0 %v5043_v28, %s8312_s14  ;;  %v4442_v19 = vpop.permute.xlu1 %4441  ;;  %v5121_v46 = vmul.f32 %v11900_v38, %v5115_v9 }
 0x401   : > { %v4440_v27 = vpop.permute.xlu0 %4439  ;;  %5061 = vrot.lane.b32.xlu1 %v5046_v3, %s8312_s14 }
 0x402   : > { %v4445_v16 = vsel %vm238_vm10, %v4438_v57, %v4440_v27  ;;  %v4446_v62 = vsel %vm238_vm10, %v4440_v27, %v4442_v19  ;;  %v4824_v8 = vld [vmem:[#allocation3 + $0x150] sm:$0xff]  ;;  %v5117_v19 = vld [vmem:[#allocation2 + $0x40] sm:$0xf0]  ;;  %v5136_v27 = vrot.slane %v5122_v29, 4  ;;  %v5170_v29 = vld [vmem:[#allocation2 + $0x20] sm:$0x3] }
 0x403   : > { %4453 = vst [vmem:[#allocation3 + $0x160] sm:$0xf] %v4445_v16  ;;  %4454 = vst [vmem:[#allocation3 + $0x168] sm:$0xf] %v4446_v62  ;;  %5059 = vrot.lane.b32.xlu0 %v5045_v61, %s8312_s14  ;;  %v4476_v39 = vpop.permute.xlu1 %4475  ;;  %v8082_v1 = vpack.c.bf16 %v4824_v8, %v4398_v23  ;;  %v5134_v16 = vrot.slane %v5124_v44, 4  ;;  %v11901_v62 = vld [vmem:[#allocation6_spill] sm:$0xff] }
 0x404   : > { %v5126_v61 = vmul.f32 %v11901_v62, %v5120_v0  ;;  %v5123_v8 = vmul.f32 %v11901_v62, %v5117_v19  ;;  %v5177_v0 = vmul.f32 %v9192_v55, %v5171_v5  ;;  %v5184_v19 = vrot.slane %v5172_v37, 6  ;;  %v5222_v5 = vld [vmem:[#allocation2 + $0x40] sm:$0xf] }
 0x405   : > { %v4474_v6 = vpop.permute.xlu0 %4473  ;;  %5065 = vrot.lane.b32.xlu1 %v5048_v12, %s8312_s14  ;;  %v5138_v12 = vsel %vm2140_vm13, %v5136_v27, %v5137_v31 }
 0x406   : > { %v4485_v35 = vsel %vm2740_vm4, %v4474_v6, %v4476_v39  ;;  %v4825_v11 = vld [vmem:[#allocation3 + $0x158] sm:$0xff]  ;;  %v5133_v6 = vrot.slane %v5121_v46, 4 }
 0x407   : > { %4493 = vst [vmem:[#allocation3 + $0x160] sm:$0xf0] %v4485_v35  ;;  %5063 = vrot.lane.b32.xlu0 %v5047_v47, %s8312_s14  ;;  %v4480_v15 = vpop.permute.xlu1 %4479  ;;  %v8080_v18 = vpack.c.bf16 %v4825_v11, %v4399_v48  ;;  %v5140_v11 = vrot.slane %v5126_v61, 4 }
 0x408   : > { %v5135_v47 = vsel %vm2140_vm13, %v5133_v6, %v5134_v16 }
 0x409   : > { %v4478_v32 = vpop.permute.xlu0 %4477  ;;  %5093 = vrot.lane.b32.xlu1 %v5080_v42, %s8312_s14  ;;  %8081 = vmatprep.subr.bf16.mxu1 %v8080_v18  ;;  %v5169_v42 = vld [vmem:[#allocation2 + $0x18] sm:$0x3] }
 0x40a   : > { %v4486_v53 = vsel %vm2740_vm4, %v4476_v39, %v4478_v32  ;;  %8083 = vmatpush1.bf16.msra.mxu1 %v8082_v1 }
 0x40b   : > { %4494 = vst [vmem:[#allocation3 + $0x168] sm:$0xf0] %v4486_v53  ;;  %5091 = vrot.lane.b32.xlu0 %v5079_v60, %s8312_s14  ;;  %v4484_v24 = vpop.permute.xlu1 %4483  ;;  %v5175_v53 = vmul.f32 %v9110_v50, %v5169_v42 }
 0x40d   : > { %v4482_v51 = vpop.permute.xlu0 %4481  ;;  %5097 = vrot.lane.b32.xlu1 %v10627_v21, %s8312_s14 }
 0x40e   : > { %v4487_v26 = vsel %vm2740_vm4, %v4480_v15, %v4482_v51  ;;  %v4488_v10 = vsel %vm2740_vm4, %v4482_v51, %v4484_v24  ;;  %v5139_v15 = vrot.slane %v5123_v8, 4 }
 0x40f   : > { %4495 = vst [vmem:[#allocation3 + $0x170] sm:$0x3f] %v4487_v26  ;;  %4496 = vst [vmem:[#allocation3 + $0x178] sm:$0x3f] %v4488_v10  ;;  %5095 = vrot.lane.b32.xlu0 %v5081_v17, %s8312_s14  ;;  %v4518_v57 = vpop.permute.xlu1 %4517  ;;  %v5185_v26 = vrot.slane %v5173_v33, 6  ;;  %v4826_v17 = vld [vmem:[#allocation3 + $0x160] sm:$0xff] }
 0x410   : > { %v5141_v1 = vsel %vm2140_vm13, %v5139_v15, %v5140_v11  ;;  %v5220_v15 = vld [vmem:[#allocation2 + $0x30] sm:$0xf] }
 0x411   : > { %v4516_v28 = vpop.permute.xlu0 %4515  ;;  %5101 = vrot.lane.b32.xlu1 %v10639_v43, %s8312_s14 }
 0x412   : > { %v4527_v3 = vsel %vm2740_vm4, %v4516_v28, %v4518_v57  ;;  %v4827_v52 = vld [vmem:[#allocation3 + $0x168] sm:$0xff] }
 0x413   : > { %4535 = vst [vmem:[#allocation3 + $0x170] sm:$0xc0] %v4527_v3  ;;  %5099 = vrot.lane.b32.xlu0 %v10622_v14, %s8312_s14  ;;  %v4522_v39 = vpop.permute.xlu1 %4521  ;;  %v5174_v3 = vmul.f32 %v9192_v55, %v10540_v41 }
 0x415   : > { %v4520_v48 = vpop.permute.xlu0 %4519  ;;  %5144 = vrot.lane.b32.xlu1 %v5138_v12, %s8310_s12 }
 0x416   : > { %v4528_v35 = vsel %vm2740_vm4, %v4518_v57, %v4520_v48  ;;  %v5187_v57 = vrot.slane %v5175_v53, 6  ;;  %v5191_v48 = vrot.slane %v5177_v0, 6 }
 0x417   : > { %4536 = vst [vmem:[#allocation3 + $0x178] sm:$0xc0] %v4528_v35  ;;  %5142 = vrot.lane.b32.xlu0 %v5135_v47, %s8310_s12  ;;  %v4526_v23 = vpop.permute.xlu1 %4525  ;;  %v5218_v35 = vld [vmem:[#allocation2 + $0x20] sm:$0xfc] }
 0x418   : > { %v5188_v8 = vsel %vm1158_vm12, %v5184_v19, %v5187_v57  ;;  %v5224_v33 = vmul.f32 %v5218_v35, %v9211_v7  ;;  %v5228_v57 = vmul.f32 %v9192_v55, %v5222_v5 }
 0x419   : > { %v4524_v18 = vpop.permute.xlu0 %4523  ;;  %5148 = vrot.lane.b32.xlu1 %v5134_v16, %s8310_s12  ;;  %v5176_v16 = vmul.f32 %v5170_v29, %v9211_v7  ;;  %v5221_v29 = vld [vmem:[#allocation2 + $0x38] sm:$0xf] }
 0x41a   : > { %v4828_v24 = vld [vmem:[#allocation3 + $0x170] sm:$0xff]  ;;  %v4529_v61 = vsel %vm2740_vm4, %v4522_v39, %v4524_v18 }
 0x41b   : > { %5146 = vrot.lane.b32.xlu0 %v5141_v1, %s8310_s12  ;;  %v4569_v32 = vpop.permute.xlu1 %4568  ;;  %v8086_v44 = vpack.c.bf16 %v4828_v24, %v4826_v17  ;;  %v5189_v39 = vrot.slane %v5176_v16, 6  ;;  %v5236_v17 = vrot.slane %v5224_v33, 6  ;;  %v5273_v33 = vld [vmem:[#allocation2 + $0x28] sm:$0x3] }
 0x41c   : > { %v5287_v5 = vrot.slane %v5273_v33, 2 }
 0x41d   : > { %v4567_v60 = vpop.permute.xlu0 %4566  ;;  %5152 = vrot.lane.b32.xlu1 %v5140_v11, %s8310_s12 }
 0x41e   : > { %v4829_v51 = vld [vmem:[#allocation3 + $0x178] sm:$0xff]  ;;  %v4578_v46 = vsel %vm2445_vm1, %v4567_v60, %v4569_v32  ;;  %v5226_v60 = vmul.f32 %v9110_v50, %v5220_v15 }
 0x41f   : > { %5150 = vrot.lane.b32.xlu0 %v5137_v31, %s8310_s12  ;;  %v4573_v9 = vpop.permute.xlu1 %4572  ;;  %v8084_v10 = vpack.c.bf16 %v4829_v51, %v4827_v52  ;;  %v4530_v31 = vsel %vm2740_vm4, %v4524_v18, %v4526_v23  ;;  %v8090_v47 = vpack.c.bf16 %v4578_v46, %v4529_v61  ;;  %v5186_v23 = vrot.slane %v5174_v3, 6  ;;  %v5217_v18 = vld [vmem:[#allocation2 + $0x18] sm:$0xfc] }
 0x420   : > { %v5223_v37 = vmul.f32 %v9110_v50, %v5217_v18  ;;  %v5190_v51 = vsel %vm1158_vm12, %v5185_v26, %v5189_v39 }
 0x421   : > { %v4571_v28 = vpop.permute.xlu0 %4570  ;;  %5195 = vrot.lane.b32.xlu1 %v5185_v26, %s8307_s9  ;;  %8085 = vmatprep.subr.bf16.mxu1 %v8084_v10  ;;  %v5192_v53 = vsel %vm1158_vm12, %v5186_v23, %v5191_v48  ;;  %v5227_v26 = vmul.f32 %v5221_v29, %v9211_v7  ;;  %v5314_v29 = vld [vmem:[#allocation2 + $0x20] sm:$0xfc] }
 0x422   : > { %v4579_v27 = vsel %vm2445_vm1, %v4569_v32, %v4571_v28  ;;  %8087 = vmatpush1.bf16.msra.mxu1 %v8086_v44  ;;  %v5238_v44 = vrot.slane %v5226_v60, 6  ;;  %v5235_v46 = vrot.slane %v5223_v37, 6 }
 0x423   : > { %5193 = vrot.lane.b32.xlu0 %v5184_v19, %s8307_s9  ;;  %v4577_v12 = vpop.permute.xlu1 %4576  ;;  %v8088_v6 = vpack.c.bf16 %v4579_v27, %v4530_v31  ;;  %v5242_v27 = vrot.slane %v5228_v57, 6 }
 0x424   : > { %v5239_v31 = vsel %vm1158_vm12, %v5235_v46, %v5238_v44  ;;  %v5316_v44 = vld [vmem:[#allocation2 + $0x30] sm:$0xf] }
 0x425   : > { %v4575_v11 = vpop.permute.xlu0 %4574  ;;  %5199 = vrot.lane.b32.xlu1 %v5188_v8, %s8307_s9  ;;  %8089 = vmatprep.subr.bf16.mxu1 %v8088_v6  ;;  %v5240_v8 = vrot.slane %v5227_v26, 6 }
 0x426   : > { %v4580_v42 = vsel %vm2445_vm1, %v4573_v9, %v4575_v11  ;;  %v4581_v1 = vsel %vm2445_vm1, %v4575_v11, %v4577_v12  ;;  %8091 = vmatpush1.bf16.msra.mxu1 %v8090_v47  ;;  %v5219_v9 = vld [vmem:[#allocation2 + $0x28] sm:$0xfc]  ;;  %v5271_v11 = vld [vmem:[#allocation2 + $0x18] sm:$0x3] }
 0x427   : > { %4588 = vst [vmem:[#allocation3 + $0x1a0] sm:$0x3] %v4580_v42  ;;  %4589 = vst [vmem:[#allocation3 + $0x1a8] sm:$0x3] %v4581_v1  ;;  %5197 = vrot.lane.b32.xlu0 %v5186_v23, %s8307_s9  ;;  %v4614_v32 = vpop.permute.xlu1 %4613  ;;  %v5225_v28 = vmul.f32 %v9192_v55, %v5219_v9  ;;  %v5241_v15 = vsel %vm1158_vm12, %v5236_v17, %v5240_v8  ;;  %v5281_v1 = vrot.slane %v10529_v40, 2  ;;  %v5283_v39 = vrot.slane %v5271_v11, 2 }
 0x428   : > { %v5282_v40 = vrot.slane %v10540_v41, 2  ;;  %v5318_v8 = vld [vmem:[#allocation2 + $0x40] sm:$0xf] }
 0x429   : > { %v4612_v24 = vpop.permute.xlu0 %4611  ;;  %5203 = vrot.lane.b32.xlu1 %v5192_v53, %s8307_s9  ;;  %v5237_v61 = vrot.slane %v5225_v28, 6  ;;  %v5313_v28 = vld [vmem:[#allocation2 + $0x18] sm:$0xfc] }
 0x42a   : > { %v4623_v52 = vsel %vm3341_vm9, %v4612_v24, %v4614_v32  ;;  %v5272_v24 = vld [vmem:[#allocation2 + $0x20] sm:$0x3]  ;;  %v5288_v57 = vsel %vm1223_vm5, %v5282_v40, %v5287_v5 }
 0x42b   : > { %4631 = vst [vmem:[#allocation3 + $0x1a0] sm:$0xfc] %v4623_v52  ;;  %5201 = vrot.lane.b32.xlu0 %v5190_v51, %s8307_s9  ;;  %v4618_v10 = vpop.permute.xlu1 %4617  ;;  %v5243_v35 = vsel %vm1158_vm12, %v5237_v61, %v5242_v27  ;;  %v5317_v51 = vld [vmem:[#allocation2 + $0x38] sm:$0xf] }
 0x42d   : > { %v4616_v0 = vpop.permute.xlu0 %4615  ;;  %5246 = vrot.lane.b32.xlu1 %v5236_v17, %s8307_s9 }
 0x42e   : > { %v4624_v19 = vsel %vm3341_vm9, %v4614_v32, %v4616_v0  ;;  %v5280_v32 = vrot.slane %v10533_v45, 2  ;;  %v5329_v0 = vrot.slane %v5317_v51, 2 }
 0x42f   : > { %4632 = vst [vmem:[#allocation3 + $0x1a8] sm:$0xfc] %v4624_v19  ;;  %5244 = vrot.lane.b32.xlu0 %v5235_v46, %s8307_s9  ;;  %v4622_v3 = vpop.permute.xlu1 %4621 }
 0x430   : > { %v5284_v37 = vsel %vm1223_vm5, %v5280_v32, %v5283_v39 }
 0x431   : > { %v4620_v16 = vpop.permute.xlu0 %4619  ;;  %5250 = vrot.lane.b32.xlu1 %v5239_v31, %s8307_s9 }
 0x432   : > { %v4625_v12 = vsel %vm3341_vm9, %v4618_v10, %v4620_v16  ;;  %v4626_v6 = vsel %vm3341_vm9, %v4620_v16, %v4622_v3  ;;  %v5285_v10 = vrot.slane %v5272_v24, 2  ;;  %v5328_v3 = vrot.slane %v5314_v29, 2  ;;  %v10787_v24 = vld [vmem:[#allocation2] sm:$0xff] }
 0x433   : > { %4633 = vst [vmem:[#allocation3 + $0x1b0] sm:$0xf] %v4625_v12  ;;  %4634 = vst [vmem:[#allocation3 + $0x1b8] sm:$0xf] %v4626_v6  ;;  %5248 = vrot.lane.b32.xlu0 %v5237_v61, %s8307_s9  ;;  %v4659_v48 = vpop.permute.xlu1 %4658  ;;  %v5326_v16 = vrot.slane %v5316_v44, 2  ;;  %v4834_v6 = vld [vmem:[#allocation3 + $0x1a0] sm:$0xff] }
 0x434   : > { %v5286_v26 = vsel %vm1223_vm5, %v5281_v1, %v5285_v10  ;;  %v5363_v10 = vld [vmem:[#allocation2 + $0x28] sm:$0x3]  ;;  %v10798_v44 = vld [vmem:[#allocation2 + $0x10] sm:$0xff] }
 0x435   : > { %v4657_v47 = vpop.permute.xlu0 %4656  ;;  %5254 = vrot.lane.b32.xlu1 %v5243_v35, %s8307_s9 }
 0x436   : > { %v4668_v23 = vsel %vm3341_vm9, %v4657_v47, %v4659_v48  ;;  %v4835_v31 = vld [vmem:[#allocation3 + $0x1a8] sm:$0xff]  ;;  %v5325_v47 = vrot.slane %v5313_v28, 2 }
 0x437   : > { %4676 = vst [vmem:[#allocation3 + $0x1b0] sm:$0xf0] %v4668_v23  ;;  %5252 = vrot.lane.b32.xlu0 %v5241_v15, %s8307_s9  ;;  %v4663_v42 = vpop.permute.xlu1 %4662  ;;  %v5315_v23 = vld [vmem:[#allocation2 + $0x28] sm:$0xfc]  ;;  %v5362_v28 = vld [vmem:[#allocation2 + $0x20] sm:$0x3] }
 0x439   : > { %v4661_v18 = vpop.permute.xlu0 %4660  ;;  %5291 = vrot.lane.b32.xlu1 %v5281_v1, %s8311_s13  ;;  %v5332_v1 = vrot.slane %v5318_v8, 2 }
 0x43a   : > { %v4669_v53 = vsel %vm3341_vm9, %v4659_v48, %v4661_v18  ;;  %v5330_v48 = vsel %vm1223_vm5, %v5328_v3, %v5329_v0  ;;  %v5331_v18 = vrot.slane %v5315_v23, 2  ;;  %v5369_v3 = vmul.f32 %v9144_v25, %v5363_v10 }
 0x43b   : > { %4677 = vst [vmem:[#allocation3 + $0x1b8] sm:$0xf0] %v4669_v53  ;;  %5289 = vrot.lane.b32.xlu0 %v5280_v32, %s8311_s13  ;;  %v4667_v60 = vpop.permute.xlu1 %4666  ;;  %v10783_v32 = vld [vmem:[#allocation2 + $0x8] sm:$0xff]  ;;  %v5361_v53 = vld [vmem:[#allocation2 + $0x18] sm:$0x3] }
 0x43c   : > { %v5365_v5 = vmul.f32 %v10783_v32, %v9257_v36 }
 0x43d   : > { %v4665_v52 = vpop.permute.xlu0 %4664  ;;  %5295 = vrot.lane.b32.xlu1 %v5284_v37, %s8311_s13 }
 0x43e   : > { %v4670_v9 = vsel %vm3341_vm9, %v4663_v42, %v4665_v52  ;;  %v4671_v45 = vsel %vm3341_vm9, %v4665_v52, %v4667_v60  ;;  %v4836_v41 = vld [vmem:[#allocation3 + $0x1b0] sm:$0xff]  ;;  %v5327_v42 = vsel %vm1223_vm5, %v5325_v47, %v5326_v16  ;;  %v5333_v60 = vsel %vm1223_vm5, %v5331_v18, %v5332_v1  ;;  %v5409_v18 = vld [vmem:[#allocation2 + $0x30] sm:$0xf0] }
 0x43f   : > { %4678 = vst [vmem:[#allocation3 + $0x1c0] sm:$0x3f] %v4670_v9  ;;  %4679 = vst [vmem:[#allocation3 + $0x1c8] sm:$0x3f] %v4671_v45  ;;  %5293 = vrot.lane.b32.xlu0 %v5282_v40, %s8311_s13  ;;  %v4710_v17 = vpop.permute.xlu1 %4709  ;;  %v8094_v35 = vpack.c.bf16 %v4836_v41, %v4834_v6  ;;  %v5367_v52 = vmul.f32 %v9076_v2, %v5361_v53  ;;  %v5364_v9 = vmul.f32 %v9076_v2, %v10787_v24 }
 0x440   : > { %v5383_v6 = vrot.slane %v5369_v3, 6  ;;  %v5413_v3 = vld [vmem:[#allocation2 + $0x50] sm:$0x3f] }
 0x441   : > { %v4708_v46 = vpop.permute.xlu0 %4707  ;;  %5299 = vrot.lane.b32.xlu1 %v5288_v57, %s8311_s13 }
 0x442   : > { %v4719_v19 = vsel %vm2258_vm6, %v4708_v46, %v4710_v17  ;;  %v4837_v27 = vld [vmem:[#allocation3 + $0x1b8] sm:$0xff]  ;;  %v5377_v46 = vrot.slane %v5365_v5, 6 }
 0x443   : > { %4727 = vst [vmem:[#allocation3 + $0x1c0] sm:$0xc0] %v4719_v19  ;;  %5297 = vrot.lane.b32.xlu0 %v5286_v26, %s8311_s13  ;;  %v4714_v61 = vpop.permute.xlu1 %4713  ;;  %v8092_v12 = vpack.c.bf16 %v4837_v27, %v4835_v31  ;;  %v5379_v19 = vrot.slane %v5367_v52, 6  ;;  %v5376_v27 = vrot.slane %v5364_v9, 6  ;;  %v5415_v52 = vmul.f32 %v9110_v50, %v5409_v18 }
 0x445   : > { %v4712_v11 = vpop.permute.xlu0 %4711  ;;  %5336 = vrot.lane.b32.xlu1 %v5330_v48, %s8311_s13  ;;  %8093 = vmatprep.subr.bf16.mxu1 %v8092_v12  ;;  %v5380_v12 = vsel %vm1158_vm12, %v5376_v27, %v5379_v19 }
 0x446   : > { %v4720_v15 = vsel %vm2258_vm6, %v4710_v17, %v4712_v11  ;;  %8095 = vmatpush1.bf16.msra.mxu1 %v8094_v35 }
 0x447   : > { %4728 = vst [vmem:[#allocation3 + $0x1c8] sm:$0xc0] %v4720_v15  ;;  %5334 = vrot.lane.b32.xlu0 %v5327_v42, %s8311_s13  ;;  %v4718_v39 = vpop.permute.xlu1 %4717  ;;  %v5410_v42 = vld [vmem:[#allocation2 + $0x38] sm:$0xf0] }
 0x448   : > { %v5416_v53 = vmul.f32 %v5410_v42, %v9211_v7  ;;  %v5460_v42 = vmul.f32 %v9110_v50, %v10627_v21 }
 0x449   : > { %v4716_v33 = vpop.permute.xlu0 %4715  ;;  %5340 = vrot.lane.b32.xlu1 %v5326_v16, %s8311_s13  ;;  %v5366_v16 = vmul.f32 %v9144_v25, %v10798_v44 }
 0x44a   : > { %v4721_v40 = vsel %vm2258_vm6, %v4714_v61, %v4716_v33  ;;  %v4838_v45 = vld [vmem:[#allocation3 + $0x1c0] sm:$0xff]  ;;  %v4722_v17 = vsel %vm2258_vm6, %v4716_v33, %v4718_v39  ;;  %v5368_v61 = vmul.f32 %v5362_v28, %v9257_v36 }
 0x44b   : > { %5338 = vrot.lane.b32.xlu0 %v5333_v60, %s8311_s13  ;;  %v4761_v37 = vpop.permute.xlu1 %4760  ;;  %v8098_v26 = vpack.c.bf16 %v4721_v40, %v4838_v45  ;;  %v5378_v48 = vrot.slane %v5366_v16, 6  ;;  %v5412_v60 = vld [vmem:[#allocation2 + $0x48] sm:$0x3f]  ;;  %v5414_v28 = vld [vmem:[#allocation2 + $0x58] sm:$0x3f] }
 0x44c   : > { %v5381_v11 = vrot.slane %v5368_v61, 6  ;;  %v5452_v16 = vld [vmem:[#allocation2 + $0x50] sm:$0xc0] }
 0x44d   : > { %v4759_v51 = vpop.permute.xlu0 %4758  ;;  %5344 = vrot.lane.b32.xlu1 %v5332_v1, %s8311_s13  ;;  %v5384_v15 = vsel %vm1158_vm12, %v5378_v48, %v5383_v6  ;;  %v5451_v6 = vld [vmem:[#allocation2 + $0x48] sm:$0xc0] }
 0x44e   : > { %v4839_v29 = vld [vmem:[#allocation3 + $0x1c8] sm:$0xff]  ;;  %v5382_v39 = vsel %vm1158_vm12, %v5377_v46, %v5381_v11  ;;  %v4770_v40 = vsel %vm2258_vm6, %v4759_v51, %v4761_v37 }
 0x44f   : > { %5342 = vrot.lane.b32.xlu0 %v5329_v0, %s8311_s13  ;;  %v4765_v57 = vpop.permute.xlu1 %4764  ;;  %v8096_v41 = vpack.c.bf16 %v4722_v17, %v4839_v29  ;;  %v5411_v17 = vld [vmem:[#allocation2 + $0x40] sm:$0xf0] }
 0x450   : > { %v5417_v51 = vmul.f32 %v9192_v55, %v5411_v17 }
 0x451   : > { %v4763_v31 = vpop.permute.xlu0 %4762  ;;  %5387 = vrot.lane.b32.xlu1 %v5377_v46, %s8308_s10  ;;  %8097 = vmatprep.subr.bf16.mxu1 %v8096_v41 }
 0x452   : > { %8099 = vmatpush1.bf16.msra.mxu1 %v8098_v26  ;;  %v4771_v9 = vsel %vm2258_vm6, %v4761_v37, %v4763_v31 }
 0x453   : > { %5385 = vrot.lane.b32.xlu0 %v5376_v27, %s8308_s10  ;;  %v4769_v0 = vpop.permute.xlu1 %4768  ;;  %v5420_v27 = vmul.f32 %v9192_v55, %v5414_v28 }
 0x455   : > { %v4767_v8 = vpop.permute.xlu0 %4766  ;;  %5391 = vrot.lane.b32.xlu1 %v5380_v12, %s8308_s10 }
 0x456   : > { %v4772_v35 = vsel %vm2258_vm6, %v4765_v57, %v4767_v8  ;;  %v4773_v47 = vsel %vm2258_vm6, %v4767_v8, %v4769_v0  ;;  %v5418_v57 = vmul.f32 %v9110_v50, %v5412_v60  ;;  %v5419_v0 = vmul.f32 %v5413_v3, %v9211_v7 }
 0x457   : > { %4780 = vst [vmem:[#allocation3 + $0x1f0] sm:$0x3] %v4772_v35  ;;  %4781 = vst [vmem:[#allocation3 + $0x1f8] sm:$0x3] %v4773_v47  ;;  %5389 = vrot.lane.b32.xlu0 %v5378_v48, %s8308_s10  ;;  %v10812_v23 = vpop.permute.xlu1 %4970  ;;  %v5458_v48 = vmul.f32 %v5452_v16, %v9211_v7  ;;  %v5457_v47 = vmul.f32 %v9110_v50, %v5451_v6 }
 0x459   : > { %v10815_v1 = vpop.permute.xlu0 %4968  ;;  %5395 = vrot.lane.b32.xlu1 %v5384_v15, %s8308_s10  ;;  %v5453_v15 = vld [vmem:[#allocation2 + $0x58] sm:$0xc0] }
 0x45a   : > { %v5459_v18 = vmul.f32 %v9192_v55, %v5453_v15 }
 0x45b   : > { %5393 = vrot.lane.b32.xlu0 %v5382_v39, %s8308_s10  ;;  %v4975_v33 = vpop.permute.xlu1 %4974 }
 0x45d   : > { %v10821_v5 = vpop.permute.xlu0 %4972  ;;  %5429 = vrot.lane.b32.xlu1 %v5416_v53, %s8307_s9 }
 0x45e   : > { %v4845_v45 = vld [vmem:[#allocation3 + $0x1f8] sm:$0x3]  ;;  %v4844_v10 = vld [vmem:[#allocation3 + $0x1f0] sm:$0x3] }
 0x45f   : > { %5427 = vrot.lane.b32.xlu0 %v5415_v52, %s8307_s9  ;;  %v4979_v29 = vpop.permute.xlu1 %4978  ;;  %v8100_v46 = vpack.c.bf16 %v4845_v45, %v4771_v9  ;;  %v8103_v41 = vpack.c.bf16 %v4844_v10, %v4770_v40  ;;  %v5462_v40 = vmul.f32 %v9192_v55, %v10639_v43  ;;  %v5494_v9 = vld [vmem:[#allocation2 + $0x38] sm:$0xf0]  ;;  %v5496_v45 = vld [vmem:[#allocation2 + $0x48] sm:$0x3f] }
 0x461   : > { %v4977_v19 = vpop.permute.xlu0 %4976  ;;  %5433 = vrot.lane.b32.xlu1 %v5418_v57, %s8307_s9  ;;  %8102 = vmatprep.subr.msk.bf16.mxu1 %vm10506_vm14, %v8100_v46  ;;  %v5493_v46 = vld [vmem:[#allocation2 + $0x30] sm:$0xf0] }
 0x462   : > { %v4982_v37 = vsel %vm2287_vm2, %v4975_v33, %v4977_v19  ;;  %v4983_v26 = vsel %vm2287_vm2, %v4977_v19, %v4979_v29  ;;  %8105 = vmatpush1.bf16.msk.msra.mxu1 %vm10506_vm14, %v8103_v41  ;;  %v5497_v33 = vld [vmem:[#allocation2 + $0x50] sm:$0x3f]  ;;  %v5461_v29 = vmul.f32 %v10622_v14, %v9211_v7  ;;  %v4981_v41 = vsel %vm2287_vm2, %v10812_v23, %v10821_v5 }
 0x463   : > { %4990 = vst [vmem:[#allocation3 + $0x10] sm:$0x3] %v4982_v37  ;;  %4991 = vst [vmem:[#allocation3 + $0x18] sm:$0x3] %v4983_v26  ;;  %5431 = vrot.lane.b32.xlu0 %v5417_v51, %s8307_s9  ;;  %v5022_v31 = vpop.permute.xlu1 %5021  ;;  %v5509_v10 = vrot.slane %v5497_v33, 4  ;;  %v5508_v19 = vrot.slane %v5494_v9, 4  ;;  %v4980_v26 = vsel %vm2287_vm2, %v10815_v1, %v10812_v23 }
 0x464   : > { %v5506_v37 = vrot.slane %v5496_v45, 4  ;;  %v5538_v33 = vld [vmem:[#allocation2 + $0x48] sm:$0xc0] }
 0x465   : > { %v5020_v61 = vpop.permute.xlu0 %5019  ;;  %5437 = vrot.lane.b32.xlu1 %v5420_v27, %s8307_s9  ;;  %4917 = vmatmul.mubr.f32.vlgmr.msra.gmra.mrb[32].mxu1 %v10668_v20  ;;  %v5498_v27 = vld [vmem:[#allocation2 + $0x58] sm:$0x3f]  ;;  %v5510_v16 = vsel %vm2140_vm13, %v5508_v19, %v5509_v10  ;;  %v5550_v45 = vrot.slane %v5538_v33, 4 }
 0x466   : > { %v5031_v12 = vsel %vm2287_vm2, %v5020_v61, %v5022_v31  ;;  %v5512_v1 = vrot.slane %v5498_v27, 4 }
 0x467   : > { %5039 = vst [vmem:[#allocation3 + $0x10] sm:$0xfc] %v5031_v12  ;;  %5435 = vrot.lane.b32.xlu0 %v5419_v0, %s8307_s9  ;;  %v5026_v8 = vpop.permute.xlu1 %5025  ;;  %v5505_v0 = vrot.slane %v5493_v46, 4  ;;  %v5495_v12 = vld [vmem:[#allocation2 + $0x40] sm:$0xf0]  ;;  %v5557_v46 = vrot.slane %v10639_v43, 4 }
 0x469   : > { %v5024_v35 = vpop.permute.xlu0 %5023  ;;  %5471 = vrot.lane.b32.xlu1 %v5458_v48, %s8307_s9  ;;  %v5507_v23 = vsel %vm2140_vm13, %v5505_v0, %v5506_v37  ;;  %v5511_v48 = vrot.slane %v5495_v12, 4  ;;  %v5586_v12 = vld [vmem:[#allocation2 + $0x48] sm:$0x3f] }
 0x46a   : > { %v5032_v11 = vsel %vm2287_vm2, %v5022_v31, %v5024_v35 }
 0x46b   : > { %5040 = vst [vmem:[#allocation3 + $0x18] sm:$0xfc] %v5032_v11  ;;  %5469 = vrot.lane.b32.xlu0 %v5457_v47, %s8307_s9  ;;  %v5030_v20 = vpop.permute.xlu1 %5029  ;;  %v5513_v15 = vsel %vm2140_vm13, %v5511_v48, %v5512_v1 }
 0x46d   : > { %v5028_v39 = vpop.permute.xlu0 %5027  ;;  %5475 = vrot.lane.b32.xlu1 %v5460_v42, %s8307_s9  ;;  %v5539_v42 = vld [vmem:[#allocation2 + $0x50] sm:$0xc0] }
 0x46e   : > { %v5033_v53 = vsel %vm2287_vm2, %v5026_v8, %v5028_v39  ;;  %v5034_v60 = vsel %vm2287_vm2, %v5028_v39, %v5030_v20  ;;  %v6095_v57 = vld [vmem:[#allocation3 + $0x10] sm:$0xff]  ;;  %v5554_v39 = vrot.slane %v10622_v14, 4  ;;  %v5540_v14 = vld [vmem:[#allocation2 + $0x58] sm:$0xc0] }
 0x46f   : > { %5041 = vst [vmem:[#allocation3 + $0x20] sm:$0xf] %v5033_v53  ;;  %5042 = vst [vmem:[#allocation3 + $0x28] sm:$0xf] %v5034_v60  ;;  %5473 = vrot.lane.b32.xlu0 %v5459_v18, %s8307_s9  ;;  %v5058_v52 = vpop.permute.xlu1 %5057  ;;  %v8108_v61 = vpack.c.bf16 %v6095_v57, %v4980_v26  ;;  %v5553_v60 = vrot.slane %v5539_v42, 4 }
 0x470   : > { %v5588_v42 = vld [vmem:[#allocation2 + $0x58] sm:$0x3f] }
 0x471   : > { %v5056_v17 = vpop.permute.xlu0 %5055  ;;  %5479 = vrot.lane.b32.xlu1 %v5462_v40, %s8307_s9  ;;  %v5555_v9 = vsel %vm2140_vm13, %v5553_v60, %v5554_v39 }
 0x472   : > { %v5067_v28 = vsel %vm2375_vm8, %v5056_v17, %v5058_v52  ;;  %v6096_v51 = vld [vmem:[#allocation3 + $0x18] sm:$0xff] }
 0x473   : > { %5075 = vst [vmem:[#allocation3 + $0x20] sm:$0xf0] %v5067_v28  ;;  %5477 = vrot.lane.b32.xlu0 %v5461_v29, %s8307_s9  ;;  %v5062_v3 = vpop.permute.xlu1 %5061  ;;  %v8106_v31 = vpack.c.bf16 %v6096_v51, %v4981_v41  ;;  %v5556_v41 = vrot.slane %v5540_v14, 4  ;;  %v5584_v51 = vld [vmem:[#allocation2 + $0x38] sm:$0xf0] }
 0x475   : > { %v5060_v5 = vpop.permute.xlu0 %5059  ;;  %5516 = vrot.lane.b32.xlu1 %v5510_v16, %s8311_s13  ;;  %8107 = vmatprep.subr.bf16.mxu0 %v8106_v31  ;;  %v5558_v28 = vsel %vm2140_vm13, %v5556_v41, %v5557_v46  ;;  %v5583_v31 = vld [vmem:[#allocation2 + $0x30] sm:$0xf0]  ;;  %v5590_v16 = vmul.f32 %v5584_v51, %v9257_v36 }
 0x476   : > { %v5068_v6 = vsel %vm2375_vm8, %v5058_v52, %v5060_v5  ;;  %8109 = vmatpush1.bf16.msra.mxu0 %v8108_v61  ;;  %v5551_v52 = vrot.slane %v10627_v21, 4 }
 0x477   : > { %5076 = vst [vmem:[#allocation3 + $0x28] sm:$0xf0] %v5068_v6  ;;  %5514 = vrot.lane.b32.xlu0 %v5507_v23, %s8311_s13  ;;  %v5066_v8 = vpop.permute.xlu1 %5065 }
 0x478   : > { %v5552_v57 = vsel %vm2140_vm13, %v5550_v45, %v5551_v52  ;;  %v5594_v45 = vmul.f32 %v9144_v25, %v5588_v42 }
 0x479   : > { %v5064_v35 = vpop.permute.xlu0 %5063  ;;  %5520 = vrot.lane.b32.xlu1 %v5506_v37, %s8311_s13 }
 0x47a   : > { %v5069_v47 = vsel %vm2375_vm8, %v5062_v3, %v5064_v35  ;;  %v5070_v11 = vsel %vm2375_vm8, %v5064_v35, %v5066_v8  ;;  %v6097_v0 = vld [vmem:[#allocation3 + $0x20] sm:$0xff]  ;;  %v5585_v35 = vld [vmem:[#allocation2 + $0x40] sm:$0xf0] }
 0x47b   : > { %5077 = vst [vmem:[#allocation3 + $0x30] sm:$0x3f] %v5069_v47  ;;  %5078 = vst [vmem:[#allocation3 + $0x38] sm:$0x3f] %v5070_v11  ;;  %5518 = vrot.lane.b32.xlu0 %v5513_v15, %s8311_s13  ;;  %v5094_v20 = vpop.permute.xlu1 %5093  ;;  %v5592_v15 = vmul.f32 %v9076_v2, %v5586_v12  ;;  %v5591_v33 = vmul.f32 %v9144_v25, %v5585_v35  ;;  %v5676_v35 = vld [vmem:[#allocation2 + $0x18] sm:$0xfc] }
 0x47d   : > { %v5092_v18 = vpop.permute.xlu0 %5091  ;;  %5524 = vrot.lane.b32.xlu1 %v5512_v1, %s8311_s13  ;;  %v5589_v1 = vmul.f32 %v9076_v2, %v5583_v31 }
 0x47e   : > { %v5103_v53 = vsel %vm2375_vm8, %v5092_v18, %v5094_v20  ;;  %v6098_v3 = vld [vmem:[#allocation3 + $0x28] sm:$0xff] }
 0x47f   : > { %5111 = vst [vmem:[#allocation3 + $0x30] sm:$0xc0] %v5103_v53  ;;  %5522 = vrot.lane.b32.xlu0 %v5509_v10, %s8311_s13  ;;  %v5098_v40 = vpop.permute.xlu1 %5097  ;;  %v5628_v53 = vld [vmem:[#allocation2 + $0x18] sm:$0x3] }
 0x480   : > { %v5634_v14 = vmul.f32 %v9021_v49, %v5628_v53  ;;  %v5682_v53 = vmul.f32 %v9021_v49, %v5676_v35 }
 0x481   : > { %v5096_v17 = vpop.permute.xlu0 %5095  ;;  %5561 = vrot.lane.b32.xlu1 %v5555_v9, %s8311_s13 }
 0x482   : > { %v5104_v29 = vsel %vm2375_vm8, %v5094_v20, %v5096_v17  ;;  %v5632_v17 = vmul.f32 %v10783_v32, %v9096_v58  ;;  %v5646_v51 = vrot.slane %v5634_v14, 2 }
 0x483   : > { %5112 = vst [vmem:[#allocation3 + $0x38] sm:$0xc0] %v5104_v29  ;;  %5559 = vrot.lane.b32.xlu0 %v5552_v57, %s8311_s13  ;;  %v5102_v21 = vpop.permute.xlu1 %5101 }
 0x485   : > { %v5100_v10 = vpop.permute.xlu0 %5099  ;;  %5565 = vrot.lane.b32.xlu1 %v5551_v52, %s8311_s13 }
 0x486   : > { %v6099_v26 = vld [vmem:[#allocation3 + $0x30] sm:$0xff]  ;;  %v5106_v8 = vsel %vm2375_vm8, %v5100_v10, %v5102_v21  ;;  %v5105_v47 = vsel %vm2375_vm8, %v5098_v40, %v5100_v10  ;;  %v5587_v40 = vld [vmem:[#allocation2 + $0x50] sm:$0x3f]  ;;  %v5629_v10 = vld [vmem:[#allocation2 + $0x20] sm:$0x3] }
 0x487   : > { %5563 = vrot.lane.b32.xlu0 %v5558_v28, %s8311_s13  ;;  %v5145_v19 = vpop.permute.xlu1 %5144  ;;  %v8112_v5 = vpack.c.bf16 %v6099_v26, %v6097_v0  ;;  %v5593_v57 = vmul.f32 %v5587_v40, %v9257_v36  ;;  %v5630_v21 = vld [vmem:[#allocation2 + $0x28] sm:$0x3]  ;;  %v5635_v31 = vmul.f32 %v5629_v10, %v9096_v58  ;;  %v5677_v0 = vld [vmem:[#allocation2 + $0x20] sm:$0xfc]  ;;  %v5678_v40 = vld [vmem:[#allocation2 + $0x28] sm:$0xfc] }
 0x489   : > { %v5143_v37 = vpop.permute.xlu0 %5142  ;;  %5569 = vrot.lane.b32.xlu1 %v5557_v46, %s8311_s13  ;;  %v5631_v46 = vmul.f32 %v9021_v49, %v10787_v24 }
 0x48a   : > { %v6100_v43 = vld [vmem:[#allocation3 + $0x38] sm:$0xff]  ;;  %v5154_v6 = vsel %vm2474_vm11, %v5143_v37, %v5145_v19  ;;  %v5636_v37 = vmul.f32 %v9072_v63, %v5630_v21  ;;  %v5684_v21 = vmul.f32 %v9072_v63, %v5678_v40 }
 0x48b   : > { %5567 = vrot.lane.b32.xlu0 %v5554_v39, %s8311_s13  ;;  %v5149_v27 = vpop.permute.xlu1 %5148  ;;  %v8110_v61 = vpack.c.bf16 %v6100_v43, %v6098_v3  ;;  %v8116_v39 = vpack.c.bf16 %v5154_v6, %v5105_v47  ;;  %v5643_v3 = vrot.slane %v5631_v46, 2  ;;  %v5633_v43 = vmul.f32 %v9072_v63, %v10798_v44 }
 0x48c   : > { %v5650_v6 = vrot.slane %v5636_v37, 2  ;;  %v5694_v46 = vrot.slane %v5682_v53, 2  ;;  %v5700_v37 = vrot.slane %v5684_v21, 2 }
 0x48d   : > { %v5147_v23 = vpop.permute.xlu0 %5146  ;;  %5603 = vrot.lane.b32.xlu1 %v5590_v16, %s8308_s10  ;;  %8111 = vmatprep.subr.bf16.mxu0 %v8110_v61  ;;  %v5647_v12 = vsel %vm1223_vm5, %v5643_v3, %v5646_v51 }
 0x48e   : > { %v5155_v48 = vsel %vm2474_vm11, %v5145_v19, %v5147_v23  ;;  %8113 = vmatpush1.bf16.msra.mxu0 %v8112_v5  ;;  %v5644_v19 = vrot.slane %v5632_v17, 2  ;;  %v5679_v5 = vld [vmem:[#allocation2 + $0x30] sm:$0xf] }
 0x48f   : > { %5601 = vrot.lane.b32.xlu0 %v5589_v1, %s8308_s10  ;;  %v5153_v11 = vpop.permute.xlu1 %5152  ;;  %v8114_v20 = vpack.c.bf16 %v5155_v48, %v5106_v8  ;;  %v5645_v8 = vrot.slane %v5633_v43, 2  ;;  %v5648_v48 = vrot.slane %v5635_v31, 2 }
 0x491   : > { %v5151_v18 = vpop.permute.xlu0 %5150  ;;  %5607 = vrot.lane.b32.xlu1 %v5592_v15, %s8308_s10  ;;  %8115 = vmatprep.subr.bf16.mxu0 %v8114_v20  ;;  %v5683_v15 = vmul.f32 %v5677_v0, %v9096_v58  ;;  %v5685_v20 = vmul.f32 %v9021_v49, %v5679_v5  ;;  %v5730_v0 = vld [vmem:[#allocation2 + $0x18] sm:$0x3] }
 0x492   : > { %v5156_v60 = vsel %vm2474_vm11, %v5149_v27, %v5151_v18  ;;  %v5157_v52 = vsel %vm2474_vm11, %v5151_v18, %v5153_v11  ;;  %8117 = vmatpush1.bf16.msra.mxu0 %v8116_v39  ;;  %v5680_v27 = vld [vmem:[#allocation2 + $0x38] sm:$0xf]  ;;  %v5681_v39 = vld [vmem:[#allocation2 + $0x40] sm:$0xf]  ;;  %v5651_v18 = vsel %vm1223_vm5, %v5645_v8, %v5650_v6 }
 0x493   : > { %5164 = vst [vmem:[#allocation3 + $0x60] sm:$0x3] %v5156_v60  ;;  %5165 = vst [vmem:[#allocation3 + $0x68] sm:$0x3] %v5157_v52  ;;  %5605 = vrot.lane.b32.xlu0 %v5591_v33, %s8308_s10  ;;  %v5196_v9 = vpop.permute.xlu1 %5195  ;;  %v5686_v23 = vmul.f32 %v5680_v27, %v9096_v58  ;;  %v5649_v52 = vsel %vm1223_vm5, %v5644_v19, %v5648_v48  ;;  %v5695_v17 = vrot.slane %v5685_v20, 2 }
 0x494   : > { %v5687_v14 = vmul.f32 %v9072_v63, %v5681_v39  ;;  %v5732_v20 = vld [vmem:[#allocation2 + $0x28] sm:$0x3] }
 0x495   : > { %v5194_v29 = vpop.permute.xlu0 %5193  ;;  %5611 = vrot.lane.b32.xlu1 %v5594_v45, %s8308_s10  ;;  %v5698_v33 = vrot.slane %v5686_v23, 2  ;;  %v5697_v45 = vrot.slane %v5683_v15, 2  ;;  %v5739_v15 = vrot.slane %v10787_v24, 6  ;;  %v5746_v53 = vrot.slane %v5732_v20, 6 }
 0x496   : > { %v5205_v41 = vsel %vm2778_vm7, %v5194_v29, %v5196_v9 }
 0x497   : > { %5213 = vst [vmem:[#allocation3 + $0x60] sm:$0xfc] %v5205_v41  ;;  %5609 = vrot.lane.b32.xlu0 %v5593_v57, %s8308_s10  ;;  %v5200_v28 = vpop.permute.xlu1 %5199  ;;  %v5699_v57 = vsel %vm1223_vm5, %v5697_v45, %v5698_v33 }
 0x499   : > { %v5198_v26 = vpop.permute.xlu0 %5197  ;;  %5654 = vrot.lane.b32.xlu1 %v5644_v19, %s8305_s7  ;;  %v5701_v19 = vrot.slane %v5687_v14, 2 }
 0x49a   : > { %v5206_v16 = vsel %vm2778_vm7, %v5196_v9, %v5198_v26 }
 0x49b   : > { %5214 = vst [vmem:[#allocation3 + $0x68] sm:$0xfc] %v5206_v16  ;;  %5652 = vrot.lane.b32.xlu0 %v5643_v3, %s8305_s7  ;;  %v5204_v61 = vpop.permute.xlu1 %5203  ;;  %v5702_v31 = vsel %vm1223_vm5, %v5700_v37, %v5701_v19 }
 0x49d   : > { %v5202_v1 = vpop.permute.xlu0 %5201  ;;  %5658 = vrot.lane.b32.xlu1 %v5647_v12, %s8305_s7 }
 0x49e   : > { %v5207_v47 = vsel %vm2778_vm7, %v5200_v28, %v5202_v1  ;;  %v5208_v11 = vsel %vm2778_vm7, %v5202_v1, %v5204_v61  ;;  %v5696_v28 = vsel %vm1223_vm5, %v5694_v46, %v5695_v17  ;;  %v5740_v1 = vrot.slane %v10783_v32, 6  ;;  %v6105_v48 = vld [vmem:[#allocation3 + $0x60] sm:$0xff] }
 0x49f   : > { %5215 = vst [vmem:[#allocation3 + $0x70] sm:$0xf] %v5207_v47  ;;  %5216 = vst [vmem:[#allocation3 + $0x78] sm:$0xf] %v5208_v11  ;;  %5656 = vrot.lane.b32.xlu0 %v5645_v8, %s8305_s7  ;;  %v5247_v42 = vpop.permute.xlu1 %5246  ;;  %v5742_v47 = vrot.slane %v5730_v0, 6 }
 0x4a0   : > { %v5776_v0 = vld [vmem:[#allocation2 + $0x38] sm:$0xf] }
 0x4a1   : > { %v5245_v60 = vpop.permute.xlu0 %5244  ;;  %5662 = vrot.lane.b32.xlu1 %v5651_v18, %s8305_s7  ;;  %v5731_v18 = vld [vmem:[#allocation2 + $0x20] sm:$0x3] }
 0x4a2   : > { %v5256_v9 = vsel %vm2778_vm7, %v5245_v60, %v5247_v42  ;;  %v6106_v12 = vld [vmem:[#allocation3 + $0x68] sm:$0xff]  ;;  %v5744_v40 = vrot.slane %v5731_v18, 6  ;;  %v5822_v18 = vld [vmem:[#allocation2 + $0x28] sm:$0x3] }
 0x4a3   : > { %5264 = vst [vmem:[#allocation3 + $0x70] sm:$0xf0] %v5256_v9  ;;  %5660 = vrot.lane.b32.xlu0 %v5649_v52, %s8305_s7  ;;  %v5251_v29 = vpop.permute.xlu1 %5250  ;;  %v5741_v52 = vrot.slane %v10798_v44, 6 }
 0x4a5   : > { %v5249_v41 = vpop.permute.xlu0 %5248  ;;  %5705 = vrot.lane.b32.xlu1 %v5699_v57, %s8305_s7  ;;  %v5747_v45 = vsel %vm1158_vm12, %v5741_v52, %v5746_v53  ;;  %v5775_v57 = vld [vmem:[#allocation2 + $0x30] sm:$0xf] }
 0x4a6   : > { %v5257_v10 = vsel %vm2778_vm7, %v5247_v42, %v5249_v41  ;;  %v5745_v41 = vsel %vm1158_vm12, %v5740_v1, %v5744_v40 }
 0x4a7   : > { %5265 = vst [vmem:[#allocation3 + $0x78] sm:$0xf0] %v5257_v10  ;;  %5703 = vrot.lane.b32.xlu0 %v5696_v28, %s8305_s7  ;;  %v5255_v51 = vpop.permute.xlu1 %5254  ;;  %v5772_v10 = vld [vmem:[#allocation2 + $0x18] sm:$0xfc] }
 0x4a9   : > { %v5253_v26 = vpop.permute.xlu0 %5252  ;;  %5709 = vrot.lane.b32.xlu1 %v5695_v17, %s8305_s7  ;;  %v5773_v17 = vld [vmem:[#allocation2 + $0x20] sm:$0xfc] }
 0x4aa   : > { %v5258_v3 = vsel %vm2778_vm7, %v5251_v29, %v5253_v26  ;;  %v5259_v43 = vsel %vm2778_vm7, %v5253_v26, %v5255_v51  ;;  %v6107_v61 = vld [vmem:[#allocation3 + $0x70] sm:$0xff]  ;;  %v5785_v51 = vrot.slane %v5773_v17, 6  ;;  %v5787_v26 = vrot.slane %v5775_v57, 6  ;;  %v5872_v57 = vld [vmem:[#allocation2 + $0x50] sm:$0x3f] }
 0x4ab   : > { %5266 = vst [vmem:[#allocation3 + $0x80] sm:$0x3f] %v5258_v3  ;;  %5267 = vst [vmem:[#allocation3 + $0x88] sm:$0x3f] %v5259_v43  ;;  %5707 = vrot.lane.b32.xlu0 %v5702_v31, %s8305_s7  ;;  %v5292_v27 = vpop.permute.xlu1 %5291  ;;  %v8120_v35 = vpack.c.bf16 %v6107_v61, %v6105_v48  ;;  %v5784_v31 = vrot.slane %v5772_v10, 6 }
 0x4ac   : > { %v5871_v10 = vld [vmem:[#allocation2 + $0x48] sm:$0x3f] }
 0x4ad   : > { %v5290_v16 = vpop.permute.xlu0 %5289  ;;  %5713 = vrot.lane.b32.xlu1 %v5701_v19, %s8305_s7 }
 0x4ae   : > { %v5301_v5 = vsel %vm238_vm10, %v5290_v16, %v5292_v27  ;;  %v6108_v6 = vld [vmem:[#allocation3 + $0x78] sm:$0xff]  ;;  %v5774_v16 = vld [vmem:[#allocation2 + $0x28] sm:$0xfc] }
 0x4af   : > { %5309 = vst [vmem:[#allocation3 + $0x80] sm:$0xc0] %v5301_v5  ;;  %5711 = vrot.lane.b32.xlu0 %v5698_v33, %s8305_s7  ;;  %v5296_v23 = vpop.permute.xlu1 %5295  ;;  %v8118_v8 = vpack.c.bf16 %v6108_v6, %v6106_v12  ;;  %v5743_v33 = vsel %vm1158_vm12, %v5739_v15, %v5742_v47  ;;  %v5788_v5 = vsel %vm1158_vm12, %v5784_v31, %v5787_v26 }
 0x4b1   : > { %v5294_v11 = vpop.permute.xlu0 %5293  ;;  %5750 = vrot.lane.b32.xlu1 %v5740_v1, %s8313_s15  ;;  %8119 = vmatprep.subr.bf16.mxu0 %v8118_v8  ;;  %v5820_v1 = vld [vmem:[#allocation2 + $0x18] sm:$0x3] }
 0x4b2   : > { %v5302_v42 = vsel %vm238_vm10, %v5292_v27, %v5294_v11  ;;  %8121 = vmatpush1.bf16.msra.mxu0 %v8120_v35  ;;  %v5777_v27 = vld [vmem:[#allocation2 + $0x40] sm:$0xf]  ;;  %v5789_v35 = vrot.slane %v5776_v0, 6  ;;  %v5824_v11 = vmul.f32 %v10783_v32, %v9166_v54  ;;  %v5826_v20 = vmul.f32 %v11897_v13, %v5820_v1 }
 0x4b3   : > { %5310 = vst [vmem:[#allocation3 + $0x88] sm:$0xc0] %v5302_v42  ;;  %5748 = vrot.lane.b32.xlu0 %v5739_v15, %s8313_s15  ;;  %v5300_v39 = vpop.permute.xlu1 %5299  ;;  %v5791_v12 = vrot.slane %v5777_v27, 6  ;;  %v5877_v27 = vmul.f32 %v9021_v49, %v5871_v10 }
 0x4b4   : > { %v5790_v53 = vsel %vm1158_vm12, %v5785_v51, %v5789_v35  ;;  %v5836_v32 = vrot.slane %v5824_v11, 2  ;;  %v5838_v40 = vrot.slane %v5826_v20, 2  ;;  %v5870_v11 = vld [vmem:[#allocation2 + $0x40] sm:$0xf0] }
 0x4b5   : > { %v5298_v60 = vpop.permute.xlu0 %5297  ;;  %5754 = vrot.lane.b32.xlu1 %v5743_v33, %s8313_s15 }
 0x4b6   : > { %v5303_v14 = vsel %vm238_vm10, %v5296_v23, %v5298_v60  ;;  %v6109_v46 = vld [vmem:[#allocation3 + $0x80] sm:$0xff]  ;;  %v5304_v21 = vsel %vm238_vm10, %v5298_v60, %v5300_v39  ;;  %v5786_v23 = vrot.slane %v5774_v16, 6  ;;  %v5823_v39 = vmul.f32 %v11897_v13, %v10787_v24 }
 0x4b7   : > { %5752 = vrot.lane.b32.xlu0 %v5741_v52, %s8313_s15  ;;  %v10964_v9 = vpop.permute.xlu1 %5336  ;;  %v8124_v3 = vpack.c.bf16 %v5303_v14, %v6109_v46  ;;  %v5821_v52 = vld [vmem:[#allocation2 + $0x20] sm:$0x3]  ;;  %v5825_v24 = vmul.f32 %v11898_v4, %v10798_v44 }
 0x4b8   : > { %v5792_v15 = vsel %vm1158_vm12, %v5786_v23, %v5791_v12  ;;  %v5835_v14 = vrot.slane %v5823_v39, 2  ;;  %v5873_v12 = vld [vmem:[#allocation2 + $0x58] sm:$0x3f] }
 0x4b9   : > { %v10968_v29 = vpop.permute.xlu0 %5334  ;;  %5758 = vrot.lane.b32.xlu1 %v5747_v45, %s8313_s15  ;;  %v5828_v45 = vmul.f32 %v11898_v4, %v5822_v18  ;;  %v5837_v44 = vrot.slane %v5825_v24, 2  ;;  %v5879_v18 = vmul.f32 %v9072_v63, %v5873_v12  ;;  %v6254_v24 = vld [vmem:[#allocation2 + $0x58] sm:$0xc0] }
 0x4ba   : > { %v6110_v28 = vld [vmem:[#allocation3 + $0x88] sm:$0xff] }
 0x4bb   : > { %5756 = vrot.lane.b32.xlu0 %v5745_v41, %s8313_s15  ;;  %v5341_v19 = vpop.permute.xlu1 %5340  ;;  %v8122_v37 = vpack.c.bf16 %v5304_v21, %v6110_v28  ;;  %v5827_v21 = vmul.f32 %v5821_v52, %v9166_v54  ;;  %v5869_v41 = vld [vmem:[#allocation2 + $0x38] sm:$0xf0] }
 0x4bd   : > { %v10974_v43 = vpop.permute.xlu0 %5338  ;;  %5795 = vrot.lane.b32.xlu1 %v5785_v51, %s8313_s15  ;;  %8123 = vmatprep.subr.bf16.mxu0 %v8122_v37  ;;  %v5842_v51 = vrot.slane %v5828_v45, 2  ;;  %v11002_v37 = vmul.f32 %v5872_v57, %v9096_v58  ;;  %v5840_v0 = vrot.slane %v5827_v21, 2  ;;  %v5876_v45 = vmul.f32 %v9072_v63, %v5870_v11  ;;  %v6307_v11 = vld [vmem:[#allocation2 + $0x50] sm:$0x3f] }
 0x4be   : > { %8125 = vmatpush1.bf16.msra.mxu0 %v8124_v3  ;;  %v5875_v3 = vmul.f32 %v5869_v41, %v9096_v58 }
 0x4bf   : > { %5793 = vrot.lane.b32.xlu0 %v5784_v31, %s8313_s15  ;;  %v5345_v61 = vpop.permute.xlu1 %5344  ;;  %v5868_v31 = vld [vmem:[#allocation2 + $0x30] sm:$0xf0]  ;;  %v5892_v21 = vrot.slane %v5876_v45, 4 }
 0x4c0   : > { %v5874_v1 = vmul.f32 %v9021_v49, %v5868_v31 }
 0x4c1   : > { %v5343_v6 = vpop.permute.xlu0 %5342  ;;  %5799 = vrot.lane.b32.xlu1 %v5788_v5, %s8313_s15 }
 0x4c2   : > { %v5348_v8 = vsel %vm238_vm10, %v5341_v19, %v5343_v6  ;;  %v5349_v48 = vsel %vm238_vm10, %v5343_v6, %v5345_v61  ;;  %v5839_v19 = vsel %vm1223_vm5, %v5835_v14, %v5838_v40  ;;  %v5843_v6 = vsel %vm1223_vm5, %v5837_v44, %v5842_v51 }
 0x4c3   : > { %5356 = vst [vmem:[#allocation3 + $0xb0] sm:$0x3] %v5348_v8  ;;  %5357 = vst [vmem:[#allocation3 + $0xb8] sm:$0x3] %v5349_v48  ;;  %5797 = vrot.lane.b32.xlu0 %v5786_v23, %s8313_s15  ;;  %v5388_v47 = vpop.permute.xlu1 %5387  ;;  %v5890_v23 = vrot.slane %v11002_v37, 4  ;;  %v5889_v48 = vrot.slane %v5875_v3, 4 }
 0x4c5   : > { %v5386_v42 = vpop.permute.xlu0 %5385  ;;  %5803 = vrot.lane.b32.xlu1 %v5792_v15, %s8313_s15  ;;  %v5347_v15 = vsel %vm238_vm10, %v10964_v9, %v10974_v43  ;;  %v5891_v52 = vsel %vm2140_vm13, %v5889_v48, %v5890_v23  ;;  %v5886_v43 = vrot.slane %v5874_v1, 4 }
 0x4c6   : > { %v5397_v33 = vsel %vm2740_vm4, %v5386_v42, %v5388_v47  ;;  %v5841_v42 = vsel %vm1223_vm5, %v5836_v32, %v5840_v0 }
 0x4c7   : > { %5405 = vst [vmem:[#allocation3 + $0xb0] sm:$0xfc] %v5397_v33  ;;  %5801 = vrot.lane.b32.xlu0 %v5790_v53, %s8313_s15  ;;  %v5392_v60 = vpop.permute.xlu1 %5391  ;;  %v5346_v33 = vsel %vm238_vm10, %v10968_v29, %v10964_v9  ;;  %v5893_v29 = vrot.slane %v5879_v18, 4 }
 0x4c9   : > { %v5390_v17 = vpop.permute.xlu0 %5389  ;;  %5846 = vrot.lane.b32.xlu1 %v5836_v32, %s8306_s8  ;;  %v11027_v32 = vld [vmem:[#allocation2 + $0x70] sm:$0xff] }
 0x4ca   : > { %v5398_v46 = vsel %vm2740_vm4, %v5388_v47, %v5390_v17  ;;  %v5887_v47 = vrot.slane %v5877_v27, 4  ;;  %v6263_v41 = vmul.f32 %v9038_v59, %v11027_v32 }
 0x4cb   : > { %5406 = vst [vmem:[#allocation3 + $0xb8] sm:$0xfc] %v5398_v46  ;;  %5844 = vrot.lane.b32.xlu0 %v5835_v14, %s8306_s8  ;;  %v5396_v28 = vpop.permute.xlu1 %5395  ;;  %v11032_v46 = vld [vmem:[#allocation2 + $0x68] sm:$0xff] }
 0x4cc   : > { %v5888_v9 = vsel %vm2140_vm13, %v5886_v43, %v5887_v47  ;;  %v6277_v31 = vrot.slane %v6263_v41, 6 }
 0x4cd   : > { %v5394_v26 = vpop.permute.xlu0 %5393  ;;  %5850 = vrot.lane.b32.xlu1 %v5839_v19, %s8306_s8  ;;  %v6253_v19 = vld [vmem:[#allocation2 + $0x50] sm:$0xc0] }
 0x4ce   : > { %v5399_v16 = vsel %vm2740_vm4, %v5392_v60, %v5394_v26  ;;  %v5400_v61 = vsel %vm2740_vm4, %v5394_v26, %v5396_v28  ;;  %v6115_v35 = vld [vmem:[#allocation3 + $0xb0] sm:$0xff]  ;;  %v6260_v28 = vmul.f32 %v9038_v59, %v6254_v24  ;;  %v5894_v26 = vsel %vm2140_vm13, %v5892_v21, %v5893_v29 }
 0x4cf   : > { %5407 = vst [vmem:[#allocation3 + $0xc0] sm:$0xf] %v5399_v16  ;;  %5408 = vst [vmem:[#allocation3 + $0xc8] sm:$0xf] %v5400_v61  ;;  %5848 = vrot.lane.b32.xlu0 %v5837_v44, %s8306_s8  ;;  %v5430_v5 = vpop.permute.xlu1 %5429  ;;  %v8128_v40 = vpack.c.bf16 %v6115_v35, %v5346_v33  ;;  %v6262_v44 = vmul.f32 %v11032_v46, %v9047_v56  ;;  %v6259_v27 = vmul.f32 %v6253_v19, %v9047_v56 }
 0x4d0   : > { %v6276_v61 = vrot.slane %v6260_v28, 6  ;;  %v6319_v33 = vrot.slane %v6307_v11, 2 }
 0x4d1   : > { %v5428_v8 = vpop.permute.xlu0 %5427  ;;  %5854 = vrot.lane.b32.xlu1 %v5843_v6, %s8306_s8  ;;  %v6274_v0 = vrot.slane %v6262_v44, 6  ;;  %v6273_v6 = vrot.slane %v6259_v27, 6 }
 0x4d2   : > { %v5439_v20 = vsel %vm2778_vm7, %v5428_v8, %v5430_v5  ;;  %v6116_v39 = vld [vmem:[#allocation3 + $0xb8] sm:$0xff]  ;;  %v6278_v12 = vsel %vm1158_vm12, %v6276_v61, %v6277_v31  ;;  %v11050_v8 = vld [vmem:[#allocation2 + $0x58] sm:$0x3f] }
 0x4d3   : > { %5447 = vst [vmem:[#allocation3 + $0xc0] sm:$0xf0] %v5439_v20  ;;  %5852 = vrot.lane.b32.xlu0 %v5841_v42, %s8306_s8  ;;  %v5434_v53 = vpop.permute.xlu1 %5433  ;;  %v8126_v60 = vpack.c.bf16 %v6116_v39, %v5347_v15  ;;  %v6275_v48 = vsel %vm1158_vm12, %v6273_v6, %v6274_v0  ;;  %v6322_v15 = vrot.slane %v11050_v8, 2  ;;  %v6304_v42 = vld [vmem:[#allocation2 + $0x38] sm:$0xf0] }
 0x4d4   : > { %v6252_v39 = vld [vmem:[#allocation2 + $0x48] sm:$0xc0] }
 0x4d5   : > { %v5432_v17 = vpop.permute.xlu0 %5431  ;;  %5897 = vrot.lane.b32.xlu1 %v5891_v52, %s8305_s7  ;;  %8127 = vmatprep.subr.bf16.mxu0 %v8126_v60  ;;  %v6258_v43 = vmul.f32 %v8993_v34, %v6252_v39  ;;  %v6350_v39 = vld [vmem:[#allocation2 + $0x58] sm:$0xc0] }
 0x4d6   : > { %v5440_v14 = vsel %vm2778_vm7, %v5430_v5, %v5432_v17  ;;  %8129 = vmatpush1.bf16.msra.mxu0 %v8128_v40  ;;  %v6318_v40 = vrot.slane %v6304_v42, 2 }
 0x4d7   : > { %5448 = vst [vmem:[#allocation3 + $0xc8] sm:$0xf0] %v5440_v14  ;;  %5895 = vrot.lane.b32.xlu0 %v5888_v9, %s8305_s7  ;;  %v5438_v57 = vpop.permute.xlu1 %5437  ;;  %v6270_v19 = vrot.slane %v6258_v43, 6 }
 0x4d8   : > { %v6320_v14 = vsel %vm1223_vm5, %v6318_v40, %v6319_v33 }
 0x4d9   : > { %v5436_v10 = vpop.permute.xlu0 %5435  ;;  %5901 = vrot.lane.b32.xlu1 %v5887_v47, %s8305_s7  ;;  %v6305_v47 = vld [vmem:[#allocation2 + $0x40] sm:$0xf0] }
 0x4da   : > { %v5441_v51 = vsel %vm2778_vm7, %v5434_v53, %v5436_v10  ;;  %v5442_v37 = vsel %vm2778_vm7, %v5436_v10, %v5438_v57  ;;  %v6321_v18 = vrot.slane %v6305_v47, 2  ;;  %v6117_v41 = vld [vmem:[#allocation3 + $0xc0] sm:$0xff]  ;;  %v11069_v10 = vld [vmem:[#allocation2 + $0x48] sm:$0x3f] }
 0x4db   : > { %5449 = vst [vmem:[#allocation3 + $0xd0] sm:$0x3f] %v5441_v51  ;;  %5450 = vst [vmem:[#allocation3 + $0xd8] sm:$0x3f] %v5442_v37  ;;  %5899 = vrot.lane.b32.xlu0 %v5894_v26, %s8305_s7  ;;  %v5472_v3 = vpop.permute.xlu1 %5471  ;;  %v6303_v37 = vld [vmem:[#allocation2 + $0x30] sm:$0xf0] }
 0x4dc   : > { %v6323_v52 = vsel %vm1223_vm5, %v6321_v18, %v6322_v15 }
 0x4dd   : > { %v5470_v16 = vpop.permute.xlu0 %5469  ;;  %5905 = vrot.lane.b32.xlu1 %v5893_v29, %s8305_s7 }
 0x4de   : > { %v5481_v59 = vsel %vm2778_vm7, %v5470_v16, %v5472_v3  ;;  %v6118_v29 = vld [vmem:[#allocation3 + $0xc8] sm:$0xff] }
 0x4df   : > { %5489 = vst [vmem:[#allocation3 + $0xd0] sm:$0xc0] %v5481_v59  ;;  %5903 = vrot.lane.b32.xlu0 %v5890_v23, %s8305_s7  ;;  %v5476_v5 = vpop.permute.xlu1 %5475  ;;  %v11055_v23 = vld [vmem:[#allocation2 + $0x60] sm:$0xff]  ;;  %v6349_v59 = vld [vmem:[#allocation2 + $0x50] sm:$0xc0] }
 0x4e0   : > { %v6261_v53 = vmul.f32 %v8993_v34, %v11055_v23 }
 0x4e1   : > { %v5474_v1 = vpop.permute.xlu0 %5473  ;;  %6283 = vrot.lane.b32.xlu1 %v6278_v12, %s8309_s11  ;;  %v6364_v12 = vrot.slane %v11032_v46, 2 }
 0x4e2   : > { %v5482_v56 = vsel %vm2778_vm7, %v5472_v3, %v5474_v1  ;;  %v6271_v9 = vrot.slane %v6261_v53, 6 }
 0x4e3   : > { %5490 = vst [vmem:[#allocation3 + $0xd8] sm:$0xc0] %v5482_v56  ;;  %6281 = vrot.lane.b32.xlu0 %v6275_v48, %s8309_s11  ;;  %v5480_v35 = vpop.permute.xlu1 %5479 }
 0x4e4   : > { %v6272_v3 = vsel %vm1158_vm12, %v6270_v19, %v6271_v9  ;;  %v6348_v19 = vld [vmem:[#allocation2 + $0x48] sm:$0xc0] }
 0x4e5   : > { %v5478_v20 = vpop.permute.xlu0 %5477  ;;  %6289 = vrot.lane.b32.xlu1 %v6277_v31, %s8309_s11  ;;  %v6316_v31 = vrot.slane %v11069_v10, 2 }
 0x4e6   : > { %v6119_v17 = vld [vmem:[#allocation3 + $0xd0] sm:$0xff]  ;;  %v5484_v26 = vsel %vm2778_vm7, %v5478_v20, %v5480_v35  ;;  %v5483_v27 = vsel %vm2778_vm7, %v5476_v5, %v5478_v20  ;;  %v6363_v5 = vrot.slane %v6349_v59, 2  ;;  %v6394_v20 = vld [vmem:[#allocation2 + $0x38] sm:$0xf0]  ;;  %v11109_v59 = vmul.f32 %v11032_v46, %v11899_v30 }
 0x4e7   : > { %6287 = vrot.lane.b32.xlu0 %v6274_v0, %s8309_s11  ;;  %v5517_v60 = vpop.permute.xlu1 %5516  ;;  %v8132_v28 = vpack.c.bf16 %v6119_v17, %v6117_v41  ;;  %v6315_v0 = vrot.slane %v6303_v37, 2  ;;  %v6395_v17 = vld [vmem:[#allocation2 + $0x40] sm:$0xf0]  ;;  %v6393_v37 = vld [vmem:[#allocation2 + $0x30] sm:$0xf0] }
 0x4e8   : > { %v6365_v11 = vsel %vm1223_vm5, %v6363_v5, %v6364_v12  ;;  %v6401_v8 = vmul.f32 %v11901_v62, %v6395_v17  ;;  %v6466_v5 = vrot.slane %v11109_v59, 6 }
 0x4e9   : > { %v5515_v45 = vpop.permute.xlu0 %5514  ;;  %6328 = vrot.lane.b32.xlu1 %v6323_v52, %s8312_s14  ;;  %v6317_v35 = vsel %vm1223_vm5, %v6315_v0, %v6316_v31  ;;  %v6366_v52 = vrot.slane %v6350_v39, 2 }
 0x4ea   : > { %v6120_v24 = vld [vmem:[#allocation3 + $0xd8] sm:$0xff]  ;;  %v5526_v34 = vsel %vm238_vm10, %v5515_v45, %v5517_v60 }
 0x4eb   : > { %6326 = vrot.lane.b32.xlu0 %v6320_v14, %s8312_s14  ;;  %v5521_v57 = vpop.permute.xlu1 %5520  ;;  %v8130_v21 = vpack.c.bf16 %v6120_v24, %v6118_v29  ;;  %v8136_v6 = vpack.c.bf16 %v5526_v34, %v5483_v27  ;;  %v6360_v27 = vrot.slane %v6348_v19, 2 }
 0x4ed   : > { %v5519_v51 = vpop.permute.xlu0 %5518  ;;  %6285 = vrot.lane.b32.xlu1 %v6271_v9, %s8309_s11  ;;  %8131 = vmatprep.subr.bf16.mxu0 %v8130_v21 }
 0x4ee   : > { %v5527_v44 = vsel %vm238_vm10, %v5517_v60, %v5519_v51  ;;  %8133 = vmatpush1.bf16.msra.mxu0 %v8132_v28  ;;  %v6400_v60 = vmul.f32 %v6394_v20, %v11899_v30  ;;  %v6413_v28 = vrot.slane %v6401_v8, 6  ;;  %v6361_v51 = vrot.slane %v11055_v23, 2 }
 0x4ef   : > { %6279 = vrot.lane.b32.xlu0 %v6272_v3, %s8309_s11  ;;  %v5525_v16 = vpop.permute.xlu1 %5524  ;;  %v8134_v61 = vpack.c.bf16 %v5527_v44, %v5484_v26  ;;  %v6445_v26 = vld [vmem:[#allocation2 + $0x50] sm:$0xc0]  ;;  %v6398_v3 = vld [vmem:[#allocation2 + $0x58] sm:$0x3f] }
 0x4f0   : > { %v6412_v9 = vrot.slane %v6400_v60, 6  ;;  %v6451_v0 = vmul.f32 %v6445_v26, %v11899_v30 }
 0x4f1   : > { %v5523_v1 = vpop.permute.xlu0 %5522  ;;  %6332 = vrot.lane.b32.xlu1 %v6319_v33, %s8312_s14  ;;  %8135 = vmatprep.subr.bf16.mxu0 %v8134_v61  ;;  %v6367_v33 = vrot.slane %v11027_v32, 2  ;;  %v6399_v61 = vmul.f32 %v11900_v38, %v6393_v37 }
 0x4f2   : > { %v5528_v56 = vsel %vm238_vm10, %v5521_v57, %v5523_v1  ;;  %v5529_v48 = vsel %vm238_vm10, %v5523_v1, %v5525_v16  ;;  %8137 = vmatpush1.bf16.msra.mxu0 %v8136_v6  ;;  %v6362_v1 = vsel %vm1223_vm5, %v6360_v27, %v6361_v51  ;;  %v6465_v20 = vrot.slane %v6451_v0, 6  ;;  %v6499_v0 = vld [vmem:[#allocation2 + $0x38] sm:$0xf] }
 0x4f3   : > { %5536 = vst [vmem:[#allocation3 + $0x100] sm:$0x3] %v5528_v56  ;;  %5537 = vst [vmem:[#allocation3 + $0x108] sm:$0x3] %v5529_v48  ;;  %6324 = vrot.lane.b32.xlu0 %v6317_v35, %s8312_s14  ;;  %v5562_v47 = vpop.permute.xlu1 %5561  ;;  %v6368_v45 = vsel %vm1223_vm5, %v6366_v52, %v6367_v33  ;;  %v6404_v56 = vmul.f32 %v11901_v62, %v6398_v3 }
 0x4f4   : > { %v6467_v52 = vsel %vm1158_vm12, %v6465_v20, %v6466_v5 }
 0x4f5   : > { %v5560_v42 = vpop.permute.xlu0 %5559  ;;  %6371 = vrot.lane.b32.xlu1 %v6365_v11, %s8312_s14 }
 0x4f6   : > { %v5571_v18 = vsel %vm238_vm10, %v5560_v42, %v5562_v47  ;;  %v6446_v42 = vld [vmem:[#allocation2 + $0x58] sm:$0xc0] }
 0x4f7   : > { %5579 = vst [vmem:[#allocation3 + $0x100] sm:$0xfc] %v5571_v18  ;;  %6334 = vrot.lane.b32.xlu0 %v6322_v15, %s8312_s14  ;;  %v5566_v53 = vpop.permute.xlu1 %5565  ;;  %v6397_v15 = vld [vmem:[#allocation2 + $0x50] sm:$0x3f] }
 0x4f8   : > { %v6403_v41 = vmul.f32 %v6397_v15, %v11899_v30  ;;  %v6411_v30 = vrot.slane %v6399_v61, 6 }
 0x4f9   : > { %v5564_v40 = vpop.permute.xlu0 %5563  ;;  %6377 = vrot.lane.b32.xlu1 %v6364_v12, %s8312_s14  ;;  %v6396_v12 = vld [vmem:[#allocation2 + $0x48] sm:$0x3f] }
 0x4fa   : > { %v5572_v43 = vsel %vm238_vm10, %v5562_v47, %v5564_v40  ;;  %v6416_v16 = vrot.slane %v6403_v41, 6  ;;  %v6402_v47 = vmul.f32 %v11900_v38, %v6396_v12 }
 0x4fb   : > { %5580 = vst [vmem:[#allocation3 + $0x108] sm:$0xfc] %v5572_v43  ;;  %6373 = vrot.lane.b32.xlu0 %v6368_v45, %s8312_s14  ;;  %v5570_v14 = vpop.permute.xlu1 %5569  ;;  %v6452_v43 = vmul.f32 %v11901_v62, %v6446_v42 }
 0x4fc   : > { %v6417_v35 = vsel %vm1158_vm12, %v6412_v9, %v6416_v16  ;;  %v6414_v40 = vrot.slane %v6402_v47, 6  ;;  %v6496_v16 = vld [vmem:[#allocation2 + $0x20] sm:$0xfc]  ;;  %v6505_v47 = vmul.f32 %v6499_v0, %v9211_v7 }
 0x4fd   : > { %v5568_v29 = vpop.permute.xlu0 %5567  ;;  %6422 = vrot.lane.b32.xlu1 %v6412_v9, %s8310_s12  ;;  %v6502_v61 = vmul.f32 %v6496_v16, %v9211_v7 }
 0x4fe   : > { %v5573_v24 = vsel %vm238_vm10, %v5566_v53, %v5568_v29  ;;  %v5574_v57 = vsel %vm238_vm10, %v5568_v29, %v5570_v14  ;;  %v6455_v53 = vmul.f32 %v11901_v62, %v11027_v32  ;;  %v6444_v14 = vld [vmem:[#allocation2 + $0x48] sm:$0xc0]  ;;  %v6125_v41 = vld [vmem:[#allocation3 + $0x100] sm:$0xff] }
 0x4ff   : > { %5581 = vst [vmem:[#allocation3 + $0x110] sm:$0xf] %v5573_v24  ;;  %5582 = vst [vmem:[#allocation3 + $0x118] sm:$0xf] %v5574_v57  ;;  %6379 = vrot.lane.b32.xlu0 %v6367_v33, %s8312_s14  ;;  %v5604_v21 = vpop.permute.xlu1 %5603  ;;  %v6418_v33 = vrot.slane %v6404_v56, 6  ;;  %v11134_v57 = vmul.f32 %v11900_v38, %v11055_v23 }
 0x500   : > { %v6469_v24 = vrot.slane %v6455_v53, 6 }
 0x501   : > { %v5602_v10 = vpop.permute.xlu0 %5601  ;;  %6330 = vrot.lane.b32.xlu1 %v6316_v31, %s8312_s14  ;;  %v6419_v29 = vsel %vm1158_vm12, %v6413_v28, %v6418_v33 }
 0x502   : > { %v5613_v34 = vsel %vm2740_vm4, %v5602_v10, %v5604_v21  ;;  %v6126_v8 = vld [vmem:[#allocation3 + $0x108] sm:$0xff]  ;;  %v6415_v10 = vsel %vm1158_vm12, %v6411_v30, %v6414_v40 }
 0x503   : > { %5621 = vst [vmem:[#allocation3 + $0x110] sm:$0xf0] %v5613_v34  ;;  %6424 = vrot.lane.b32.xlu0 %v6413_v28, %s8310_s12  ;;  %v5608_v44 = vpop.permute.xlu1 %5607  ;;  %v6468_v34 = vrot.slane %v6452_v43, 6 }
 0x505   : > { %v5606_v31 = vpop.permute.xlu0 %5605  ;;  %6375 = vrot.lane.b32.xlu1 %v6361_v51, %s8312_s14  ;;  %v6450_v51 = vmul.f32 %v11900_v38, %v6444_v14  ;;  %v6470_v26 = vsel %vm1158_vm12, %v6468_v34, %v6469_v24  ;;  %v6498_v14 = vld [vmem:[#allocation2 + $0x30] sm:$0xf]  ;;  %v11178_v34 = vld [vmem:[#allocation2] sm:$0xff] }
 0x506   : > { %v5614_v6 = vsel %vm2740_vm4, %v5604_v21, %v5606_v31 }
 0x507   : > { %5622 = vst [vmem:[#allocation3 + $0x118] sm:$0xf0] %v5614_v6  ;;  %6369 = vrot.lane.b32.xlu0 %v6362_v1, %s8312_s14  ;;  %v5612_v48 = vpop.permute.xlu1 %5611  ;;  %v6462_v27 = vrot.slane %v6450_v51, 6 }
 0x509   : > { %v5610_v11 = vpop.permute.xlu0 %5609  ;;  %6428 = vrot.lane.b32.xlu1 %v6417_v35, %s8310_s12 }
 0x50a   : > { %v5615_v39 = vsel %vm2740_vm4, %v5608_v44, %v5610_v11  ;;  %v5616_v18 = vsel %vm2740_vm4, %v5610_v11, %v5612_v48  ;;  %v6127_v17 = vld [vmem:[#allocation3 + $0x110] sm:$0xff]  ;;  %v6463_v44 = vrot.slane %v11134_v57, 6 }
 0x50b   : > { %5623 = vst [vmem:[#allocation3 + $0x120] sm:$0x3f] %v5615_v39  ;;  %5624 = vst [vmem:[#allocation3 + $0x128] sm:$0x3f] %v5616_v18  ;;  %6420 = vrot.lane.b32.xlu0 %v6411_v30, %s8310_s12  ;;  %v5655_v60 = vpop.permute.xlu1 %5654  ;;  %v8140_v19 = vpack.c.bf16 %v6127_v17, %v6125_v41  ;;  %v6497_v48 = vld [vmem:[#allocation2 + $0x28] sm:$0xfc] }
 0x50c   : > { %v6464_v38 = vsel %vm1158_vm12, %v6462_v27, %v6463_v44  ;;  %v11157_v30 = vld [vmem:[#allocation2 + $0x8] sm:$0xff]  ;;  %v6503_v39 = vmul.f32 %v9192_v55, %v6497_v48  ;;  %v6500_v18 = vld [vmem:[#allocation2 + $0x40] sm:$0xf]  ;;  %v6586_v27 = vld [vmem:[#allocation2 + $0x38] sm:$0xf] }
 0x50d   : > { %v5653_v45 = vpop.permute.xlu0 %5652  ;;  %6473 = vrot.lane.b32.xlu1 %v6467_v52, %s8310_s12  ;;  %v6550_v53 = vrot.slane %v11157_v30, 4  ;;  %v6506_v52 = vmul.f32 %v9192_v55, %v6500_v18  ;;  %v6540_v48 = vld [vmem:[#allocation2 + $0x18] sm:$0x3] }
 0x50e   : > { %v5664_v9 = vsel %vm2445_vm1, %v5653_v45, %v5655_v60  ;;  %v6128_v15 = vld [vmem:[#allocation3 + $0x118] sm:$0xff] }
 0x50f   : > { %5672 = vst [vmem:[#allocation3 + $0x120] sm:$0xc0] %v5664_v9  ;;  %6430 = vrot.lane.b32.xlu0 %v6419_v29, %s8310_s12  ;;  %v5659_v62 = vpop.permute.xlu1 %5658  ;;  %v8138_v21 = vpack.c.bf16 %v6128_v15, %v6126_v8  ;;  %v11167_v45 = vld [vmem:[#allocation2 + $0x10] sm:$0xff]  ;;  %v6541_v8 = vld [vmem:[#allocation2 + $0x20] sm:$0x3] }
 0x510   : > { %v6551_v29 = vrot.slane %v11167_v45, 4 }
 0x511   : > { %v5657_v28 = vpop.permute.xlu0 %5656  ;;  %6426 = vrot.lane.b32.xlu1 %v6415_v10, %s8310_s12  ;;  %8139 = vmatprep.subr.bf16.mxu0 %v8138_v21  ;;  %v6554_v21 = vrot.slane %v6541_v8, 4 }
 0x512   : > { %v5665_v37 = vsel %vm2445_vm1, %v5655_v60, %v5657_v28  ;;  %8141 = vmatpush1.bf16.msra.mxu0 %v8140_v19  ;;  %v6542_v28 = vld [vmem:[#allocation2 + $0x28] sm:$0x3] }
 0x513   : > { %5673 = vst [vmem:[#allocation3 + $0x128] sm:$0xc0] %v5665_v37  ;;  %6475 = vrot.lane.b32.xlu0 %v6470_v26, %s8310_s12  ;;  %v5663_v3 = vpop.permute.xlu1 %5662  ;;  %v6555_v37 = vsel %vm2140_vm13, %v6550_v53, %v6554_v21  ;;  %v6583_v26 = vld [vmem:[#allocation2 + $0x20] sm:$0xfc] }
 0x514   : > { %v6595_v0 = vrot.slane %v6583_v26, 4  ;;  %v6632_v26 = vld [vmem:[#allocation2 + $0x28] sm:$0x3] }
 0x515   : > { %v5661_v59 = vpop.permute.xlu0 %5660  ;;  %6479 = vrot.lane.b32.xlu1 %v6466_v5, %s8310_s12 }
 0x516   : > { %v5666_v12 = vsel %vm2445_vm1, %v5659_v62, %v5661_v59  ;;  %v6129_v1 = vld [vmem:[#allocation3 + $0x120] sm:$0xff]  ;;  %v5667_v56 = vsel %vm2445_vm1, %v5661_v59, %v5663_v3  ;;  %v6504_v62 = vmul.f32 %v9110_v50, %v6498_v14  ;;  %v6549_v3 = vrot.slane %v11178_v34, 4 }
 0x517   : > { %6471 = vrot.lane.b32.xlu0 %v6464_v38, %s8310_s12  ;;  %v11147_v31 = vpop.permute.xlu1 %5705  ;;  %v8144_v20 = vpack.c.bf16 %v5666_v12, %v6129_v1  ;;  %v6556_v38 = vrot.slane %v6542_v28, 4  ;;  %v6599_v12 = vrot.slane %v6586_v27, 4 }
 0x519   : > { %v11151_v6 = vpop.permute.xlu0 %5703  ;;  %6515 = vrot.lane.b32.xlu1 %v6502_v61, %s8307_s9 }
 0x51a   : > { %v6130_v35 = vld [vmem:[#allocation3 + $0x128] sm:$0xff] }
 0x51b   : > { %6481 = vrot.lane.b32.xlu0 %v6469_v24, %s8310_s12  ;;  %v5710_v5 = vpop.permute.xlu1 %5709  ;;  %v8142_v11 = vpack.c.bf16 %v5667_v56, %v6130_v35  ;;  %v6495_v24 = vld [vmem:[#allocation2 + $0x18] sm:$0xfc] }
 0x51c   : > { %v6501_v10 = vmul.f32 %v9110_v50, %v6495_v24 }
 0x51d   : > { %v5708_v42 = vpop.permute.xlu0 %5707  ;;  %6521 = vrot.lane.b32.xlu1 %v6505_v47, %s8307_s9  ;;  %8143 = vmatprep.subr.bf16.mxu0 %v8142_v11  ;;  %v6557_v47 = vsel %vm2140_vm13, %v6551_v29, %v6556_v38  ;;  %v6638_v38 = vmul.f32 %v9144_v25, %v6632_v26  ;;  %v6674_v26 = vld [vmem:[#allocation2 + $0x40] sm:$0xf] }
 0x51e   : > { %8145 = vmatpush1.bf16.msra.mxu0 %v8144_v20  ;;  %v5716_v35 = vsel %vm2445_vm1, %v11147_v31, %v5708_v42  ;;  %v6584_v20 = vld [vmem:[#allocation2 + $0x28] sm:$0xfc]  ;;  %v6552_v42 = vrot.slane %v6540_v48, 4 }
 0x51f   : > { %6517 = vrot.lane.b32.xlu0 %v6503_v39, %s8307_s9  ;;  %v5714_v33 = vpop.permute.xlu1 %5713  ;;  %v5715_v39 = vsel %vm2445_vm1, %v11151_v6, %v11147_v31 }
 0x521   : > { %v5712_v60 = vpop.permute.xlu0 %5711  ;;  %6560 = vrot.lane.b32.xlu1 %v6550_v53, %s8311_s13  ;;  %v6587_v53 = vld [vmem:[#allocation2 + $0x40] sm:$0xf] }
 0x522   : > { %v5717_v40 = vsel %vm2445_vm1, %v5710_v5, %v5712_v60  ;;  %v5718_v43 = vsel %vm2445_vm1, %v5712_v60, %v5714_v33  ;;  %v6600_v60 = vsel %vm2140_vm13, %v6595_v0, %v6599_v12  ;;  %v6601_v31 = vrot.slane %v6587_v53, 4 }
 0x523   : > { %5725 = vst [vmem:[#allocation3 + $0x150] sm:$0x3] %v5717_v40  ;;  %5726 = vst [vmem:[#allocation3 + $0x158] sm:$0x3] %v5718_v43  ;;  %6523 = vrot.lane.b32.xlu0 %v6506_v52, %s8307_s9  ;;  %v5751_v17 = vpop.permute.xlu1 %5750  ;;  %v6596_v43 = vrot.slane %v6584_v20, 4 }
 0x525   : > { %v5749_v9 = vpop.permute.xlu0 %5748  ;;  %6477 = vrot.lane.b32.xlu1 %v6463_v44, %s8310_s12 }
 0x526   : > { %v5760_v15 = vsel %vm3341_vm9, %v5749_v9, %v5751_v17  ;;  %v6582_v9 = vld [vmem:[#allocation2 + $0x18] sm:$0xfc] }
 0x527   : > { %5768 = vst [vmem:[#allocation3 + $0x150] sm:$0xfc] %v5760_v15  ;;  %6562 = vrot.lane.b32.xlu0 %v6551_v29, %s8311_s13  ;;  %v5755_v57 = vpop.permute.xlu1 %5754  ;;  %v6553_v29 = vsel %vm2140_vm13, %v6549_v3, %v6552_v42  ;;  %v6594_v21 = vrot.slane %v6582_v9, 4 }
 0x529   : > { %v5753_v41 = vpop.permute.xlu0 %5752  ;;  %6519 = vrot.lane.b32.xlu1 %v6504_v62, %s8307_s9  ;;  %v6602_v62 = vsel %vm2140_vm13, %v6596_v43, %v6601_v31  ;;  %v6633_v31 = vmul.f32 %v9076_v2, %v11178_v34 }
 0x52a   : > { %v5761_v19 = vsel %vm3341_vm9, %v5751_v17, %v5753_v41  ;;  %v6585_v17 = vld [vmem:[#allocation2 + $0x30] sm:$0xf] }
 0x52b   : > { %5769 = vst [vmem:[#allocation3 + $0x158] sm:$0xfc] %v5761_v19  ;;  %6513 = vrot.lane.b32.xlu0 %v6501_v10, %s8307_s9  ;;  %v5759_v51 = vpop.permute.xlu1 %5758  ;;  %v6597_v8 = vrot.slane %v6585_v17, 4 }
 0x52d   : > { %v5757_v44 = vpop.permute.xlu0 %5756  ;;  %6566 = vrot.lane.b32.xlu1 %v6555_v37, %s8311_s13  ;;  %v6598_v10 = vsel %vm2140_vm13, %v6594_v21, %v6597_v8  ;;  %v6635_v37 = vmul.f32 %v9144_v25, %v11167_v45 }
 0x52e   : > { %v5762_v16 = vsel %vm3341_vm9, %v5755_v57, %v5757_v44  ;;  %v5763_v59 = vsel %vm3341_vm9, %v5757_v44, %v5759_v51  ;;  %v6135_v56 = vld [vmem:[#allocation3 + $0x150] sm:$0xff] }
 0x52f   : > { %5770 = vst [vmem:[#allocation3 + $0x160] sm:$0xf] %v5762_v16  ;;  %5771 = vst [vmem:[#allocation3 + $0x168] sm:$0xf] %v5763_v59  ;;  %6558 = vrot.lane.b32.xlu0 %v6549_v3, %s8311_s13  ;;  %v5796_v61 = vpop.permute.xlu1 %5795  ;;  %v8148_v52 = vpack.c.bf16 %v6135_v56, %v5715_v39  ;;  %v6634_v3 = vmul.f32 %v11157_v30, %v9257_v36  ;;  %v6631_v16 = vld [vmem:[#allocation2 + $0x20] sm:$0x3] }
 0x530   : > { %v6637_v12 = vmul.f32 %v6631_v16, %v9257_v36 }
 0x531   : > { %v5794_v1 = vpop.permute.xlu0 %5793  ;;  %6605 = vrot.lane.b32.xlu1 %v6595_v0, %s8311_s13 }
 0x532   : > { %v5805_v5 = vsel %vm3341_vm9, %v5794_v1, %v5796_v61  ;;  %v6136_v11 = vld [vmem:[#allocation3 + $0x158] sm:$0xff]  ;;  %v6670_v1 = vld [vmem:[#allocation2 + $0x20] sm:$0xfc] }
 0x533   : > { %5813 = vst [vmem:[#allocation3 + $0x160] sm:$0xf0] %v5805_v5  ;;  %6568 = vrot.lane.b32.xlu0 %v6557_v47, %s8311_s13  ;;  %v5800_v18 = vpop.permute.xlu1 %5799  ;;  %v8146_v33 = vpack.c.bf16 %v6136_v11, %v5716_v35  ;;  %v6630_v35 = vld [vmem:[#allocation2 + $0x18] sm:$0x3]  ;;  %v6676_v47 = vmul.f32 %v6670_v1, %v9257_v36 }
 0x535   : > { %v5798_v40 = vpop.permute.xlu0 %5797  ;;  %6611 = vrot.lane.b32.xlu1 %v6600_v60, %s8311_s13  ;;  %8147 = vmatprep.subr.bf16.mxu0 %v8146_v33  ;;  %v6636_v33 = vmul.f32 %v9076_v2, %v6630_v35 }
 0x536   : > { %v5806_v14 = vsel %vm3341_vm9, %v5796_v61, %v5798_v40  ;;  %8149 = vmatpush1.bf16.msra.mxu0 %v8148_v52  ;;  %v6671_v61 = vld [vmem:[#allocation2 + $0x28] sm:$0xfc]  ;;  %v6712_v52 = vld [vmem:[#allocation2 + $0x50] sm:$0xc0]  ;;  %v6673_v40 = vld [vmem:[#allocation2 + $0x38] sm:$0xf] }
 0x537   : > { %5814 = vst [vmem:[#allocation3 + $0x168] sm:$0xf0] %v5806_v14  ;;  %6607 = vrot.lane.b32.xlu0 %v6596_v43, %s8311_s13  ;;  %v5804_v6 = vpop.permute.xlu1 %5803  ;;  %v6677_v48 = vmul.f32 %v9144_v25, %v6671_v61  ;;  %v6721_v43 = vmul.f32 %v11032_v46, %v9211_v7  ;;  %v6718_v8 = vmul.f32 %v6712_v52, %v9211_v7 }
 0x539   : > { %v5802_v15 = vpop.permute.xlu0 %5801  ;;  %6564 = vrot.lane.b32.xlu1 %v6553_v29, %s8311_s13  ;;  %v6669_v29 = vld [vmem:[#allocation2 + $0x18] sm:$0xfc] }
 0x53a   : > { %v5807_v24 = vsel %vm3341_vm9, %v5800_v18, %v5802_v15  ;;  %v5808_v57 = vsel %vm3341_vm9, %v5802_v15, %v5804_v6  ;;  %v6137_v60 = vld [vmem:[#allocation3 + $0x160] sm:$0xff] }
 0x53b   : > { %5815 = vst [vmem:[#allocation3 + $0x170] sm:$0x3f] %v5807_v24  ;;  %5816 = vst [vmem:[#allocation3 + $0x178] sm:$0x3f] %v5808_v57  ;;  %6613 = vrot.lane.b32.xlu0 %v6602_v62, %s8311_s13  ;;  %v5847_v41 = vpop.permute.xlu1 %5846  ;;  %v6679_v57 = vmul.f32 %v6673_v40, %v9257_v36 }
 0x53d   : > { %v5845_v19 = vpop.permute.xlu0 %5844  ;;  %6609 = vrot.lane.b32.xlu1 %v6598_v10, %s8311_s13 }
 0x53e   : > { %v5856_v51 = vsel %vm2258_vm6, %v5845_v19, %v5847_v41  ;;  %v6138_v20 = vld [vmem:[#allocation3 + $0x168] sm:$0xff]  ;;  %v6675_v19 = vmul.f32 %v9076_v2, %v6669_v29 }
 0x53f   : > { %5864 = vst [vmem:[#allocation3 + $0x170] sm:$0xc0] %v5856_v51  ;;  %6603 = vrot.lane.b32.xlu0 %v6594_v21, %s8311_s13  ;;  %v5851_v28 = vpop.permute.xlu1 %5850  ;;  %v6733_v21 = vrot.slane %v6721_v43, 2  ;;  %v6713_v51 = vld [vmem:[#allocation2 + $0x58] sm:$0xc0] }
 0x540   : > { %v6719_v16 = vmul.f32 %v9192_v55, %v6713_v51 }
 0x541   : > { %v5849_v44 = vpop.permute.xlu0 %5848  ;;  %6649 = vrot.lane.b32.xlu1 %v6635_v37, %s8308_s10 }
 0x542   : > { %v5857_v27 = vsel %vm2258_vm6, %v5847_v41, %v5849_v44  ;;  %v6722_v44 = vmul.f32 %v9192_v55, %v11027_v32  ;;  %v6735_v1 = vrot.slane %v6719_v16, 2 }
 0x543   : > { %5865 = vst [vmem:[#allocation3 + $0x178] sm:$0xc0] %v5857_v27  ;;  %6647 = vrot.lane.b32.xlu0 %v6634_v3, %s8308_s10  ;;  %v5855_v59 = vpop.permute.xlu1 %5854 }
 0x545   : > { %v5853_v0 = vpop.permute.xlu0 %5852  ;;  %6655 = vrot.lane.b32.xlu1 %v6638_v38, %s8308_s10  ;;  %v6680_v38 = vmul.f32 %v9144_v25, %v6674_v26  ;;  %v6765_v26 = vld [vmem:[#allocation2 + $0x48] sm:$0x3f] }
 0x546   : > { %v6139_v11 = vld [vmem:[#allocation3 + $0x170] sm:$0xff]  ;;  %v5859_v6 = vsel %vm2258_vm6, %v5853_v0, %v5855_v59  ;;  %v5858_v15 = vsel %vm2258_vm6, %v5851_v28, %v5853_v0  ;;  %v6732_v28 = vrot.slane %v6718_v8, 2  ;;  %v6736_v0 = vrot.slane %v6722_v44, 2 }
 0x547   : > { %6653 = vrot.lane.b32.xlu0 %v6637_v12, %s8308_s10  ;;  %v5898_v56 = vpop.permute.xlu1 %5897  ;;  %v8152_v42 = vpack.c.bf16 %v6139_v11, %v6137_v60  ;;  %v6672_v11 = vld [vmem:[#allocation2 + $0x30] sm:$0xf] }
 0x548   : > { %v6734_v27 = vsel %vm1223_vm5, %v6732_v28, %v6733_v21  ;;  %v6737_v55 = vsel %vm1223_vm5, %v6735_v1, %v6736_v0  ;;  %v6678_v52 = vmul.f32 %v9076_v2, %v6672_v11 }
 0x549   : > { %v5896_v5 = vpop.permute.xlu0 %5895  ;;  %6691 = vrot.lane.b32.xlu1 %v6677_v48, %s8308_s10 }
 0x54a   : > { %v6140_v39 = vld [vmem:[#allocation3 + $0x178] sm:$0xff]  ;;  %v5907_v17 = vsel %vm2445_vm1, %v5896_v5, %v5898_v56 }
 0x54b   : > { %6689 = vrot.lane.b32.xlu0 %v6676_v47, %s8308_s10  ;;  %v5902_v18 = vpop.permute.xlu1 %5901  ;;  %v8150_v53 = vpack.c.bf16 %v6140_v39, %v6138_v20  ;;  %v8156_v41 = vpack.c.bf16 %v5907_v17, %v5858_v15  ;;  %v6711_v39 = vld [vmem:[#allocation2 + $0x48] sm:$0xc0] }
 0x54c   : > { %v6717_v40 = vmul.f32 %v9110_v50, %v6711_v39 }
 0x54d   : > { %v5900_v14 = vpop.permute.xlu0 %5899  ;;  %6651 = vrot.lane.b32.xlu1 %v6636_v33, %s8308_s10  ;;  %8151 = vmatprep.subr.bf16.mxu0 %v8150_v53  ;;  %v6764_v33 = vld [vmem:[#allocation2 + $0x40] sm:$0xf0]  ;;  %v6720_v53 = vmul.f32 %v9110_v50, %v11055_v23 }
 0x54e   : > { %v5908_v9 = vsel %vm2445_vm1, %v5898_v56, %v5900_v14  ;;  %8153 = vmatpush1.bf16.msra.mxu0 %v8152_v42  ;;  %v6763_v56 = vld [vmem:[#allocation2 + $0x38] sm:$0xf0]  ;;  %v6776_v17 = vrot.slane %v6764_v33, 6  ;;  %v6766_v14 = vld [vmem:[#allocation2 + $0x50] sm:$0x3f]  ;;  %v6729_v29 = vrot.slane %v6717_v40, 2 }
 0x54f   : > { %6645 = vrot.lane.b32.xlu0 %v6633_v31, %s8308_s10  ;;  %v5906_v24 = vpop.permute.xlu1 %5905  ;;  %v8154_v62 = vpack.c.bf16 %v5908_v9, %v5859_v6  ;;  %v6775_v47 = vrot.slane %v6763_v56, 6  ;;  %v6730_v6 = vrot.slane %v6720_v53, 2  ;;  %v6779_v8 = vrot.slane %v6766_v14, 6 }
 0x550   : > { %v6820_v53 = vrot.slane %v11055_v23, 6 }
 0x551   : > { %v5904_v10 = vpop.permute.xlu0 %5903  ;;  %6695 = vrot.lane.b32.xlu1 %v6679_v57, %s8308_s10  ;;  %8155 = vmatprep.subr.bf16.mxu0 %v8154_v62  ;;  %v6731_v50 = vsel %vm1223_vm5, %v6729_v29, %v6730_v6  ;;  %v6762_v62 = vld [vmem:[#allocation2 + $0x30] sm:$0xf0]  ;;  %v6780_v51 = vsel %vm1158_vm12, %v6775_v47, %v6779_v8 }
 0x552   : > { %v5909_v37 = vsel %vm2445_vm1, %v5902_v18, %v5904_v10  ;;  %v5910_v7 = vsel %vm2445_vm1, %v5904_v10, %v5906_v24  ;;  %8157 = vmatpush1.bf16.msra.mxu0 %v8156_v41  ;;  %v6808_v10 = vld [vmem:[#allocation2 + $0x50] sm:$0xc0]  ;;  %v6774_v28 = vrot.slane %v6762_v62, 6 }
 0x553   : > { %5917 = vst [vmem:[#allocation3 + $0x1a0] sm:$0x3] %v5909_v37  ;;  %5918 = vst [vmem:[#allocation3 + $0x1a8] sm:$0x3] %v5910_v7  ;;  %6687 = vrot.lane.b32.xlu0 %v6675_v19, %s8308_s10  ;;  %v6284_v3 = vpop.permute.xlu1 %6283  ;;  %v6767_v19 = vld [vmem:[#allocation2 + $0x58] sm:$0x3f] }
 0x554   : > { %v6823_v37 = vrot.slane %v11032_v46, 6  ;;  %v6809_v46 = vld [vmem:[#allocation2 + $0x58] sm:$0xc0] }
 0x555   : > { %v6282_v59 = vpop.permute.xlu0 %6281  ;;  %6740 = vrot.lane.b32.xlu1 %v6734_v27, %s8307_s9  ;;  %v6781_v27 = vrot.slane %v6767_v19, 6  ;;  %v6825_v11 = vrot.slane %v6809_v46, 6 }
 0x556   : > { %v6292_v61 = vsel %vm2287_vm2, %v6282_v59, %v6284_v3  ;;  %v6822_v3 = vrot.slane %v6808_v10, 6 }
 0x557   : > { %6697 = vrot.lane.b32.xlu0 %v6680_v38, %s8308_s10  ;;  %v6290_v12 = vpop.permute.xlu1 %6289  ;;  %v6777_v38 = vrot.slane %v6765_v26, 6  ;;  %v6782_v1 = vsel %vm1158_vm12, %v6776_v17, %v6781_v27  ;;  %v11314_v26 = vld [vmem:[#allocation2 + $0x70] sm:$0xff] }
 0x558   : > { %v11322_v46 = vmul.f32 %v9144_v25, %v11314_v26 }
 0x559   : > { %v6288_v48 = vpop.permute.xlu0 %6287  ;;  %6746 = vrot.lane.b32.xlu1 %v6733_v21, %s8307_s9 }
 0x55a   : > { %v6294_v35 = vsel %vm2287_vm2, %v6288_v48, %v6290_v12 }
 0x55b   : > { %6302 = vst [vmem:[#allocation3 + $0x18] sm:$0x3] %v6294_v35  ;;  %6742 = vrot.lane.b32.xlu0 %v6737_v55, %s8307_s9  ;;  %v6329_v5 = vpop.permute.xlu1 %6328 }
 0x55d   : > { %v6327_v20 = vpop.permute.xlu0 %6326  ;;  %6785 = vrot.lane.b32.xlu1 %v6775_v47, %s8311_s13  ;;  %v6778_v47 = vsel %vm1158_vm12, %v6774_v28, %v6777_v38 }
 0x55e   : > { %v6337_v18 = vsel %vm2375_vm8, %v6327_v20, %v6329_v5  ;;  %v6853_v5 = vld [vmem:[#allocation2 + $0x38] sm:$0xf0] }
 0x55f   : > { %6345 = vst [vmem:[#allocation3 + $0x18] sm:$0xfc] %v6337_v18  ;;  %6748 = vrot.lane.b32.xlu0 %v6736_v0, %s8307_s9  ;;  %v6286_v60 = vpop.permute.xlu1 %6285  ;;  %v6856_v0 = vld [vmem:[#allocation2 + $0x50] sm:$0x3f]  ;;  %v6807_v18 = vld [vmem:[#allocation2 + $0x48] sm:$0xc0] }
 0x560   : > { %v6293_v42 = vsel %vm2287_vm2, %v6286_v60, %v6288_v48  ;;  %v6826_v48 = vrot.slane %v11027_v32, 6  ;;  %v6859_v60 = vmul.f32 %v6853_v5, %v9257_v36 }
 0x561   : > { %6301 = vst [vmem:[#allocation3 + $0x10] sm:$0x3] %v6293_v42  ;;  %v6280_v43 = vpop.permute.xlu0 %6279  ;;  %6693 = vrot.lane.b32.xlu1 %v6678_v52, %s8308_s10  ;;  %v6857_v42 = vld [vmem:[#allocation2 + $0x58] sm:$0x3f] }
 0x562   : > { %v6291_v31 = vsel %vm2287_vm2, %v6280_v43, %v6282_v59  ;;  %v6824_v59 = vsel %vm1158_vm12, %v6822_v3, %v6823_v37  ;;  %v6827_v32 = vsel %vm1158_vm12, %v6825_v11, %v6826_v48  ;;  %v6819_v43 = vrot.slane %v6807_v18, 6 }
 0x563   : > { %6787 = vrot.lane.b32.xlu0 %v6776_v17, %s8311_s13  ;;  %v6333_v9 = vpop.permute.xlu1 %6332 }
 0x564   : > { %v6821_v8 = vsel %vm1158_vm12, %v6819_v43, %v6820_v53 }
 0x565   : > { %v6325_v15 = vpop.permute.xlu0 %6324  ;;  %6744 = vrot.lane.b32.xlu1 %v6730_v6, %s8307_s9  ;;  %v11294_v6 = vld [vmem:[#allocation2 + $0x68] sm:$0xff] }
 0x566   : > { %v6336_v24 = vsel %vm2375_vm8, %v6325_v15, %v6327_v20  ;;  %v7425_v57 = vld [vmem:[#allocation3 + $0x18] sm:$0xff]  ;;  %v6862_v20 = vmul.f32 %v6856_v0, %v9257_v36  ;;  %v6873_v15 = vrot.slane %v6859_v60, 2  ;;  %v11307_v10 = vmul.f32 %v11294_v6, %v9257_v36  ;;  %v6903_v60 = vld [vmem:[#allocation2 + $0x48] sm:$0xc0] }
 0x567   : > { %6344 = vst [vmem:[#allocation3 + $0x10] sm:$0xfc] %v6336_v24  ;;  %6738 = vrot.lane.b32.xlu0 %v6731_v50, %s8307_s9  ;;  %v11270_v21 = vpop.permute.xlu1 %6371  ;;  %v8172_v41 = vpack.c.bf16 %v7425_v57, %v6292_v61  ;;  %v6863_v24 = vmul.f32 %v9144_v25, %v6857_v42  ;;  %v6904_v50 = vld [vmem:[#allocation2 + $0x50] sm:$0xc0]  ;;  %v6909_v23 = vmul.f32 %v9076_v2, %v6903_v60 }
 0x568   : > { %v6874_v17 = vrot.slane %v6862_v20, 2  ;;  %v6925_v3 = vrot.slane %v11307_v10, 2 }
 0x569   : > { %v6335_v7 = vpop.permute.xlu0 %6334  ;;  %6791 = vrot.lane.b32.xlu1 %v6780_v51, %s8311_s13  ;;  %8173 = vmatprep.subr.bf16.mxu1 %v8172_v41 }
 0x56a   : > { %v6339_v44 = vsel %vm2375_vm8, %v6333_v9, %v6335_v7  ;;  %v6875_v62 = vsel %vm1223_vm5, %v6873_v15, %v6874_v17  ;;  %v6910_v7 = vmul.f32 %v6904_v50, %v9257_v36 }
 0x56b   : > { %6347 = vst [vmem:[#allocation3 + $0x28] sm:$0xf] %v6339_v44  ;;  %6783 = vrot.lane.b32.xlu0 %v6774_v28, %s8311_s13  ;;  %v6378_v16 = vpop.permute.xlu1 %6377 }
 0x56c   : > { %v6924_v38 = vrot.slane %v6910_v7, 2 }
 0x56d   : > { %v6374_v61 = vpop.permute.xlu0 %6373  ;;  %6830 = vrot.lane.b32.xlu1 %v6824_v59, %s8311_s13 }
 0x56e   : > { %v6382_v12 = vsel %vm2375_vm8, %v11270_v21, %v6374_v61  ;;  %v7424_v56 = vld [vmem:[#allocation3 + $0x10] sm:$0xff] }
 0x56f   : > { %6390 = vst [vmem:[#allocation3 + $0x28] sm:$0xf0] %v6382_v12  ;;  %6793 = vrot.lane.b32.xlu0 %v6782_v1, %s8311_s13  ;;  %v6423_v35 = vpop.permute.xlu1 %6422  ;;  %v8174_v55 = vpack.c.bf16 %v7424_v56, %v6291_v31  ;;  %v6854_v31 = vld [vmem:[#allocation2 + $0x40] sm:$0xf0]  ;;  %v6855_v1 = vld [vmem:[#allocation2 + $0x48] sm:$0x3f]  ;;  %v6926_v56 = vsel %vm1223_vm5, %v6924_v38, %v6925_v3 }
 0x570   : > { %v6860_v41 = vmul.f32 %v9144_v25, %v6854_v31  ;;  %v6861_v11 = vmul.f32 %v9076_v2, %v6855_v1 }
 0x571   : > { %v6380_v39 = vpop.permute.xlu0 %6379  ;;  %6789 = vrot.lane.b32.xlu1 %v6778_v47, %s8311_s13  ;;  %8175 = vmatpush1.bf16.msra.mxu1 %v8174_v55  ;;  %v6852_v55 = vld [vmem:[#allocation2 + $0x30] sm:$0xf0]  ;;  %v6928_v47 = vrot.slane %v11322_v46, 2 }
 0x572   : > { %v6384_v33 = vsel %vm2375_vm8, %v6378_v16, %v6380_v39  ;;  %v6876_v44 = vrot.slane %v6860_v41, 2  ;;  %v11332_v39 = vld [vmem:[#allocation2 + $0x60] sm:$0xff] }
 0x573   : > { %6392 = vst [vmem:[#allocation3 + $0x38] sm:$0x3f] %v6384_v33  ;;  %6832 = vrot.lane.b32.xlu0 %v6827_v32, %s8311_s13  ;;  %v6331_v52 = vpop.permute.xlu1 %6330 }
 0x574   : > { %v6338_v40 = vsel %vm2375_vm8, %v6331_v52, %v6333_v9 }
 0x575   : > { %6346 = vst [vmem:[#allocation3 + $0x20] sm:$0xf] %v6338_v40  ;;  %v6425_v14 = vpop.permute.xlu0 %6424  ;;  %6836 = vrot.lane.b32.xlu1 %v6823_v37, %s8311_s13  ;;  %v6877_v37 = vrot.slane %v6863_v24, 2  ;;  %v6871_v40 = vrot.slane %v6861_v11, 2 }
 0x576   : > { %v6433_v29 = vsel %vm2474_vm11, %v6423_v35, %v6425_v14  ;;  %v7427_v61 = vld [vmem:[#allocation3 + $0x28] sm:$0xff]  ;;  %v6912_v14 = vmul.f32 %v9076_v2, %v11332_v39 }
 0x577   : > { %6441 = vst [vmem:[#allocation3 + $0x38] sm:$0xc0] %v6433_v29  ;;  %6828 = vrot.lane.b32.xlu0 %v6821_v8, %s8311_s13  ;;  %v6376_v9 = vpop.permute.xlu1 %6375 }
 0x578   : > { %v6383_v57 = vsel %vm2375_vm8, %v6376_v9, %v6378_v16  ;;  %v6905_v16 = vld [vmem:[#allocation2 + $0x58] sm:$0xc0]  ;;  %v6958_v9 = vld [vmem:[#allocation2 + $0x38] sm:$0xf] }
 0x579   : > { %6391 = vst [vmem:[#allocation3 + $0x30] sm:$0x3f] %v6383_v57  ;;  %v6370_v19 = vpop.permute.xlu0 %6369  ;;  %6881 = vrot.lane.b32.xlu1 %v6875_v62, %s8308_s10  ;;  %v6922_v62 = vrot.slane %v6912_v14, 2 }
 0x57a   : > { %v6381_v51 = vsel %vm2375_vm8, %v6370_v19, %v11270_v21  ;;  %v6878_v21 = vsel %vm1223_vm5, %v6876_v44, %v6877_v37  ;;  %v6956_v44 = vld [vmem:[#allocation2 + $0x28] sm:$0xfc] }
 0x57b   : > { %6389 = vst [vmem:[#allocation3 + $0x20] sm:$0xf0] %v6381_v51  ;;  %6838 = vrot.lane.b32.xlu0 %v6826_v48, %s8311_s13  ;;  %v6429_v28 = vpop.permute.xlu1 %6428  ;;  %v6911_v48 = vmul.f32 %v9144_v25, %v6905_v16  ;;  %v6858_v25 = vmul.f32 %v9076_v2, %v6852_v55  ;;  %v6921_v2 = vrot.slane %v6909_v23, 2  ;;  %v6964_v51 = vmul.f32 %v6958_v9, %v9096_v58 }
 0x57d   : > { %v6421_v27 = vpop.permute.xlu0 %6420  ;;  %6887 = vrot.lane.b32.xlu1 %v6874_v17, %s8308_s10  ;;  %v6927_v33 = vrot.slane %v6911_v48, 2  ;;  %v6870_v15 = vrot.slane %v6858_v25, 2 }
 0x57e   : > { %v6432_v59 = vsel %vm2474_vm11, %v6421_v27, %v6423_v35  ;;  %v7429_v36 = vld [vmem:[#allocation3 + $0x38] sm:$0xff] }
 0x57f   : > { %6440 = vst [vmem:[#allocation3 + $0x30] sm:$0xc0] %v6432_v59  ;;  %6883 = vrot.lane.b32.xlu0 %v6878_v21, %s8308_s10  ;;  %v6474_v0 = vpop.permute.xlu1 %6473  ;;  %v8176_v12 = vpack.c.bf16 %v7429_v36, %v7427_v61  ;;  %v6929_v42 = vsel %vm1223_vm5, %v6927_v33, %v6928_v47  ;;  %v6872_v57 = vsel %vm1223_vm5, %v6870_v15, %v6871_v40  ;;  %v6959_v59 = vld [vmem:[#allocation2 + $0x40] sm:$0xf]  ;;  %v6977_v21 = vrot.slane %v6964_v51, 4 }
 0x580   : > { %v6962_v61 = vmul.f32 %v9072_v63, %v6956_v44  ;;  %v6957_v36 = vld [vmem:[#allocation2 + $0x30] sm:$0xf]  ;;  %v6965_v46 = vmul.f32 %v9072_v63, %v6959_v59 }
 0x581   : > { %v6431_v35 = vpop.permute.xlu0 %6430  ;;  %6932 = vrot.lane.b32.xlu1 %v6926_v56, %s8308_s10  ;;  %8177 = vmatprep.subr.bf16.mxu1 %v8176_v12  ;;  %v6954_v12 = vld [vmem:[#allocation2 + $0x18] sm:$0xfc]  ;;  %v6963_v56 = vmul.f32 %v9021_v49, %v6957_v36 }
 0x582   : > { %v6435_v5 = vsel %vm2474_vm11, %v6429_v28, %v6431_v35  ;;  %v7426_v43 = vld [vmem:[#allocation3 + $0x20] sm:$0xff]  ;;  %v6974_v35 = vrot.slane %v6962_v61, 4  ;;  %v6960_v11 = vmul.f32 %v9021_v49, %v6954_v12 }
 0x583   : > { %6889 = vrot.lane.b32.xlu0 %v6877_v37, %s8308_s10  ;;  %v6427_v20 = vpop.permute.xlu1 %6426 }
 0x584   : > { %v6434_v18 = vsel %vm2474_vm11, %v6427_v20, %v6429_v28  ;;  %v6923_v28 = vsel %vm1223_vm5, %v6921_v2, %v6922_v62  ;;  %v6972_v60 = vrot.slane %v6960_v11, 4  ;;  %v7042_v2 = vld [vmem:[#allocation2 + $0x20] sm:$0xfc] }
 0x585   : > { %v6476_v32 = vpop.permute.xlu0 %6475  ;;  %6834 = vrot.lane.b32.xlu1 %v6820_v53, %s8311_s13  ;;  %v6955_v53 = vld [vmem:[#allocation2 + $0x20] sm:$0xfc] }
 0x586   : > { %v6484_v52 = vsel %vm2474_vm11, %v6474_v0, %v6476_v32  ;;  %v7428_v17 = vld [vmem:[#allocation3 + $0x30] sm:$0xff]  ;;  %v6961_v10 = vmul.f32 %v6955_v53, %v9096_v58 }
 0x587   : > { %6492 = vst [vmem:[#allocation3 + $0x58] sm:$0xff] %v6484_v52  ;;  %6934 = vrot.lane.b32.xlu0 %v6929_v42, %s8308_s10  ;;  %v6480_v31 = vpop.permute.xlu1 %6479  ;;  %v8178_v29 = vpack.c.bf16 %v7428_v17, %v7426_v43  ;;  %v8180_v8 = vpack.c.bf16 %v6484_v52, %v6435_v5  ;;  %v6979_v5 = vrot.slane %v6965_v46, 4 }
 0x588   : > { %v6973_v16 = vrot.slane %v6961_v10, 4  ;;  %v11386_v10 = vmul.f32 %v11294_v6, %v9096_v58 }
 0x589   : > { %v6472_v24 = vpop.permute.xlu0 %6471  ;;  %6885 = vrot.lane.b32.xlu1 %v6871_v40, %s8308_s10  ;;  %8179 = vmatpush1.bf16.msra.mxu1 %v8178_v29  ;;  %v6980_v32 = vsel %vm2140_vm13, %v6974_v35, %v6979_v5 }
 0x58a   : > { %v6483_v50 = vsel %vm2474_vm11, %v6472_v24, %v6474_v0  ;;  %8181 = vmatprep.subr.bf16.mxu1 %v8180_v8  ;;  %v6978_v1 = vsel %vm2140_vm13, %v6973_v16, %v6977_v21  ;;  %v7010_v24 = vld [vmem:[#allocation2 + $0x28] sm:$0x3]  ;;  %v5941_v59 = vrot.slane %v11386_v10, 4 }
 0x58b   : > { %6491 = vst [vmem:[#allocation3 + $0x50] sm:$0xff] %v6483_v50  ;;  %6879 = vrot.lane.b32.xlu0 %v6872_v57, %s8308_s10  ;;  %v6516_v41 = vpop.permute.xlu1 %6515  ;;  %v8182_v19 = vpack.c.bf16 %v6483_v50, %v6434_v18  ;;  %v6975_v18 = vrot.slane %v6963_v56, 4  ;;  %v7009_v57 = vld [vmem:[#allocation2 + $0x20] sm:$0x3] }
 0x58d   : > { %v6482_v37 = vpop.permute.xlu0 %6481  ;;  %6938 = vrot.lane.b32.xlu1 %v6925_v3, %s8308_s10  ;;  %8183 = vmatpush1.bf16.msra.mxu1 %v8182_v19  ;;  %v6976_v40 = vsel %vm2140_vm13, %v6972_v60, %v6975_v18 }
 0x58e   : > { %v6486_v7 = vsel %vm2474_vm11, %v6480_v31, %v6482_v37 }
 0x58f   : > { %6494 = vst [vmem:[#allocation3 + $0x68] sm:$0x3] %v6486_v7  ;;  %6930 = vrot.lane.b32.xlu0 %v6923_v28, %s8308_s10  ;;  %v6522_v27 = vpop.permute.xlu1 %6521 }
 0x591   : > { %v6518_v38 = vpop.permute.xlu0 %6517  ;;  %6983 = vrot.lane.b32.xlu1 %v6973_v16, %s8305_s7  ;;  %v7008_v16 = vld [vmem:[#allocation2 + $0x18] sm:$0x3] }
 0x592   : > { %v6526_v3 = vsel %vm2778_vm7, %v6516_v41, %v6518_v38  ;;  %v5921_v38 = vld [vmem:[#allocation2 + $0x58] sm:$0xc0] }
 0x593   : > { %6534 = vst [vmem:[#allocation3 + $0x68] sm:$0xfc] %v6526_v3  ;;  %6940 = vrot.lane.b32.xlu0 %v6928_v47, %s8308_s10  ;;  %v6561_v0 = vpop.permute.xlu1 %6560  ;;  %v11398_v3 = vmul.f32 %v9072_v63, %v11314_v26 }
 0x595   : > { %v6524_v48 = vpop.permute.xlu0 %6523  ;;  %6989 = vrot.lane.b32.xlu1 %v6978_v1, %s8305_s7  ;;  %v5927_v1 = vmul.f32 %v9072_v63, %v5921_v38 }
 0x596   : > { %v6528_v55 = vsel %vm2778_vm7, %v6522_v27, %v6524_v48 }
 0x597   : > { %6536 = vst [vmem:[#allocation3 + $0x78] sm:$0xf] %v6528_v55  ;;  %6985 = vrot.lane.b32.xlu0 %v6974_v35, %s8305_s7  ;;  %v6478_v20 = vpop.permute.xlu1 %6477  ;;  %v7041_v35 = vld [vmem:[#allocation2 + $0x18] sm:$0xfc]  ;;  %v5944_v55 = vrot.slane %v11398_v3, 4 }
 0x598   : > { %v6485_v47 = vsel %vm2474_vm11, %v6478_v20, %v6480_v31  ;;  %v5943_v20 = vrot.slane %v5927_v1, 4 }
 0x599   : > { %6493 = vst [vmem:[#allocation3 + $0x60] sm:$0x3] %v6485_v47  ;;  %v6563_v33 = vpop.permute.xlu0 %6562  ;;  %6936 = vrot.lane.b32.xlu1 %v6922_v62, %s8308_s10  ;;  %v5920_v62 = vld [vmem:[#allocation2 + $0x50] sm:$0xc0] }
 0x59a   : > { %v6571_v25 = vsel %vm238_vm10, %v6561_v0, %v6563_v33  ;;  %v7435_v8 = vld [vmem:[#allocation3 + $0x68] sm:$0xff]  ;;  %v5926_v7 = vmul.f32 %v5920_v62, %v9096_v58  ;;  %v5945_v33 = vsel %vm2140_vm13, %v5943_v20, %v5944_v55 }
 0x59b   : > { %6579 = vst [vmem:[#allocation3 + $0x78] sm:$0xf0] %v6571_v25  ;;  %6991 = vrot.lane.b32.xlu0 %v6980_v32, %s8305_s7  ;;  %v6520_v52 = vpop.permute.xlu1 %6519  ;;  %v5971_v32 = vld [vmem:[#allocation2 + $0x38] sm:$0xf0] }
 0x59c   : > { %v6527_v42 = vsel %vm2778_vm7, %v6520_v52, %v6522_v27  ;;  %v5940_v36 = vrot.slane %v5926_v7, 4 }
 0x59d   : > { %6535 = vst [vmem:[#allocation3 + $0x70] sm:$0xf] %v6527_v42  ;;  %v6514_v43 = vpop.permute.xlu0 %6513  ;;  %6987 = vrot.lane.b32.xlu1 %v6976_v40, %s8305_s7  ;;  %v7081_v42 = vld [vmem:[#allocation2 + $0x20] sm:$0x3] }
 0x59e   : > { %v6525_v17 = vsel %vm2778_vm7, %v6514_v43, %v6516_v41  ;;  %v7043_v41 = vld [vmem:[#allocation2 + $0x28] sm:$0xfc]  ;;  %v5942_v12 = vsel %vm2140_vm13, %v5940_v36, %v5941_v59 }
 0x59f   : > { %6533 = vst [vmem:[#allocation3 + $0x60] sm:$0xfc] %v6525_v17  ;;  %6981 = vrot.lane.b32.xlu0 %v6972_v60, %s8305_s7  ;;  %v6567_v14 = vpop.permute.xlu1 %6566  ;;  %v7078_v60 = vld [vmem:[#allocation2 + $0x8] sm:$0xff] }
 0x5a1   : > { %v6559_v31 = vpop.permute.xlu0 %6558  ;;  %7021 = vrot.lane.b32.xlu1 %v11167_v45, %s8313_s15 }
 0x5a2   : > { %v6570_v29 = vsel %vm238_vm10, %v6559_v31, %v6561_v0  ;;  %v7437_v15 = vld [vmem:[#allocation3 + $0x78] sm:$0xff]  ;;  %v7084_v31 = vmul.f32 %v7078_v60, %v9166_v54 }
 0x5a3   : > { %6578 = vst [vmem:[#allocation3 + $0x70] sm:$0xf0] %v6570_v29  ;;  %7019 = vrot.lane.b32.xlu0 %v11157_v30, %s8313_s15  ;;  %v6606_v23 = vpop.permute.xlu1 %6605  ;;  %v8184_v53 = vpack.c.bf16 %v7437_v15, %v7435_v8  ;;  %v7045_v29 = vld [vmem:[#allocation2 + $0x38] sm:$0xf]  ;;  %v7087_v8 = vmul.f32 %v7081_v42, %v9166_v54 }
 0x5a5   : > { %v6569_v9 = vpop.permute.xlu0 %6568  ;;  %7027 = vrot.lane.b32.xlu1 %v7010_v24, %s8313_s15  ;;  %8185 = vmatprep.subr.bf16.mxu1 %v8184_v53  ;;  %v5972_v53 = vld [vmem:[#allocation2 + $0x40] sm:$0xf0]  ;;  %v7079_v24 = vld [vmem:[#allocation2 + $0x10] sm:$0xff]  ;;  %v7100_v62 = vrot.slane %v7087_v8, 4 }
 0x5a6   : > { %v6573_v50 = vsel %vm238_vm10, %v6567_v14, %v6569_v9  ;;  %v7434_v51 = vld [vmem:[#allocation3 + $0x60] sm:$0xff] }
 0x5a7   : > { %6581 = vst [vmem:[#allocation3 + $0x88] sm:$0x3f] %v6573_v50  ;;  %7025 = vrot.lane.b32.xlu0 %v7009_v57, %s8313_s15  ;;  %v6612_v45 = vpop.permute.xlu1 %6611  ;;  %v7096_v50 = vrot.slane %v7084_v31, 4  ;;  %v7082_v57 = vld [vmem:[#allocation2 + $0x28] sm:$0x3] }
 0x5a9   : > { %v6608_v30 = vpop.permute.xlu0 %6607  ;;  %7057 = vrot.lane.b32.xlu1 %v7043_v41, %s8313_s15  ;;  %v7129_v41 = vld [vmem:[#allocation2 + $0x20] sm:$0xfc] }
 0x5aa   : > { %v6616_v19 = vsel %vm238_vm10, %v6606_v23, %v6608_v30  ;;  %v7436_v37 = vld [vmem:[#allocation3 + $0x70] sm:$0xff] }
 0x5ab   : > { %6624 = vst [vmem:[#allocation3 + $0x88] sm:$0xc0] %v6616_v19  ;;  %7055 = vrot.lane.b32.xlu0 %v7042_v2, %s8313_s15  ;;  %v6565_v28 = vpop.permute.xlu1 %6564  ;;  %v8186_v44 = vpack.c.bf16 %v7436_v37, %v7434_v51  ;;  %v7085_v19 = vmul.f32 %v11898_v4, %v7079_v24  ;;  %v7046_v51 = vld [vmem:[#allocation2 + $0x40] sm:$0xf]  ;;  %v7088_v37 = vmul.f32 %v11898_v4, %v7082_v57  ;;  %v7044_v57 = vld [vmem:[#allocation2 + $0x30] sm:$0xf] }
 0x5ac   : > { %v6572_v27 = vsel %vm238_vm10, %v6565_v28, %v6567_v14  ;;  %v11428_v28 = vmul.f32 %v7129_v41, %v9166_v54 }
 0x5ad   : > { %6580 = vst [vmem:[#allocation3 + $0x80] sm:$0x3f] %v6572_v27  ;;  %v6614_v21 = vpop.permute.xlu0 %6613  ;;  %7023 = vrot.lane.b32.xlu1 %v7008_v16, %s8313_s15  ;;  %8187 = vmatpush1.bf16.msra.mxu1 %v8186_v44  ;;  %v5919_v44 = vld [vmem:[#allocation2 + $0x48] sm:$0xc0]  ;;  %v7101_v27 = vsel %vm2140_vm13, %v7096_v50, %v7100_v62  ;;  %v11433_v16 = vmul.f32 %v9021_v49, %v11332_v39  ;;  %v7102_v36 = vrot.slane %v7088_v37, 4 }
 0x5ae   : > { %v6618_v61 = vsel %vm238_vm10, %v6612_v45, %v6614_v21  ;;  %v7097_v21 = vrot.slane %v7085_v19, 4  ;;  %v7147_v1 = vrot.slane %v11428_v28, 4  ;;  %v6046_v28 = vld [vmem:[#allocation2 + $0x50] sm:$0x3f] }
 0x5af   : > { %7017 = vrot.lane.b32.xlu0 %v11178_v34, %s8313_s15  ;;  %v6610_v46 = vpop.permute.xlu1 %6609 }
 0x5b0   : > { %v6617_v0 = vsel %vm238_vm10, %v6610_v46, %v6612_v45  ;;  %v5925_v46 = vmul.f32 %v9021_v49, %v5919_v44 }
 0x5b1   : > { %v6604_v56 = vpop.permute.xlu0 %6603  ;;  %5948 = vrot.lane.b32.xlu1 %v5942_v12, %s8305_s7 }
 0x5b2   : > { %v6615_v48 = vsel %vm238_vm10, %v6604_v56, %v6606_v23  ;;  %v7439_v5 = vld [vmem:[#allocation3 + $0x88] sm:$0xff] }
 0x5b3   : > { %6623 = vst [vmem:[#allocation3 + $0x80] sm:$0xc0] %v6615_v48  ;;  %7053 = vrot.lane.b32.xlu0 %v7041_v35, %s8313_s15  ;;  %v6650_v34 = vpop.permute.xlu1 %6649  ;;  %v8188_v11 = vpack.c.bf16 %v6618_v61, %v7439_v5  ;;  %v5938_v48 = vrot.slane %v11433_v16, 4 }
 0x5b5   : > { %v6648_v47 = vpop.permute.xlu0 %6647  ;;  %5954 = vrot.lane.b32.xlu1 %v5941_v59, %s8305_s7  ;;  %8189 = vmatprep.subr.bf16.mxu1 %v8188_v11  ;;  %v5937_v11 = vrot.slane %v5925_v46, 4 }
 0x5b6   : > { %v6658_v18 = vsel %vm2740_vm4, %v6648_v47, %v6650_v34  ;;  %v7103_v34 = vsel %vm2140_vm13, %v7097_v21, %v7102_v36 }
 0x5b7   : > { %5950 = vrot.lane.b32.xlu0 %v5945_v33, %s8305_s7  ;;  %v6656_v25 = vpop.permute.xlu1 %6655 }
 0x5b9   : > { %v6654_v52 = vpop.permute.xlu0 %6653  ;;  %5984 = vrot.lane.b32.xlu1 %v5971_v32, %s8313_s15 }
 0x5ba   : > { %v6660_v40 = vsel %vm2740_vm4, %v6654_v52, %v6656_v25  ;;  %v7438_v43 = vld [vmem:[#allocation3 + $0x80] sm:$0xff] }
 0x5bb   : > { %6668 = vst [vmem:[#allocation3 + $0xb8] sm:$0x3] %v6660_v40  ;;  %5956 = vrot.lane.b32.xlu0 %v5944_v55, %s8305_s7  ;;  %v6692_v17 = vpop.permute.xlu1 %6691  ;;  %v8190_v14 = vpack.c.bf16 %v6617_v0, %v7438_v43  ;;  %v7130_v0 = vld [vmem:[#allocation2 + $0x28] sm:$0xfc]  ;;  %v7080_v43 = vld [vmem:[#allocation2 + $0x18] sm:$0x3] }
 0x5bc   : > { %v11445_v55 = vmul.f32 %v11898_v4, %v7130_v0  ;;  %v7086_v8 = vmul.f32 %v11897_v13, %v7080_v43  ;;  %v7132_v0 = vld [vmem:[#allocation2 + $0x38] sm:$0xf] }
 0x5bd   : > { %v6690_v15 = vpop.permute.xlu0 %6689  ;;  %7061 = vrot.lane.b32.xlu1 %v7045_v29, %s8313_s15  ;;  %8191 = vmatpush1.bf16.msra.mxu1 %v8190_v14  ;;  %v7128_v14 = vld [vmem:[#allocation2 + $0x18] sm:$0xfc] }
 0x5be   : > { %v6700_v23 = vsel %vm2740_vm4, %v6690_v15, %v6692_v17  ;;  %v7148_v25 = vrot.slane %v11445_v55, 4  ;;  %v5970_v17 = vld [vmem:[#allocation2 + $0x30] sm:$0xf0]  ;;  %v7201_v55 = vrot.slane %v11386_v10, 6  ;;  %v6045_v10 = vld [vmem:[#allocation2 + $0x48] sm:$0x3f] }
 0x5bf   : > { %6708 = vst [vmem:[#allocation3 + $0xb8] sm:$0xfc] %v6700_v23  ;;  %5986 = vrot.lane.b32.xlu0 %v5972_v53, %s8313_s15  ;;  %v6652_v9 = vpop.permute.xlu1 %6651  ;;  %v11463_v53 = vmul.f32 %v11897_v13, %v7128_v14 }
 0x5c0   : > { %v6659_v45 = vsel %vm2740_vm4, %v6652_v9, %v6654_v52 }
 0x5c1   : > { %6667 = vst [vmem:[#allocation3 + $0xb0] sm:$0x3] %v6659_v45  ;;  %v6646_v30 = vpop.permute.xlu0 %6645  ;;  %7106 = vrot.lane.b32.xlu1 %v7096_v50, %s8306_s8  ;;  %v7098_v45 = vrot.slane %v7086_v8, 4  ;;  %v7146_v41 = vrot.slane %v11463_v53, 4  ;;  %v7204_v8 = vrot.slane %v11398_v3, 6 }
 0x5c2   : > { %v6657_v2 = vsel %vm2740_vm4, %v6646_v30, %v6648_v47  ;;  %v5939_v47 = vsel %vm2140_vm13, %v5937_v11, %v5938_v48 }
 0x5c3   : > { %7063 = vrot.lane.b32.xlu0 %v7046_v51, %s8313_s15  ;;  %v6696_v7 = vpop.permute.xlu1 %6695 }
 0x5c5   : > { %v6688_v59 = vpop.permute.xlu0 %6687  ;;  %7112 = vrot.lane.b32.xlu1 %v7101_v27, %s8306_s8  ;;  %v7133_v27 = vld [vmem:[#allocation2 + $0x40] sm:$0xf] }
 0x5c6   : > { %v6699_v38 = vsel %vm2740_vm4, %v6688_v59, %v6690_v15  ;;  %v7445_v61 = vld [vmem:[#allocation3 + $0xb8] sm:$0xff] }
 0x5c7   : > { %6707 = vst [vmem:[#allocation3 + $0xb0] sm:$0xfc] %v6699_v38  ;;  %7108 = vrot.lane.b32.xlu0 %v7097_v21, %s8306_s8  ;;  %v6741_v12 = vpop.permute.xlu1 %6740  ;;  %v8192_v56 = vpack.c.bf16 %v7445_v61, %v6658_v18  ;;  %v7077_v18 = vld [vmem:[#allocation2] sm:$0xff]  ;;  %v5974_v21 = vld [vmem:[#allocation2 + $0x50] sm:$0x3f] }
 0x5c8   : > { %v7083_v40 = vmul.f32 %v11897_v13, %v7077_v18 }
 0x5c9   : > { %v6698_v35 = vpop.permute.xlu0 %6697  ;;  %7157 = vrot.lane.b32.xlu1 %v7147_v1, %s8306_s8  ;;  %8193 = vmatprep.subr.bf16.mxu1 %v8192_v56  ;;  %v7139_v56 = vmul.f32 %v11898_v4, %v7133_v27 }
 0x5ca   : > { %v6702_v5 = vsel %vm2740_vm4, %v6696_v7, %v6698_v35  ;;  %v7095_v23 = vrot.slane %v7083_v40, 4 }
 0x5cb   : > { %6710 = vst [vmem:[#allocation3 + $0xc8] sm:$0xf] %v6702_v5  ;;  %7114 = vrot.lane.b32.xlu0 %v7103_v34, %s8306_s8  ;;  %v6747_v20 = vpop.permute.xlu1 %6746  ;;  %v6007_v5 = vld [vmem:[#allocation2 + $0x50] sm:$0xc0]  ;;  %v7138_v34 = vmul.f32 %v7132_v0, %v9166_v54  ;;  %v7153_v18 = vrot.slane %v7139_v56, 4 }
 0x5cc   : > { %v7099_v51 = vsel %vm2140_vm13, %v7095_v23, %v7098_v45 }
 0x5cd   : > { %v6743_v33 = vpop.permute.xlu0 %6742  ;;  %5946 = vrot.lane.b32.xlu1 %v5939_v47, %s8305_s7  ;;  %v7151_v40 = vrot.slane %v7138_v34, 4 }
 0x5ce   : > { %v6751_v32 = vsel %vm2778_vm7, %v6741_v12, %v6743_v33  ;;  %v7444_v60 = vld [vmem:[#allocation3 + $0xb0] sm:$0xff] }
 0x5cf   : > { %6759 = vst [vmem:[#allocation3 + $0xc8] sm:$0xf0] %v6751_v32  ;;  %7159 = vrot.lane.b32.xlu0 %v7148_v25, %s8306_s8  ;;  %v6786_v52 = vpop.permute.xlu1 %6785  ;;  %v8194_v42 = vpack.c.bf16 %v7444_v60, %v6657_v2  ;;  %v7180_v32 = vld [vmem:[#allocation2 + $0x50] sm:$0xc0] }
 0x5d1   : > { %v6749_v31 = vpop.permute.xlu0 %6748  ;;  %5982 = vrot.lane.b32.xlu1 %v5970_v17, %s8313_s15  ;;  %8195 = vmatpush1.bf16.msra.mxu1 %v8194_v42 }
 0x5d2   : > { %v6753_v29 = vsel %vm2778_vm7, %v6747_v20, %v6749_v31 }
 0x5d3   : > { %6761 = vst [vmem:[#allocation3 + $0xd8] sm:$0x3f] %v6753_v29  ;;  %5952 = vrot.lane.b32.xlu0 %v5938_v48, %s8305_s7  ;;  %v6694_v15 = vpop.permute.xlu1 %6693  ;;  %v7154_v29 = vsel %vm2140_vm13, %v7148_v25, %v7153_v18 }
 0x5d4   : > { %v6701_v24 = vsel %vm2740_vm4, %v6694_v15, %v6696_v7  ;;  %v5975_v7 = vld [vmem:[#allocation2 + $0x58] sm:$0x3f]  ;;  %v7186_v15 = vmul.f32 %v7180_v32, %v9096_v58 }
 0x5d5   : > { %6709 = vst [vmem:[#allocation3 + $0xc0] sm:$0xf] %v6701_v24  ;;  %v6788_v9 = vpop.permute.xlu0 %6787  ;;  %7104 = vrot.lane.b32.xlu1 %v7095_v23, %s8306_s8 }
 0x5d6   : > { %v6796_v50 = vsel %vm238_vm10, %v6786_v52, %v6788_v9  ;;  %v7447_v38 = vld [vmem:[#allocation3 + $0xc8] sm:$0xff]  ;;  %v7152_v9 = vsel %vm2140_vm13, %v7147_v1, %v7151_v40  ;;  %v7200_v45 = vrot.slane %v7186_v15, 6 }
 0x5d7   : > { %6804 = vst [vmem:[#allocation3 + $0xd8] sm:$0xc0] %v6796_v50  ;;  %7059 = vrot.lane.b32.xlu0 %v7044_v57, %s8313_s15  ;;  %v6745_v62 = vpop.permute.xlu1 %6744 }
 0x5d8   : > { %v6752_v30 = vsel %vm2778_vm7, %v6745_v62, %v6747_v20  ;;  %v7181_v20 = vld [vmem:[#allocation2 + $0x58] sm:$0xc0] }
 0x5d9   : > { %6760 = vst [vmem:[#allocation3 + $0xd0] sm:$0x3f] %v6752_v30  ;;  %v6739_v19 = vpop.permute.xlu0 %6738  ;;  %7155 = vrot.lane.b32.xlu1 %v7146_v41, %s8306_s8  ;;  %v7187_v43 = vmul.f32 %v9072_v63, %v7181_v20  ;;  %v7131_v63 = vld [vmem:[#allocation2 + $0x30] sm:$0xf] }
 0x5da   : > { %v6750_v2 = vsel %vm2778_vm7, %v6739_v19, %v6741_v12  ;;  %v6008_v12 = vld [vmem:[#allocation2 + $0x58] sm:$0xc0]  ;;  %v7137_v62 = vmul.f32 %v11897_v13, %v7131_v63  ;;  %v7202_v19 = vsel %vm1158_vm12, %v7200_v45, %v7201_v55 }
 0x5db   : > { %6758 = vst [vmem:[#allocation3 + $0xc0] sm:$0xf0] %v6750_v2  ;;  %7110 = vrot.lane.b32.xlu0 %v7099_v51, %s8306_s8  ;;  %v6792_v37 = vpop.permute.xlu1 %6791  ;;  %v7203_v50 = vrot.slane %v7187_v43, 6  ;;  %v6043_v51 = vld [vmem:[#allocation2 + $0x38] sm:$0xf0] }
 0x5dd   : > { %v6784_v44 = vpop.permute.xlu0 %6783  ;;  %5992 = vrot.lane.b32.xlu1 %v5975_v7, %s8313_s15  ;;  %v7205_v57 = vsel %vm1158_vm12, %v7203_v50, %v7204_v8  ;;  %v7149_v7 = vrot.slane %v7137_v62, 4  ;;  %v7235_v62 = vld [vmem:[#allocation2 + $0x58] sm:$0x3f] }
 0x5de   : > { %v6795_v59 = vsel %vm238_vm10, %v6784_v44, %v6786_v52  ;;  %v7449_v61 = vld [vmem:[#allocation3 + $0xd8] sm:$0xff]  ;;  %v6052_v44 = vmul.f32 %v6046_v28, %v9166_v54 }
 0x5df   : > { %6803 = vst [vmem:[#allocation3 + $0xd0] sm:$0xc0] %v6795_v59  ;;  %5990 = vrot.lane.b32.xlu0 %v5974_v21, %s8313_s15  ;;  %v6831_v36 = vpop.permute.xlu1 %6830  ;;  %v8196_v46 = vpack.c.bf16 %v7449_v61, %v7447_v38  ;;  %v7179_v59 = vld [vmem:[#allocation2 + $0x48] sm:$0xc0]  ;;  %v5973_v38 = vld [vmem:[#allocation2 + $0x48] sm:$0x3f]  ;;  %v6049_v61 = vmul.f32 %v6043_v51, %v9166_v54  ;;  %v7150_v0 = vsel %vm2140_vm13, %v7146_v41, %v7149_v7 }
 0x5e0   : > { %v7185_v56 = vmul.f32 %v9021_v49, %v7179_v59  ;;  %v7276_v51 = vld [vmem:[#allocation2 + $0x50] sm:$0xc0] }
 0x5e1   : > { %v6794_v48 = vpop.permute.xlu0 %6793  ;;  %6022 = vrot.lane.b32.xlu1 %v6008_v12, %s8313_s15  ;;  %8197 = vmatprep.subr.bf16.mxu1 %v8196_v46  ;;  %v6047_v46 = vld [vmem:[#allocation2 + $0x58] sm:$0x3f]  ;;  %v6064_v12 = vrot.slane %v6052_v44, 4  ;;  %v6063_v34 = vrot.slane %v6049_v61, 4  ;;  %v7291_v44 = vrot.slane %v11294_v6, 2  ;;  %v7290_v61 = vrot.slane %v7276_v51, 2 }
 0x5e2   : > { %v6798_v35 = vsel %vm238_vm10, %v6792_v37, %v6794_v48  ;;  %v7446_v52 = vld [vmem:[#allocation3 + $0xc0] sm:$0xff]  ;;  %v6053_v20 = vmul.f32 %v11898_v4, %v6047_v46 }
 0x5e3   : > { %6806 = vst [vmem:[#allocation3 + $0xe8] sm:$0xff] %v6798_v35  ;;  %6020 = vrot.lane.b32.xlu0 %v6007_v5, %s8313_s15  ;;  %v6790_v11 = vpop.permute.xlu1 %6789  ;;  %v6065_v49 = vsel %vm2140_vm13, %v6063_v34, %v6064_v12 }
 0x5e4   : > { %v6797_v47 = vsel %vm238_vm10, %v6790_v11, %v6792_v37  ;;  %v6006_v37 = vld [vmem:[#allocation2 + $0x48] sm:$0xc0]  ;;  %v7198_v11 = vrot.slane %v11433_v16, 6 }
 0x5e5   : > { %6805 = vst [vmem:[#allocation3 + $0xe0] sm:$0xff] %v6797_v47  ;;  %v6833_v33 = vpop.permute.xlu0 %6832  ;;  %6028 = vrot.lane.b32.xlu1 %v11314_v26, %s8313_s15 }
 0x5e6   : > { %v6841_v60 = vsel %vm238_vm10, %v6831_v36, %v6833_v33  ;;  %v7448_v42 = vld [vmem:[#allocation3 + $0xd0] sm:$0xff] }
 0x5e7   : > { %6849 = vst [vmem:[#allocation3 + $0xf8] sm:$0xff] %v6841_v60  ;;  %6026 = vrot.lane.b32.xlu0 %v11294_v6, %s8313_s15  ;;  %v6837_v17 = vpop.permute.xlu1 %6836  ;;  %v8198_v14 = vpack.c.bf16 %v7448_v42, %v7446_v52  ;;  %v8200_v31 = vpack.c.bf16 %v6841_v60, %v6798_v35  ;;  %v6044_v35 = vld [vmem:[#allocation2 + $0x40] sm:$0xf0]  ;;  %v6067_v52 = vrot.slane %v6053_v20, 4 }
 0x5e8   : > { %v6050_v18 = vmul.f32 %v11898_v4, %v6044_v35 }
 0x5e9   : > { %v6829_v23 = vpop.permute.xlu0 %6828  ;;  %7165 = vrot.lane.b32.xlu1 %v7154_v29, %s8306_s8  ;;  %8199 = vmatpush1.bf16.msra.mxu1 %v8198_v14  ;;  %v7234_v14 = vld [vmem:[#allocation2 + $0x50] sm:$0x3f] }
 0x5ea   : > { %v6840_v24 = vsel %vm238_vm10, %v6829_v23, %v6831_v36  ;;  %8201 = vmatprep.subr.bf16.mxu1 %v8200_v31  ;;  %v6066_v43 = vrot.slane %v6050_v18, 4  ;;  %v7231_v23 = vld [vmem:[#allocation2 + $0x38] sm:$0xf0]  ;;  %v7246_v63 = vrot.slane %v7234_v14, 2 }
 0x5eb   : > { %6848 = vst [vmem:[#allocation3 + $0xf0] sm:$0xff] %v6840_v24  ;;  %7163 = vrot.lane.b32.xlu0 %v7152_v9, %s8306_s8  ;;  %v6882_v25 = vpop.permute.xlu1 %6881  ;;  %v8202_v58 = vpack.c.bf16 %v6840_v24, %v6797_v47  ;;  %v7197_v47 = vrot.slane %v7185_v56, 6  ;;  %v7245_v50 = vrot.slane %v7231_v23, 2  ;;  %v7292_v56 = vsel %vm1223_vm5, %v7290_v61, %v7291_v44  ;;  %v7230_v23 = vld [vmem:[#allocation2 + $0x30] sm:$0xf0] }
 0x5ec   : > { %v6068_v29 = vsel %vm2140_vm13, %v6066_v43, %v6067_v52  ;;  %v7242_v16 = vrot.slane %v7230_v23, 2 }
 0x5ed   : > { %v6839_v30 = vpop.permute.xlu0 %6838  ;;  %7210 = vrot.lane.b32.xlu1 %v7205_v57, %s8305_s7  ;;  %8203 = vmatpush1.bf16.msra.mxu1 %v8202_v58  ;;  %v7199_v60 = vsel %vm1158_vm12, %v7197_v47, %v7198_v11  ;;  %v11577_v47 = vld [vmem:[%s11792_s3 + $0x10] sm:$0xff] }
 0x5ee   : > { %v6843_v1 = vsel %vm238_vm10, %v6837_v17, %v6839_v30  ;;  %v7247_v30 = vsel %vm1223_vm5, %v7245_v50, %v7246_v63  ;;  %v8292_v50 = vld [vmem:[%s11792_s3 + $0x8] sm:$0xff] }
 0x5ef   : > { %6851 = vst [vmem:[#allocation3 + $0x108] sm:$0x3] %v6843_v1  ;;  %7208 = vrot.lane.b32.xlu0 %v7202_v19, %s8305_s7  ;;  %v6888_v2 = vpop.permute.xlu1 %6887  ;;  %v7232_v1 = vld [vmem:[#allocation2 + $0x40] sm:$0xf0]  ;;  %v7249_v19 = vrot.slane %v7235_v62, 2 }
 0x5f0   : > { %v7248_v7 = vrot.slane %v7232_v1, 2 }
 0x5f1   : > { %v6884_v27 = vpop.permute.xlu0 %6883  ;;  %6018 = vrot.lane.b32.xlu1 %v6006_v37, %s8313_s15  ;;  %v6042_v37 = vld [vmem:[#allocation2 + $0x30] sm:$0xf0] }
 0x5f2   : > { %v6892_v21 = vsel %vm2740_vm4, %v6882_v25, %v6884_v27  ;;  %v6051_v27 = vmul.f32 %v11897_v13, %v6045_v10  ;;  %v6048_v3 = vmul.f32 %v11897_v13, %v6042_v37 }
 0x5f3   : > { %6900 = vst [vmem:[#allocation3 + $0x108] sm:$0xfc] %v6892_v21  ;;  %5988 = vrot.lane.b32.xlu0 %v5973_v38, %s8313_s15  ;;  %v6933_v36 = vpop.permute.xlu1 %6932  ;;  %v7250_v38 = vsel %vm1223_vm5, %v7248_v7, %v7249_v19  ;;  %v7322_v7 = vld [vmem:[#allocation2 + $0x40] sm:$0xf0] }
 0x5f4   : > { %v6060_v20 = vrot.slane %v6048_v3, 4  ;;  %v7328_v6 = vmul.f32 %v11898_v4, %v7322_v7 }
 0x5f5   : > { %v6890_v48 = vpop.permute.xlu0 %6889  ;;  %7161 = vrot.lane.b32.xlu1 %v7150_v0, %s8306_s8 }
 0x5f6   : > { %v6894_v5 = vsel %vm2740_vm4, %v6888_v2, %v6890_v48  ;;  %v6061_v48 = vrot.slane %v6051_v27, 4 }
 0x5f7   : > { %6902 = vst [vmem:[#allocation3 + $0x118] sm:$0xf] %v6894_v5  ;;  %6024 = vrot.lane.b32.xlu0 %v11332_v39, %s8313_s15  ;;  %v6835_v53 = vpop.permute.xlu1 %6834  ;;  %v7277_v5 = vld [vmem:[#allocation2 + $0x58] sm:$0xc0] }
 0x5f8   : > { %v6842_v41 = vsel %vm238_vm10, %v6835_v53, %v6837_v17  ;;  %v7294_v53 = vrot.slane %v11314_v26, 2  ;;  %v7373_v26 = vld [vmem:[#allocation2 + $0x58] sm:$0xc0] }
 0x5f9   : > { %6850 = vst [vmem:[#allocation3 + $0x100] sm:$0x3] %v6842_v41  ;;  %v6935_v33 = vpop.permute.xlu0 %6934  ;;  %6071 = vrot.lane.b32.xlu1 %v6065_v49, %s8306_s8  ;;  %v11572_v49 = vld [vmem:[%s11792_s3 + $0x18] sm:$0xff] }
 0x5fa   : > { %v6943_v32 = vsel %vm2740_vm4, %v6933_v36, %v6935_v33  ;;  %v7455_v58 = vld [vmem:[#allocation3 + $0x108] sm:$0xff]  ;;  %v6062_v33 = vsel %vm2140_vm13, %v6060_v20, %v6061_v48  ;;  %7795 = vmatprep.mubr.msk.f32.mxu0 %vm3513_vm3, %v11572_v49  ;;  %7800 = vmatprep.mubr.msk.f32.mxu1 %vm3513_vm3, %v11572_v49 }
 0x5fb   : > { %6951 = vst [vmem:[#allocation3 + $0x118] sm:$0xf0] %v6943_v32  ;;  %7206 = vrot.lane.b32.xlu0 %v7199_v60, %s8305_s7  ;;  %v6886_v42 = vpop.permute.xlu1 %6885  ;;  %v7293_v32 = vrot.slane %v7277_v5, 2  ;;  %3600 = vmatmul.mubr.f32.gmra.mrb[34].mxu0 %v11577_v47  ;;  %v7376_v5 = vld [vmem:[#allocation2 + $0x70] sm:$0xff] }
 0x5fc   : > { %v6893_v40 = vsel %vm2740_vm4, %v6886_v42, %v6888_v2  ;;  %4923 = vmatmul.mubr.f32.gmra.mrb[34].mxu1 %v11577_v47 }
 0x5fd   : > { %6901 = vst [vmem:[#allocation3 + $0x110] sm:$0xf] %v6893_v40  ;;  %v6880_v17 = vpop.permute.xlu0 %6879  ;;  %6077 = vrot.lane.b32.xlu1 %v6064_v12, %s8306_s8  ;;  %v7295_v42 = vsel %vm1223_vm5, %v7293_v32, %v7294_v53  ;;  %v7375_v32 = vld [vmem:[#allocation2 + $0x68] sm:$0xff] }
 0x5fe   : > { %v6891_v31 = vsel %vm2740_vm4, %v6880_v17, %v6882_v25  ;;  %v7233_v17 = vld [vmem:[#allocation2 + $0x48] sm:$0x3f]  ;;  %v7381_v23 = vmul.f32 %v7375_v32, %v9166_v54 }
 0x5ff   : > { %6899 = vst [vmem:[#allocation3 + $0x100] sm:$0xfc] %v6891_v31  ;;  %6073 = vrot.lane.b32.xlu0 %v6068_v29, %s8306_s8  ;;  %v6939_v15 = vpop.permute.xlu1 %6938  ;;  %v11596_v31 = vld [vmem:[%s11792_s3 + $0x28] sm:$0xf]  ;;  %v11601_v29 = vld [vmem:[%s11792_s3 + $0x20] sm:$0xf] }
 0x600   : > { %7796 = vmatprep.mubr.msk.f32.mxu0 %vm3513_vm3, %v11596_v31  ;;  %7801 = vmatprep.mubr.msk.f32.mxu1 %vm3513_vm3, %v11596_v31 }
 0x601   : > { %v6931_v24 = vpop.permute.xlu0 %6930  ;;  %7214 = vrot.lane.b32.xlu1 %v7201_v55, %s8305_s7  ;;  %3606 = vmatmul.mubr.f32.gmra.mrb[36].mxu0 %v11601_v29 }
 0x602   : > { %v6942_v9 = vsel %vm2740_vm4, %v6931_v24, %v6933_v36  ;;  %v7457_v57 = vld [vmem:[#allocation3 + $0x118] sm:$0xff]  ;;  %v7243_v24 = vrot.slane %v7233_v17, 2  ;;  %4929 = vmatmul.mubr.f32.gmra.mrb[36].mxu1 %v11601_v29  ;;  %7804 = vmatprep.mubr.msk.f32.mxu0 %vm3513_vm3, %v8292_v50 }
 0x603   : > { %6950 = vst [vmem:[#allocation3 + $0x110] sm:$0xf0] %v6942_v9  ;;  %6079 = vrot.lane.b32.xlu0 %v6067_v52, %s8306_s8  ;;  %v6984_v25 = vpop.permute.xlu1 %6983  ;;  %v8204_v45 = vpack.c.bf16 %v7457_v57, %v7455_v58  ;;  %7809 = vmatprep.mubr.msk.f32.mxu1 %vm3513_vm3, %v8292_v50  ;;  %v7275_v57 = vld [vmem:[#allocation2 + $0x48] sm:$0xc0] }
 0x604   : > { %v7244_v62 = vsel %vm1223_vm5, %v7242_v16, %v7243_v24 }
 0x605   : > { %v6941_v28 = vpop.permute.xlu0 %6940  ;;  %7253 = vrot.lane.b32.xlu1 %v7247_v30, %s8313_s15  ;;  %8205 = vmatprep.subr.bf16.mxu1 %v8204_v45 }
 0x606   : > { %v6945_v55 = vsel %vm2740_vm4, %v6939_v15, %v6941_v28  ;;  %v7454_v36 = vld [vmem:[#allocation3 + $0x100] sm:$0xff]  ;;  %v7288_v28 = vrot.slane %v11332_v39, 2 }
 0x607   : > { %6953 = vst [vmem:[#allocation3 + $0x128] sm:$0x3f] %v6945_v55  ;;  %7216 = vrot.lane.b32.xlu0 %v7204_v8, %s8305_s7  ;;  %v6990_v2 = vpop.permute.xlu1 %6989 }
 0x609   : > { %v6986_v59 = vpop.permute.xlu0 %6985  ;;  %7259 = vrot.lane.b32.xlu1 %v7246_v63, %s8313_s15 }
 0x60a   : > { %v6994_v21 = vsel %vm2445_vm1, %v6984_v25, %v6986_v59  ;;  %v7456_v46 = vld [vmem:[#allocation3 + $0x110] sm:$0xff] }
 0x60b   : > { %7002 = vst [vmem:[#allocation3 + $0x128] sm:$0xc0] %v6994_v21  ;;  %7255 = vrot.lane.b32.xlu0 %v7250_v38, %s8313_s15  ;;  %v6937_v8 = vpop.permute.xlu1 %6936  ;;  %v8206_v0 = vpack.c.bf16 %v7456_v46, %v7454_v36  ;;  %v7325_v21 = vld [vmem:[#allocation2 + $0x58] sm:$0x3f] }
 0x60c   : > { %v6944_v12 = vsel %vm2740_vm4, %v6937_v8, %v6939_v15  ;;  %v7331_v3 = vmul.f32 %v11898_v4, %v7325_v21 }
 0x60d   : > { %6952 = vst [vmem:[#allocation3 + $0x120] sm:$0x3f] %v6944_v12  ;;  %v6992_v35 = vpop.permute.xlu0 %6991  ;;  %7298 = vrot.lane.b32.xlu1 %v7292_v56, %s8313_s15  ;;  %8207 = vmatpush1.bf16.msra.mxu1 %v8206_v0  ;;  %v7320_v0 = vld [vmem:[#allocation2 + $0x30] sm:$0xf0] }
 0x60e   : > { %v6996_v34 = vsel %vm2445_vm1, %v6990_v2, %v6992_v35  ;;  %v7340_v35 = vrot.slane %v7328_v6, 6 }
 0x60f   : > { %7261 = vrot.lane.b32.xlu0 %v7249_v19, %s8313_s15  ;;  %v6988_v41 = vpop.permute.xlu1 %6987  ;;  %v7287_v19 = vrot.slane %v7275_v57, 2  ;;  %v7393_v57 = vrot.slane %v7381_v23, 6 }
 0x610   : > { %v6995_v18 = vsel %vm2445_vm1, %v6988_v41, %v6990_v2  ;;  %v7345_v41 = vrot.slane %v7331_v3, 6 }
 0x611   : > { %v6982_v60 = vpop.permute.xlu0 %6981  ;;  %6069 = vrot.lane.b32.xlu1 %v6062_v33, %s8306_s8  ;;  %v7289_v39 = vsel %vm1223_vm5, %v7287_v19, %v7288_v28 }
 0x612   : > { %v6993_v52 = vsel %vm2445_vm1, %v6982_v60, %v6984_v25  ;;  %v7459_v40 = vld [vmem:[#allocation3 + $0x128] sm:$0xff]  ;;  %v7324_v25 = vld [vmem:[#allocation2 + $0x50] sm:$0x3f] }
 0x613   : > { %7001 = vst [vmem:[#allocation3 + $0x120] sm:$0xc0] %v6993_v52  ;;  %7300 = vrot.lane.b32.xlu0 %v7295_v42, %s8313_s15  ;;  %v7022_v43 = vpop.permute.xlu1 %7021  ;;  %v8208_v14 = vpack.c.bf16 %v6996_v34, %v7459_v40  ;;  %v7330_v2 = vmul.f32 %v7324_v25, %v9166_v54  ;;  %v7382_v52 = vmul.f32 %v11898_v4, %v7376_v5 }
 0x614   : > { %v7379_v40 = vmul.f32 %v11898_v4, %v7373_v26 }
 0x615   : > { %v7020_v15 = vpop.permute.xlu0 %7019  ;;  %7212 = vrot.lane.b32.xlu1 %v7198_v11, %s8305_s7  ;;  %8209 = vmatprep.subr.bf16.mxu1 %v8208_v14  ;;  %v7321_v11 = vld [vmem:[#allocation2 + $0x38] sm:$0xf0]  ;;  %v7343_v61 = vrot.slane %v7330_v2, 6  ;;  %v7346_v14 = vsel %vm1158_vm12, %v7340_v35, %v7345_v41  ;;  %v11702_v41 = vpop.f32.mrb[32].mxu1 }
 0x616   : > { %v11611_v63 = vsel %vm3341_vm9, %v7020_v15, %v7022_v43  ;;  %v7327_v55 = vmul.f32 %v7321_v11, %v9166_v54  ;;  %v7372_v43 = vld [vmem:[#allocation2 + $0x50] sm:$0xc0]  ;;  %v7395_v11 = vrot.slane %v7379_v40, 6  ;;  %v11710_v32 = vpop.f32.mrb[33].mxu1 }
 0x617   : > { %6075 = vrot.lane.b32.xlu0 %v6061_v48, %s8306_s8  ;;  %v7028_v9 = vpop.permute.xlu1 %7027  ;;  %v7378_v50 = vmul.f32 %v7372_v43, %v9166_v54 }
 0x618   : > { %v7339_v59 = vrot.slane %v7327_v55, 6 }
 0x619   : > { %v7026_v58 = vpop.permute.xlu0 %7025  ;;  %7257 = vrot.lane.b32.xlu1 %v7243_v24, %s8313_s15 }
 0x61a   : > { %v7032_v45 = vsel %vm3341_vm9, %v7026_v58, %v7028_v9  ;;  %v7458_v30 = vld [vmem:[#allocation3 + $0x120] sm:$0xff]  ;;  %v7344_v12 = vsel %vm1158_vm12, %v7339_v59, %v7343_v61  ;;  %v7396_v9 = vrot.slane %v7382_v52, 6 }
 0x61b   : > { %7040 = vst [vmem:[#allocation3 + $0x158] sm:$0x3] %v7032_v45  ;;  %7251 = vrot.lane.b32.xlu0 %v7244_v62, %s8313_s15  ;;  %v7058_v1 = vpop.permute.xlu1 %7057  ;;  %v8210_v10 = vpack.c.bf16 %v6995_v18, %v7458_v30  ;;  %v7326_v18 = vmul.f32 %v11897_v13, %v7320_v0  ;;  %v7374_v62 = vld [vmem:[#allocation2 + $0x60] sm:$0xff] }
 0x61c   : > { %v7397_v30 = vsel %vm1158_vm12, %v7395_v11, %v7396_v9  ;;  %v7380_v19 = vmul.f32 %v11897_v13, %v7374_v62 }
 0x61d   : > { %v7056_v51 = vpop.permute.xlu0 %7055  ;;  %7304 = vrot.lane.b32.xlu1 %v7291_v44, %s8313_s15  ;;  %8211 = vmatpush1.bf16.msra.mxu1 %v8210_v10  ;;  %v7323_v44 = vld [vmem:[#allocation2 + $0x48] sm:$0x3f] }
 0x61e   : > { %v7066_v37 = vsel %vm3341_vm9, %v7056_v51, %v7058_v1  ;;  %v7329_v56 = vmul.f32 %v11897_v13, %v7323_v44  ;;  %v7371_v1 = vld [vmem:[#allocation2 + $0x48] sm:$0xc0]  ;;  %v7390_v7 = vrot.slane %v7380_v19, 6 }
 0x61f   : > { %7074 = vst [vmem:[#allocation3 + $0x158] sm:$0xfc] %v7066_v37  ;;  %7296 = vrot.lane.b32.xlu0 %v7289_v39, %s8313_s15  ;;  %v7024_v27 = vpop.permute.xlu1 %7023 }
 0x620   : > { %v7031_v38 = vsel %vm3341_vm9, %v7024_v27, %v7026_v58  ;;  %v7341_v60 = vrot.slane %v7329_v56, 6 }
 0x621   : > { %7039 = vst [vmem:[#allocation3 + $0x150] sm:$0x3] %v7031_v38  ;;  %v7018_v36 = vpop.permute.xlu0 %7017  ;;  %7349 = vrot.lane.b32.xlu1 %v7339_v59, %s8306_s8 }
 0x622   : > { %v7029_v46 = vsel %vm3341_vm9, %v7018_v36, %v7020_v15  ;;  %v7338_v15 = vrot.slane %v7326_v18, 6 }
 0x623   : > { %7306 = vrot.lane.b32.xlu0 %v7294_v53, %s8313_s15  ;;  %v11642_v8 = vpop.permute.xlu1 %5948 }
 0x624   : > { %v7342_v24 = vsel %vm1158_vm12, %v7338_v15, %v7341_v60 }
 0x625   : > { %v7054_v48 = vpop.permute.xlu0 %7053  ;;  %7355 = vrot.lane.b32.xlu1 %v7344_v12, %s8306_s8 }
 0x626   : > { %v7065_v34 = vsel %vm3341_vm9, %v7054_v48, %v7056_v51  ;;  %v7465_v20 = vld [vmem:[#allocation3 + $0x158] sm:$0xff]  ;;  %v7377_v51 = vmul.f32 %v11897_v13, %v7371_v1 }
 0x627   : > { %7073 = vst [vmem:[#allocation3 + $0x150] sm:$0xfc] %v7065_v34  ;;  %7351 = vrot.lane.b32.xlu0 %v7340_v35, %s8306_s8  ;;  %v11650_v53 = vpop.permute.xlu1 %5954  ;;  %v8212_v33 = vpack.c.bf16 %v7465_v20, %v11611_v63  ;;  %v237_v48 = vld [vmem:[%s11793_s4 + $0x10] sm:$0xf]  ;;  %v236_v34 = vld [vmem:[%s11793_s4 + $0x8] sm:$0xff]  ;;  %v11700_v20 = vpop.f32.mrb[32].mxu0 }
 0x628   : > { %v7389_v59 = vrot.slane %v7377_v51, 6  ;;  %v11706_v26 = vpop.f32.mrb[33].mxu0 }
 0x629   : > { %v5951_v42 = vpop.permute.xlu0 %5950  ;;  %7302 = vrot.lane.b32.xlu1 %v7288_v28, %s8313_s15  ;;  %8213 = vmatprep.subr.bf16.mxu1 %v8212_v33  ;;  %v7392_v28 = vrot.slane %v7378_v50, 6  ;;  %v4936_v52 = vmax.f32 %v11706_v26, %v11710_v32  ;;  %s8239_s15 = smul.u32 48, %s11903_s19 }
 0x62a   : > { %v5959_v17 = vsel %vm2445_vm1, %v11642_v8, %v5951_v42  ;;  %v7391_v61 = vsel %vm1158_vm12, %v7389_v59, %v7390_v7 }
 0x62b   : > { %5967 = vst [vmem:[#allocation3 + $0x1a8] sm:$0xfc] %v5959_v17  ;;  %7357 = vrot.lane.b32.xlu0 %v7346_v14, %s8306_s8  ;;  %v11661_v63 = vpop.permute.xlu1 %5984  ;;  %v7394_v55 = vsel %vm1158_vm12, %v7392_v28, %v7393_v57  ;;  %s224_s20 = scalar_lea.vmem %s11794_s5, %s8239_s15 }
 0x62d   : > { %v5957_v4 = vpop.permute.xlu0 %5956  ;;  %7353 = vrot.lane.b32.xlu1 %v7342_v24, %s8306_s8 }
 0x62e   : > { %v5961_v16 = vsel %vm2445_vm1, %v11650_v53, %v5957_v4  ;;  %v7464_v58 = vld [vmem:[#allocation3 + $0x150] sm:$0xff] }
 0x62f   : > { %5969 = vst [vmem:[#allocation3 + $0x1b8] sm:$0xf] %v5961_v16  ;;  %7347 = vrot.lane.b32.xlu0 %v7338_v15, %s8306_s8  ;;  %v11669_v25 = vpop.permute.xlu1 %7061  ;;  %v8214_v45 = vpack.c.bf16 %v7464_v58, %v7029_v46  ;;  %v235_v46 = vld [vmem:[%s11793_s4] sm:$0xff] }
 0x631   : > { %v5987_v54 = vpop.permute.xlu0 %5986  ;;  %7402 = vrot.lane.b32.xlu1 %v7397_v30, %s8306_s8  ;;  %8215 = vmatpush1.bf16.msra.mxu1 %v8214_v45 }
 0x632   : > { %v5995_v10 = vsel %vm3341_vm9, %v11661_v63, %v5987_v54  ;;  %v6146_v13 = vld [vmem:[#allocation3 + $0x1a8] sm:$0xff] }
 0x633   : > { %6003 = vst [vmem:[#allocation3 + $0x1b8] sm:$0xf0] %v5995_v10  ;;  %7400 = vrot.lane.b32.xlu0 %v7394_v55, %s8306_s8  ;;  %v7107_v2 = vpop.permute.xlu1 %7106 }
 0x635   : > { %v7064_v37 = vpop.permute.xlu0 %7063  ;;  %7408 = vrot.lane.b32.xlu1 %v7396_v9, %s8306_s8 }
 0x636   : > { %v7068_v39 = vsel %vm3341_vm9, %v11669_v25, %v7064_v37 }
 0x637   : > { %7076 = vst [vmem:[#allocation3 + $0x168] sm:$0xf] %v7068_v39  ;;  %7406 = vrot.lane.b32.xlu0 %v7393_v57, %s8306_s8  ;;  %v7113_v27 = vpop.permute.xlu1 %7112 }
 0x639   : > { %v7109_v21 = vpop.permute.xlu0 %7108  ;;  %7404 = vrot.lane.b32.xlu1 %v7390_v7, %s8306_s8 }
 0x63a   : > { %v7117_v38 = vsel %vm2258_vm6, %v7107_v2, %v7109_v21  ;;  %v6148_v36 = vld [vmem:[#allocation3 + $0x1b8] sm:$0xff] }
 0x63b   : > { %7125 = vst [vmem:[#allocation3 + $0x168] sm:$0xf0] %v7117_v38  ;;  %7398 = vrot.lane.b32.xlu0 %v7391_v61, %s8306_s8  ;;  %v7158_v6 = vpop.permute.xlu1 %7157  ;;  %v8158_v44 = vpack.c.bf16 %v6148_v36, %v6146_v13 }
 0x63d   : > { %v7115_v3 = vpop.permute.xlu0 %7114  ;;  %8159 = vmatprep.subr.bf16.mxu0 %v8158_v44  ;;  %7588 = vperm.xlu1 %8291, %v236_v34  }
 0x63e   : > { %v7119_v0 = vsel %vm2258_vm6, %v7113_v27, %v7115_v3 }
 0x63f   : > { %7127 = vst [vmem:[#allocation3 + $0x178] sm:$0x3f] %v7119_v0  ;;  %7583 = vperm.xlu0 %8260, %v235_v46   ;;  %v5947_v12 = vpop.permute.xlu1 %5946 }
 0x640   : > { %v5958_v56 = vsel %vm2445_vm1, %v5947_v12, %v11642_v8  ;;  %v4935_v8 = vmax.f32 %v11700_v20, %v11702_v41 }
 0x641   : > { %5966 = vst [vmem:[#allocation3 + $0x1a0] sm:$0xfc] %v5958_v56  ;;  %v7160_v35 = vpop.permute.xlu0 %7159 }
 0x642   : > { %v7168_v5 = vsel %vm2258_vm6, %v7158_v6, %v7160_v35  ;;  %v7467_v15 = vld [vmem:[#allocation3 + $0x168] sm:$0xff] }
 0x643   : > { %7176 = vst [vmem:[#allocation3 + $0x178] sm:$0xc0] %v7168_v5  ;;  %7593 = vperm.xlu0 %8260, %v237_v48   ;;  %v5983_v18 = vpop.permute.xlu1 %5982 }
 0x644   : > { %v5994_v33 = vsel %vm3341_vm9, %v5983_v18, %v11661_v63 }
 0x645   : > { %6002 = vst [vmem:[#allocation3 + $0x1b0] sm:$0xf0] %v5994_v33  ;;  %v5953_v60 = vpop.permute.xlu0 %5952 }
 0x646   : > { %v5960_v42 = vsel %vm2445_vm1, %v5953_v60, %v11650_v53 }
 0x647   : > { %5968 = vst [vmem:[#allocation3 + $0x1b0] sm:$0xf] %v5960_v42  ;;  %v7105_v40 = vpop.permute.xlu1 %7104 }
 0x648   : > { %v7116_v43 = vsel %vm2258_vm6, %v7105_v40, %v7107_v2  ;;  %v6145_v4 = vld [vmem:[#allocation3 + $0x1a0] sm:$0xff] }
 0x649   : > { %7124 = vst [vmem:[#allocation3 + $0x160] sm:$0xf0] %v7116_v43  ;;  %v7060_v17 = vpop.permute.xlu0 %7059 }
 0x64a   : > { %v7067_v14 = vsel %vm3341_vm9, %v7060_v17, %v11669_v25  ;;  %v7469_v23 = vld [vmem:[#allocation3 + $0x178] sm:$0xff] }
 0x64b   : > { %7075 = vst [vmem:[#allocation3 + $0x160] sm:$0xf] %v7067_v14  ;;  %v7156_v63 = vpop.permute.xlu1 %7155  ;;  %v8216_v24 = vpack.c.bf16 %v7469_v23, %v7467_v15 }
 0x64c   : > { %v7167_v9 = vsel %vm2258_vm6, %v7156_v63, %v7158_v6 }
 0x64d   : > { %7175 = vst [vmem:[#allocation3 + $0x170] sm:$0xc0] %v7167_v9  ;;  %v7111_v50 = vpop.permute.xlu0 %7110  ;;  %8217 = vmatprep.subr.bf16.mxu1 %v8216_v24 }
 0x64e   : > { %v7118_v53 = vsel %vm2258_vm6, %v7111_v50, %v7113_v27  ;;  %v6147_v16 = vld [vmem:[#allocation3 + $0x1b0] sm:$0xff] }
 0x64f   : > { %7126 = vst [vmem:[#allocation3 + $0x170] sm:$0x3f] %v7118_v53  ;;  %v5993_v11 = vpop.permute.xlu1 %5992  ;;  %v8160_v58 = vpack.c.bf16 %v6147_v16, %v6145_v4 }
 0x651   : > { %v5991_v57 = vpop.permute.xlu0 %5990  ;;  %8161 = vmatpush1.bf16.msra.mxu0 %v8160_v58 }
 0x652   : > { %v5997_v25 = vsel %vm3341_vm9, %v5991_v57, %v5993_v11  ;;  %v7466_v28 = vld [vmem:[#allocation3 + $0x160] sm:$0xff] }
 0x653   : > { %6005 = vst [vmem:[#allocation3 + $0x1c8] sm:$0x3f] %v5997_v25  ;;  %v6023_v45 = vpop.permute.xlu1 %6022 }
 0x655   : > { %v6021_v62 = vpop.permute.xlu0 %6020 }
 0x656   : > { %v6031_v30 = vsel %vm3341_vm9, %v6021_v62, %v6023_v45  ;;  %v7468_v54 = vld [vmem:[#allocation3 + $0x170] sm:$0xff] }
 0x657   : > { %6039 = vst [vmem:[#allocation3 + $0x1c8] sm:$0xc0] %v6031_v30  ;;  %v6029_v1 = vpop.permute.xlu1 %6028  ;;  %v8218_v10 = vpack.c.bf16 %v7468_v54, %v7466_v28 }
 0x659   : > { %v6027_v55 = vpop.permute.xlu0 %6026  ;;  %8219 = vmatpush1.bf16.msra.mxu1 %v8218_v10 }
 0x65a   : > { %v6033_v51 = vsel %vm3341_vm9, %v6027_v55, %v6029_v1 }
 0x65b   : > { %v7166_v19 = vpop.permute.xlu1 %7165 }
 0x65d   : > { %v7164_v2 = vpop.permute.xlu0 %7163 }
 0x65e   : > { %v7170_v37 = vsel %vm2258_vm6, %v7164_v2, %v7166_v19  ;;  %v6150_v39 = vld [vmem:[#allocation3 + $0x1c8] sm:$0xff] }
 0x65f   : > { %v7211_v7 = vpop.permute.xlu1 %7210  ;;  %v8162_v27 = vpack.c.bf16 %v6033_v51, %v6150_v39 }
 0x661   : > { %v7209_v59 = vpop.permute.xlu0 %7208  ;;  %8163 = vmatprep.subr.bf16.mxu0 %v8162_v27 }
 0x662   : > { %v7219_v21 = vsel %vm2445_vm1, %v7209_v59, %v7211_v7 }
 0x663   : > { %7227 = vst [vmem:[#allocation3 + $0x198] sm:$0xff] %v7219_v21  ;;  %v6019_v38 = vpop.permute.xlu1 %6018  ;;  %v8220_v61 = vpack.c.bf16 %v7219_v21, %v7170_v37 }
 0x664   : > { %v6030_v13 = vsel %vm3341_vm9, %v6019_v38, %v6021_v62 }
 0x665   : > { %6038 = vst [vmem:[#allocation3 + $0x1c0] sm:$0xc0] %v6030_v13  ;;  %v5989_v36 = vpop.permute.xlu0 %5988  ;;  %8221 = vmatprep.subr.bf16.mxu1 %v8220_v61 }
 0x666   : > { %v5996_v6 = vsel %vm3341_vm9, %v5989_v36, %v5991_v57  ;;  %v8293_v36 = vld [vmem:[%s11792_s3] sm:$0xff] }
 0x667   : > { %6004 = vst [vmem:[#allocation3 + $0x1c0] sm:$0x3f] %v5996_v6  ;;  %v7162_v44 = vpop.permute.xlu1 %7161 }
 0x668   : > { %v7169_v46 = vsel %vm2258_vm6, %v7162_v44, %v7164_v2 }
 0x669   : > { %v6025_v3 = vpop.permute.xlu0 %6024 }
 0x66a   : > { %v6032_v56 = vsel %vm3341_vm9, %v6025_v3, %v6027_v55 }
 0x66b   : > { %v6072_v0 = vpop.permute.xlu1 %6071 }
 0x66d   : > { %v7207_v12 = vpop.permute.xlu0 %7206 }
 0x66e   : > { %v7218_v48 = vsel %vm2445_vm1, %v7207_v12, %v7209_v59  ;;  %v6149_v35 = vld [vmem:[#allocation3 + $0x1c0] sm:$0xff] }
 0x66f   : > { %7226 = vst [vmem:[#allocation3 + $0x190] sm:$0xff] %v7218_v48  ;;  %v6078_v5 = vpop.permute.xlu1 %6077  ;;  %v8164_v34 = vpack.c.bf16 %v6032_v56, %v6149_v35  ;;  %v8222_v18 = vpack.c.bf16 %v7218_v48, %v7169_v46 }
 0x671   : > { %v6074_v33 = vpop.permute.xlu0 %6073  ;;  %8165 = vmatpush1.bf16.msra.mxu0 %v8164_v34  ;;  %8223 = vmatpush1.bf16.msra.mxu1 %v8222_v18 }
 0x672   : > { %v6082_v63 = vsel %vm2258_vm6, %v6072_v0, %v6074_v33 }
 0x673   : > { %v7215_v60 = vpop.permute.xlu1 %7214 }
 0x675   : > { %v6080_v42 = vpop.permute.xlu0 %6079 }
 0x676   : > { %v6084_v40 = vsel %vm2258_vm6, %v6078_v5, %v6080_v42 }
 0x677   : > { %6092 = vst [vmem:[#allocation3 + $0x1f8] sm:$0x3] %v6084_v40  ;;  %v7254_v43 = vpop.permute.xlu1 %7253 }
 0x679   : > { %v7217_v17 = vpop.permute.xlu0 %7216 }
 0x67a   : > { %v7221_v14 = vsel %vm2445_vm1, %v7215_v60, %v7217_v17 }
 0x67b   : > { %7229 = vst [vmem:[#allocation3 + $0x1a8] sm:$0x3] %v7221_v14  ;;  %v7260_v15 = vpop.permute.xlu1 %7259 }
 0x67d   : > { %v7256_v23 = vpop.permute.xlu0 %7255 }
 0x67e   : > { %v7264_v24 = vsel %vm3341_vm9, %v7254_v43, %v7256_v23  ;;  %v6156_v9 = vld [vmem:[#allocation3 + $0x1f8] sm:$0x3] }
 0x67f   : > { %7272 = vst [vmem:[#allocation3 + $0x1a8] sm:$0xfc] %v7264_v24  ;;  %v7299_v50 = vpop.permute.xlu1 %7298  ;;  %v8166_v53 = vpack.c.bf16 %v6156_v9, %v6082_v63 }
 0x681   : > { %v7262_v4 = vpop.permute.xlu0 %7261  ;;  %8168 = vmatprep.subr.msk.bf16.mxu0 %vm10506_vm14, %v8166_v53 }
 0x682   : > { %v7266_v16 = vsel %vm3341_vm9, %v7260_v15, %v7262_v4 }
 0x683   : > { %7274 = vst [vmem:[#allocation3 + $0x1b8] sm:$0xf] %v7266_v16  ;;  %v6070_v11 = vpop.permute.xlu1 %6069 }
 0x684   : > { %v6081_v39 = vsel %vm2258_vm6, %v6070_v11, %v6072_v0 }
 0x685   : > { %v7301_v58 = vpop.permute.xlu0 %7300 }
 0x686   : > { %v7309_v57 = vsel %vm3341_vm9, %v7299_v50, %v7301_v58  ;;  %v7475_v55 = vld [vmem:[#allocation3 + $0x1a8] sm:$0xff] }
 0x687   : > { %7317 = vst [vmem:[#allocation3 + $0x1b8] sm:$0xf0] %v7309_v57  ;;  %v7213_v25 = vpop.permute.xlu1 %7212 }
 0x688   : > { %v7220_v45 = vsel %vm2445_vm1, %v7213_v25, %v7215_v60 }
 0x689   : > { %7228 = vst [vmem:[#allocation3 + $0x1a0] sm:$0x3] %v7220_v45  ;;  %v6076_v62 = vpop.permute.xlu0 %6075 }
 0x68a   : > { %v6083_v30 = vsel %vm2258_vm6, %v6076_v62, %v6078_v5 }
 0x68b   : > { %6091 = vst [vmem:[#allocation3 + $0x1f0] sm:$0x3] %v6083_v30  ;;  %v7258_v28 = vpop.permute.xlu1 %7257 }
 0x68c   : > { %v7265_v54 = vsel %vm3341_vm9, %v7258_v28, %v7260_v15 }
 0x68d   : > { %7273 = vst [vmem:[#allocation3 + $0x1b0] sm:$0xf] %v7265_v54  ;;  %v7252_v1 = vpop.permute.xlu0 %7251 }
 0x68e   : > { %v7263_v10 = vsel %vm3341_vm9, %v7252_v1, %v7254_v43  ;;  %v7477_v19 = vld [vmem:[#allocation3 + $0x1b8] sm:$0xff] }
 0x68f   : > { %7271 = vst [vmem:[#allocation3 + $0x1a0] sm:$0xfc] %v7263_v10  ;;  %v7305_v2 = vpop.permute.xlu1 %7304  ;;  %v8224_v51 = vpack.c.bf16 %v7477_v19, %v7475_v55 }
 0x691   : > { %v7297_v37 = vpop.permute.xlu0 %7296  ;;  %8225 = vmatprep.subr.bf16.mxu1 %v8224_v51 }
 0x692   : > { %v7308_v7 = vsel %vm3341_vm9, %v7297_v37, %v7299_v50  ;;  %v6155_v27 = vld [vmem:[#allocation3 + $0x1f0] sm:$0x3] }
 0x693   : > { %7316 = vst [vmem:[#allocation3 + $0x1b0] sm:$0xf0] %v7308_v7  ;;  %v7350_v59 = vpop.permute.xlu1 %7349  ;;  %v8169_v21 = vpack.c.bf16 %v6155_v27, %v6081_v39 }
 0x695   : > { %v7307_v38 = vpop.permute.xlu0 %7306  ;;  %8171 = vmatpush1.bf16.msk.msra.mxu0 %vm10506_vm14, %v8169_v21 }
 0x696   : > { %v7311_v61 = vsel %vm3341_vm9, %v7305_v2, %v7307_v38  ;;  %v7474_v46 = vld [vmem:[#allocation3 + $0x1a0] sm:$0xff] }
 0x697   : > { %7319 = vst [vmem:[#allocation3 + $0x1c8] sm:$0x3f] %v7311_v61  ;;  %v7356_v13 = vpop.permute.xlu1 %7355 }
 0x698   : > { %6228 = vmatmul.mubr.f32.vlgmr.msra.gmra.mrb[38].mxu0 %v8293_v36 }
 0x699   : > { %v7352_v6 = vpop.permute.xlu0 %7351  ;;  %7805 = vmatprep.mubr.msk.f32.mxu0 %vm3513_vm3, %v11572_v49 }
 0x69a   : > { %v7360_v44 = vsel %vm2258_vm6, %v7350_v59, %v7352_v6  ;;  %v7476_v3 = vld [vmem:[#allocation3 + $0x1b0] sm:$0xff] }
 0x69b   : > { %7368 = vst [vmem:[#allocation3 + $0x1c8] sm:$0xc0] %v7360_v44  ;;  %v7303_v0 = vpop.permute.xlu1 %7302  ;;  %v8226_v12 = vpack.c.bf16 %v7476_v3, %v7474_v46 }
 0x69c   : > { %v7310_v56 = vsel %vm3341_vm9, %v7303_v0, %v7305_v2  ;;  %6234 = vmatmul.mubr.f32.gmra.mrb[40].mxu0 %v11577_v47 }
 0x69d   : > { %7318 = vst [vmem:[#allocation3 + $0x1c0] sm:$0x3f] %v7310_v56  ;;  %v7358_v48 = vpop.permute.xlu0 %7357  ;;  %8227 = vmatpush1.bf16.msra.mxu1 %v8226_v12  ;;  %7806 = vmatprep.mubr.msk.f32.mxu0 %vm3513_vm3, %v11596_v31 }
 0x69e   : > { %v7362_v35 = vsel %vm2258_vm6, %v7356_v13, %v7358_v48 }
 0x69f   : > { %7370 = vst [vmem:[#allocation3 + $0x1d8] sm:$0xff] %v7362_v35  ;;  %v7354_v5 = vpop.permute.xlu1 %7353 }
 0x6a0   : > { %v7361_v34 = vsel %vm2258_vm6, %v7354_v5, %v7356_v13  ;;  %6240 = vmatmul.mubr.f32.gmra.mrb[42].mxu0 %v11601_v29 }
 0x6a1   : > { %7369 = vst [vmem:[#allocation3 + $0x1d0] sm:$0xff] %v7361_v34  ;;  %v7348_v18 = vpop.permute.xlu0 %7347 }
 0x6a2   : > { %v7359_v33 = vsel %vm2258_vm6, %v7348_v18, %v7350_v59  ;;  %v7479_v60 = vld [vmem:[#allocation3 + $0x1c8] sm:$0xff] }
 0x6a3   : > { %7367 = vst [vmem:[#allocation3 + $0x1c0] sm:$0xc0] %v7359_v33  ;;  %v7403_v42 = vpop.permute.xlu1 %7402  ;;  %v8228_v40 = vpack.c.bf16 %v7362_v35, %v7479_v60 }
 0x6a5   : > { %v7401_v43 = vpop.permute.xlu0 %7400  ;;  %8229 = vmatprep.subr.bf16.mxu1 %v8228_v40 }
 0x6a6   : > { %v7411_v17 = vsel %vm2258_vm6, %v7401_v43, %v7403_v42 }
 0x6a7   : > { %7419 = vst [vmem:[#allocation3 + $0x1e8] sm:$0xff] %v7411_v17  ;;  %v7409_v14 = vpop.permute.xlu1 %7408 }
 0x6a9   : > { %v7407_v15 = vpop.permute.xlu0 %7406 }
 0x6aa   : > { %v7413_v23 = vsel %vm2258_vm6, %v7407_v15, %v7409_v14  ;;  %v7478_v63 = vld [vmem:[#allocation3 + $0x1c0] sm:$0xff] }
 0x6ab   : > { %7421 = vst [vmem:[#allocation3 + $0x1f8] sm:$0x3] %v7413_v23  ;;  %v7405_v24 = vpop.permute.xlu1 %7404  ;;  %v8230_v9 = vpack.c.bf16 %v7361_v34, %v7478_v63 }
 0x6ac   : > { %v7412_v50 = vsel %vm2258_vm6, %v7405_v24, %v7407_v15 }
 0x6ad   : > { %7420 = vst [vmem:[#allocation3 + $0x1f0] sm:$0x3] %v7412_v50  ;;  %v7399_v53 = vpop.permute.xlu0 %7398  ;;  %8231 = vmatpush1.bf16.msra.mxu1 %v8230_v9 }
 0x6ae   : > { %v7410_v4 = vsel %vm2258_vm6, %v7399_v53, %v7401_v43 }
 0x6af   : > { %7418 = vst [vmem:[#allocation3 + $0x1e0] sm:$0xff] %v7410_v4 }
 0x6b2   : > { %v7485_v16 = vld [vmem:[#allocation3 + $0x1f8] sm:$0x3] }
 0x6b3   : > { %v8232_v11 = vpack.c.bf16 %v7485_v16, %v7411_v17 }
 0x6b4   : > { %v7484_v58 = vld [vmem:[#allocation3 + $0x1f0] sm:$0x3] }
 0x6b5   : > { %8234 = vmatprep.subr.msk.bf16.mxu1 %vm10506_vm14, %v8232_v11  ;;  %v8235_v57 = vpack.c.bf16 %v7484_v58, %v7410_v4 }
 0x6b7   : > { %8237 = vmatpush1.bf16.msk.msra.mxu1 %vm10506_vm14, %v8235_v57 }
 0x6ba   : > { %7557 = vmatmul.mubr.f32.vlgmr.msra.gmra.mrb[38].mxu1 %v8293_v36 }
 0x6bb   : > { %7810 = vmatprep.mubr.msk.f32.mxu1 %vm3513_vm3, %v11572_v49 }
 0x6bc   : > { %v7589_v32 = vpop.permute.xlu1 %7588 }
 0x6be   : > { %7563 = vmatmul.mubr.f32.gmra.mrb[40].mxu1 %v11577_v47  ;;  %v7584_v6 = vpop.permute.xlu0 %7583 }
 0x6bf   : > { %7811 = vmatprep.mubr.msk.f32.mxu1 %vm3513_vm3, %v11596_v31 }
 0x6c2   : > { %7569 = vmatmul.mubr.f32.gmra.mrb[42].mxu1 %v11601_v29  ;;  %v7594_v18 = vpop.permute.xlu0 %7593 }
 0x6ce   : > { %v3601_v25 = vpop.f32.mrb[34].mxu0 }
 0x6cf   : > { %v3603_v45 = vpop.f32.mrb[35].mxu0  ;;  %v4924_v28 = vpop.f32.mrb[34].mxu1 }
 0x6d0   : > { %v4937_v54 = vmax.f32 %v3601_v25, %v4924_v28  ;;  %v4926_v1 = vpop.f32.mrb[35].mxu1 }
 0x6d1   : > { %v4938_v22 = vmax.f32 %v3603_v45, %v4926_v1 }
 0x6d4   : > { %v3607_v62 = vpop.f32.mrb[36].mxu0 }
 0x6d5   : > { %v3609_v30 = vpop.f32.mrb[37].mxu0  ;;  %v4930_v10 = vpop.f32.mrb[36].mxu1 }
 0x6d6   : > { %v4939_v55 = vmax.f32 %v3607_v62, %v4930_v10  ;;  %v4932_v19 = vpop.f32.mrb[37].mxu1 }
 0x6d7   : > { %v4940_v49 = vmax.f32 %v3609_v30, %v4932_v19 }
 0x76b   : > { %v6229_v2 = vpop.f32.mrb[38].mxu0 }
 0x76c   : > { %v6246_v47 = vmax.f32 %v4935_v8, %v6229_v2  ;;  %v6231_v31 = vpop.f32.mrb[39].mxu0 }
 0x76d   : > { %v6247_v29 = vmax.f32 %v4936_v52, %v6231_v31 }
 0x76f   : > { %v6235_v51 = vpop.f32.mrb[40].mxu0 }
 0x770   : > { %v6248_v37 = vmax.f32 %v4937_v54, %v6235_v51  ;;  %v6237_v39 = vpop.f32.mrb[41].mxu0 }
 0x771   : > { %v6249_v7 = vmax.f32 %v4938_v22, %v6237_v39 }
 0x773   : > { %v6241_v27 = vpop.f32.mrb[42].mxu0 }
 0x774   : > { %v6250_v59 = vmax.f32 %v4939_v55, %v6241_v27  ;;  %v6243_v21 = vpop.f32.mrb[43].mxu0 }
 0x775   : > { %v6251_v38 = vmax.f32 %v4940_v49, %v6243_v21 }
 0x78d   : > { %v7558_v61 = vpop.f32.mrb[38].mxu1 }
 0x78e   : > { %v7575_v13 = vmax.f32 %v6246_v47, %v7558_v61  ;;  %v7560_v36 = vpop.f32.mrb[39].mxu1 }
 0x78f   : > { %v7576_v20 = vmax.f32 %v6247_v29, %v7560_v36 }
 0x790   : > { %v7596_v41 = vadd.f32 %v7584_v6, %v7575_v13 }
 0x791   : > { %v7597_v8 = vadd.f32 %v7584_v6, %v7576_v20  ;;  %v7564_v26 = vpop.f32.mrb[40].mxu1 }
 0x792   : > { %v7602_v52 = vmax.f32 %v7596_v41, 0.0  ;;  %v7577_v44 = vmax.f32 %v6248_v37, %v7564_v26  ;;  %v7566_v46 = vpop.f32.mrb[41].mxu1 }
 0x793   : > { %v7603_v3 = vmax.f32 %v7597_v8, 0.0  ;;  %v7578_v0 = vmax.f32 %v6249_v7, %v7566_v46 }
 0x794   : > { %7608 = vst [vmem:[%s224_s20] sm:$0xff] %v7602_v52  ;;  %v7598_v12 = vadd.f32 %v7589_v32, %v7577_v44 }
 0x795   : > { %7609 = vst [vmem:[%s224_s20 + $0x8] sm:$0xff] %v7603_v3  ;;  %v7599_v56 = vadd.f32 %v7589_v32, %v7578_v0  ;;  %v7570_v48 = vpop.f32.mrb[42].mxu1 }
 0x796   : > { %v7604_v35 = vmax.f32 %v7598_v12, 0.0  ;;  %v7579_v5 = vmax.f32 %v6250_v59, %v7570_v48  ;;  %v7572_v34 = vpop.f32.mrb[43].mxu1 }
 0x797   : > { %v7605_v33 = vmax.f32 %v7599_v56, 0.0  ;;  %v7580_v60 = vmax.f32 %v6251_v38, %v7572_v34 }
 0x798   : > { %7610 = vst [vmem:[%s224_s20 + $0x10] sm:$0xff] %v7604_v35  ;;  %v7600_v42 = vadd.f32 %v7594_v18, %v7579_v5 }
 0x799   : > { %7611 = vst [vmem:[%s224_s20 + $0x18] sm:$0xff] %v7605_v33  ;;  %v7601_v40 = vadd.f32 %v7594_v18, %v7580_v60 }
 0x79a   : > { %v7606_v43 = vmax.f32 %v7600_v42, 0.0 }
 0x79b   : > { %v7607_v17 = vmax.f32 %v7601_v40, 0.0 }
 0x79c   : > { %7612 = vst [vmem:[%s224_s20 + $0x20] sm:$0xf] %v7606_v43 }
 0x79d   : > { %7613 = vst [vmem:[%s224_s20 + $0x28] sm:$0xf] %v7607_v17 }
 0x79e PF: > { %s15_s18 = sadd.s32 1, %s8300_s18  }
 0x79f   : > { %p12_p4 = scmp.ge.s32.totalorder %s15_s18, 4  }
 0x7a1   :  { %14 = sbr.rel (!%p12_p4) target bundleno = 1 (0x1), region = 71 }

</bundles_post_ra>
